<compile_context>
chip_gen: v5e
topology: v5e:2x2
jax: 0.10.0
libtpu: 0.0.40
codegen_flags: <defaults>
</compile_context>

<pallas_src>
import numpy as np
import jax
import jax.numpy as jnp
from jax.experimental import pallas as pl
from jax.experimental.pallas import tpu as pltpu  # noqa: F401  (kept for TPU-specific tweaks)

S = 4                                # streams: [ctx_fwd, ctx_bwd, rep_fwd, rep_bwd]
OUT_PAD = 128                        # lane-dense head width (sliced back to 1)
PERM_W1 = (0, 2, 1, 3, 4, 6, 5, 7)   # in-kernel hidden block order -> PyTorch hflat order


# --------------------------- Pallas kernel -----------------------------------

def _disc_fused_kernel(gi0_ref, whh0_ref, bhn0_ref,
                       a1_ref, b1_ref, bias1_ref, whh1_ref, bhn1_ref,
                       wh_ref, bh_ref, wo_ref, bo_ref, out_ref):
    """Whole Discriminator forward for the 4 batched streams.

    gi0_ref:   (T, B, 3*S*H)  layer-0 input projection, gate-major [r|z|n], biases folded in
    whh*_ref:  (S*H, 3*S*H)   block-diagonal hidden-to-hidden weights, gate-major columns
    bhn*_ref:  (1, S*H)       b_hh of the 'n' gate (must stay inside r * (...))
    a1/b1:     (S*H, 3*S*H)   layer-1 input projection applied to y0[t] / y0[T-1-t]
    bias1:     (1, 3*S*H)     layer-1 b_ih + b_hh(r,z), gate-major
    wh/bh:     (2*S*H, 128) / (1, 128)   gru2hidden (rows pre-permuted, cols zero-padded)
    wo/bo:     (128, 128) / (1, 128)     hidden2out (zero-padded)
    out_ref:   (B, 128)       sigmoid scores live in column 0
    """
    T, B, _ = gi0_ref.shape
    SH = whh0_ref.shape[0]

    # Hoist weight/bias reads (and bias broadcasts) out of the unrolled loops.
    whh0 = whh0_ref[...]
    whh1 = whh1_ref[...]
    a1 = a1_ref[...]
    b1 = b1_ref[...]
    bhn0 = jnp.broadcast_to(bhn0_ref[...], (B, SH))
    bhn1 = jnp.broadcast_to(bhn1_ref[...], (B, SH))
    bias1 = jnp.broadcast_to(bias1_ref[...], (B, 3 * SH))

    def step(h, gi_t, whh, bhn):
        gh = jnp.dot(h, whh, preferred_element_type=jnp.float32)      # (B, 3*S*H)
        r = jax.nn.sigmoid(gi_t[:, :SH] + gh[:, :SH])
        z = jax.nn.sigmoid(gi_t[:, SH:2 * SH] + gh[:, SH:2 * SH])
        n = jnp.tanh(gi_t[:, 2 * SH:] + r * (gh[:, 2 * SH:] + bhn))
        return (1.0 - z) * n + z * h

    # ---- layer 0 (T small & static -> full unroll; PyTorch init_hidden == zeros) ----
    h0 = jnp.zeros((B, SH), jnp.float32)
    ys = []
    for t in range(T):
        h0 = step(h0, gi0_ref[t], whh0, bhn0)
        ys.append(h0)

    # ---- layer 1: input projection computed in-kernel from layer-0's outputs.
    # gi1_t only depends on ys -> the LLO scheduler overlaps these matmuls with the serial
    # recurrence chain; no value reshapes / sublane slices are needed anywhere.
    h1 = jnp.zeros((B, SH), jnp.float32)
    for t in range(T):
        gi1_t = (jnp.dot(ys[t], a1, preferred_element_type=jnp.float32)
                 + jnp.dot(ys[T - 1 - t], b1, preferred_element_type=jnp.float32)
                 + bias1)
        h1 = step(h1, gi1_t, whh1, bhn1)

    # ---- head: gru2hidden -> tanh -> hidden2out -> sigmoid (one K=256 + one K=128 matmul) --
    hflat = jnp.concatenate([h0, h1], axis=-1)                         # (B, 2*S*H)
    zh = jnp.tanh(jnp.dot(hflat, wh_ref[...], preferred_element_type=jnp.float32)
                  + bh_ref[...])
    # TODO(synk): nn.Dropout(p=0.2) (between GRU layers and after tanh) is identity at inference.
    out_ref[...] = jax.nn.sigmoid(
        jnp.dot(zh, wo_ref[...], preferred_element_type=jnp.float32) + bo_ref[...])


# --------------------------- Pallas wrapper -----------------------------------

def _full_spec(x):
    zeros = (0,) * x.ndim
    return pl.BlockSpec(x.shape, lambda: zeros)


def discriminator_forward(prep, context, reply):
    """Forward pass using prepared (re-laid-out) params; returns (B, 1) sigmoid scores."""
    emb = prep["embedding"]

    # ---- XLA glue: embedding gather + hoisted, gate-major layer-0 input projection ----
    xc = jnp.transpose(emb[context], (1, 0, 2)).astype(jnp.float32)    # (T, B, E)
    xr = jnp.transpose(emb[reply], (1, 0, 2)).astype(jnp.float32)
    x0 = jnp.concatenate([xc, xc[::-1], xr, xr[::-1]], axis=-1)        # (T, B, S*E)
    T, B, SE = x0.shape
    gi0 = (jnp.dot(x0.reshape(T * B, SE), prep["wih0_bd"],
                   precision=jax.lax.Precision.HIGHEST)
           .reshape(T, B, -1) + prep["bias0"])                         # (T, B, 3*S*H)

    args = (gi0, prep["whh0_bd"], prep["bhn0"],
            prep["a1"], prep["b1w"], prep["bias1"], prep["whh1_bd"], prep["bhn1"],
            prep["w1p"], prep["b1h"], prep["w2p"], prep["b2p"])
    out = pl.pallas_call(
        _disc_fused_kernel,
        out_shape=jax.ShapeDtypeStruct((B, OUT_PAD), jnp.float32),
        in_specs=[_full_spec(a) for a in args],
        out_specs=pl.BlockSpec((B, OUT_PAD), lambda: (0, 0)),
    )(*args)
    return out[:, :1]                                                  # (B, 1)


# --------------------------- One-time param re-layout -------------------------

def prepare_params(params):
    """Re-lay the PyTorch-style params into the kernel's fused layouts (runs once, eagerly)."""
    H = int(params["l0"]["whh"].shape[1])
    SH = S * H
    Hh = int(params["w1"].shape[1])

    def place(dst, row0, nrows, s, chunk):
        # chunk: (nrows, 3H) with per-stream gate columns [r|z|n] -> gate-major stream-s cols.
        for g in range(3):
            dst[row0:row0 + nrows, g * SH + s * H:g * SH + (s + 1) * H] = \
                chunk[:, g * H:(g + 1) * H]

    def block_diag(w):
        # w: (S, in_dim, 3H) -> (S*in_dim, 3*S*H) block-diagonal, gate-major columns.
        w = np.asarray(w, np.float32)
        in_dim = w.shape[1]
        out = np.zeros((S * in_dim, 3 * SH), np.float32)
        for s in range(S):
            place(out, s * in_dim, in_dim, s, w[s])
        return out

    def layer_biases(g):
        bih = np.asarray(g["bih"], np.float32)[:, 0, :]                # (S, 3H)
        bhh = np.asarray(g["bhh"], np.float32)[:, 0, :]
        bias = bih.copy()
        bias[:, :2 * H] += bhh[:, :2 * H]                              # fold b_hh of r/z into gi
        gate_major = np.transpose(bias.reshape(S, 3, H), (1, 0, 2)).reshape(1, 3 * SH)
        bhn = bhh[:, 2 * H:].reshape(1, SH)                            # b_hh of n stays separate
        return gate_major, bhn

    g0, g1 = params["l0"], params["l1"]
    bias0, bhn0 = layer_biases(g0)
    bias1, bhn1 = layer_biases(g1)

    # Layer-1 input projection split into A1 (applied to y0[t]) and B1 (applied to y0[T-1-t]).
    # y0[t] lane blocks: [ctx_f, ctx_b, rep_f, rep_b]; wih1[s] rows: [fwd-half(H), bwd-half(H)].
    wih1 = np.asarray(g1["wih"], np.float32)                           # (S, 2H, 3H)
    a1 = np.zeros((SH, 3 * SH), np.float32)
    b1w = np.zeros((SH, 3 * SH), np.float32)
    fwd_map = [(0, 0), (1, 1), (2, 0), (3, 1)]   # y0[t]     block p -> (target stream, half)
    bwd_map = [(1, 0), (0, 1), (3, 0), (2, 1)]   # y0[T-1-t] block p -> (target stream, half)
    for p in range(S):
        s, half = fwd_map[p]
        place(a1, p * H, H, s, wih1[s][half * H:(half + 1) * H, :])
        s, half = bwd_map[p]
        place(b1w, p * H, H, s, wih1[s][half * H:(half + 1) * H, :])

    # Head: permute gru2hidden row blocks to the in-kernel [h0 | h1] block order and zero-pad
    # to lane-dense widths (padding is exact: tanh(0+0)=0 feeds all-zero weight rows).
    w1p = np.asarray(params["w1"], np.float32).reshape(2 * S, H, Hh)[list(PERM_W1)]
    w1p = np.pad(w1p.reshape(2 * SH, Hh), ((0, 0), (0, OUT_PAD - Hh)))
    b1h = np.pad(np.asarray(params["b1"], np.float32), ((0, 0), (0, OUT_PAD - Hh)))
    w2p = np.pad(np.asarray(params["w2"], np.float32),
                 ((0, OUT_PAD - Hh), (0, OUT_PAD - params["w2"].shape[1])))
    b2p = np.pad(np.asarray(params["b2"], np.float32),
                 ((0, 0), (0, OUT_PAD - params["b2"].shape[1])))

    j = jnp.asarray
    return {
        "embedding": params["embedding"],
        "wih0_bd": j(block_diag(g0["wih"])), "whh0_bd": j(block_diag(g0["whh"])),
        "bias0": j(bias0), "bhn0": j(bhn0),
        "a1": j(a1), "b1w": j(b1w), "bias1": j(bias1),
        "whh1_bd": j(block_diag(g1["whh"])), "bhn1": j(bhn1),
        "w1p": j(w1p), "b1h": j(b1h), "w2p": j(w2p), "b2p": j(b2p),
    }


# --------------------------- Reference (pure JAX) -----------------------------

def reference_forward(params, context, reply):
    """Faithful reimplementation of the PyTorch module forward (dropout == identity)."""
    emb = params["embedding"]
    H = params["l0"]["whh"].shape[1]

    def run_dir(x, layer, s):
        g = params[layer]
        wih, whh, bih, bhh = g["wih"][s], g["whh"][s], g["bih"][s], g["bhh"][s]

        def step(h, xt):
            gi = xt @ wih + bih
            gh = h @ whh + bhh
            r = jax.nn.sigmoid(gi[:, :H] + gh[:, :H])
            z = jax.nn.sigmoid(gi[:, H:2 * H] + gh[:, H:2 * H])
            n = jnp.tanh(gi[:, 2 * H:] + r * gh[:, 2 * H:])
            hn = (1.0 - z) * n + z * h
            return hn, hn

        h0 = jnp.zeros((x.shape[1], H), jnp.float32)
        hf, ys = jax.lax.scan(step, h0, x)
        return ys, hf

    def encode(tokens, sf, sb):
        x = jnp.transpose(emb[tokens], (1, 0, 2)).astype(jnp.float32)
        y0f, h0f = run_dir(x, "l0", sf)
        y0br, h0b = run_dir(x[::-1], "l0", sb)
        y0 = jnp.concatenate([y0f, y0br[::-1]], axis=-1)
        _, h1f = run_dir(y0, "l1", sf)
        _, h1b = run_dir(y0[::-1], "l1", sb)
        return jnp.stack([h0f, h0b, h1f, h1b], axis=1)                # (B, 4, H)

    hc = encode(context, 0, 1)
    hr = encode(reply, 2, 3)
    hidden = jnp.concatenate([hc, hr], axis=2)                        # (B, 4, 2H)
    hflat = hidden.reshape(hidden.shape[0], -1)                       # (B, 8H)
    z = jnp.tanh(hflat @ params["w1"] + params["b1"])
    return jax.nn.sigmoid(z @ params["w2"] + params["b2"])


# --------------------------- Param init --------------------------------------

def init_params(key, vocab, E, H):
    ks = iter(jax.random.split(key, 24))
    s = 1.0 / (H ** 0.5)

    def u(shape):
        return jax.random.uniform(next(ks), shape, jnp.float32, -s, s)

    def layer(in_dim):
        # 4 streams: [ctx_fwd, ctx_bwd, rep_fwd, rep_bwd]; gates (r, z, n) fused on last axis
        return {"wih": u((4, in_dim, 3 * H)), "whh": u((4, H, 3 * H)),
                "bih": u((4, 1, 3 * H)), "bhh": u((4, 1, 3 * H))}

    return {
        "embedding": jax.random.normal(next(ks), (vocab, E), jnp.float32),
        "l0": layer(E),
        "l1": layer(2 * H),
        "w1": u((2 * 4 * H, H)),    # gru2hidden, stored transposed (in_features, out)
        "b1": u((1, H)),
        "w2": u((H, 1)),            # hidden2out, stored transposed
        "b2": u((1, 1)),
    }


# --------------------------- Main ---------------------------------------------

if __name__ == "__main__":
    B, T, E, H, V = 2, 8, 16, 32, 32   # batch, max_seq_len, embedding_dim, hidden_dim, vocab

    key = jax.random.PRNGKey(0)
    kp, kc, kr = jax.random.split(key, 3)
    params = init_params(kp, V, E, H)
    prep = prepare_params(params)       # one-time param re-layout (NOT per call)
    context = jax.random.randint(kc, (B, T), 0, V, dtype=jnp.int32)
    reply = jax.random.randint(kr, (B, T), 0, V, dtype=jnp.int32)

    out = jax.jit(discriminator_forward)(prep, context, reply)
    out = jax.block_until_ready(out)
    assert out.shape == (B, 1), out.shape

    ref = reference_forward(params, context, reply)
    np.testing.assert_allclose(np.asarray(out), np.asarray(ref), rtol=2e-3, atol=2e-3)

    print("KERNEL_OK")
</pallas_src>

<mosaic_0001>
module attributes {stable_mosaic.version = 11 : i64} {
  func.func @_disc_fused_kernel(%arg0: memref<8x2x384xf32, #tpu.memory_space<vmem>>, %arg1: memref<128x384xf32, #tpu.memory_space<vmem>>, %arg2: memref<1x128xf32, #tpu.memory_space<vmem>>, %arg3: memref<128x384xf32, #tpu.memory_space<vmem>>, %arg4: memref<128x384xf32, #tpu.memory_space<vmem>>, %arg5: memref<1x384xf32, #tpu.memory_space<vmem>>, %arg6: memref<128x384xf32, #tpu.memory_space<vmem>>, %arg7: memref<1x128xf32, #tpu.memory_space<vmem>>, %arg8: memref<256x128xf32, #tpu.memory_space<vmem>>, %arg9: memref<1x128xf32, #tpu.memory_space<vmem>>, %arg10: memref<128x128xf32, #tpu.memory_space<vmem>>, %arg11: memref<1x128xf32, #tpu.memory_space<vmem>>, %arg12: memref<2x128xf32, #tpu.memory_space<vmem>>) attributes {dimension_semantics = [], scalar_prefetch = 0 : i64, scratch_operands = 0 : i64, tpu.core_type = #tpu.core_type<tc>} {
    %c0 = arith.constant 0 : index
    %c0_0 = arith.constant 0 : index
    %0 = vector.load %arg1[%c0, %c0_0] : memref<128x384xf32, #tpu.memory_space<vmem>>, vector<128x384xf32>
    %c0_1 = arith.constant 0 : index
    %c0_2 = arith.constant 0 : index
    %1 = vector.load %arg6[%c0_1, %c0_2] : memref<128x384xf32, #tpu.memory_space<vmem>>, vector<128x384xf32>
    %c0_3 = arith.constant 0 : index
    %c0_4 = arith.constant 0 : index
    %2 = vector.load %arg3[%c0_3, %c0_4] : memref<128x384xf32, #tpu.memory_space<vmem>>, vector<128x384xf32>
    %c0_5 = arith.constant 0 : index
    %c0_6 = arith.constant 0 : index
    %3 = vector.load %arg4[%c0_5, %c0_6] : memref<128x384xf32, #tpu.memory_space<vmem>>, vector<128x384xf32>
    %c0_7 = arith.constant 0 : index
    %c0_8 = arith.constant 0 : index
    %4 = vector.load %arg2[%c0_7, %c0_8] : memref<1x128xf32, #tpu.memory_space<vmem>>, vector<1x128xf32>
    %5 = vector.shape_cast %4 : vector<1x128xf32> to vector<1x128xf32>
    %6 = vector.broadcast %5 : vector<1x128xf32> to vector<2x128xf32>
    %c0_9 = arith.constant 0 : index
    %c0_10 = arith.constant 0 : index
    %7 = vector.load %arg7[%c0_9, %c0_10] : memref<1x128xf32, #tpu.memory_space<vmem>>, vector<1x128xf32>
    %8 = vector.shape_cast %7 : vector<1x128xf32> to vector<1x128xf32>
    %9 = vector.broadcast %8 : vector<1x128xf32> to vector<2x128xf32>
    %c0_11 = arith.constant 0 : index
    %c0_12 = arith.constant 0 : index
    %10 = vector.load %arg5[%c0_11, %c0_12] : memref<1x384xf32, #tpu.memory_space<vmem>>, vector<1x384xf32>
    %11 = vector.shape_cast %10 : vector<1x384xf32> to vector<1x384xf32>
    %12 = vector.broadcast %11 : vector<1x384xf32> to vector<2x384xf32>
    %cst = arith.constant 0.000000e+00 : f32
    %13 = vector.broadcast %cst : f32 to vector<2x128xf32>
    %c0_13 = arith.constant 0 : index
    %c0_14 = arith.constant 0 : index
    %c0_15 = arith.constant 0 : index
    %14 = vector.load %arg0[%c0_13, %c0_14, %c0_15] : memref<8x2x384xf32, #tpu.memory_space<vmem>>, vector<1x2x384xf32>
    %15 = vector.shape_cast %14 : vector<1x2x384xf32> to vector<2x384xf32>
    %cst_16 = arith.constant dense<0.000000e+00> : vector<2x384xf32>
    %16 = tpu.matmul %13, %0, %cst_16 {dimension_numbers = #tpu.dot_dimension_numbers<[1], [0], [0], [1], [0, 0, 1, 1], [], []>} : vector<2x128xf32>, vector<128x384xf32>, vector<2x384xf32> -> vector<2x384xf32>
    %17 = vector.extract_strided_slice %15 {offsets = [0, 0], sizes = [2, 128], strides = [1, 1]} : vector<2x384xf32> to vector<2x128xf32>
    %18 = vector.extract_strided_slice %16 {offsets = [0, 0], sizes = [2, 128], strides = [1, 1]} : vector<2x384xf32> to vector<2x128xf32>
    %19 = arith.addf %17, %18 : vector<2x128xf32>
    %20 = arith.negf %19 : vector<2x128xf32>
    %21 = math.exp %20 : vector<2x128xf32>
    %cst_17 = arith.constant 1.000000e+00 : f32
    %22 = vector.broadcast %cst_17 : f32 to vector<2x128xf32>
    %23 = arith.addf %22, %21 : vector<2x128xf32>
    %24 = arith.divf %22, %23 : vector<2x128xf32>
    %25 = vector.extract_strided_slice %15 {offsets = [0, 128], sizes = [2, 128], strides = [1, 1]} : vector<2x384xf32> to vector<2x128xf32>
    %26 = vector.extract_strided_slice %16 {offsets = [0, 128], sizes = [2, 128], strides = [1, 1]} : vector<2x384xf32> to vector<2x128xf32>
    %27 = arith.addf %25, %26 : vector<2x128xf32>
    %28 = arith.negf %27 : vector<2x128xf32>
    %29 = math.exp %28 : vector<2x128xf32>
    %cst_18 = arith.constant 1.000000e+00 : f32
    %30 = vector.broadcast %cst_18 : f32 to vector<2x128xf32>
    %31 = arith.addf %30, %29 : vector<2x128xf32>
    %32 = arith.divf %30, %31 : vector<2x128xf32>
    %33 = vector.extract_strided_slice %15 {offsets = [0, 256], sizes = [2, 128], strides = [1, 1]} : vector<2x384xf32> to vector<2x128xf32>
    %34 = vector.extract_strided_slice %16 {offsets = [0, 256], sizes = [2, 128], strides = [1, 1]} : vector<2x384xf32> to vector<2x128xf32>
    %35 = arith.addf %34, %6 : vector<2x128xf32>
    %36 = arith.mulf %24, %35 : vector<2x128xf32>
    %37 = arith.addf %33, %36 : vector<2x128xf32>
    %38 = math.tanh %37 : vector<2x128xf32>
    %cst_19 = arith.constant 1.000000e+00 : f32
    %39 = vector.broadcast %cst_19 : f32 to vector<2x128xf32>
    %40 = arith.subf %39, %32 : vector<2x128xf32>
    %41 = arith.mulf %40, %38 : vector<2x128xf32>
    %42 = arith.mulf %32, %13 : vector<2x128xf32>
    %43 = arith.addf %41, %42 : vector<2x128xf32>
    %c1 = arith.constant 1 : index
    %c0_20 = arith.constant 0 : index
    %c0_21 = arith.constant 0 : index
    %44 = vector.load %arg0[%c1, %c0_20, %c0_21] : memref<8x2x384xf32, #tpu.memory_space<vmem>>, vector<1x2x384xf32>
    %45 = vector.shape_cast %44 : vector<1x2x384xf32> to vector<2x384xf32>
    %cst_22 = arith.constant dense<0.000000e+00> : vector<2x384xf32>
    %46 = tpu.matmul %43, %0, %cst_22 {dimension_numbers = #tpu.dot_dimension_numbers<[1], [0], [0], [1], [0, 0, 1, 1], [], []>} : vector<2x128xf32>, vector<128x384xf32>, vector<2x384xf32> -> vector<2x384xf32>
    %47 = vector.extract_strided_slice %45 {offsets = [0, 0], sizes = [2, 128], strides = [1, 1]} : vector<2x384xf32> to vector<2x128xf32>
    %48 = vector.extract_strided_slice %46 {offsets = [0, 0], sizes = [2, 128], strides = [1, 1]} : vector<2x384xf32> to vector<2x128xf32>
    %49 = arith.addf %47, %48 : vector<2x128xf32>
    %50 = arith.negf %49 : vector<2x128xf32>
    %51 = math.exp %50 : vector<2x128xf32>
    %cst_23 = arith.constant 1.000000e+00 : f32
    %52 = vector.broadcast %cst_23 : f32 to vector<2x128xf32>
    %53 = arith.addf %52, %51 : vector<2x128xf32>
    %54 = arith.divf %52, %53 : vector<2x128xf32>
    %55 = vector.extract_strided_slice %45 {offsets = [0, 128], sizes = [2, 128], strides = [1, 1]} : vector<2x384xf32> to vector<2x128xf32>
    %56 = vector.extract_strided_slice %46 {offsets = [0, 128], sizes = [2, 128], strides = [1, 1]} : vector<2x384xf32> to vector<2x128xf32>
    %57 = arith.addf %55, %56 : vector<2x128xf32>
    %58 = arith.negf %57 : vector<2x128xf32>
    %59 = math.exp %58 : vector<2x128xf32>
    %cst_24 = arith.constant 1.000000e+00 : f32
    %60 = vector.broadcast %cst_24 : f32 to vector<2x128xf32>
    %61 = arith.addf %60, %59 : vector<2x128xf32>
    %62 = arith.divf %60, %61 : vector<2x128xf32>
    %63 = vector.extract_strided_slice %45 {offsets = [0, 256], sizes = [2, 128], strides = [1, 1]} : vector<2x384xf32> to vector<2x128xf32>
    %64 = vector.extract_strided_slice %46 {offsets = [0, 256], sizes = [2, 128], strides = [1, 1]} : vector<2x384xf32> to vector<2x128xf32>
    %65 = arith.addf %64, %6 : vector<2x128xf32>
    %66 = arith.mulf %54, %65 : vector<2x128xf32>
    %67 = arith.addf %63, %66 : vector<2x128xf32>
    %68 = math.tanh %67 : vector<2x128xf32>
    %cst_25 = arith.constant 1.000000e+00 : f32
    %69 = vector.broadcast %cst_25 : f32 to vector<2x128xf32>
    %70 = arith.subf %69, %62 : vector<2x128xf32>
    %71 = arith.mulf %70, %68 : vector<2x128xf32>
    %72 = arith.mulf %62, %43 : vector<2x128xf32>
    %73 = arith.addf %71, %72 : vector<2x128xf32>
    %c2 = arith.constant 2 : index
    %c0_26 = arith.constant 0 : index
    %c0_27 = arith.constant 0 : index
    %74 = vector.load %arg0[%c2, %c0_26, %c0_27] : memref<8x2x384xf32, #tpu.memory_space<vmem>>, vector<1x2x384xf32>
    %75 = vector.shape_cast %74 : vector<1x2x384xf32> to vector<2x384xf32>
    %cst_28 = arith.constant dense<0.000000e+00> : vector<2x384xf32>
    %76 = tpu.matmul %73, %0, %cst_28 {dimension_numbers = #tpu.dot_dimension_numbers<[1], [0], [0], [1], [0, 0, 1, 1], [], []>} : vector<2x128xf32>, vector<128x384xf32>, vector<2x384xf32> -> vector<2x384xf32>
    %77 = vector.extract_strided_slice %75 {offsets = [0, 0], sizes = [2, 128], strides = [1, 1]} : vector<2x384xf32> to vector<2x128xf32>
    %78 = vector.extract_strided_slice %76 {offsets = [0, 0], sizes = [2, 128], strides = [1, 1]} : vector<2x384xf32> to vector<2x128xf32>
    %79 = arith.addf %77, %78 : vector<2x128xf32>
    %80 = arith.negf %79 : vector<2x128xf32>
    %81 = math.exp %80 : vector<2x128xf32>
    %cst_29 = arith.constant 1.000000e+00 : f32
    %82 = vector.broadcast %cst_29 : f32 to vector<2x128xf32>
    %83 = arith.addf %82, %81 : vector<2x128xf32>
    %84 = arith.divf %82, %83 : vector<2x128xf32>
    %85 = vector.extract_strided_slice %75 {offsets = [0, 128], sizes = [2, 128], strides = [1, 1]} : vector<2x384xf32> to vector<2x128xf32>
    %86 = vector.extract_strided_slice %76 {offsets = [0, 128], sizes = [2, 128], strides = [1, 1]} : vector<2x384xf32> to vector<2x128xf32>
    %87 = arith.addf %85, %86 : vector<2x128xf32>
    %88 = arith.negf %87 : vector<2x128xf32>
    %89 = math.exp %88 : vector<2x128xf32>
    %cst_30 = arith.constant 1.000000e+00 : f32
    %90 = vector.broadcast %cst_30 : f32 to vector<2x128xf32>
    %91 = arith.addf %90, %89 : vector<2x128xf32>
    %92 = arith.divf %90, %91 : vector<2x128xf32>
    %93 = vector.extract_strided_slice %75 {offsets = [0, 256], sizes = [2, 128], strides = [1, 1]} : vector<2x384xf32> to vector<2x128xf32>
    %94 = vector.extract_strided_slice %76 {offsets = [0, 256], sizes = [2, 128], strides = [1, 1]} : vector<2x384xf32> to vector<2x128xf32>
    %95 = arith.addf %94, %6 : vector<2x128xf32>
    %96 = arith.mulf %84, %95 : vector<2x128xf32>
    %97 = arith.addf %93, %96 : vector<2x128xf32>
    %98 = math.tanh %97 : vector<2x128xf32>
    %cst_31 = arith.constant 1.000000e+00 : f32
    %99 = vector.broadcast %cst_31 : f32 to vector<2x128xf32>
    %100 = arith.subf %99, %92 : vector<2x128xf32>
    %101 = arith.mulf %100, %98 : vector<2x128xf32>
    %102 = arith.mulf %92, %73 : vector<2x128xf32>
    %103 = arith.addf %101, %102 : vector<2x128xf32>
    %c3 = arith.constant 3 : index
    %c0_32 = arith.constant 0 : index
    %c0_33 = arith.constant 0 : index
    %104 = vector.load %arg0[%c3, %c0_32, %c0_33] : memref<8x2x384xf32, #tpu.memory_space<vmem>>, vector<1x2x384xf32>
    %105 = vector.shape_cast %104 : vector<1x2x384xf32> to vector<2x384xf32>
    %cst_34 = arith.constant dense<0.000000e+00> : vector<2x384xf32>
    %106 = tpu.matmul %103, %0, %cst_34 {dimension_numbers = #tpu.dot_dimension_numbers<[1], [0], [0], [1], [0, 0, 1, 1], [], []>} : vector<2x128xf32>, vector<128x384xf32>, vector<2x384xf32> -> vector<2x384xf32>
    %107 = vector.extract_strided_slice %105 {offsets = [0, 0], sizes = [2, 128], strides = [1, 1]} : vector<2x384xf32> to vector<2x128xf32>
    %108 = vector.extract_strided_slice %106 {offsets = [0, 0], sizes = [2, 128], strides = [1, 1]} : vector<2x384xf32> to vector<2x128xf32>
    %109 = arith.addf %107, %108 : vector<2x128xf32>
    %110 = arith.negf %109 : vector<2x128xf32>
    %111 = math.exp %110 : vector<2x128xf32>
    %cst_35 = arith.constant 1.000000e+00 : f32
    %112 = vector.broadcast %cst_35 : f32 to vector<2x128xf32>
    %113 = arith.addf %112, %111 : vector<2x128xf32>
    %114 = arith.divf %112, %113 : vector<2x128xf32>
    %115 = vector.extract_strided_slice %105 {offsets = [0, 128], sizes = [2, 128], strides = [1, 1]} : vector<2x384xf32> to vector<2x128xf32>
    %116 = vector.extract_strided_slice %106 {offsets = [0, 128], sizes = [2, 128], strides = [1, 1]} : vector<2x384xf32> to vector<2x128xf32>
    %117 = arith.addf %115, %116 : vector<2x128xf32>
    %118 = arith.negf %117 : vector<2x128xf32>
    %119 = math.exp %118 : vector<2x128xf32>
    %cst_36 = arith.constant 1.000000e+00 : f32
    %120 = vector.broadcast %cst_36 : f32 to vector<2x128xf32>
    %121 = arith.addf %120, %119 : vector<2x128xf32>
    %122 = arith.divf %120, %121 : vector<2x128xf32>
    %123 = vector.extract_strided_slice %105 {offsets = [0, 256], sizes = [2, 128], strides = [1, 1]} : vector<2x384xf32> to vector<2x128xf32>
    %124 = vector.extract_strided_slice %106 {offsets = [0, 256], sizes = [2, 128], strides = [1, 1]} : vector<2x384xf32> to vector<2x128xf32>
    %125 = arith.addf %124, %6 : vector<2x128xf32>
    %126 = arith.mulf %114, %125 : vector<2x128xf32>
    %127 = arith.addf %123, %126 : vector<2x128xf32>
    %128 = math.tanh %127 : vector<2x128xf32>
    %cst_37 = arith.constant 1.000000e+00 : f32
    %129 = vector.broadcast %cst_37 : f32 to vector<2x128xf32>
    %130 = arith.subf %129, %122 : vector<2x128xf32>
    %131 = arith.mulf %130, %128 : vector<2x128xf32>
    %132 = arith.mulf %122, %103 : vector<2x128xf32>
    %133 = arith.addf %131, %132 : vector<2x128xf32>
    %c4 = arith.constant 4 : index
    %c0_38 = arith.constant 0 : index
    %c0_39 = arith.constant 0 : index
    %134 = vector.load %arg0[%c4, %c0_38, %c0_39] : memref<8x2x384xf32, #tpu.memory_space<vmem>>, vector<1x2x384xf32>
    %135 = vector.shape_cast %134 : vector<1x2x384xf32> to vector<2x384xf32>
    %cst_40 = arith.constant dense<0.000000e+00> : vector<2x384xf32>
    %136 = tpu.matmul %133, %0, %cst_40 {dimension_numbers = #tpu.dot_dimension_numbers<[1], [0], [0], [1], [0, 0, 1, 1], [], []>} : vector<2x128xf32>, vector<128x384xf32>, vector<2x384xf32> -> vector<2x384xf32>
    %137 = vector.extract_strided_slice %135 {offsets = [0, 0], sizes = [2, 128], strides = [1, 1]} : vector<2x384xf32> to vector<2x128xf32>
    %138 = vector.extract_strided_slice %136 {offsets = [0, 0], sizes = [2, 128], strides = [1, 1]} : vector<2x384xf32> to vector<2x128xf32>
    %139 = arith.addf %137, %138 : vector<2x128xf32>
    %140 = arith.negf %139 : vector<2x128xf32>
    %141 = math.exp %140 : vector<2x128xf32>
    %cst_41 = arith.constant 1.000000e+00 : f32
    %142 = vector.broadcast %cst_41 : f32 to vector<2x128xf32>
    %143 = arith.addf %142, %141 : vector<2x128xf32>
    %144 = arith.divf %142, %143 : vector<2x128xf32>
    %145 = vector.extract_strided_slice %135 {offsets = [0, 128], sizes = [2, 128], strides = [1, 1]} : vector<2x384xf32> to vector<2x128xf32>
    %146 = vector.extract_strided_slice %136 {offsets = [0, 128], sizes = [2, 128], strides = [1, 1]} : vector<2x384xf32> to vector<2x128xf32>
    %147 = arith.addf %145, %146 : vector<2x128xf32>
    %148 = arith.negf %147 : vector<2x128xf32>
    %149 = math.exp %148 : vector<2x128xf32>
    %cst_42 = arith.constant 1.000000e+00 : f32
    %150 = vector.broadcast %cst_42 : f32 to vector<2x128xf32>
    %151 = arith.addf %150, %149 : vector<2x128xf32>
    %152 = arith.divf %150, %151 : vector<2x128xf32>
    %153 = vector.extract_strided_slice %135 {offsets = [0, 256], sizes = [2, 128], strides = [1, 1]} : vector<2x384xf32> to vector<2x128xf32>
    %154 = vector.extract_strided_slice %136 {offsets = [0, 256], sizes = [2, 128], strides = [1, 1]} : vector<2x384xf32> to vector<2x128xf32>
    %155 = arith.addf %154, %6 : vector<2x128xf32>
    %156 = arith.mulf %144, %155 : vector<2x128xf32>
    %157 = arith.addf %153, %156 : vector<2x128xf32>
    %158 = math.tanh %157 : vector<2x128xf32>
    %cst_43 = arith.constant 1.000000e+00 : f32
    %159 = vector.broadcast %cst_43 : f32 to vector<2x128xf32>
    %160 = arith.subf %159, %152 : vector<2x128xf32>
    %161 = arith.mulf %160, %158 : vector<2x128xf32>
    %162 = arith.mulf %152, %133 : vector<2x128xf32>
    %163 = arith.addf %161, %162 : vector<2x128xf32>
    %c5 = arith.constant 5 : index
    %c0_44 = arith.constant 0 : index
    %c0_45 = arith.constant 0 : index
    %164 = vector.load %arg0[%c5, %c0_44, %c0_45] : memref<8x2x384xf32, #tpu.memory_space<vmem>>, vector<1x2x384xf32>
    %165 = vector.shape_cast %164 : vector<1x2x384xf32> to vector<2x384xf32>
    %cst_46 = arith.constant dense<0.000000e+00> : vector<2x384xf32>
    %166 = tpu.matmul %163, %0, %cst_46 {dimension_numbers = #tpu.dot_dimension_numbers<[1], [0], [0], [1], [0, 0, 1, 1], [], []>} : vector<2x128xf32>, vector<128x384xf32>, vector<2x384xf32> -> vector<2x384xf32>
    %167 = vector.extract_strided_slice %165 {offsets = [0, 0], sizes = [2, 128], strides = [1, 1]} : vector<2x384xf32> to vector<2x128xf32>
    %168 = vector.extract_strided_slice %166 {offsets = [0, 0], sizes = [2, 128], strides = [1, 1]} : vector<2x384xf32> to vector<2x128xf32>
    %169 = arith.addf %167, %168 : vector<2x128xf32>
    %170 = arith.negf %169 : vector<2x128xf32>
    %171 = math.exp %170 : vector<2x128xf32>
    %cst_47 = arith.constant 1.000000e+00 : f32
    %172 = vector.broadcast %cst_47 : f32 to vector<2x128xf32>
    %173 = arith.addf %172, %171 : vector<2x128xf32>
    %174 = arith.divf %172, %173 : vector<2x128xf32>
    %175 = vector.extract_strided_slice %165 {offsets = [0, 128], sizes = [2, 128], strides = [1, 1]} : vector<2x384xf32> to vector<2x128xf32>
    %176 = vector.extract_strided_slice %166 {offsets = [0, 128], sizes = [2, 128], strides = [1, 1]} : vector<2x384xf32> to vector<2x128xf32>
    %177 = arith.addf %175, %176 : vector<2x128xf32>
    %178 = arith.negf %177 : vector<2x128xf32>
    %179 = math.exp %178 : vector<2x128xf32>
    %cst_48 = arith.constant 1.000000e+00 : f32
    %180 = vector.broadcast %cst_48 : f32 to vector<2x128xf32>
    %181 = arith.addf %180, %179 : vector<2x128xf32>
    %182 = arith.divf %180, %181 : vector<2x128xf32>
    %183 = vector.extract_strided_slice %165 {offsets = [0, 256], sizes = [2, 128], strides = [1, 1]} : vector<2x384xf32> to vector<2x128xf32>
    %184 = vector.extract_strided_slice %166 {offsets = [0, 256], sizes = [2, 128], strides = [1, 1]} : vector<2x384xf32> to vector<2x128xf32>
    %185 = arith.addf %184, %6 : vector<2x128xf32>
    %186 = arith.mulf %174, %185 : vector<2x128xf32>
    %187 = arith.addf %183, %186 : vector<2x128xf32>
    %188 = math.tanh %187 : vector<2x128xf32>
    %cst_49 = arith.constant 1.000000e+00 : f32
    %189 = vector.broadcast %cst_49 : f32 to vector<2x128xf32>
    %190 = arith.subf %189, %182 : vector<2x128xf32>
    %191 = arith.mulf %190, %188 : vector<2x128xf32>
    %192 = arith.mulf %182, %163 : vector<2x128xf32>
    %193 = arith.addf %191, %192 : vector<2x128xf32>
    %c6 = arith.constant 6 : index
    %c0_50 = arith.constant 0 : index
    %c0_51 = arith.constant 0 : index
    %194 = vector.load %arg0[%c6, %c0_50, %c0_51] : memref<8x2x384xf32, #tpu.memory_space<vmem>>, vector<1x2x384xf32>
    %195 = vector.shape_cast %194 : vector<1x2x384xf32> to vector<2x384xf32>
    %cst_52 = arith.constant dense<0.000000e+00> : vector<2x384xf32>
    %196 = tpu.matmul %193, %0, %cst_52 {dimension_numbers = #tpu.dot_dimension_numbers<[1], [0], [0], [1], [0, 0, 1, 1], [], []>} : vector<2x128xf32>, vector<128x384xf32>, vector<2x384xf32> -> vector<2x384xf32>
    %197 = vector.extract_strided_slice %195 {offsets = [0, 0], sizes = [2, 128], strides = [1, 1]} : vector<2x384xf32> to vector<2x128xf32>
    %198 = vector.extract_strided_slice %196 {offsets = [0, 0], sizes = [2, 128], strides = [1, 1]} : vector<2x384xf32> to vector<2x128xf32>
    %199 = arith.addf %197, %198 : vector<2x128xf32>
    %200 = arith.negf %199 : vector<2x128xf32>
    %201 = math.exp %200 : vector<2x128xf32>
    %cst_53 = arith.constant 1.000000e+00 : f32
    %202 = vector.broadcast %cst_53 : f32 to vector<2x128xf32>
    %203 = arith.addf %202, %201 : vector<2x128xf32>
    %204 = arith.divf %202, %203 : vector<2x128xf32>
    %205 = vector.extract_strided_slice %195 {offsets = [0, 128], sizes = [2, 128], strides = [1, 1]} : vector<2x384xf32> to vector<2x128xf32>
    %206 = vector.extract_strided_slice %196 {offsets = [0, 128], sizes = [2, 128], strides = [1, 1]} : vector<2x384xf32> to vector<2x128xf32>
    %207 = arith.addf %205, %206 : vector<2x128xf32>
    %208 = arith.negf %207 : vector<2x128xf32>
    %209 = math.exp %208 : vector<2x128xf32>
    %cst_54 = arith.constant 1.000000e+00 : f32
    %210 = vector.broadcast %cst_54 : f32 to vector<2x128xf32>
    %211 = arith.addf %210, %209 : vector<2x128xf32>
    %212 = arith.divf %210, %211 : vector<2x128xf32>
    %213 = vector.extract_strided_slice %195 {offsets = [0, 256], sizes = [2, 128], strides = [1, 1]} : vector<2x384xf32> to vector<2x128xf32>
    %214 = vector.extract_strided_slice %196 {offsets = [0, 256], sizes = [2, 128], strides = [1, 1]} : vector<2x384xf32> to vector<2x128xf32>
    %215 = arith.addf %214, %6 : vector<2x128xf32>
    %216 = arith.mulf %204, %215 : vector<2x128xf32>
    %217 = arith.addf %213, %216 : vector<2x128xf32>
    %218 = math.tanh %217 : vector<2x128xf32>
    %cst_55 = arith.constant 1.000000e+00 : f32
    %219 = vector.broadcast %cst_55 : f32 to vector<2x128xf32>
    %220 = arith.subf %219, %212 : vector<2x128xf32>
    %221 = arith.mulf %220, %218 : vector<2x128xf32>
    %222 = arith.mulf %212, %193 : vector<2x128xf32>
    %223 = arith.addf %221, %222 : vector<2x128xf32>
    %c7 = arith.constant 7 : index
    %c0_56 = arith.constant 0 : index
    %c0_57 = arith.constant 0 : index
    %224 = vector.load %arg0[%c7, %c0_56, %c0_57] : memref<8x2x384xf32, #tpu.memory_space<vmem>>, vector<1x2x384xf32>
    %225 = vector.shape_cast %224 : vector<1x2x384xf32> to vector<2x384xf32>
    %cst_58 = arith.constant dense<0.000000e+00> : vector<2x384xf32>
    %226 = tpu.matmul %223, %0, %cst_58 {dimension_numbers = #tpu.dot_dimension_numbers<[1], [0], [0], [1], [0, 0, 1, 1], [], []>} : vector<2x128xf32>, vector<128x384xf32>, vector<2x384xf32> -> vector<2x384xf32>
    %227 = vector.extract_strided_slice %225 {offsets = [0, 0], sizes = [2, 128], strides = [1, 1]} : vector<2x384xf32> to vector<2x128xf32>
    %228 = vector.extract_strided_slice %226 {offsets = [0, 0], sizes = [2, 128], strides = [1, 1]} : vector<2x384xf32> to vector<2x128xf32>
    %229 = arith.addf %227, %228 : vector<2x128xf32>
    %230 = arith.negf %229 : vector<2x128xf32>
    %231 = math.exp %230 : vector<2x128xf32>
    %cst_59 = arith.constant 1.000000e+00 : f32
    %232 = vector.broadcast %cst_59 : f32 to vector<2x128xf32>
    %233 = arith.addf %232, %231 : vector<2x128xf32>
    %234 = arith.divf %232, %233 : vector<2x128xf32>
    %235 = vector.extract_strided_slice %225 {offsets = [0, 128], sizes = [2, 128], strides = [1, 1]} : vector<2x384xf32> to vector<2x128xf32>
    %236 = vector.extract_strided_slice %226 {offsets = [0, 128], sizes = [2, 128], strides = [1, 1]} : vector<2x384xf32> to vector<2x128xf32>
    %237 = arith.addf %235, %236 : vector<2x128xf32>
    %238 = arith.negf %237 : vector<2x128xf32>
    %239 = math.exp %238 : vector<2x128xf32>
    %cst_60 = arith.constant 1.000000e+00 : f32
    %240 = vector.broadcast %cst_60 : f32 to vector<2x128xf32>
    %241 = arith.addf %240, %239 : vector<2x128xf32>
    %242 = arith.divf %240, %241 : vector<2x128xf32>
    %243 = vector.extract_strided_slice %225 {offsets = [0, 256], sizes = [2, 128], strides = [1, 1]} : vector<2x384xf32> to vector<2x128xf32>
    %244 = vector.extract_strided_slice %226 {offsets = [0, 256], sizes = [2, 128], strides = [1, 1]} : vector<2x384xf32> to vector<2x128xf32>
    %245 = arith.addf %244, %6 : vector<2x128xf32>
    %246 = arith.mulf %234, %245 : vector<2x128xf32>
    %247 = arith.addf %243, %246 : vector<2x128xf32>
    %248 = math.tanh %247 : vector<2x128xf32>
    %cst_61 = arith.constant 1.000000e+00 : f32
    %249 = vector.broadcast %cst_61 : f32 to vector<2x128xf32>
    %250 = arith.subf %249, %242 : vector<2x128xf32>
    %251 = arith.mulf %250, %248 : vector<2x128xf32>
    %252 = arith.mulf %242, %223 : vector<2x128xf32>
    %253 = arith.addf %251, %252 : vector<2x128xf32>
    %cst_62 = arith.constant 0.000000e+00 : f32
    %254 = vector.broadcast %cst_62 : f32 to vector<2x128xf32>
    %cst_63 = arith.constant dense<0.000000e+00> : vector<2x384xf32>
    %255 = tpu.matmul %43, %2, %cst_63 {dimension_numbers = #tpu.dot_dimension_numbers<[1], [0], [0], [1], [0, 0, 1, 1], [], []>} : vector<2x128xf32>, vector<128x384xf32>, vector<2x384xf32> -> vector<2x384xf32>
    %cst_64 = arith.constant dense<0.000000e+00> : vector<2x384xf32>
    %256 = tpu.matmul %253, %3, %cst_64 {dimension_numbers = #tpu.dot_dimension_numbers<[1], [0], [0], [1], [0, 0, 1, 1], [], []>} : vector<2x128xf32>, vector<128x384xf32>, vector<2x384xf32> -> vector<2x384xf32>
    %257 = arith.addf %255, %256 : vector<2x384xf32>
    %258 = arith.addf %257, %12 : vector<2x384xf32>
    %cst_65 = arith.constant dense<0.000000e+00> : vector<2x384xf32>
    %259 = tpu.matmul %254, %1, %cst_65 {dimension_numbers = #tpu.dot_dimension_numbers<[1], [0], [0], [1], [0, 0, 1, 1], [], []>} : vector<2x128xf32>, vector<128x384xf32>, vector<2x384xf32> -> vector<2x384xf32>
    %260 = vector.extract_strided_slice %258 {offsets = [0, 0], sizes = [2, 128], strides = [1, 1]} : vector<2x384xf32> to vector<2x128xf32>
    %261 = vector.extract_strided_slice %259 {offsets = [0, 0], sizes = [2, 128], strides = [1, 1]} : vector<2x384xf32> to vector<2x128xf32>
    %262 = arith.addf %260, %261 : vector<2x128xf32>
    %263 = arith.negf %262 : vector<2x128xf32>
    %264 = math.exp %263 : vector<2x128xf32>
    %cst_66 = arith.constant 1.000000e+00 : f32
    %265 = vector.broadcast %cst_66 : f32 to vector<2x128xf32>
    %266 = arith.addf %265, %264 : vector<2x128xf32>
    %267 = arith.divf %265, %266 : vector<2x128xf32>
    %268 = vector.extract_strided_slice %258 {offsets = [0, 128], sizes = [2, 128], strides = [1, 1]} : vector<2x384xf32> to vector<2x128xf32>
    %269 = vector.extract_strided_slice %259 {offsets = [0, 128], sizes = [2, 128], strides = [1, 1]} : vector<2x384xf32> to vector<2x128xf32>
    %270 = arith.addf %268, %269 : vector<2x128xf32>
    %271 = arith.negf %270 : vector<2x128xf32>
    %272 = math.exp %271 : vector<2x128xf32>
    %cst_67 = arith.constant 1.000000e+00 : f32
    %273 = vector.broadcast %cst_67 : f32 to vector<2x128xf32>
    %274 = arith.addf %273, %272 : vector<2x128xf32>
    %275 = arith.divf %273, %274 : vector<2x128xf32>
    %276 = vector.extract_strided_slice %258 {offsets = [0, 256], sizes = [2, 128], strides = [1, 1]} : vector<2x384xf32> to vector<2x128xf32>
    %277 = vector.extract_strided_slice %259 {offsets = [0, 256], sizes = [2, 128], strides = [1, 1]} : vector<2x384xf32> to vector<2x128xf32>
    %278 = arith.addf %277, %9 : vector<2x128xf32>
    %279 = arith.mulf %267, %278 : vector<2x128xf32>
    %280 = arith.addf %276, %279 : vector<2x128xf32>
    %281 = math.tanh %280 : vector<2x128xf32>
    %cst_68 = arith.constant 1.000000e+00 : f32
    %282 = vector.broadcast %cst_68 : f32 to vector<2x128xf32>
    %283 = arith.subf %282, %275 : vector<2x128xf32>
    %284 = arith.mulf %283, %281 : vector<2x128xf32>
    %285 = arith.mulf %275, %254 : vector<2x128xf32>
    %286 = arith.addf %284, %285 : vector<2x128xf32>
    %cst_69 = arith.constant dense<0.000000e+00> : vector<2x384xf32>
    %287 = tpu.matmul %73, %2, %cst_69 {dimension_numbers = #tpu.dot_dimension_numbers<[1], [0], [0], [1], [0, 0, 1, 1], [], []>} : vector<2x128xf32>, vector<128x384xf32>, vector<2x384xf32> -> vector<2x384xf32>
    %cst_70 = arith.constant dense<0.000000e+00> : vector<2x384xf32>
    %288 = tpu.matmul %223, %3, %cst_70 {dimension_numbers = #tpu.dot_dimension_numbers<[1], [0], [0], [1], [0, 0, 1, 1], [], []>} : vector<2x128xf32>, vector<128x384xf32>, vector<2x384xf32> -> vector<2x384xf32>
    %289 = arith.addf %287, %288 : vector<2x384xf32>
    %290 = arith.addf %289, %12 : vector<2x384xf32>
    %cst_71 = arith.constant dense<0.000000e+00> : vector<2x384xf32>
    %291 = tpu.matmul %286, %1, %cst_71 {dimension_numbers = #tpu.dot_dimension_numbers<[1], [0], [0], [1], [0, 0, 1, 1], [], []>} : vector<2x128xf32>, vector<128x384xf32>, vector<2x384xf32> -> vector<2x384xf32>
    %292 = vector.extract_strided_slice %290 {offsets = [0, 0], sizes = [2, 128], strides = [1, 1]} : vector<2x384xf32> to vector<2x128xf32>
    %293 = vector.extract_strided_slice %291 {offsets = [0, 0], sizes = [2, 128], strides = [1, 1]} : vector<2x384xf32> to vector<2x128xf32>
    %294 = arith.addf %292, %293 : vector<2x128xf32>
    %295 = arith.negf %294 : vector<2x128xf32>
    %296 = math.exp %295 : vector<2x128xf32>
    %cst_72 = arith.constant 1.000000e+00 : f32
    %297 = vector.broadcast %cst_72 : f32 to vector<2x128xf32>
    %298 = arith.addf %297, %296 : vector<2x128xf32>
    %299 = arith.divf %297, %298 : vector<2x128xf32>
    %300 = vector.extract_strided_slice %290 {offsets = [0, 128], sizes = [2, 128], strides = [1, 1]} : vector<2x384xf32> to vector<2x128xf32>
    %301 = vector.extract_strided_slice %291 {offsets = [0, 128], sizes = [2, 128], strides = [1, 1]} : vector<2x384xf32> to vector<2x128xf32>
    %302 = arith.addf %300, %301 : vector<2x128xf32>
    %303 = arith.negf %302 : vector<2x128xf32>
    %304 = math.exp %303 : vector<2x128xf32>
    %cst_73 = arith.constant 1.000000e+00 : f32
    %305 = vector.broadcast %cst_73 : f32 to vector<2x128xf32>
    %306 = arith.addf %305, %304 : vector<2x128xf32>
    %307 = arith.divf %305, %306 : vector<2x128xf32>
    %308 = vector.extract_strided_slice %290 {offsets = [0, 256], sizes = [2, 128], strides = [1, 1]} : vector<2x384xf32> to vector<2x128xf32>
    %309 = vector.extract_strided_slice %291 {offsets = [0, 256], sizes = [2, 128], strides = [1, 1]} : vector<2x384xf32> to vector<2x128xf32>
    %310 = arith.addf %309, %9 : vector<2x128xf32>
    %311 = arith.mulf %299, %310 : vector<2x128xf32>
    %312 = arith.addf %308, %311 : vector<2x128xf32>
    %313 = math.tanh %312 : vector<2x128xf32>
    %cst_74 = arith.constant 1.000000e+00 : f32
    %314 = vector.broadcast %cst_74 : f32 to vector<2x128xf32>
    %315 = arith.subf %314, %307 : vector<2x128xf32>
    %316 = arith.mulf %315, %313 : vector<2x128xf32>
    %317 = arith.mulf %307, %286 : vector<2x128xf32>
    %318 = arith.addf %316, %317 : vector<2x128xf32>
    %cst_75 = arith.constant dense<0.000000e+00> : vector<2x384xf32>
    %319 = tpu.matmul %103, %2, %cst_75 {dimension_numbers = #tpu.dot_dimension_numbers<[1], [0], [0], [1], [0, 0, 1, 1], [], []>} : vector<2x128xf32>, vector<128x384xf32>, vector<2x384xf32> -> vector<2x384xf32>
    %cst_76 = arith.constant dense<0.000000e+00> : vector<2x384xf32>
    %320 = tpu.matmul %193, %3, %cst_76 {dimension_numbers = #tpu.dot_dimension_numbers<[1], [0], [0], [1], [0, 0, 1, 1], [], []>} : vector<2x128xf32>, vector<128x384xf32>, vector<2x384xf32> -> vector<2x384xf32>
    %321 = arith.addf %319, %320 : vector<2x384xf32>
    %322 = arith.addf %321, %12 : vector<2x384xf32>
    %cst_77 = arith.constant dense<0.000000e+00> : vector<2x384xf32>
    %323 = tpu.matmul %318, %1, %cst_77 {dimension_numbers = #tpu.dot_dimension_numbers<[1], [0], [0], [1], [0, 0, 1, 1], [], []>} : vector<2x128xf32>, vector<128x384xf32>, vector<2x384xf32> -> vector<2x384xf32>
    %324 = vector.extract_strided_slice %322 {offsets = [0, 0], sizes = [2, 128], strides = [1, 1]} : vector<2x384xf32> to vector<2x128xf32>
    %325 = vector.extract_strided_slice %323 {offsets = [0, 0], sizes = [2, 128], strides = [1, 1]} : vector<2x384xf32> to vector<2x128xf32>
    %326 = arith.addf %324, %325 : vector<2x128xf32>
    %327 = arith.negf %326 : vector<2x128xf32>
    %328 = math.exp %327 : vector<2x128xf32>
    %cst_78 = arith.constant 1.000000e+00 : f32
    %329 = vector.broadcast %cst_78 : f32 to vector<2x128xf32>
    %330 = arith.addf %329, %328 : vector<2x128xf32>
    %331 = arith.divf %329, %330 : vector<2x128xf32>
    %332 = vector.extract_strided_slice %322 {offsets = [0, 128], sizes = [2, 128], strides = [1, 1]} : vector<2x384xf32> to vector<2x128xf32>
    %333 = vector.extract_strided_slice %323 {offsets = [0, 128], sizes = [2, 128], strides = [1, 1]} : vector<2x384xf32> to vector<2x128xf32>
    %334 = arith.addf %332, %333 : vector<2x128xf32>
    %335 = arith.negf %334 : vector<2x128xf32>
    %336 = math.exp %335 : vector<2x128xf32>
    %cst_79 = arith.constant 1.000000e+00 : f32
    %337 = vector.broadcast %cst_79 : f32 to vector<2x128xf32>
    %338 = arith.addf %337, %336 : vector<2x128xf32>
    %339 = arith.divf %337, %338 : vector<2x128xf32>
    %340 = vector.extract_strided_slice %322 {offsets = [0, 256], sizes = [2, 128], strides = [1, 1]} : vector<2x384xf32> to vector<2x128xf32>
    %341 = vector.extract_strided_slice %323 {offsets = [0, 256], sizes = [2, 128], strides = [1, 1]} : vector<2x384xf32> to vector<2x128xf32>
    %342 = arith.addf %341, %9 : vector<2x128xf32>
    %343 = arith.mulf %331, %342 : vector<2x128xf32>
    %344 = arith.addf %340, %343 : vector<2x128xf32>
    %345 = math.tanh %344 : vector<2x128xf32>
    %cst_80 = arith.constant 1.000000e+00 : f32
    %346 = vector.broadcast %cst_80 : f32 to vector<2x128xf32>
    %347 = arith.subf %346, %339 : vector<2x128xf32>
    %348 = arith.mulf %347, %345 : vector<2x128xf32>
    %349 = arith.mulf %339, %318 : vector<2x128xf32>
    %350 = arith.addf %348, %349 : vector<2x128xf32>
    %cst_81 = arith.constant dense<0.000000e+00> : vector<2x384xf32>
    %351 = tpu.matmul %133, %2, %cst_81 {dimension_numbers = #tpu.dot_dimension_numbers<[1], [0], [0], [1], [0, 0, 1, 1], [], []>} : vector<2x128xf32>, vector<128x384xf32>, vector<2x384xf32> -> vector<2x384xf32>
    %cst_82 = arith.constant dense<0.000000e+00> : vector<2x384xf32>
    %352 = tpu.matmul %163, %3, %cst_82 {dimension_numbers = #tpu.dot_dimension_numbers<[1], [0], [0], [1], [0, 0, 1, 1], [], []>} : vector<2x128xf32>, vector<128x384xf32>, vector<2x384xf32> -> vector<2x384xf32>
    %353 = arith.addf %351, %352 : vector<2x384xf32>
    %354 = arith.addf %353, %12 : vector<2x384xf32>
    %cst_83 = arith.constant dense<0.000000e+00> : vector<2x384xf32>
    %355 = tpu.matmul %350, %1, %cst_83 {dimension_numbers = #tpu.dot_dimension_numbers<[1], [0], [0], [1], [0, 0, 1, 1], [], []>} : vector<2x128xf32>, vector<128x384xf32>, vector<2x384xf32> -> vector<2x384xf32>
    %356 = vector.extract_strided_slice %354 {offsets = [0, 0], sizes = [2, 128], strides = [1, 1]} : vector<2x384xf32> to vector<2x128xf32>
    %357 = vector.extract_strided_slice %355 {offsets = [0, 0], sizes = [2, 128], strides = [1, 1]} : vector<2x384xf32> to vector<2x128xf32>
    %358 = arith.addf %356, %357 : vector<2x128xf32>
    %359 = arith.negf %358 : vector<2x128xf32>
    %360 = math.exp %359 : vector<2x128xf32>
    %cst_84 = arith.constant 1.000000e+00 : f32
    %361 = vector.broadcast %cst_84 : f32 to vector<2x128xf32>
    %362 = arith.addf %361, %360 : vector<2x128xf32>
    %363 = arith.divf %361, %362 : vector<2x128xf32>
    %364 = vector.extract_strided_slice %354 {offsets = [0, 128], sizes = [2, 128], strides = [1, 1]} : vector<2x384xf32> to vector<2x128xf32>
    %365 = vector.extract_strided_slice %355 {offsets = [0, 128], sizes = [2, 128], strides = [1, 1]} : vector<2x384xf32> to vector<2x128xf32>
    %366 = arith.addf %364, %365 : vector<2x128xf32>
    %367 = arith.negf %366 : vector<2x128xf32>
    %368 = math.exp %367 : vector<2x128xf32>
    %cst_85 = arith.constant 1.000000e+00 : f32
    %369 = vector.broadcast %cst_85 : f32 to vector<2x128xf32>
    %370 = arith.addf %369, %368 : vector<2x128xf32>
    %371 = arith.divf %369, %370 : vector<2x128xf32>
    %372 = vector.extract_strided_slice %354 {offsets = [0, 256], sizes = [2, 128], strides = [1, 1]} : vector<2x384xf32> to vector<2x128xf32>
    %373 = vector.extract_strided_slice %355 {offsets = [0, 256], sizes = [2, 128], strides = [1, 1]} : vector<2x384xf32> to vector<2x128xf32>
    %374 = arith.addf %373, %9 : vector<2x128xf32>
    %375 = arith.mulf %363, %374 : vector<2x128xf32>
    %376 = arith.addf %372, %375 : vector<2x128xf32>
    %377 = math.tanh %376 : vector<2x128xf32>
    %cst_86 = arith.constant 1.000000e+00 : f32
    %378 = vector.broadcast %cst_86 : f32 to vector<2x128xf32>
    %379 = arith.subf %378, %371 : vector<2x128xf32>
    %380 = arith.mulf %379, %377 : vector<2x128xf32>
    %381 = arith.mulf %371, %350 : vector<2x128xf32>
    %382 = arith.addf %380, %381 : vector<2x128xf32>
    %cst_87 = arith.constant dense<0.000000e+00> : vector<2x384xf32>
    %383 = tpu.matmul %163, %2, %cst_87 {dimension_numbers = #tpu.dot_dimension_numbers<[1], [0], [0], [1], [0, 0, 1, 1], [], []>} : vector<2x128xf32>, vector<128x384xf32>, vector<2x384xf32> -> vector<2x384xf32>
    %cst_88 = arith.constant dense<0.000000e+00> : vector<2x384xf32>
    %384 = tpu.matmul %133, %3, %cst_88 {dimension_numbers = #tpu.dot_dimension_numbers<[1], [0], [0], [1], [0, 0, 1, 1], [], []>} : vector<2x128xf32>, vector<128x384xf32>, vector<2x384xf32> -> vector<2x384xf32>
    %385 = arith.addf %383, %384 : vector<2x384xf32>
    %386 = arith.addf %385, %12 : vector<2x384xf32>
    %cst_89 = arith.constant dense<0.000000e+00> : vector<2x384xf32>
    %387 = tpu.matmul %382, %1, %cst_89 {dimension_numbers = #tpu.dot_dimension_numbers<[1], [0], [0], [1], [0, 0, 1, 1], [], []>} : vector<2x128xf32>, vector<128x384xf32>, vector<2x384xf32> -> vector<2x384xf32>
    %388 = vector.extract_strided_slice %386 {offsets = [0, 0], sizes = [2, 128], strides = [1, 1]} : vector<2x384xf32> to vector<2x128xf32>
    %389 = vector.extract_strided_slice %387 {offsets = [0, 0], sizes = [2, 128], strides = [1, 1]} : vector<2x384xf32> to vector<2x128xf32>
    %390 = arith.addf %388, %389 : vector<2x128xf32>
    %391 = arith.negf %390 : vector<2x128xf32>
    %392 = math.exp %391 : vector<2x128xf32>
    %cst_90 = arith.constant 1.000000e+00 : f32
    %393 = vector.broadcast %cst_90 : f32 to vector<2x128xf32>
    %394 = arith.addf %393, %392 : vector<2x128xf32>
    %395 = arith.divf %393, %394 : vector<2x128xf32>
    %396 = vector.extract_strided_slice %386 {offsets = [0, 128], sizes = [2, 128], strides = [1, 1]} : vector<2x384xf32> to vector<2x128xf32>
    %397 = vector.extract_strided_slice %387 {offsets = [0, 128], sizes = [2, 128], strides = [1, 1]} : vector<2x384xf32> to vector<2x128xf32>
    %398 = arith.addf %396, %397 : vector<2x128xf32>
    %399 = arith.negf %398 : vector<2x128xf32>
    %400 = math.exp %399 : vector<2x128xf32>
    %cst_91 = arith.constant 1.000000e+00 : f32
    %401 = vector.broadcast %cst_91 : f32 to vector<2x128xf32>
    %402 = arith.addf %401, %400 : vector<2x128xf32>
    %403 = arith.divf %401, %402 : vector<2x128xf32>
    %404 = vector.extract_strided_slice %386 {offsets = [0, 256], sizes = [2, 128], strides = [1, 1]} : vector<2x384xf32> to vector<2x128xf32>
    %405 = vector.extract_strided_slice %387 {offsets = [0, 256], sizes = [2, 128], strides = [1, 1]} : vector<2x384xf32> to vector<2x128xf32>
    %406 = arith.addf %405, %9 : vector<2x128xf32>
    %407 = arith.mulf %395, %406 : vector<2x128xf32>
    %408 = arith.addf %404, %407 : vector<2x128xf32>
    %409 = math.tanh %408 : vector<2x128xf32>
    %cst_92 = arith.constant 1.000000e+00 : f32
    %410 = vector.broadcast %cst_92 : f32 to vector<2x128xf32>
    %411 = arith.subf %410, %403 : vector<2x128xf32>
    %412 = arith.mulf %411, %409 : vector<2x128xf32>
    %413 = arith.mulf %403, %382 : vector<2x128xf32>
    %414 = arith.addf %412, %413 : vector<2x128xf32>
    %cst_93 = arith.constant dense<0.000000e+00> : vector<2x384xf32>
    %415 = tpu.matmul %193, %2, %cst_93 {dimension_numbers = #tpu.dot_dimension_numbers<[1], [0], [0], [1], [0, 0, 1, 1], [], []>} : vector<2x128xf32>, vector<128x384xf32>, vector<2x384xf32> -> vector<2x384xf32>
    %cst_94 = arith.constant dense<0.000000e+00> : vector<2x384xf32>
    %416 = tpu.matmul %103, %3, %cst_94 {dimension_numbers = #tpu.dot_dimension_numbers<[1], [0], [0], [1], [0, 0, 1, 1], [], []>} : vector<2x128xf32>, vector<128x384xf32>, vector<2x384xf32> -> vector<2x384xf32>
    %417 = arith.addf %415, %416 : vector<2x384xf32>
    %418 = arith.addf %417, %12 : vector<2x384xf32>
    %cst_95 = arith.constant dense<0.000000e+00> : vector<2x384xf32>
    %419 = tpu.matmul %414, %1, %cst_95 {dimension_numbers = #tpu.dot_dimension_numbers<[1], [0], [0], [1], [0, 0, 1, 1], [], []>} : vector<2x128xf32>, vector<128x384xf32>, vector<2x384xf32> -> vector<2x384xf32>
    %420 = vector.extract_strided_slice %418 {offsets = [0, 0], sizes = [2, 128], strides = [1, 1]} : vector<2x384xf32> to vector<2x128xf32>
    %421 = vector.extract_strided_slice %419 {offsets = [0, 0], sizes = [2, 128], strides = [1, 1]} : vector<2x384xf32> to vector<2x128xf32>
    %422 = arith.addf %420, %421 : vector<2x128xf32>
    %423 = arith.negf %422 : vector<2x128xf32>
    %424 = math.exp %423 : vector<2x128xf32>
    %cst_96 = arith.constant 1.000000e+00 : f32
    %425 = vector.broadcast %cst_96 : f32 to vector<2x128xf32>
    %426 = arith.addf %425, %424 : vector<2x128xf32>
    %427 = arith.divf %425, %426 : vector<2x128xf32>
    %428 = vector.extract_strided_slice %418 {offsets = [0, 128], sizes = [2, 128], strides = [1, 1]} : vector<2x384xf32> to vector<2x128xf32>
    %429 = vector.extract_strided_slice %419 {offsets = [0, 128], sizes = [2, 128], strides = [1, 1]} : vector<2x384xf32> to vector<2x128xf32>
    %430 = arith.addf %428, %429 : vector<2x128xf32>
    %431 = arith.negf %430 : vector<2x128xf32>
    %432 = math.exp %431 : vector<2x128xf32>
    %cst_97 = arith.constant 1.000000e+00 : f32
    %433 = vector.broadcast %cst_97 : f32 to vector<2x128xf32>
    %434 = arith.addf %433, %432 : vector<2x128xf32>
    %435 = arith.divf %433, %434 : vector<2x128xf32>
    %436 = vector.extract_strided_slice %418 {offsets = [0, 256], sizes = [2, 128], strides = [1, 1]} : vector<2x384xf32> to vector<2x128xf32>
    %437 = vector.extract_strided_slice %419 {offsets = [0, 256], sizes = [2, 128], strides = [1, 1]} : vector<2x384xf32> to vector<2x128xf32>
    %438 = arith.addf %437, %9 : vector<2x128xf32>
    %439 = arith.mulf %427, %438 : vector<2x128xf32>
    %440 = arith.addf %436, %439 : vector<2x128xf32>
    %441 = math.tanh %440 : vector<2x128xf32>
    %cst_98 = arith.constant 1.000000e+00 : f32
    %442 = vector.broadcast %cst_98 : f32 to vector<2x128xf32>
    %443 = arith.subf %442, %435 : vector<2x128xf32>
    %444 = arith.mulf %443, %441 : vector<2x128xf32>
    %445 = arith.mulf %435, %414 : vector<2x128xf32>
    %446 = arith.addf %444, %445 : vector<2x128xf32>
    %cst_99 = arith.constant dense<0.000000e+00> : vector<2x384xf32>
    %447 = tpu.matmul %223, %2, %cst_99 {dimension_numbers = #tpu.dot_dimension_numbers<[1], [0], [0], [1], [0, 0, 1, 1], [], []>} : vector<2x128xf32>, vector<128x384xf32>, vector<2x384xf32> -> vector<2x384xf32>
    %cst_100 = arith.constant dense<0.000000e+00> : vector<2x384xf32>
    %448 = tpu.matmul %73, %3, %cst_100 {dimension_numbers = #tpu.dot_dimension_numbers<[1], [0], [0], [1], [0, 0, 1, 1], [], []>} : vector<2x128xf32>, vector<128x384xf32>, vector<2x384xf32> -> vector<2x384xf32>
    %449 = arith.addf %447, %448 : vector<2x384xf32>
    %450 = arith.addf %449, %12 : vector<2x384xf32>
    %cst_101 = arith.constant dense<0.000000e+00> : vector<2x384xf32>
    %451 = tpu.matmul %446, %1, %cst_101 {dimension_numbers = #tpu.dot_dimension_numbers<[1], [0], [0], [1], [0, 0, 1, 1], [], []>} : vector<2x128xf32>, vector<128x384xf32>, vector<2x384xf32> -> vector<2x384xf32>
    %452 = vector.extract_strided_slice %450 {offsets = [0, 0], sizes = [2, 128], strides = [1, 1]} : vector<2x384xf32> to vector<2x128xf32>
    %453 = vector.extract_strided_slice %451 {offsets = [0, 0], sizes = [2, 128], strides = [1, 1]} : vector<2x384xf32> to vector<2x128xf32>
    %454 = arith.addf %452, %453 : vector<2x128xf32>
    %455 = arith.negf %454 : vector<2x128xf32>
    %456 = math.exp %455 : vector<2x128xf32>
    %cst_102 = arith.constant 1.000000e+00 : f32
    %457 = vector.broadcast %cst_102 : f32 to vector<2x128xf32>
    %458 = arith.addf %457, %456 : vector<2x128xf32>
    %459 = arith.divf %457, %458 : vector<2x128xf32>
    %460 = vector.extract_strided_slice %450 {offsets = [0, 128], sizes = [2, 128], strides = [1, 1]} : vector<2x384xf32> to vector<2x128xf32>
    %461 = vector.extract_strided_slice %451 {offsets = [0, 128], sizes = [2, 128], strides = [1, 1]} : vector<2x384xf32> to vector<2x128xf32>
    %462 = arith.addf %460, %461 : vector<2x128xf32>
    %463 = arith.negf %462 : vector<2x128xf32>
    %464 = math.exp %463 : vector<2x128xf32>
    %cst_103 = arith.constant 1.000000e+00 : f32
    %465 = vector.broadcast %cst_103 : f32 to vector<2x128xf32>
    %466 = arith.addf %465, %464 : vector<2x128xf32>
    %467 = arith.divf %465, %466 : vector<2x128xf32>
    %468 = vector.extract_strided_slice %450 {offsets = [0, 256], sizes = [2, 128], strides = [1, 1]} : vector<2x384xf32> to vector<2x128xf32>
    %469 = vector.extract_strided_slice %451 {offsets = [0, 256], sizes = [2, 128], strides = [1, 1]} : vector<2x384xf32> to vector<2x128xf32>
    %470 = arith.addf %469, %9 : vector<2x128xf32>
    %471 = arith.mulf %459, %470 : vector<2x128xf32>
    %472 = arith.addf %468, %471 : vector<2x128xf32>
    %473 = math.tanh %472 : vector<2x128xf32>
    %cst_104 = arith.constant 1.000000e+00 : f32
    %474 = vector.broadcast %cst_104 : f32 to vector<2x128xf32>
    %475 = arith.subf %474, %467 : vector<2x128xf32>
    %476 = arith.mulf %475, %473 : vector<2x128xf32>
    %477 = arith.mulf %467, %446 : vector<2x128xf32>
    %478 = arith.addf %476, %477 : vector<2x128xf32>
    %cst_105 = arith.constant dense<0.000000e+00> : vector<2x384xf32>
    %479 = tpu.matmul %253, %2, %cst_105 {dimension_numbers = #tpu.dot_dimension_numbers<[1], [0], [0], [1], [0, 0, 1, 1], [], []>} : vector<2x128xf32>, vector<128x384xf32>, vector<2x384xf32> -> vector<2x384xf32>
    %cst_106 = arith.constant dense<0.000000e+00> : vector<2x384xf32>
    %480 = tpu.matmul %43, %3, %cst_106 {dimension_numbers = #tpu.dot_dimension_numbers<[1], [0], [0], [1], [0, 0, 1, 1], [], []>} : vector<2x128xf32>, vector<128x384xf32>, vector<2x384xf32> -> vector<2x384xf32>
    %481 = arith.addf %479, %480 : vector<2x384xf32>
    %482 = arith.addf %481, %12 : vector<2x384xf32>
    %cst_107 = arith.constant dense<0.000000e+00> : vector<2x384xf32>
    %483 = tpu.matmul %478, %1, %cst_107 {dimension_numbers = #tpu.dot_dimension_numbers<[1], [0], [0], [1], [0, 0, 1, 1], [], []>} : vector<2x128xf32>, vector<128x384xf32>, vector<2x384xf32> -> vector<2x384xf32>
    %484 = vector.extract_strided_slice %482 {offsets = [0, 0], sizes = [2, 128], strides = [1, 1]} : vector<2x384xf32> to vector<2x128xf32>
    %485 = vector.extract_strided_slice %483 {offsets = [0, 0], sizes = [2, 128], strides = [1, 1]} : vector<2x384xf32> to vector<2x128xf32>
    %486 = arith.addf %484, %485 : vector<2x128xf32>
    %487 = arith.negf %486 : vector<2x128xf32>
    %488 = math.exp %487 : vector<2x128xf32>
    %cst_108 = arith.constant 1.000000e+00 : f32
    %489 = vector.broadcast %cst_108 : f32 to vector<2x128xf32>
    %490 = arith.addf %489, %488 : vector<2x128xf32>
    %491 = arith.divf %489, %490 : vector<2x128xf32>
    %492 = vector.extract_strided_slice %482 {offsets = [0, 128], sizes = [2, 128], strides = [1, 1]} : vector<2x384xf32> to vector<2x128xf32>
    %493 = vector.extract_strided_slice %483 {offsets = [0, 128], sizes = [2, 128], strides = [1, 1]} : vector<2x384xf32> to vector<2x128xf32>
    %494 = arith.addf %492, %493 : vector<2x128xf32>
    %495 = arith.negf %494 : vector<2x128xf32>
    %496 = math.exp %495 : vector<2x128xf32>
    %cst_109 = arith.constant 1.000000e+00 : f32
    %497 = vector.broadcast %cst_109 : f32 to vector<2x128xf32>
    %498 = arith.addf %497, %496 : vector<2x128xf32>
    %499 = arith.divf %497, %498 : vector<2x128xf32>
    %500 = vector.extract_strided_slice %482 {offsets = [0, 256], sizes = [2, 128], strides = [1, 1]} : vector<2x384xf32> to vector<2x128xf32>
    %501 = vector.extract_strided_slice %483 {offsets = [0, 256], sizes = [2, 128], strides = [1, 1]} : vector<2x384xf32> to vector<2x128xf32>
    %502 = arith.addf %501, %9 : vector<2x128xf32>
    %503 = arith.mulf %491, %502 : vector<2x128xf32>
    %504 = arith.addf %500, %503 : vector<2x128xf32>
    %505 = math.tanh %504 : vector<2x128xf32>
    %cst_110 = arith.constant 1.000000e+00 : f32
    %506 = vector.broadcast %cst_110 : f32 to vector<2x128xf32>
    %507 = arith.subf %506, %499 : vector<2x128xf32>
    %508 = arith.mulf %507, %505 : vector<2x128xf32>
    %509 = arith.mulf %499, %478 : vector<2x128xf32>
    %510 = arith.addf %508, %509 : vector<2x128xf32>
    %511 = tpu.concatenate %253, %510 in 1 : vector<2x128xf32>, vector<2x128xf32> -> vector<2x256xf32>
    %c0_111 = arith.constant 0 : index
    %c0_112 = arith.constant 0 : index
    %512 = vector.load %arg8[%c0_111, %c0_112] : memref<256x128xf32, #tpu.memory_space<vmem>>, vector<256x128xf32>
    %cst_113 = arith.constant dense<0.000000e+00> : vector<2x128xf32>
    %513 = tpu.matmul %511, %512, %cst_113 {dimension_numbers = #tpu.dot_dimension_numbers<[1], [0], [0], [1], [0, 0, 1, 1], [], []>} : vector<2x256xf32>, vector<256x128xf32>, vector<2x128xf32> -> vector<2x128xf32>
    %c0_114 = arith.constant 0 : index
    %c0_115 = arith.constant 0 : index
    %514 = vector.load %arg9[%c0_114, %c0_115] : memref<1x128xf32, #tpu.memory_space<vmem>>, vector<1x128xf32>
    %515 = vector.broadcast %514 : vector<1x128xf32> to vector<2x128xf32>
    %516 = arith.addf %513, %515 : vector<2x128xf32>
    %517 = math.tanh %516 : vector<2x128xf32>
    %c0_116 = arith.constant 0 : index
    %c0_117 = arith.constant 0 : index
    %518 = vector.load %arg10[%c0_116, %c0_117] : memref<128x128xf32, #tpu.memory_space<vmem>>, vector<128x128xf32>
    %cst_118 = arith.constant dense<0.000000e+00> : vector<2x128xf32>
    %519 = tpu.matmul %517, %518, %cst_118 {dimension_numbers = #tpu.dot_dimension_numbers<[1], [0], [0], [1], [0, 0, 1, 1], [], []>} : vector<2x128xf32>, vector<128x128xf32>, vector<2x128xf32> -> vector<2x128xf32>
    %c0_119 = arith.constant 0 : index
    %c0_120 = arith.constant 0 : index
    %520 = vector.load %arg11[%c0_119, %c0_120] : memref<1x128xf32, #tpu.memory_space<vmem>>, vector<1x128xf32>
    %521 = vector.broadcast %520 : vector<1x128xf32> to vector<2x128xf32>
    %522 = arith.addf %519, %521 : vector<2x128xf32>
    %523 = arith.negf %522 : vector<2x128xf32>
    %524 = math.exp %523 : vector<2x128xf32>
    %cst_121 = arith.constant 1.000000e+00 : f32
    %525 = vector.broadcast %cst_121 : f32 to vector<2x128xf32>
    %526 = arith.addf %525, %524 : vector<2x128xf32>
    %527 = arith.divf %525, %526 : vector<2x128xf32>
    %c0_122 = arith.constant 0 : index
    %c0_123 = arith.constant 0 : index
    %528 = vector.load %arg12[%c0_122, %c0_123] : memref<2x128xf32, #tpu.memory_space<vmem>>, vector<2x128xf32>
    tpu.vector_store %arg12[%c0_122, %c0_123], %527 {strides = array<i32>} : memref<2x128xf32, #tpu.memory_space<vmem>>, vector<2x128xf32>,
    return
  }
}

</mosaic_0001>

<bundles_post_ra>
// kernel: discriminator_forward.1
= control target key start
LH: loop header
LB: loop body
LE: loop exit
PB: predicated region body
PF: predicated region fallthrough
CT: control target
= control target key end

     0   :  { %17 = vsyncpa [#allocation3], 0  ;;  %s7014_s0 = inlined_call_operand.vmem [shape: f32[8,2,384], index: 0, kind: input, shape index: {}]   ;;  %s7015_s1 = inlined_call_operand.vmem [shape: f32[128,384], index: 1, kind: input, shape index: {}]   ;;  %s7016_s2 = inlined_call_operand.vmem [shape: f32[1,128], index: 2, kind: input, shape index: {}]   ;;  %s7017_s3 = inlined_call_operand.hbm [shape: f32[128,384], index: 3, kind: input, shape index: {}]   ;;  %s7018_s4 = inlined_call_operand.hbm [shape: f32[128,384], index: 4, kind: input, shape index: {}]   ;;  %s7019_s5 = inlined_call_operand.vmem [shape: f32[1,384], index: 5, kind: input, shape index: {}]   ;;  %s7020_s6 = inlined_call_operand.hbm [shape: f32[128,384], index: 6, kind: input, shape index: {}]   ;;  %s7021_s7 = inlined_call_operand.vmem [shape: f32[1,128], index: 7, kind: input, shape index: {}]   ;;  %s7022_s8 = inlined_call_operand.hbm [shape: f32[256,128], index: 8, kind: input, shape index: {}]   ;;  %s7023_s9 = inlined_call_operand.vmem [shape: f32[1,128], index: 9, kind: input, shape index: {}]   ;;  %s7024_s10 = inlined_call_operand.vmem [shape: f32[128,128], index: 10, kind: input, shape index: {}]   ;;  %s7025_s11 = inlined_call_operand.vmem [shape: f32[1,128], index: 11, kind: input, shape index: {}]   ;;  %s7026_s12 = inlined_call_operand.vmem [shape: f32[2,128], index: 12, kind: output, shape index: {}]  }
   0x1   :  { %18 = vsyncpa [#allocation5], 0 }
   0x2   :  { %19 = vsyncpa [#allocation8], 0  ;;  %s43_s23 = sshll.u32 %s7018_s4, 4  ;;  %s3883_s24 = smov [#allocation4]   ;;  %s44_s23 = int_to_ptr.hbm [resolvable:$true] %s43_s23 }
   0x3   :  { %s45_s25 = sshll.u32 %s3883_s24, 4  ;;  %s30_s28 = sshll.u32 %s7017_s3, 4  ;;  %s46_s25 = int_to_ptr.vmem [resolvable:$true] %s45_s25  ;;  %s31_s28 = int_to_ptr.hbm [resolvable:$true] %s30_s28 }
   0x4   :  { %s3884_s29 = smov 384   ;;  %s3885_s30 = smov 24  }
   0x5   :  { %51 = dma.hbm_to_vmem [thread:$0]  %s44_s23, 6144, %s46_s25, [#allocation5], %s3884_s29, %s3884_s29, %s3885_s30  }
   0x6   :  { %s3886_s13 = smov [#allocation2]   ;;  %s58_s17 = sshll.u32 %s7020_s6, 4  ;;  %s59_s17 = int_to_ptr.hbm [resolvable:$true] %s58_s17 }
   0x7   :  { %s32_s14 = sshll.u32 %s3886_s13, 4  ;;  %s73_s19 = sshll.u32 %s7022_s8, 4  ;;  %s33_s14 = int_to_ptr.vmem [resolvable:$true] %s32_s14  ;;  %s74_s19 = int_to_ptr.hbm [resolvable:$true] %s73_s19 }
   0x8   :  { %38 = dma.hbm_to_vmem [thread:$0]  %s31_s28, 6144, %s33_s14, [#allocation3], %s3884_s29, %s3884_s29, %s3885_s30  }
   0x9   :  { %s3887_s20 = smov [#allocation6]   ;;  %s3888_s3 = smov [#allocation7]  }
   0xa   :  { %s60_s21 = sshll.u32 %s3887_s20, 4  ;;  %s75_s22 = sshll.u32 %s3888_s3, 4  ;;  %s61_s21 = int_to_ptr.vmem [resolvable:$true] %s60_s21  ;;  %s76_s22 = int_to_ptr.vmem [resolvable:$true] %s75_s22 }
   0xb   :  { %66 = dma.hbm_to_vmem [thread:$0]  %s59_s17, 6144, %s61_s21, [#allocation5], %s3884_s29, %s3884_s29, %s3885_s30  }
   0xc   :  { %s3889_s23 = smov 128   ;;  %s3890_s24 = smov 8  }
   0xd   :  { %81 = dma.hbm_to_vmem [thread:$0]  %s74_s19, 4096, %s76_s22, [#allocation8], %s3889_s23, %s3889_s23, %s3890_s24  }
   0xe   :  { %3877 = dma.done.wait [#allocation3], 6144  }
   0xf   :  { %3878 = vsyncadd [#allocation3], 4294961152 }
  0x10   :  { %3879 = dma.done.wait [#allocation5], 12288  }
  0x11   :  { %3880 = vsyncadd [#allocation5], 4294955008 }
  0x12   :  { %3881 = dma.done.wait [#allocation8], 4096  }
  0x13   :  { %3882 = vsyncadd [#allocation8], 4294963200  ;;  %v3972_v0 = vld [vmem:[%s7015_s1 + $0x168] sm:$0xff]  ;;  %v3977_v1 = vld [vmem:[%s7015_s1 + $0x170] sm:$0xff]  ;;  %v7027_v44 = vmov 0.0  }
  0x14   :  { %v3982_v2 = vld [vmem:[%s7015_s1 + $0x150] sm:$0xff]  ;;  %313 = vmatpush.msra.mxu0 %v3972_v0  ;;  %333 = vmatpush.msra.mxu1 %v3977_v1  ;;  %v3989_v3 = vld [vmem:[%s7015_s1 + $0x158] sm:$0xff]  ;;  %v3999_v5 = vld [vmem:[%s7015_s1 + $0x140] sm:$0xff] }
  0x15   :  { %v3994_v4 = vld [vmem:[%s7015_s1 + $0x138] sm:$0xff]  ;;  %428 = vmatpush.msra.mxu3 %v3972_v0  ;;  %v4007_v6 = vld [vmem:[%s7015_s1 + $0x120] sm:$0xff]  ;;  %v4012_v7 = vld [vmem:[%s7015_s1 + $0x128] sm:$0xff] }
  0x16   :  { %314 = vmatpush.msra.mxu0 %v3982_v2  ;;  %334 = vmatpush.msra.mxu1 %v3989_v3  ;;  %v4020_v8 = vld [vmem:[%s7015_s1 + $0x108] sm:$0xff]  ;;  %v4025_v9 = vld [vmem:[%s7015_s1 + $0x110] sm:$0xff]  ;;  %v4038_v11 = vld [vmem:[%s7015_s1 + $0xf8] sm:$0xff] }
  0x17   :  { %429 = vmatpush.msra.mxu3 %v3982_v2  ;;  %v4033_v10 = vld [vmem:[%s7015_s1 + $0xf0] sm:$0xff]  ;;  %v4043_v12 = vld [vmem:[%s7015_s1 + $0x178] sm:$0xff]  ;;  %v4051_v13 = vld [vmem:[%s7015_s1 + $0x160] sm:$0xff] }
  0x18   :  { %315 = vmatpush.msra.mxu0 %v3994_v4  ;;  %335 = vmatpush.msra.mxu1 %v3999_v5  ;;  %v4056_v14 = vld [vmem:[%s7015_s1 + $0xd8] sm:$0xff]  ;;  %v4061_v15 = vld [vmem:[%s7015_s1 + $0xe0] sm:$0xff]  ;;  %v4070_v16 = vld [vmem:[%s7015_s1 + $0x148] sm:$0xff] }
  0x19   :  { %430 = vmatpush.msra.mxu3 %v3994_v4  ;;  %353 = vmatpush.msra.mxu2 %v4043_v12  ;;  %v4075_v17 = vld [vmem:[%s7015_s1 + $0xc0] sm:$0xff]  ;;  %v4080_v18 = vld [vmem:[%s7015_s1 + $0xc8] sm:$0xff]  ;;  %v4089_v19 = vld [vmem:[%s7015_s1 + $0x130] sm:$0xff] }
  0x1a   :  { %316 = vmatpush.msra.mxu0 %v4007_v6  ;;  %336 = vmatpush.msra.mxu1 %v4012_v7  ;;  %v4094_v20 = vld [vmem:[%s7015_s1 + $0xa8] sm:$0xff]  ;;  %v4099_v21 = vld [vmem:[%s7015_s1 + $0xb0] sm:$0xff]  ;;  %v4113_v23 = vld [vmem:[%s7015_s1 + $0x118] sm:$0xff] }
  0x1b   :  { %431 = vmatpush.msra.mxu3 %v4007_v6  ;;  %354 = vmatpush.msra.mxu2 %v4051_v13  ;;  %v4108_v22 = vld [vmem:[%s7015_s1 + $0x90] sm:$0xff]  ;;  %v4118_v24 = vld [vmem:[%s7015_s1 + $0x98] sm:$0xff]  ;;  %v4127_v25 = vld [vmem:[%s7015_s1 + $0x100] sm:$0xff] }
  0x1c   :  { %317 = vmatpush.msra.mxu0 %v4020_v8  ;;  %337 = vmatpush.msra.mxu1 %v4025_v9  ;;  %v4132_v26 = vld [vmem:[%s7015_s1 + $0x78] sm:$0xff]  ;;  %v4137_v27 = vld [vmem:[%s7015_s1 + $0x80] sm:$0xff]  ;;  %v4146_v28 = vld [vmem:[%s7015_s1 + $0xe8] sm:$0xff] }
  0x1d   :  { %432 = vmatpush.msra.mxu3 %v4020_v8  ;;  %355 = vmatpush.msra.mxu2 %v4070_v16  ;;  %v4151_v29 = vld [vmem:[%s7015_s1 + $0x60] sm:$0xff]  ;;  %v4156_v30 = vld [vmem:[%s7015_s1 + $0x68] sm:$0xff]  ;;  %v4165_v31 = vld [vmem:[%s7015_s1 + $0xd0] sm:$0xff] }
  0x1e   :  { %318 = vmatpush.msra.mxu0 %v4033_v10  ;;  %338 = vmatpush.msra.mxu1 %v4038_v11  ;;  %v4170_v32 = vld [vmem:[%s7015_s1 + $0x48] sm:$0xff]  ;;  %v4175_v33 = vld [vmem:[%s7015_s1 + $0x50] sm:$0xff]  ;;  %v4184_v34 = vld [vmem:[%s7015_s1 + $0xb8] sm:$0xff] }
  0x1f   :  { %433 = vmatpush.msra.mxu3 %v4033_v10  ;;  %356 = vmatpush.msra.mxu2 %v4089_v19  ;;  %v4189_v35 = vld [vmem:[%s7015_s1 + $0x30] sm:$0xff]  ;;  %v4194_v36 = vld [vmem:[%s7015_s1 + $0x38] sm:$0xff]  ;;  %v4203_v37 = vld [vmem:[%s7015_s1 + $0xa0] sm:$0xff] }
  0x20   :  { %319 = vmatpush.msra.mxu0 %v4056_v14  ;;  %339 = vmatpush.msra.mxu1 %v4061_v15  ;;  %7437 = vst [vmem:[#allocation12_spill] sm:$0xff] %v4189_v35  ;;  %v4208_v38 = vld [vmem:[%s7015_s1 + $0x18] sm:$0xff]  ;;  %v4213_v39 = vld [vmem:[%s7015_s1 + $0x20] sm:$0xff]  ;;  %v4222_v40 = vld [vmem:[%s7015_s1 + $0x88] sm:$0xff] }
  0x21   :  { %434 = vmatpush.msra.mxu3 %v4056_v14  ;;  %357 = vmatpush.msra.mxu2 %v4113_v23  ;;  %7438 = vst [vmem:[#allocation13_spill] sm:$0xff] %v4194_v36  ;;  %v4227_v41 = vld [vmem:[%s7015_s1] sm:$0xff]  ;;  %v4232_v42 = vld [vmem:[%s7015_s1 + $0x8] sm:$0xff]  ;;  %v4242_v43 = vld [vmem:[%s7015_s1 + $0x70] sm:$0xff] }
  0x22   :  { %320 = vmatpush.msra.mxu0 %v4075_v17  ;;  %340 = vmatpush.msra.mxu1 %v4080_v18  ;;  %7439 = vst [vmem:[#allocation14_spill] sm:$0xff] %v4208_v38  ;;  %v4252_v45 = vld [vmem:[%s7015_s1 + $0x58] sm:$0xff]  ;;  %v4259_v46 = vld [vmem:[%s7015_s1 + $0x40] sm:$0xff]  ;;  %v4268_v47 = vld [vmem:[%s7015_s1 + $0x28] sm:$0xff] }
  0x23   :  { %435 = vmatpush.msra.mxu3 %v4075_v17  ;;  %358 = vmatpush.msra.mxu2 %v4127_v25  ;;  %7440 = vst [vmem:[#allocation15_spill] sm:$0xff] %v4213_v39  ;;  %v4277_v48 = vld [vmem:[%s7015_s1 + $0x10] sm:$0xff]  ;;  %v312_v49 = vld [vmem:[%s7014_s0] sm:$0x3f] }
  0x24   :  { %321 = vmatpush.msra.mxu0 %v4094_v20  ;;  %341 = vmatpush.msra.mxu1 %v4099_v21  ;;  %7441 = vst [vmem:[#allocation16_spill] sm:$0xff] %v4227_v41  ;;  %v394_v50 = vrot.slane %v312_v49, 2 }
  0x25   :  { %436 = vmatpush.msra.mxu3 %v4094_v20  ;;  %359 = vmatpush.msra.mxu2 %v4146_v28  ;;  %7442 = vst [vmem:[#allocation17_spill] sm:$0xff] %v4232_v42 }
  0x26   :  { %322 = vmatpush.msra.mxu0 %v4108_v22  ;;  %342 = vmatpush.msra.mxu1 %v4118_v24  ;;  %7443 = vst [vmem:[#allocation18_spill] sm:$0xff] %v4259_v46 }
  0x27   :  { %437 = vmatpush.msra.mxu3 %v4108_v22  ;;  %360 = vmatpush.msra.mxu2 %v4165_v31  ;;  %7444 = vst [vmem:[#allocation19_spill] sm:$0xff] %v4268_v47 }
  0x28   :  { %323 = vmatpush.msra.mxu0 %v4132_v26  ;;  %343 = vmatpush.msra.mxu1 %v4137_v27  ;;  %7445 = vst [vmem:[#allocation20_spill] sm:$0xff] %v4277_v48 }
  0x29   :  { %438 = vmatpush.msra.mxu3 %v4132_v26  ;;  %361 = vmatpush.msra.mxu2 %v4184_v34 }
  0x2a   :  { %324 = vmatpush.msra.mxu0 %v4151_v29  ;;  %344 = vmatpush.msra.mxu1 %v4156_v30 }
  0x2b   :  { %439 = vmatpush.msra.mxu3 %v4151_v29  ;;  %362 = vmatpush.msra.mxu2 %v4203_v37 }
  0x2c   :  { %325 = vmatpush.msra.mxu0 %v4170_v32  ;;  %345 = vmatpush.msra.mxu1 %v4175_v33 }
  0x2d   :  { %440 = vmatpush.msra.mxu3 %v4170_v32  ;;  %363 = vmatpush.msra.mxu2 %v4222_v40 }
  0x2e   :  { %326 = vmatpush.msra.mxu0 %v4189_v35  ;;  %346 = vmatpush.msra.mxu1 %v4194_v36 }
  0x2f   :  { %441 = vmatpush.msra.mxu3 %v4189_v35  ;;  %364 = vmatpush.msra.mxu2 %v4242_v43 }
  0x30   :  { %327 = vmatpush.msra.mxu0 %v4208_v38  ;;  %347 = vmatpush.msra.mxu1 %v4213_v39 }
  0x31   :  { %442 = vmatpush.msra.mxu3 %v4208_v38  ;;  %365 = vmatpush.msra.mxu2 %v4252_v45 }
  0x32   :  { %328 = vmatpush.msra.mxu0 %v4227_v41  ;;  %348 = vmatpush.msra.mxu1 %v4232_v42 }
  0x33   :  { %329 = vmatmul.f32.vlgmr.msra.gmra.mxu0 %v7027_v44  ;;  %349 = vmatmul.f32.vlgmr.msra.gmra.mxu1 %v7027_v44 }
  0x34   :  { %448 = vmatpush.msrb.mxu0 %v3977_v1  ;;  %468 = vmatpush.msrb.mxu1 %v4043_v12 }
  0x35   :  { %443 = vmatpush.msra.mxu3 %v4227_v41  ;;  %366 = vmatpush.msra.mxu2 %v4259_v46 }
  0x36   :  { %449 = vmatpush.msrb.mxu0 %v3989_v3  ;;  %469 = vmatpush.msrb.mxu1 %v4051_v13 }
  0x37   :  { %563 = vmatpush.msrb.mxu3 %v3977_v1  ;;  %367 = vmatpush.msra.mxu2 %v4268_v47 }
  0x38   :  { %450 = vmatpush.msrb.mxu0 %v3999_v5  ;;  %470 = vmatpush.msrb.mxu1 %v4070_v16 }
  0x39   :  { %564 = vmatpush.msrb.mxu3 %v3989_v3  ;;  %368 = vmatpush.msra.mxu2 %v4277_v48 }
  0x3a   :  { %451 = vmatpush.msrb.mxu0 %v4012_v7  ;;  %471 = vmatpush.msrb.mxu1 %v4089_v19 }
  0x3b   :  { %565 = vmatpush.msrb.mxu3 %v3999_v5  ;;  %369 = vmatmul.f32.vlgmr.msra.gmra.mxu2 %v7027_v44 }
  0x3c   :  { %452 = vmatpush.msrb.mxu0 %v4025_v9  ;;  %472 = vmatpush.msrb.mxu1 %v4113_v23 }
  0x3d   :  { %543 = vmatpush.msrb.mxu2 %v3972_v0  ;;  %566 = vmatpush.msrb.mxu3 %v4012_v7 }
  0x3e   :  { %453 = vmatpush.msrb.mxu0 %v4038_v11  ;;  %473 = vmatpush.msrb.mxu1 %v4127_v25 }
  0x3f   :  { %544 = vmatpush.msrb.mxu2 %v3982_v2  ;;  %567 = vmatpush.msrb.mxu3 %v4025_v9 }
  0x40   :  { %454 = vmatpush.msrb.mxu0 %v4061_v15  ;;  %474 = vmatpush.msrb.mxu1 %v4146_v28 }
  0x41   :  { %545 = vmatpush.msrb.mxu2 %v3994_v4  ;;  %568 = vmatpush.msrb.mxu3 %v4038_v11 }
  0x42   :  { %455 = vmatpush.msrb.mxu0 %v4080_v18  ;;  %475 = vmatpush.msrb.mxu1 %v4165_v31 }
  0x43   :  { %546 = vmatpush.msrb.mxu2 %v4007_v6  ;;  %569 = vmatpush.msrb.mxu3 %v4061_v15 }
  0x44   :  { %456 = vmatpush.msrb.mxu0 %v4099_v21  ;;  %476 = vmatpush.msrb.mxu1 %v4184_v34 }
  0x45   :  { %547 = vmatpush.msrb.mxu2 %v4020_v8  ;;  %570 = vmatpush.msrb.mxu3 %v4080_v18 }
  0x46   :  { %457 = vmatpush.msrb.mxu0 %v4118_v24  ;;  %477 = vmatpush.msrb.mxu1 %v4203_v37 }
  0x47   :  { %548 = vmatpush.msrb.mxu2 %v4033_v10  ;;  %571 = vmatpush.msrb.mxu3 %v4099_v21 }
  0x48   :  { %458 = vmatpush.msrb.mxu0 %v4137_v27  ;;  %478 = vmatpush.msrb.mxu1 %v4222_v40 }
  0x49   :  { %549 = vmatpush.msrb.mxu2 %v4056_v14  ;;  %572 = vmatpush.msrb.mxu3 %v4118_v24 }
  0x4a   :  { %459 = vmatpush.msrb.mxu0 %v4156_v30  ;;  %479 = vmatpush.msrb.mxu1 %v4242_v43 }
  0x4b   :  { %550 = vmatpush.msrb.mxu2 %v4075_v17  ;;  %573 = vmatpush.msrb.mxu3 %v4137_v27 }
  0x4c   :  { %460 = vmatpush.msrb.mxu0 %v4175_v33  ;;  %480 = vmatpush.msrb.mxu1 %v4252_v45 }
  0x4d   :  { %551 = vmatpush.msrb.mxu2 %v4094_v20  ;;  %574 = vmatpush.msrb.mxu3 %v4156_v30 }
  0x4e   :  { %461 = vmatpush.msrb.mxu0 %v4194_v36  ;;  %481 = vmatpush.msrb.mxu1 %v4259_v46 }
  0x4f   :  { %552 = vmatpush.msrb.mxu2 %v4108_v22  ;;  %575 = vmatpush.msrb.mxu3 %v4175_v33 }
  0x50   :  { %462 = vmatpush.msrb.mxu0 %v4213_v39  ;;  %482 = vmatpush.msrb.mxu1 %v4268_v47 }
  0x51   :  { %553 = vmatpush.msrb.mxu2 %v4132_v26  ;;  %576 = vmatpush.msrb.mxu3 %v4194_v36 }
  0x52   :  { %463 = vmatpush.msrb.mxu0 %v4232_v42  ;;  %483 = vmatpush.msrb.mxu1 %v4277_v48 }
  0x53   :  { %554 = vmatpush.msrb.mxu2 %v4151_v29  ;;  %577 = vmatpush.msrb.mxu3 %v4213_v39 }
  0x54   :  { %583 = vmatpush.msra.mxu0 %v4043_v12  ;;  %658 = vmatpush.msra.mxu1 %v3972_v0 }
  0x55   :  { %555 = vmatpush.msrb.mxu2 %v4170_v32  ;;  %578 = vmatpush.msrb.mxu3 %v4232_v42 }
  0x56   :  { %584 = vmatpush.msra.mxu0 %v4051_v13  ;;  %659 = vmatpush.msra.mxu1 %v3982_v2 }
  0x57   :  { %556 = vmatpush.msrb.mxu2 %v4189_v35 }
  0x58   :  { %585 = vmatpush.msra.mxu0 %v4070_v16  ;;  %660 = vmatpush.msra.mxu1 %v3994_v4 }
  0x59   :  { %557 = vmatpush.msrb.mxu2 %v4208_v38 }
  0x5a   :  { %586 = vmatpush.msra.mxu0 %v4089_v19  ;;  %661 = vmatpush.msra.mxu1 %v4007_v6 }
  0x5b   :  { %558 = vmatpush.msrb.mxu2 %v4227_v41 }
  0x5c   :  { %587 = vmatpush.msra.mxu0 %v4113_v23  ;;  %662 = vmatpush.msra.mxu1 %v4020_v8 }
  0x5d   :  { %678 = vmatpush.msra.mxu2 %v3977_v1 }
  0x5e   :  { %588 = vmatpush.msra.mxu0 %v4127_v25  ;;  %663 = vmatpush.msra.mxu1 %v4033_v10 }
  0x5f   :  { %679 = vmatpush.msra.mxu2 %v3989_v3 }
  0x60   :  { %589 = vmatpush.msra.mxu0 %v4146_v28  ;;  %664 = vmatpush.msra.mxu1 %v4056_v14 }
  0x61   :  { %680 = vmatpush.msra.mxu2 %v3999_v5 }
  0x62   :  { %590 = vmatpush.msra.mxu0 %v4165_v31  ;;  %665 = vmatpush.msra.mxu1 %v4075_v17 }
  0x63   :  { %681 = vmatpush.msra.mxu2 %v4012_v7 }
  0x64   :  { %591 = vmatpush.msra.mxu0 %v4184_v34  ;;  %666 = vmatpush.msra.mxu1 %v4094_v20 }
  0x65   :  { %682 = vmatpush.msra.mxu2 %v4025_v9 }
  0x66   :  { %592 = vmatpush.msra.mxu0 %v4203_v37  ;;  %667 = vmatpush.msra.mxu1 %v4108_v22 }
  0x67   :  { %683 = vmatpush.msra.mxu2 %v4038_v11 }
  0x68   :  { %593 = vmatpush.msra.mxu0 %v4222_v40  ;;  %668 = vmatpush.msra.mxu1 %v4132_v26 }
  0x69   :  { %684 = vmatpush.msra.mxu2 %v4061_v15 }
  0x6a   :  { %594 = vmatpush.msra.mxu0 %v4242_v43  ;;  %669 = vmatpush.msra.mxu1 %v4151_v29 }
  0x6b   :  { %685 = vmatpush.msra.mxu2 %v4080_v18 }
  0x6c   :  { %595 = vmatpush.msra.mxu0 %v4252_v45  ;;  %670 = vmatpush.msra.mxu1 %v4170_v32 }
  0x6d   :  { %686 = vmatpush.msra.mxu2 %v4099_v21 }
  0x6e   :  { %596 = vmatpush.msra.mxu0 %v4259_v46  ;;  %671 = vmatpush.msra.mxu1 %v4189_v35 }
  0x6f   :  { %687 = vmatpush.msra.mxu2 %v4118_v24 }
  0x70   :  { %597 = vmatpush.msra.mxu0 %v4268_v47  ;;  %672 = vmatpush.msra.mxu1 %v4208_v38 }
  0x71   :  { %688 = vmatpush.msra.mxu2 %v4137_v27 }
  0x72   :  { %598 = vmatpush.msra.mxu0 %v4277_v48  ;;  %673 = vmatpush.msra.mxu1 %v4227_v41  ;;  %v418_v48 = vrot.slane %v312_v49, 4 }
  0x73   :  { %689 = vmatpush.msra.mxu2 %v4156_v30 }
  0x75   :  { %690 = vmatpush.msra.mxu2 %v4175_v33 }
  0x77   :  { %691 = vmatpush.msra.mxu2 %v4194_v36 }
  0x79   :  { %692 = vmatpush.msra.mxu2 %v4213_v39 }
  0x7b   :  { %693 = vmatpush.msra.mxu2 %v4232_v42  ;;  %v4394_v42 = vld [vmem:[%s7016_s2] ss:$0 sm:$0xff] }
  0xb0   :  { %v330_v51 = vpop.f32.mrf.mxu0  ;;  %v350_v52 = vpop.f32.mrf.mxu1 }
  0xb1   :  { %v373_v53 = vadd.f32 %v330_v51, %v312_v49  ;;  %v396_v54 = vadd.f32 %v394_v50, %v350_v52 }
  0xb3   :  { %v3223_v55 = vmul.f32 -1.442695, %v373_v53  ;;  %v3224_v56 = vmul.f32 -1.442695, %v396_v54 }
  0xb5   :  { %3276 = vpow2.f32 %v3223_v55 }
  0xb6   :  { %3278 = vpow2.f32 %v3224_v56 }
  0xbb   :  { %v3277_v57 = vpop.eup %3276 }
  0xbc   :  { %v3279_v58 = vpop.eup %3278  ;;  %v377_v59 = vadd.f32 1.0, %v3277_v57 }
  0xbd   :  { %v400_v60 = vadd.f32 1.0, %v3279_v58 }
  0xbe   :  { %3280 = vrcp.f32 %v377_v59  ;;  %v370_v52 = vpop.f32.mrf.mxu2  ;;  %v389_v53 = vand.u32 2147483648, %v377_v59  ;;  %v387_v55 = vand.u32 2147483647, %v377_v59  ;;  %vm383_vm1 = vweird.f32 %v377_v59 }
  0xbf   :  { %3282 = vrcp.f32 %v400_v60  ;;  %v416_v58 = vadd.f32 %v4394_v42, %v370_v52  ;;  %vm406_vm4 = vweird.f32 %v400_v60  ;;  %v410_v36 = vand.u32 2147483647, %v400_v60 }
  0xc0   :  { %v390_v41 = vor.u32 1.1754944e-38, %v389_v53  ;;  %vm388_vm3 = vcmp.eq.f32.partialorder %v387_v55, 8.507059e+37 }
  0xc1   :  { %vm411_vm7 = vcmp.eq.f32.partialorder %v410_v36, 8.507059e+37  ;;  %v7448_v36 = vld [vmem:[#allocation13_spill] sm:$0xff] }
  0xc4   :  { %v3281_v61 = vpop.eup %3280 }
  0xc5   :  { %v3283_v62 = vpop.eup %3282  ;;  %v379_v63 = vmul.f32 %v3281_v61, %v377_v59  ;;  %vm384_vm0 = vweird.f32 %v3281_v61 }
  0xc6   :  { %v402_v44 = vmul.f32 %v3283_v62, %v400_v60  ;;  %vm385_vm2 = vmor %vm383_vm1, %vm384_vm0  ;;  %vm407_vm5 = vweird.f32 %v3283_v62 }
  0xc7   :  { %v380_v50 = vsub.f32 1.0, %v379_v63  ;;  %vm408_vm6 = vmor %vm406_vm4, %vm407_vm5 }
  0xc8   :  { %v403_v51 = vsub.f32 1.0, %v402_v44  ;;  %v412_v44 = vand.u32 2147483648, %v400_v60  ;;  %v7454_v60 = vld [vmem:[#allocation17_spill] sm:$0xff] }
  0xc9   :  { %v381_v54 = vmul.f32 %v3281_v61, %v380_v50 }
  0xca   :  { %v404_v56 = vmul.f32 %v3283_v62, %v403_v51  ;;  %v413_v51 = vor.u32 1.1754944e-38, %v412_v44 }
  0xcb   :  { %v382_v57 = vadd.f32 %v3281_v61, %v381_v54 }
  0xcc   :  { %v405_v38 = vadd.f32 %v3283_v62, %v404_v56 }
  0xcd   :  { %v386_v39 = vsel %vm385_vm2, %v3281_v61, %v382_v57 }
  0xce   :  { %v391_v63 = vsel %vm388_vm3, %v390_v41, %v386_v39  ;;  %v409_v35 = vsel %vm408_vm6, %v3283_v62, %v405_v38  ;;  %v7449_v38 = vld [vmem:[#allocation19_spill] sm:$0xff]  ;;  %v7450_v39 = vld [vmem:[#allocation14_spill] sm:$0xff]  ;;  %v3225_v62 = vld [vmem:[%s7014_s0 + $0x6] sm:$0x3f] }
  0xcf   :  { %v417_v47 = vmul.f32 %v416_v58, %v391_v63  ;;  %v414_v59 = vsel %vm411_vm7, %v413_v51, %v409_v35  ;;  %v7447_v35 = vld [vmem:[#allocation12_spill] sm:$0xff]  ;;  %v7451_v41 = vld [vmem:[#allocation15_spill] sm:$0xff]  ;;  %v509_v55 = vrot.slane %v3225_v62, 2 }
  0xd0   :  { %v422_v52 = vsub.f32 1.0, %v414_v59  ;;  %v424_v49 = vmul.f32 0.0, %v414_v59 }
  0xd1   :  { %v420_v50 = vadd.f32 %v418_v48, %v417_v47  ;;  %v7452_v47 = vld [vmem:[#allocation20_spill] sm:$0xff] }
  0xd2   :  { %v7453_v48 = vld [vmem:[#allocation16_spill] sm:$0xff] }
  0xd3   :  { %3284 = vtanh.f32 %v420_v50 }
  0xd9   :  { %v3285_v54 = vpop.eup %3284 }
  0xda   :  { %v423_v53 = vmul.f32 %v3285_v54, %v422_v52 }
  0xdc   :  { %v4397_v61 = vadd.f32 %v424_v49, %v423_v53 }
  0xde   :  { %7446 = vst [vmem:[#allocation21_spill] sm:$0xff] %v4397_v61  ;;  %444 = vmatmul.f32.vlgmr.msra.gmra.mxu3 %v4397_v61  ;;  %464 = vmatmul.f32.vlgmr.msrb.gmra.mxu0 %v4397_v61 }
  0xdf   :  { %484 = vmatmul.f32.vlgmr.msrb.gmra.mxu1 %v4397_v61  ;;  %698 = vmatpush.msra.mxu3 %v4043_v12 }
  0xe0   :  { %773 = vmatpush.msrb.mxu0 %v3972_v0  ;;  %793 = vmatpush.msrb.mxu1 %v3977_v1 }
  0xe1   :  { %699 = vmatpush.msra.mxu3 %v4051_v13 }
  0xe2   :  { %774 = vmatpush.msrb.mxu0 %v3982_v2  ;;  %794 = vmatpush.msrb.mxu1 %v3989_v3 }
  0xe3   :  { %700 = vmatpush.msra.mxu3 %v4070_v16 }
  0xe4   :  { %775 = vmatpush.msrb.mxu0 %v3994_v4  ;;  %795 = vmatpush.msrb.mxu1 %v3999_v5 }
  0xe5   :  { %701 = vmatpush.msra.mxu3 %v4089_v19 }
  0xe6   :  { %776 = vmatpush.msrb.mxu0 %v4007_v6  ;;  %796 = vmatpush.msrb.mxu1 %v4012_v7 }
  0xe7   :  { %702 = vmatpush.msra.mxu3 %v4113_v23 }
  0xe8   :  { %777 = vmatpush.msrb.mxu0 %v4020_v8  ;;  %797 = vmatpush.msrb.mxu1 %v4025_v9 }
  0xe9   :  { %703 = vmatpush.msra.mxu3 %v4127_v25 }
  0xea   :  { %778 = vmatpush.msrb.mxu0 %v4033_v10  ;;  %798 = vmatpush.msrb.mxu1 %v4038_v11 }
  0xeb   :  { %704 = vmatpush.msra.mxu3 %v4146_v28 }
  0xec   :  { %779 = vmatpush.msrb.mxu0 %v4056_v14  ;;  %799 = vmatpush.msrb.mxu1 %v4061_v15 }
  0xed   :  { %705 = vmatpush.msra.mxu3 %v4165_v31 }
  0xee   :  { %780 = vmatpush.msrb.mxu0 %v4075_v17  ;;  %800 = vmatpush.msrb.mxu1 %v4080_v18 }
  0xef   :  { %706 = vmatpush.msra.mxu3 %v4184_v34 }
  0xf0   :  { %781 = vmatpush.msrb.mxu0 %v4094_v20  ;;  %801 = vmatpush.msrb.mxu1 %v4099_v21 }
  0xf1   :  { %707 = vmatpush.msra.mxu3 %v4203_v37 }
  0xf2   :  { %782 = vmatpush.msrb.mxu0 %v4108_v22  ;;  %802 = vmatpush.msrb.mxu1 %v4118_v24 }
  0xf3   :  { %708 = vmatpush.msra.mxu3 %v4222_v40 }
  0xf4   :  { %783 = vmatpush.msrb.mxu0 %v4132_v26  ;;  %803 = vmatpush.msrb.mxu1 %v4137_v27 }
  0xf5   :  { %709 = vmatpush.msra.mxu3 %v4242_v43 }
  0xf6   :  { %784 = vmatpush.msrb.mxu0 %v4151_v29  ;;  %804 = vmatpush.msrb.mxu1 %v4156_v30 }
  0xf7   :  { %710 = vmatpush.msra.mxu3 %v4252_v45 }
  0xf8   :  { %785 = vmatpush.msrb.mxu0 %v4170_v32  ;;  %805 = vmatpush.msrb.mxu1 %v4175_v33 }
  0xf9   :  { %711 = vmatpush.msra.mxu3 %v4259_v46 }
  0xfa   :  { %786 = vmatpush.msrb.mxu0 %v7447_v35  ;;  %806 = vmatpush.msrb.mxu1 %v7448_v36 }
  0xfb   :  { %712 = vmatpush.msra.mxu3 %v7449_v38 }
  0xfc   :  { %787 = vmatpush.msrb.mxu0 %v7450_v39  ;;  %807 = vmatpush.msrb.mxu1 %v7451_v41 }
  0xfd   :  { %713 = vmatpush.msra.mxu3 %v7452_v47 }
  0xfe   :  { %788 = vmatpush.msrb.mxu0 %v7453_v48  ;;  %808 = vmatpush.msrb.mxu1 %v7454_v60 }
 0x15b   :  { %v465_v56 = vpop.f32.mrf.mxu0 }
 0x15c   :  { %v511_v57 = vadd.f32 %v509_v55, %v465_v56 }
 0x15e   :  { %v3227_v58 = vmul.f32 -1.442695, %v511_v57 }
 0x160   :  { %3286 = vpow2.f32 %v3227_v58  ;;  %v485_v58 = vpop.f32.mrf.mxu1 }
 0x161   :  { %v445_v63 = vpop.f32.mrf.mxu3 }
 0x162   :  { %v488_v44 = vadd.f32 %v3225_v62, %v445_v63 }
 0x164   :  { %v3226_v50 = vmul.f32 -1.442695, %v488_v44 }
 0x166   :  { %v3287_v51 = vpop.eup %3286  ;;  %3288 = vpow2.f32 %v3226_v50  ;;  %v533_v50 = vrot.slane %v3225_v62, 4 }
 0x167   :  { %v515_v59 = vadd.f32 1.0, %v3287_v51  ;;  %v531_v51 = vadd.f32 %v4394_v42, %v485_v58  ;;  %v7463_v58 = vld [vmem:[#allocation16_spill] sm:$0xff] }
 0x169   :  { %3290 = vrcp.f32 %v515_v59  ;;  %vm521_vm13 = vweird.f32 %v515_v59 }
 0x16c   :  { %v3289_v52 = vpop.eup %3288 }
 0x16d   :  { %v492_v54 = vadd.f32 1.0, %v3289_v52 }
 0x16f   :  { %3292 = vrcp.f32 %v492_v54  ;;  %v3291_v53 = vpop.eup %3290  ;;  %v504_v39 = vand.u32 2147483648, %v492_v54  ;;  %v502_v56 = vand.u32 2147483647, %v492_v54  ;;  %vm498_vm9 = vweird.f32 %v492_v54 }
 0x170   :  { %v517_v49 = vmul.f32 %v3291_v53, %v515_v59  ;;  %vm522_vm12 = vweird.f32 %v3291_v53 }
 0x171   :  { %v505_v44 = vor.u32 1.1754944e-38, %v504_v39  ;;  %vm503_vm11 = vcmp.eq.f32.partialorder %v502_v56, 8.507059e+37  ;;  %vm523_vm14 = vmor %vm521_vm13, %vm522_vm12 }
 0x172   :  { %v518_v47 = vsub.f32 1.0, %v517_v49  ;;  %v527_v49 = vand.u32 2147483648, %v515_v59 }
 0x174   :  { %v519_v57 = vmul.f32 %v3291_v53, %v518_v47  ;;  %v528_v46 = vor.u32 1.1754944e-38, %v527_v49 }
 0x175   :  { %v3293_v60 = vpop.eup %3292 }
 0x176   :  { %v494_v48 = vmul.f32 %v3293_v60, %v492_v54  ;;  %vm499_vm8 = vweird.f32 %v3293_v60  ;;  %v520_v38 = vadd.f32 %v3291_v53, %v519_v57  ;;  %v7462_v57 = vld [vmem:[#allocation20_spill] sm:$0xff] }
 0x177   :  { %vm500_vm10 = vmor %vm498_vm9, %vm499_vm8 }
 0x178   :  { %v495_v41 = vsub.f32 1.0, %v494_v48  ;;  %v524_v47 = vsel %vm523_vm14, %v3291_v53, %v520_v38  ;;  %v7459_v38 = vld [vmem:[#allocation19_spill] sm:$0xff] }
 0x179   :  { %v7461_v53 = vld [vmem:[#allocation15_spill] sm:$0xff] }
 0x17a   :  { %v496_v55 = vmul.f32 %v3293_v60, %v495_v41  ;;  %v525_v41 = vand.u32 2147483647, %v515_v59  ;;  %v7460_v59 = vld [vmem:[#allocation14_spill] sm:$0xff] }
 0x17c   :  { %v497_v63 = vadd.f32 %v3293_v60, %v496_v55  ;;  %vm526_vm15 = vcmp.eq.f32.partialorder %v525_v41, 8.507059e+37 }
 0x17d   :  { %v529_v54 = vsel %vm526_vm15, %v528_v46, %v524_v47  ;;  %v7456_v46 = vld [vmem:[#allocation18_spill] sm:$0xff] }
 0x17e   :  { %v501_v52 = vsel %vm500_vm10, %v3293_v60, %v497_v63  ;;  %v537_v39 = vsub.f32 1.0, %v529_v54  ;;  %v539_v55 = vmul.f32 %v529_v54, %v4397_v61  ;;  %v7464_v63 = vld [vmem:[#allocation17_spill] sm:$0xff] }
 0x17f   :  { %v506_v36 = vsel %vm503_vm11, %v505_v44, %v501_v52  ;;  %v3228_v44 = vld [vmem:[%s7014_s0 + $0xc] sm:$0x3f] }
 0x180   :  { %v532_v48 = vmul.f32 %v531_v51, %v506_v36  ;;  %v7458_v36 = vld [vmem:[#allocation13_spill] sm:$0xff] }
 0x182   :  { %v535_v35 = vadd.f32 %v533_v50, %v532_v48  ;;  %v624_v50 = vrot.slane %v3228_v44, 2 }
 0x184   :  { %3294 = vtanh.f32 %v535_v35  ;;  %v7457_v35 = vld [vmem:[#allocation12_spill] sm:$0xff] }
 0x18a   :  { %v3295_v62 = vpop.eup %3294 }
 0x18b   :  { %v538_v60 = vmul.f32 %v3295_v62, %v537_v39 }
 0x18d   :  { %v4455_v56 = vadd.f32 %v539_v55, %v538_v60 }
 0x18f   :  { %7455 = vst [vmem:[#allocation22_spill] sm:$0xff] %v4455_v56  ;;  %559 = vmatmul.f32.vlgmr.msrb.gmra.mxu2 %v4455_v56  ;;  %579 = vmatmul.f32.vlgmr.msrb.gmra.mxu3 %v4455_v56 }
 0x190   :  { %599 = vmatmul.f32.vlgmr.msra.gmra.mxu0 %v4455_v56  ;;  %813 = vmatpush.msrb.mxu2 %v4043_v12 }
 0x191   :  { %888 = vmatpush.msrb.mxu3 %v3972_v0  ;;  %908 = vmatpush.msra.mxu0 %v3977_v1 }
 0x192   :  { %814 = vmatpush.msrb.mxu2 %v4051_v13 }
 0x193   :  { %889 = vmatpush.msrb.mxu3 %v3982_v2  ;;  %909 = vmatpush.msra.mxu0 %v3989_v3 }
 0x194   :  { %815 = vmatpush.msrb.mxu2 %v4070_v16 }
 0x195   :  { %890 = vmatpush.msrb.mxu3 %v3994_v4  ;;  %910 = vmatpush.msra.mxu0 %v3999_v5 }
 0x196   :  { %816 = vmatpush.msrb.mxu2 %v4089_v19 }
 0x197   :  { %891 = vmatpush.msrb.mxu3 %v4007_v6  ;;  %911 = vmatpush.msra.mxu0 %v4012_v7 }
 0x198   :  { %817 = vmatpush.msrb.mxu2 %v4113_v23 }
 0x199   :  { %892 = vmatpush.msrb.mxu3 %v4020_v8  ;;  %912 = vmatpush.msra.mxu0 %v4025_v9 }
 0x19a   :  { %818 = vmatpush.msrb.mxu2 %v4127_v25 }
 0x19b   :  { %893 = vmatpush.msrb.mxu3 %v4033_v10  ;;  %913 = vmatpush.msra.mxu0 %v4038_v11 }
 0x19c   :  { %819 = vmatpush.msrb.mxu2 %v4146_v28 }
 0x19d   :  { %894 = vmatpush.msrb.mxu3 %v4056_v14  ;;  %914 = vmatpush.msra.mxu0 %v4061_v15 }
 0x19e   :  { %820 = vmatpush.msrb.mxu2 %v4165_v31 }
 0x19f   :  { %895 = vmatpush.msrb.mxu3 %v4075_v17  ;;  %915 = vmatpush.msra.mxu0 %v4080_v18 }
 0x1a0   :  { %821 = vmatpush.msrb.mxu2 %v4184_v34 }
 0x1a1   :  { %896 = vmatpush.msrb.mxu3 %v4094_v20  ;;  %916 = vmatpush.msra.mxu0 %v4099_v21 }
 0x1a2   :  { %822 = vmatpush.msrb.mxu2 %v4203_v37 }
 0x1a3   :  { %897 = vmatpush.msrb.mxu3 %v4108_v22  ;;  %917 = vmatpush.msra.mxu0 %v4118_v24 }
 0x1a4   :  { %823 = vmatpush.msrb.mxu2 %v4222_v40 }
 0x1a5   :  { %898 = vmatpush.msrb.mxu3 %v4132_v26  ;;  %918 = vmatpush.msra.mxu0 %v4137_v27 }
 0x1a6   :  { %824 = vmatpush.msrb.mxu2 %v4242_v43 }
 0x1a7   :  { %899 = vmatpush.msrb.mxu3 %v4151_v29  ;;  %919 = vmatpush.msra.mxu0 %v4156_v30 }
 0x1a8   :  { %825 = vmatpush.msrb.mxu2 %v4252_v45 }
 0x1a9   :  { %900 = vmatpush.msrb.mxu3 %v4170_v32  ;;  %920 = vmatpush.msra.mxu0 %v4175_v33 }
 0x1aa   :  { %826 = vmatpush.msrb.mxu2 %v7456_v46 }
 0x1ab   :  { %901 = vmatpush.msrb.mxu3 %v7457_v35  ;;  %921 = vmatpush.msra.mxu0 %v7458_v36 }
 0x1ac   :  { %827 = vmatpush.msrb.mxu2 %v7459_v38 }
 0x1ad   :  { %902 = vmatpush.msrb.mxu3 %v7460_v59  ;;  %922 = vmatpush.msra.mxu0 %v7461_v53 }
 0x1ae   :  { %828 = vmatpush.msrb.mxu2 %v7462_v57 }
 0x1af   :  { %903 = vmatpush.msrb.mxu3 %v7463_v58  ;;  %923 = vmatpush.msra.mxu0 %v7464_v63 }
 0x212   :  { %v560_v51 = vpop.f32.mrf.mxu2  ;;  %v580_v52 = vpop.f32.mrf.mxu3 }
 0x213   :  { %v603_v49 = vadd.f32 %v3228_v44, %v560_v51  ;;  %v626_v48 = vadd.f32 %v624_v50, %v580_v52  ;;  %v600_v51 = vpop.f32.mrf.mxu0 }
 0x215   :  { %v3229_v41 = vmul.f32 -1.442695, %v603_v49  ;;  %v3230_v47 = vmul.f32 -1.442695, %v626_v48 }
 0x217   :  { %3296 = vpow2.f32 %v3229_v41  ;;  %v646_v41 = vadd.f32 %v4394_v42, %v600_v51 }
 0x218   :  { %3298 = vpow2.f32 %v3230_v47 }
 0x21d   :  { %v3297_v54 = vpop.eup %3296 }
 0x21e   :  { %v3299_v39 = vpop.eup %3298  ;;  %v607_v62 = vadd.f32 1.0, %v3297_v54  ;;  %v648_v54 = vrot.slane %v3228_v44, 4 }
 0x21f   :  { %v630_v55 = vadd.f32 1.0, %v3299_v39 }
 0x220   :  { %3300 = vrcp.f32 %v607_v62  ;;  %v619_v53 = vand.u32 2147483648, %v607_v62  ;;  %v617_v50 = vand.u32 2147483647, %v607_v62  ;;  %vm613_vm1 = vweird.f32 %v607_v62 }
 0x221   :  { %3302 = vrcp.f32 %v630_v55  ;;  %v642_v35 = vand.u32 2147483648, %v630_v55  ;;  %vm636_vm5 = vweird.f32 %v630_v55 }
 0x222   :  { %v620_v48 = vor.u32 1.1754944e-38, %v619_v53  ;;  %vm618_vm3 = vcmp.eq.f32.partialorder %v617_v50, 8.507059e+37 }
 0x226   :  { %v3301_v60 = vpop.eup %3300 }
 0x227   :  { %v3303_v61 = vpop.eup %3302  ;;  %v609_v63 = vmul.f32 %v3301_v60, %v607_v62  ;;  %vm614_vm0 = vweird.f32 %v3301_v60 }
 0x228   :  { %v632_v58 = vmul.f32 %v3303_v61, %v630_v55  ;;  %vm615_vm2 = vmor %vm613_vm1, %vm614_vm0  ;;  %vm637_vm4 = vweird.f32 %v3303_v61 }
 0x229   :  { %v610_v57 = vsub.f32 1.0, %v609_v63  ;;  %vm638_vm6 = vmor %vm636_vm5, %vm637_vm4 }
 0x22a   :  { %v633_v59 = vsub.f32 1.0, %v632_v58 }
 0x22b   :  { %v611_v38 = vmul.f32 %v3301_v60, %v610_v57  ;;  %v640_v57 = vand.u32 2147483647, %v630_v55 }
 0x22c   :  { %v634_v52 = vmul.f32 %v3303_v61, %v633_v59 }
 0x22d   :  { %v612_v49 = vadd.f32 %v3301_v60, %v611_v38  ;;  %v643_v38 = vor.u32 1.1754944e-38, %v642_v35  ;;  %vm641_vm7 = vcmp.eq.f32.partialorder %v640_v57, 8.507059e+37  ;;  %v3444_v57 = vld [vmem:[%s7015_s1 + $0x170] sm:$0xff] }
 0x22e   :  { %v635_v36 = vadd.f32 %v3303_v61, %v634_v52 }
 0x22f   :  { %v616_v47 = vsel %vm615_vm2, %v3301_v60, %v612_v49 }
 0x230   :  { %v621_v39 = vsel %vm618_vm3, %v620_v48, %v616_v47  ;;  %v639_v46 = vsel %vm638_vm6, %v3303_v61, %v635_v36 }
 0x231   :  { %v647_v63 = vmul.f32 %v646_v41, %v621_v39  ;;  %v644_v59 = vsel %vm641_vm7, %v643_v38, %v639_v46  ;;  %v4579_v39 = vld [vmem:[%s7015_s1 + $0x178] sm:$0xff]  ;;  %v3446_v38 = vld [vmem:[%s7015_s1 + $0x150] sm:$0xff] }
 0x232   :  { %v652_v53 = vsub.f32 1.0, %v644_v59  ;;  %v654_v60 = vmul.f32 %v644_v59, %v4455_v56  ;;  %v3447_v59 = vld [vmem:[%s7015_s1 + $0x158] sm:$0xff] }
 0x233   :  { %v650_v58 = vadd.f32 %v648_v54, %v647_v63  ;;  %v3443_v63 = vld [vmem:[%s7015_s1 + $0x168] sm:$0xff]  ;;  %v5124_v56 = vld [vmem:[#allocation2 + $0x118] sm:$0xff] }
 0x234   :  { %7534 = vst [vmem:[#allocation72_spill] sm:$0xff] %v5124_v56 }
 0x235   :  { %3304 = vtanh.f32 %v650_v58  ;;  %v4591_v58 = vld [vmem:[%s7015_s1 + $0x160] sm:$0xff] }
 0x23b   :  { %v3305_v62 = vpop.eup %3304 }
 0x23c   :  { %v653_v51 = vmul.f32 %v3305_v62, %v652_v53  ;;  %v4603_v53 = vld [vmem:[%s7015_s1 + $0x148] sm:$0xff]  ;;  %v3449_v62 = vld [vmem:[%s7015_s1 + $0x138] sm:$0xff] }
 0x23e   :  { %v4513_v44 = vadd.f32 %v654_v60, %v653_v51  ;;  %v3450_v51 = vld [vmem:[%s7015_s1 + $0x140] sm:$0xff]  ;;  %v4615_v60 = vld [vmem:[%s7015_s1 + $0x130] sm:$0xff] }
 0x240   :  { %7465 = vst [vmem:[#allocation23_spill] sm:$0xff] %v4513_v44  ;;  %674 = vmatmul.f32.vlgmr.msra.gmra.mxu1 %v4513_v44  ;;  %694 = vmatmul.f32.vlgmr.msra.gmra.mxu2 %v4513_v44 }
 0x241   :  { %714 = vmatmul.f32.vlgmr.msra.gmra.mxu3 %v4513_v44  ;;  %928 = vmatpush.msra.mxu1 %v4043_v12 }
 0x242   :  { %1003 = vmatpush.msra.mxu2 %v3972_v0  ;;  %1023 = vmatpush.msra.mxu3 %v3977_v1  ;;  %v7466_v0 = vld [vmem:[#allocation18_spill] sm:$0xff]  ;;  %v7467_v1 = vld [vmem:[#allocation12_spill] sm:$0xff] }
 0x243   :  { %929 = vmatpush.msra.mxu1 %v4051_v13 }
 0x244   :  { %1004 = vmatpush.msra.mxu2 %v3982_v2  ;;  %1024 = vmatpush.msra.mxu3 %v3989_v3  ;;  %v7468_v2 = vld [vmem:[#allocation13_spill] sm:$0xff]  ;;  %v7469_v3 = vld [vmem:[#allocation19_spill] sm:$0xff] }
 0x245   :  { %930 = vmatpush.msra.mxu1 %v4070_v16 }
 0x246   :  { %1005 = vmatpush.msra.mxu2 %v3994_v4  ;;  %1025 = vmatpush.msra.mxu3 %v3999_v5  ;;  %v7470_v4 = vld [vmem:[#allocation14_spill] sm:$0xff]  ;;  %v7471_v5 = vld [vmem:[#allocation15_spill] sm:$0xff] }
 0x247   :  { %931 = vmatpush.msra.mxu1 %v4089_v19 }
 0x248   :  { %1006 = vmatpush.msra.mxu2 %v4007_v6  ;;  %1026 = vmatpush.msra.mxu3 %v4012_v7  ;;  %v7472_v6 = vld [vmem:[#allocation20_spill] sm:$0xff] }
 0x249   :  { %932 = vmatpush.msra.mxu1 %v4113_v23  ;;  %v7473_v7 = vld [vmem:[#allocation16_spill] sm:$0xff] }
 0x24a   :  { %1007 = vmatpush.msra.mxu2 %v4020_v8  ;;  %1027 = vmatpush.msra.mxu3 %v4025_v9  ;;  %v7474_v8 = vld [vmem:[#allocation17_spill] sm:$0xff]  ;;  %v3231_v9 = vld [vmem:[%s7014_s0 + $0x12] sm:$0x3f] }
 0x24b   :  { %933 = vmatpush.msra.mxu1 %v4127_v25  ;;  %v739_v13 = vrot.slane %v3231_v9, 2 }
 0x24c   :  { %1008 = vmatpush.msra.mxu2 %v4033_v10  ;;  %1028 = vmatpush.msra.mxu3 %v4038_v11 }
 0x24d   :  { %934 = vmatpush.msra.mxu1 %v4146_v28 }
 0x24e   :  { %1009 = vmatpush.msra.mxu2 %v4056_v14  ;;  %1029 = vmatpush.msra.mxu3 %v4061_v15 }
 0x24f   :  { %935 = vmatpush.msra.mxu1 %v4165_v31  ;;  %v763_v31 = vrot.slane %v3231_v9, 4 }
 0x250   :  { %1010 = vmatpush.msra.mxu2 %v4075_v17  ;;  %1030 = vmatpush.msra.mxu3 %v4080_v18 }
 0x251   :  { %936 = vmatpush.msra.mxu1 %v4184_v34 }
 0x252   :  { %1011 = vmatpush.msra.mxu2 %v4094_v20  ;;  %1031 = vmatpush.msra.mxu3 %v4099_v21 }
 0x253   :  { %937 = vmatpush.msra.mxu1 %v4203_v37 }
 0x254   :  { %1012 = vmatpush.msra.mxu2 %v4108_v22  ;;  %1032 = vmatpush.msra.mxu3 %v4118_v24 }
 0x255   :  { %938 = vmatpush.msra.mxu1 %v4222_v40 }
 0x256   :  { %1013 = vmatpush.msra.mxu2 %v4132_v26  ;;  %1033 = vmatpush.msra.mxu3 %v4137_v27 }
 0x257   :  { %939 = vmatpush.msra.mxu1 %v4242_v43 }
 0x258   :  { %1014 = vmatpush.msra.mxu2 %v4151_v29  ;;  %1034 = vmatpush.msra.mxu3 %v4156_v30 }
 0x259   :  { %940 = vmatpush.msra.mxu1 %v4252_v45 }
 0x25a   :  { %1015 = vmatpush.msra.mxu2 %v4170_v32  ;;  %1035 = vmatpush.msra.mxu3 %v4175_v33 }
 0x25b   :  { %941 = vmatpush.msra.mxu1 %v7466_v0  ;;  %v3452_v0 = vld [vmem:[%s7015_s1 + $0x120] sm:$0xff] }
 0x25c   :  { %1016 = vmatpush.msra.mxu2 %v7467_v1  ;;  %1036 = vmatpush.msra.mxu3 %v7468_v2  ;;  %v3453_v1 = vld [vmem:[%s7015_s1 + $0x128] sm:$0xff]  ;;  %v4627_v2 = vld [vmem:[%s7015_s1 + $0x118] sm:$0xff] }
 0x25d   :  { %942 = vmatpush.msra.mxu1 %v7469_v3  ;;  %v3455_v3 = vld [vmem:[%s7015_s1 + $0x108] sm:$0xff] }
 0x25e   :  { %1017 = vmatpush.msra.mxu2 %v7470_v4  ;;  %1037 = vmatpush.msra.mxu3 %v7471_v5  ;;  %v3456_v4 = vld [vmem:[%s7015_s1 + $0x110] sm:$0xff]  ;;  %v4639_v5 = vld [vmem:[%s7015_s1 + $0x100] sm:$0xff] }
 0x25f   :  { %943 = vmatpush.msra.mxu1 %v7472_v6  ;;  %v3458_v6 = vld [vmem:[%s7015_s1 + $0xf0] sm:$0xff] }
 0x260   :  { %1018 = vmatpush.msra.mxu2 %v7473_v7  ;;  %1038 = vmatpush.msra.mxu3 %v7474_v8  ;;  %v3459_v7 = vld [vmem:[%s7015_s1 + $0xf8] sm:$0xff]  ;;  %v4651_v8 = vld [vmem:[%s7015_s1 + $0xe8] sm:$0xff] }
 0x2bd   :  { %v675_v10 = vpop.f32.mrf.mxu1 }
 0x2be   :  { %v718_v11 = vadd.f32 %v3231_v9, %v675_v10  ;;  %v3461_v9 = vld [vmem:[%s7015_s1 + $0xd8] sm:$0xff]  ;;  %v3462_v10 = vld [vmem:[%s7015_s1 + $0xe0] sm:$0xff] }
 0x2c0   :  { %v3232_v12 = vmul.f32 -1.442695, %v718_v11  ;;  %v4663_v11 = vld [vmem:[%s7015_s1 + $0xd0] sm:$0xff] }
 0x2c2   :  { %3306 = vpow2.f32 %v3232_v12  ;;  %v3464_v12 = vld [vmem:[%s7015_s1 + $0xc0] sm:$0xff] }
 0x2c3   :  { %v695_v14 = vpop.f32.mrf.mxu2 }
 0x2c4   :  { %v741_v15 = vadd.f32 %v739_v13, %v695_v14  ;;  %v715_v28 = vpop.f32.mrf.mxu3  ;;  %v3465_v13 = vld [vmem:[%s7015_s1 + $0xc8] sm:$0xff]  ;;  %v4675_v14 = vld [vmem:[%s7015_s1 + $0xb8] sm:$0xff] }
 0x2c5   :  { %v761_v37 = vadd.f32 %v4394_v42, %v715_v28  ;;  %v3480_v28 = vld [vmem:[%s7015_s1 + $0x50] sm:$0xff] }
 0x2c6   :  { %v3233_v16 = vmul.f32 -1.442695, %v741_v15  ;;  %v3467_v15 = vld [vmem:[%s7015_s1 + $0xa8] sm:$0xff] }
 0x2c8   :  { %v3307_v17 = vpop.eup %3306  ;;  %3308 = vpow2.f32 %v3233_v16  ;;  %v3468_v16 = vld [vmem:[%s7015_s1 + $0xb0] sm:$0xff] }
 0x2c9   :  { %v722_v18 = vadd.f32 1.0, %v3307_v17  ;;  %v4687_v17 = vld [vmem:[%s7015_s1 + $0xa0] sm:$0xff] }
 0x2cb   :  { %3310 = vrcp.f32 %v722_v18  ;;  %v734_v24 = vand.u32 2147483648, %v722_v18  ;;  %v732_v26 = vand.u32 2147483647, %v722_v18  ;;  %vm728_vm9 = vweird.f32 %v722_v18 }
 0x2cd   :  { %v735_v32 = vor.u32 1.1754944e-38, %v734_v24  ;;  %vm733_vm11 = vcmp.eq.f32.partialorder %v732_v26, 8.507059e+37  ;;  %v3476_v24 = vld [vmem:[%s7015_s1 + $0x60] sm:$0xff]  ;;  %v4723_v26 = vld [vmem:[%s7015_s1 + $0x58] sm:$0xff] }
 0x2ce   :  { %v3309_v19 = vpop.eup %3308 }
 0x2cf   :  { %v745_v20 = vadd.f32 1.0, %v3309_v19  ;;  %v3471_v19 = vld [vmem:[%s7015_s1 + $0x98] sm:$0xff] }
 0x2d1   :  { %v3311_v21 = vpop.eup %3310  ;;  %3312 = vrcp.f32 %v745_v20  ;;  %v757_v45 = vand.u32 2147483648, %v745_v20  ;;  %v755_v46 = vand.u32 2147483647, %v745_v20  ;;  %vm751_vm13 = vweird.f32 %v745_v20 }
 0x2d2   :  { %v724_v22 = vmul.f32 %v3311_v21, %v722_v18  ;;  %vm729_vm8 = vweird.f32 %v3311_v21  ;;  %v3470_v18 = vld [vmem:[%s7015_s1 + $0x90] sm:$0xff] }
 0x2d3   :  { %vm730_vm10 = vmor %vm728_vm9, %vm729_vm8  ;;  %v758_v55 = vor.u32 1.1754944e-38, %v757_v45  ;;  %vm756_vm15 = vcmp.eq.f32.partialorder %v755_v46, 8.507059e+37  ;;  %v3234_v45 = vld [vmem:[%s7014_s0 + $0x18] sm:$0x3f] }
 0x2d4   :  { %v725_v23 = vsub.f32 1.0, %v724_v22  ;;  %v3474_v22 = vld [vmem:[%s7015_s1 + $0x80] sm:$0xff] }
 0x2d6   :  { %v726_v25 = vmul.f32 %v3311_v21, %v725_v23  ;;  %v4711_v23 = vld [vmem:[%s7015_s1 + $0x70] sm:$0xff] }
 0x2d7   :  { %v3313_v27 = vpop.eup %3312 }
 0x2d8   :  { %v747_v29 = vmul.f32 %v3313_v27, %v745_v20  ;;  %v727_v30 = vadd.f32 %v3311_v21, %v726_v25  ;;  %vm752_vm12 = vweird.f32 %v3313_v27  ;;  %v4699_v20 = vld [vmem:[%s7015_s1 + $0x88] sm:$0xff] }
 0x2d9   :  { %vm753_vm14 = vmor %vm751_vm13, %vm752_vm12  ;;  %v3477_v25 = vld [vmem:[%s7015_s1 + $0x68] sm:$0xff] }
 0x2da   :  { %v748_v33 = vsub.f32 1.0, %v747_v29  ;;  %v731_v34 = vsel %vm730_vm10, %v3311_v21, %v727_v30  ;;  %v3473_v21 = vld [vmem:[%s7015_s1 + $0x78] sm:$0xff]  ;;  %v4735_v29 = vld [vmem:[%s7015_s1 + $0x40] sm:$0xff]  ;;  %v3482_v30 = vld [vmem:[%s7015_s1 + $0x30] sm:$0xff] }
 0x2db   :  { %v736_v40 = vsel %vm733_vm11, %v735_v32, %v731_v34  ;;  %v4747_v32 = vld [vmem:[%s7015_s1 + $0x28] sm:$0xff]  ;;  %v3486_v34 = vld [vmem:[%s7015_s1 + $0x20] sm:$0xff] }
 0x2dc   :  { %v749_v43 = vmul.f32 %v3313_v27, %v748_v33  ;;  %v762_v61 = vmul.f32 %v761_v37, %v736_v40  ;;  %v3485_v33 = vld [vmem:[%s7015_s1 + $0x18] sm:$0xff]  ;;  %v4759_v37 = vld [vmem:[%s7015_s1 + $0x10] sm:$0xff]  ;;  %v3488_v40 = vld [vmem:[%s7015_s1] sm:$0xff] }
 0x2de   :  { %v750_v35 = vadd.f32 %v3313_v27, %v749_v43  ;;  %v765_v36 = vadd.f32 %v763_v31, %v762_v61  ;;  %v3483_v31 = vld [vmem:[%s7015_s1 + $0x38] sm:$0xff]  ;;  %v3489_v43 = vld [vmem:[%s7015_s1 + $0x8] sm:$0xff]  ;;  %v854_v61 = vrot.slane %v3234_v45, 2 }
 0x2e0   :  { %v754_v50 = vsel %vm753_vm14, %v3313_v27, %v750_v35  ;;  %3314 = vtanh.f32 %v765_v36  ;;  %v3479_v27 = vld [vmem:[%s7015_s1 + $0x48] sm:$0xff] }
 0x2e1   :  { %v759_v52 = vsel %vm756_vm15, %v758_v55, %v754_v50 }
 0x2e2   :  { %v767_v49 = vsub.f32 1.0, %v759_v52  ;;  %v769_v47 = vmul.f32 %v759_v52, %v4513_v44  ;;  %v4999_v44 = vld [vmem:[#allocation4 + $0x110] sm:$0xff] }
 0x2e6   :  { %v3315_v48 = vpop.eup %3314 }
 0x2e7   :  { %v768_v41 = vmul.f32 %v3315_v48, %v767_v49 }
 0x2e9   :  { %v4571_v54 = vadd.f32 %v769_v47, %v768_v41 }
 0x2eb   :  { %7475 = vst [vmem:[#allocation18_spill] sm:$0xff] %v4571_v54  ;;  %789 = vmatmul.f32.vlgmr.msrb.gmra.mxu0 %v4571_v54  ;;  %809 = vmatmul.f32.vlgmr.msrb.gmra.mxu1 %v4571_v54 }
 0x2ec   :  { %829 = vmatmul.f32.vlgmr.msrb.gmra.mxu2 %v4571_v54  ;;  %1043 = vmatpush.msrb.mxu0 %v4579_v39 }
 0x2ed   :  { %1118 = vmatpush.msrb.mxu1 %v3443_v63  ;;  %1138 = vmatpush.msrb.mxu2 %v3444_v57 }
 0x2ee   :  { %1044 = vmatpush.msrb.mxu0 %v4591_v58 }
 0x2ef   :  { %1119 = vmatpush.msrb.mxu1 %v3446_v38  ;;  %1139 = vmatpush.msrb.mxu2 %v3447_v59 }
 0x2f0   :  { %1045 = vmatpush.msrb.mxu0 %v4603_v53 }
 0x2f1   :  { %1120 = vmatpush.msrb.mxu1 %v3449_v62  ;;  %1140 = vmatpush.msrb.mxu2 %v3450_v51 }
 0x2f2   :  { %1046 = vmatpush.msrb.mxu0 %v4615_v60 }
 0x2f3   :  { %1121 = vmatpush.msrb.mxu1 %v3452_v0  ;;  %1141 = vmatpush.msrb.mxu2 %v3453_v1 }
 0x2f4   :  { %1047 = vmatpush.msrb.mxu0 %v4627_v2 }
 0x2f5   :  { %1122 = vmatpush.msrb.mxu1 %v3455_v3  ;;  %1142 = vmatpush.msrb.mxu2 %v3456_v4 }
 0x2f6   :  { %1048 = vmatpush.msrb.mxu0 %v4639_v5 }
 0x2f7   :  { %1123 = vmatpush.msrb.mxu1 %v3458_v6  ;;  %1143 = vmatpush.msrb.mxu2 %v3459_v7 }
 0x2f8   :  { %1049 = vmatpush.msrb.mxu0 %v4651_v8 }
 0x2f9   :  { %1124 = vmatpush.msrb.mxu1 %v3461_v9  ;;  %1144 = vmatpush.msrb.mxu2 %v3462_v10  ;;  %v878_v10 = vrot.slane %v3234_v45, 4 }
 0x2fa   :  { %1050 = vmatpush.msrb.mxu0 %v4663_v11 }
 0x2fb   :  { %1125 = vmatpush.msrb.mxu1 %v3464_v12  ;;  %1145 = vmatpush.msrb.mxu2 %v3465_v13 }
 0x2fc   :  { %1051 = vmatpush.msrb.mxu0 %v4675_v14 }
 0x2fd   :  { %1126 = vmatpush.msrb.mxu1 %v3467_v15  ;;  %1146 = vmatpush.msrb.mxu2 %v3468_v16 }
 0x2fe   :  { %1052 = vmatpush.msrb.mxu0 %v4687_v17 }
 0x2ff   :  { %1127 = vmatpush.msrb.mxu1 %v3470_v18  ;;  %1147 = vmatpush.msrb.mxu2 %v3471_v19 }
 0x300   :  { %1053 = vmatpush.msrb.mxu0 %v4699_v20 }
 0x301   :  { %1128 = vmatpush.msrb.mxu1 %v3473_v21  ;;  %1148 = vmatpush.msrb.mxu2 %v3474_v22 }
 0x302   :  { %1054 = vmatpush.msrb.mxu0 %v4711_v23 }
 0x303   :  { %1129 = vmatpush.msrb.mxu1 %v3476_v24  ;;  %1149 = vmatpush.msrb.mxu2 %v3477_v25 }
 0x304   :  { %1055 = vmatpush.msrb.mxu0 %v4723_v26 }
 0x305   :  { %1130 = vmatpush.msrb.mxu1 %v3479_v27  ;;  %1150 = vmatpush.msrb.mxu2 %v3480_v28 }
 0x306   :  { %1056 = vmatpush.msrb.mxu0 %v4735_v29 }
 0x307   :  { %1131 = vmatpush.msrb.mxu1 %v3482_v30  ;;  %1151 = vmatpush.msrb.mxu2 %v3483_v31 }
 0x308   :  { %1057 = vmatpush.msrb.mxu0 %v4747_v32 }
 0x309   :  { %1132 = vmatpush.msrb.mxu1 %v3485_v33  ;;  %1152 = vmatpush.msrb.mxu2 %v3486_v34 }
 0x30a   :  { %1058 = vmatpush.msrb.mxu0 %v4759_v37 }
 0x30b   :  { %1133 = vmatpush.msrb.mxu1 %v3488_v40  ;;  %1153 = vmatpush.msrb.mxu2 %v3489_v43 }
 0x368   :  { %v790_v46 = vpop.f32.mrf.mxu0  ;;  %v810_v35 = vpop.f32.mrf.mxu1 }
 0x369   :  { %v833_v36 = vadd.f32 %v3234_v45, %v790_v46  ;;  %v856_v55 = vadd.f32 %v854_v61, %v810_v35 }
 0x36b   :  { %v3235_v50 = vmul.f32 -1.442695, %v833_v36  ;;  %v3236_v52 = vmul.f32 -1.442695, %v856_v55 }
 0x36d   :  { %3316 = vpow2.f32 %v3235_v50 }
 0x36e   :  { %3318 = vpow2.f32 %v3236_v52  ;;  %v4800_v52 = vld [vmem:[%s7016_s2] ss:$0 sm:$0xff] }
 0x36f   :  { %v830_v6 = vpop.f32.mrf.mxu2 }
 0x370   :  { %v876_v13 = vadd.f32 %v4394_v42, %v830_v6 }
 0x373   :  { %v3317_v49 = vpop.eup %3316 }
 0x374   :  { %v3319_v48 = vpop.eup %3318  ;;  %v837_v41 = vadd.f32 1.0, %v3317_v49 }
 0x375   :  { %v860_v47 = vadd.f32 1.0, %v3319_v48 }
 0x376   :  { %3320 = vrcp.f32 %v837_v41  ;;  %v849_v0 = vand.u32 2147483648, %v837_v41  ;;  %v847_v3 = vand.u32 2147483647, %v837_v41  ;;  %vm843_vm1 = vweird.f32 %v837_v41 }
 0x377   :  { %3322 = vrcp.f32 %v860_v47  ;;  %v872_v18 = vand.u32 2147483648, %v860_v47  ;;  %vm866_vm5 = vweird.f32 %v860_v47  ;;  %v870_v21 = vand.u32 2147483647, %v860_v47 }
 0x378   :  { %v850_v9 = vor.u32 1.1754944e-38, %v849_v0  ;;  %vm848_vm3 = vcmp.eq.f32.partialorder %v847_v3, 8.507059e+37 }
 0x379   :  { %v873_v25 = vor.u32 1.1754944e-38, %v872_v18  ;;  %vm871_vm7 = vcmp.eq.f32.partialorder %v870_v21, 8.507059e+37  ;;  %v4829_v18 = vld [vmem:[%s7014_s0 + $0x24] sm:$0x3f] }
 0x37a   :  { %v1084_v21 = vrot.slane %v4829_v18, 2 }
 0x37c   :  { %v3321_v63 = vpop.eup %3320 }
 0x37d   :  { %v3323_v57 = vpop.eup %3322  ;;  %v839_v38 = vmul.f32 %v3321_v63, %v837_v41  ;;  %vm844_vm0 = vweird.f32 %v3321_v63 }
 0x37e   :  { %v862_v59 = vmul.f32 %v3323_v57, %v860_v47  ;;  %vm845_vm2 = vmor %vm843_vm1, %vm844_vm0  ;;  %vm867_vm4 = vweird.f32 %v3323_v57 }
 0x37f   :  { %v840_v62 = vsub.f32 1.0, %v839_v38  ;;  %vm868_vm6 = vmor %vm866_vm5, %vm867_vm4 }
 0x380   :  { %v863_v51 = vsub.f32 1.0, %v862_v59 }
 0x381   :  { %v841_v1 = vmul.f32 %v3321_v63, %v840_v62 }
 0x382   :  { %v864_v4 = vmul.f32 %v3323_v57, %v863_v51 }
 0x383   :  { %v842_v7 = vadd.f32 %v3321_v63, %v841_v1 }
 0x384   :  { %v865_v15 = vadd.f32 %v3323_v57, %v864_v4 }
 0x385   :  { %v846_v12 = vsel %vm845_vm2, %v3321_v63, %v842_v7 }
 0x386   :  { %v851_v16 = vsel %vm848_vm3, %v850_v9, %v846_v12  ;;  %v869_v24 = vsel %vm868_vm6, %v3323_v57, %v865_v15  ;;  %v4809_v9 = vld [vmem:[#allocation2 + $0x168] sm:$0xff]  ;;  %v4815_v12 = vld [vmem:[#allocation2 + $0x138] sm:$0xff] }
 0x387   :  { %v877_v19 = vmul.f32 %v876_v13, %v851_v16  ;;  %v874_v27 = vsel %vm871_vm7, %v873_v25, %v869_v24  ;;  %v4818_v13 = vld [vmem:[#allocation2 + $0x120] sm:$0xff]  ;;  %v4821_v15 = vld [vmem:[#allocation2 + $0x108] sm:$0xff]  ;;  %v4824_v16 = vld [vmem:[#allocation2 + $0xf0] sm:$0xff] }
 0x388   :  { %v882_v28 = vsub.f32 1.0, %v874_v27  ;;  %v884_v33 = vmul.f32 %v874_v27, %v4571_v54  ;;  %7478 = vst [vmem:[#allocation19_spill] sm:$0xff] %v4818_v13  ;;  %v4839_v24 = vld [vmem:[#allocation2 + $0xa8] sm:$0xff] }
 0x389   :  { %v880_v22 = vadd.f32 %v878_v10, %v877_v19  ;;  %v4812_v10 = vld [vmem:[#allocation2 + $0x150] sm:$0xff]  ;;  %7479 = vst [vmem:[#allocation14_spill] sm:$0xff] %v4821_v15  ;;  %v4832_v19 = vld [vmem:[#allocation2 + $0xd8] sm:$0xff]  ;;  %v4992_v54 = vld [vmem:[#allocation4 + $0x128] sm:$0xff] }
 0x38a   :  { %7480 = vst [vmem:[#allocation15_spill] sm:$0xff] %v4824_v16 }
 0x38b   :  { %3324 = vtanh.f32 %v880_v22  ;;  %7481 = vst [vmem:[#allocation20_spill] sm:$0xff] %v4832_v19  ;;  %v4836_v22 = vld [vmem:[#allocation2 + $0xc0] sm:$0xff] }
 0x38c   :  { %7482 = vst [vmem:[#allocation16_spill] sm:$0xff] %v4836_v22 }
 0x38d   :  { %7483 = vst [vmem:[#allocation17_spill] sm:$0xff] %v4839_v24 }
 0x391   :  { %v3325_v30 = vpop.eup %3324 }
 0x392   :  { %v883_v31 = vmul.f32 %v3325_v30, %v882_v28 }
 0x394   :  { %v4773_v42 = vadd.f32 %v884_v33, %v883_v31  ;;  %v4843_v31 = vld [vmem:[#allocation2 + $0x90] sm:$0xff] }
 0x395   :  { %7484 = vst [vmem:[#allocation24_spill] sm:$0xff] %v4843_v31 }
 0x396   :  { %7476 = vst [vmem:[#allocation12_spill] sm:$0xff] %v4773_v42  ;;  %904 = vmatmul.f32.vlgmr.msrb.gmra.mxu3 %v4773_v42  ;;  %924 = vmatmul.f32.vlgmr.msra.gmra.mxu0 %v4773_v42 }
 0x397   :  { %944 = vmatmul.f32.vlgmr.msra.gmra.mxu1 %v4773_v42  ;;  %1158 = vmatpush.msrb.mxu3 %v4579_v39  ;;  %v3237_v39 = vld [vmem:[%s7014_s0 + $0x1e] sm:$0x3f] }
 0x398   :  { %v993_v50 = vrot.slane %v3237_v39, 4 }
 0x399   :  { %1159 = vmatpush.msrb.mxu3 %v4591_v58  ;;  %v969_v58 = vrot.slane %v3237_v39, 2 }
 0x39b   :  { %1160 = vmatpush.msrb.mxu3 %v4603_v53 }
 0x39d   :  { %1161 = vmatpush.msrb.mxu3 %v4615_v60 }
 0x39f   :  { %1162 = vmatpush.msrb.mxu3 %v4627_v2 }
 0x3a1   :  { %1163 = vmatpush.msrb.mxu3 %v4639_v5 }
 0x3a3   :  { %1164 = vmatpush.msrb.mxu3 %v4651_v8 }
 0x3a5   :  { %1165 = vmatpush.msrb.mxu3 %v4663_v11 }
 0x3a7   :  { %1166 = vmatpush.msrb.mxu3 %v4675_v14 }
 0x3a9   :  { %1167 = vmatpush.msrb.mxu3 %v4687_v17 }
 0x3ab   :  { %1168 = vmatpush.msrb.mxu3 %v4699_v20 }
 0x3ad   :  { %1169 = vmatpush.msrb.mxu3 %v4711_v23 }
 0x3af   :  { %1170 = vmatpush.msrb.mxu3 %v4723_v26 }
 0x3b1   :  { %1171 = vmatpush.msrb.mxu3 %v4735_v29 }
 0x3b3   :  { %1172 = vmatpush.msrb.mxu3 %v4747_v32 }
 0x3b5   :  { %1173 = vmatpush.msrb.mxu3 %v4759_v37 }
 0x413   :  { %v925_v53 = vpop.f32.mrf.mxu0 }
 0x414   :  { %v971_v60 = vadd.f32 %v969_v58, %v925_v53  ;;  %v945_v35 = vpop.f32.mrf.mxu1  ;;  %v4846_v58 = vld [vmem:[#allocation2 + $0x78] sm:$0xff]  ;;  %v4849_v53 = vld [vmem:[#allocation2 + $0x60] sm:$0xff] }
 0x415   :  { %v991_v49 = vadd.f32 %v4800_v52, %v945_v35  ;;  %7485 = vst [vmem:[#allocation25_spill] sm:$0xff] %v4846_v58 }
 0x416   :  { %v3239_v2 = vmul.f32 -1.442695, %v971_v60  ;;  %7486 = vst [vmem:[#allocation26_spill] sm:$0xff] %v4849_v53  ;;  %v4852_v60 = vld [vmem:[#allocation2 + $0x48] sm:$0xff] }
 0x417   :  { %7487 = vst [vmem:[#allocation27_spill] sm:$0xff] %v4852_v60 }
 0x418   :  { %3326 = vpow2.f32 %v3239_v2  ;;  %v4855_v2 = vld [vmem:[#allocation2 + $0x30] sm:$0xff] }
 0x419   :  { %v905_v5 = vpop.f32.mrf.mxu3  ;;  %7488 = vst [vmem:[#allocation28_spill] sm:$0xff] %v4855_v2 }
 0x41a   :  { %v948_v8 = vadd.f32 %v3237_v39, %v905_v5 }
 0x41c   :  { %v3238_v11 = vmul.f32 -1.442695, %v948_v8  ;;  %v4858_v8 = vld [vmem:[#allocation2 + $0x18] sm:$0xff] }
 0x41d   :  { %7489 = vst [vmem:[#allocation29_spill] sm:$0xff] %v4858_v8 }
 0x41e   :  { %v3327_v14 = vpop.eup %3326  ;;  %3328 = vpow2.f32 %v3238_v11 }
 0x41f   :  { %v975_v17 = vadd.f32 1.0, %v3327_v14 }
 0x421   :  { %3330 = vrcp.f32 %v975_v17  ;;  %v987_v63 = vand.u32 2147483648, %v975_v17  ;;  %vm981_vm13 = vweird.f32 %v975_v17  ;;  %v985_v38 = vand.u32 2147483647, %v975_v17 }
 0x423   :  { %v988_v51 = vor.u32 1.1754944e-38, %v987_v63  ;;  %vm986_vm15 = vcmp.eq.f32.partialorder %v985_v38, 8.507059e+37 }
 0x424   :  { %v3329_v20 = vpop.eup %3328 }
 0x425   :  { %v952_v23 = vadd.f32 1.0, %v3329_v20 }
 0x427   :  { %3332 = vrcp.f32 %v952_v23  ;;  %v3331_v26 = vpop.eup %3330  ;;  %v964_v43 = vand.u32 2147483648, %v952_v23  ;;  %v962_v61 = vand.u32 2147483647, %v952_v23  ;;  %vm958_vm9 = vweird.f32 %v952_v23 }
 0x428   :  { %v977_v29 = vmul.f32 %v3331_v26, %v975_v17  ;;  %vm982_vm12 = vweird.f32 %v3331_v26  ;;  %v4861_v17 = vld [vmem:[#allocation2] sm:$0xff] }
 0x429   :  { %v965_v55 = vor.u32 1.1754944e-38, %v964_v43  ;;  %vm963_vm11 = vcmp.eq.f32.partialorder %v962_v61, 8.507059e+37  ;;  %vm983_vm14 = vmor %vm981_vm13, %vm982_vm12  ;;  %7490 = vst [vmem:[#allocation30_spill] sm:$0xff] %v4861_v17 }
 0x42a   :  { %v978_v37 = vsub.f32 1.0, %v977_v29 }
 0x42c   :  { %v979_v46 = vmul.f32 %v3331_v26, %v978_v37 }
 0x42d   :  { %v3333_v32 = vpop.eup %3332 }
 0x42e   :  { %v954_v34 = vmul.f32 %v3333_v32, %v952_v23  ;;  %vm959_vm8 = vweird.f32 %v3333_v32  ;;  %v980_v41 = vadd.f32 %v3331_v26, %v979_v46 }
 0x42f   :  { %vm960_vm10 = vmor %vm958_vm9, %vm959_vm8 }
 0x430   :  { %v955_v40 = vsub.f32 1.0, %v954_v34  ;;  %v984_v62 = vsel %vm983_vm14, %v3331_v26, %v980_v41 }
 0x431   :  { %v989_v0 = vsel %vm986_vm15, %v988_v51, %v984_v62 }
 0x432   :  { %v956_v45 = vmul.f32 %v3333_v32, %v955_v40  ;;  %v997_v1 = vsub.f32 1.0, %v989_v0  ;;  %v999_v4 = vmul.f32 %v989_v0, %v4773_v42  ;;  %v4995_v42 = vld [vmem:[#allocation4 + $0x108] sm:$0xff] }
 0x434   :  { %v957_v36 = vadd.f32 %v3333_v32, %v956_v45 }
 0x436   :  { %v961_v48 = vsel %vm960_vm10, %v3333_v32, %v957_v36 }
 0x437   :  { %v966_v47 = vsel %vm963_vm11, %v965_v55, %v961_v48 }
 0x438   :  { %v992_v57 = vmul.f32 %v991_v49, %v966_v47  ;;  %v1108_v49 = vrot.slane %v4829_v18, 4 }
 0x43a   :  { %v995_v59 = vadd.f32 %v993_v50, %v992_v57 }
 0x43c   :  { %3334 = vtanh.f32 %v995_v59 }
 0x442   :  { %v3335_v3 = vpop.eup %3334 }
 0x443   :  { %v998_v6 = vmul.f32 %v3335_v3, %v997_v1 }
 0x445   :  { %v4804_v7 = vadd.f32 %v999_v4, %v998_v6 }
 0x447   :  { %7477 = vst [vmem:[#allocation13_spill] sm:$0xff] %v4804_v7  ;;  %1019 = vmatmul.f32.vlgmr.msra.gmra.mxu2 %v4804_v7  ;;  %1039 = vmatmul.f32.vlgmr.msra.gmra.mxu3 %v4804_v7 }
 0x448   :  { %1059 = vmatmul.f32.vlgmr.msrb.gmra.mxu0 %v4804_v7  ;;  %1291 = vmatpush.msra.mxu3 %v4809_v9 }
 0x44a   :  { %1292 = vmatpush.msra.mxu3 %v4812_v10 }
 0x44c   :  { %1293 = vmatpush.msra.mxu3 %v4815_v12 }
 0x44e   :  { %1294 = vmatpush.msra.mxu3 %v4818_v13 }
 0x450   :  { %1295 = vmatpush.msra.mxu3 %v4821_v15 }
 0x452   :  { %1296 = vmatpush.msra.mxu3 %v4824_v16 }
 0x454   :  { %1297 = vmatpush.msra.mxu3 %v4832_v19 }
 0x456   :  { %1298 = vmatpush.msra.mxu3 %v4836_v22  ;;  %v5167_v22 = vld [vmem:[#allocation2 + $0xb0] sm:$0xff] }
 0x457   :  { %7545 = vst [vmem:[#allocation83_spill] sm:$0xff] %v5167_v22 }
 0x458   :  { %1299 = vmatpush.msra.mxu3 %v4839_v24  ;;  %v5161_v24 = vld [vmem:[#allocation6 + $0xc0] sm:$0xff] }
 0x459   :  { %7544 = vst [vmem:[#allocation82_spill] sm:$0xff] %v5161_v24 }
 0x45a   :  { %1300 = vmatpush.msra.mxu3 %v4843_v31  ;;  %v5159_v31 = vld [vmem:[#allocation2 + $0xd0] sm:$0xff] }
 0x45b   :  { %7543 = vst [vmem:[#allocation81_spill] sm:$0xff] %v5159_v31 }
 0x45c   :  { %1301 = vmatpush.msra.mxu3 %v4846_v58  ;;  %v5152_v58 = vld [vmem:[%s7014_s0 + $0x2a] sm:$0x3f] }
 0x45e   :  { %1302 = vmatpush.msra.mxu3 %v4849_v53  ;;  %v5146_v53 = vld [vmem:[#allocation6 + $0xd8] sm:$0xff] }
 0x45f   :  { %7541 = vst [vmem:[#allocation79_spill] sm:$0xff] %v5146_v53 }
 0x460   :  { %1303 = vmatpush.msra.mxu3 %v4852_v60  ;;  %v5144_v60 = vld [vmem:[#allocation2 + $0xe8] sm:$0xff] }
 0x461   :  { %7540 = vst [vmem:[#allocation78_spill] sm:$0xff] %v5144_v60 }
 0x462   :  { %1304 = vmatpush.msra.mxu3 %v4855_v2  ;;  %v5136_v2 = vld [vmem:[#allocation6 + $0xf0] sm:$0xff] }
 0x463   :  { %7538 = vst [vmem:[#allocation76_spill] sm:$0xff] %v5136_v2 }
 0x464   :  { %1305 = vmatpush.msra.mxu3 %v4858_v8  ;;  %v5134_v8 = vld [vmem:[#allocation2 + $0x100] sm:$0xff] }
 0x465   :  { %7537 = vst [vmem:[#allocation75_spill] sm:$0xff] %v5134_v8 }
 0x466   :  { %1306 = vmatpush.msra.mxu3 %v4861_v17  ;;  %v5126_v17 = vld [vmem:[#allocation6 + $0x108] sm:$0xff] }
 0x467   :  { %7535 = vst [vmem:[#allocation73_spill] sm:$0xff] %v5126_v17 }
 0x4c5   :  { %v1060_v61 = vpop.f32.mrf.mxu0 }
 0x4c6   :  { %v1106_v55 = vadd.f32 %v4800_v52, %v1060_v61  ;;  %v4931_v61 = vld [vmem:[#allocation6 + $0x80] sm:$0xff] }
 0x4c7   :  { %7513 = vst [vmem:[#allocation52_spill] sm:$0xff] %v4931_v61 }
 0x4ca   :  { %v1020_v25 = vpop.f32.mrf.mxu2  ;;  %v1040_v27 = vpop.f32.mrf.mxu3 }
 0x4cb   :  { %v1063_v28 = vadd.f32 %v4829_v18, %v1020_v25  ;;  %v1086_v30 = vadd.f32 %v1084_v21, %v1040_v27  ;;  %v4869_v18 = vld [vmem:[#allocation6 + $0x170] sm:$0xff]  ;;  %v4873_v21 = vld [vmem:[#allocation4 + $0x178] sm:$0xff]  ;;  %v4880_v27 = vld [vmem:[#allocation4 + $0x160] sm:$0xff] }
 0x4cc   :  { %7492 = vst [vmem:[#allocation32_spill] sm:$0xff] %v4869_v18  ;;  %v4876_v25 = vld [vmem:[#allocation6 + $0x158] sm:$0xff]  ;;  %1271 = vmatpush.msra.mxu2 %v4873_v21 }
 0x4cd   :  { %v3241_v33 = vmul.f32 -1.442695, %v1063_v28  ;;  %v3242_v39 = vmul.f32 -1.442695, %v1086_v30  ;;  %7493 = vst [vmem:[#allocation33_spill] sm:$0xff] %v4873_v21  ;;  %v4882_v28 = vld [vmem:[#allocation6 + $0x140] sm:$0xff] }
 0x4ce   :  { %7494 = vst [vmem:[#allocation34_spill] sm:$0xff] %v4876_v25  ;;  %1272 = vmatpush.msra.mxu2 %v4880_v27  ;;  %v4886_v30 = vld [vmem:[#allocation4 + $0x148] sm:$0xff] }
 0x4cf   :  { %3336 = vpow2.f32 %v3241_v33  ;;  %7495 = vst [vmem:[#allocation35_spill] sm:$0xff] %v4880_v27  ;;  %v4888_v33 = vld [vmem:[#allocation6 + $0x128] sm:$0xff] }
 0x4d0   :  { %3338 = vpow2.f32 %v3242_v39  ;;  %7496 = vst [vmem:[#allocation36_spill] sm:$0xff] %v4882_v28  ;;  %1273 = vmatpush.msra.mxu2 %v4886_v30  ;;  %v4892_v39 = vld [vmem:[#allocation4 + $0x130] sm:$0xff] }
 0x4d1   :  { %7497 = vst [vmem:[#allocation37_spill] sm:$0xff] %v4886_v30 }
 0x4d2   :  { %7498 = vst [vmem:[#allocation38_spill] sm:$0xff] %v4888_v33  ;;  %1274 = vmatpush.msra.mxu2 %v4892_v39 }
 0x4d3   :  { %7499 = vst [vmem:[#allocation39_spill] sm:$0xff] %v4892_v39 }
 0x4d5   :  { %v3337_v5 = vpop.eup %3336 }
 0x4d6   :  { %v3339_v11 = vpop.eup %3338  ;;  %v1067_v14 = vadd.f32 1.0, %v3337_v5  ;;  %v4894_v5 = vld [vmem:[#allocation6 + $0x110] sm:$0xff] }
 0x4d7   :  { %v1090_v20 = vadd.f32 1.0, %v3339_v11  ;;  %7500 = vst [vmem:[#allocation40_spill] sm:$0xff] %v4894_v5  ;;  %v4898_v11 = vld [vmem:[#allocation4 + $0x118] sm:$0xff] }
 0x4d8   :  { %3340 = vrcp.f32 %v1067_v14  ;;  %v1079_v37 = vand.u32 2147483648, %v1067_v14  ;;  %v1077_v45 = vand.u32 2147483647, %v1067_v14  ;;  %vm1073_vm1 = vweird.f32 %v1067_v14  ;;  %7501 = vst [vmem:[#allocation41_spill] sm:$0xff] %v4898_v11  ;;  %1275 = vmatpush.msra.mxu2 %v4898_v11 }
 0x4d9   :  { %3342 = vrcp.f32 %v1090_v20  ;;  %v1102_v63 = vand.u32 2147483648, %v1090_v20  ;;  %vm1096_vm5 = vweird.f32 %v1090_v20  ;;  %v1100_v57 = vand.u32 2147483647, %v1090_v20 }
 0x4da   :  { %v1080_v36 = vor.u32 1.1754944e-38, %v1079_v37  ;;  %vm1078_vm3 = vcmp.eq.f32.partialorder %v1077_v45, 8.507059e+37  ;;  %v4919_v37 = vld [vmem:[#allocation6 + $0xb0] sm:$0xff]  ;;  %v4929_v45 = vld [vmem:[#allocation4 + $0xa0] sm:$0xff] }
 0x4db   :  { %v1103_v62 = vor.u32 1.1754944e-38, %v1102_v63  ;;  %vm1101_vm7 = vcmp.eq.f32.partialorder %v1100_v57, 8.507059e+37  ;;  %7509 = vst [vmem:[#allocation48_spill] sm:$0xff] %v4919_v37  ;;  %v4961_v63 = vld [vmem:[#allocation6 + $0x8] sm:$0xff]  ;;  %v4965_v57 = vld [vmem:[#allocation4 + $0x10] sm:$0xff] }
 0x4dc   :  { %7512 = vst [vmem:[#allocation51_spill] sm:$0xff] %v4929_v45 }
 0x4dd   :  { %7523 = vst [vmem:[#allocation62_spill] sm:$0xff] %v4961_v63 }
 0x4de   :  { %v3341_v23 = vpop.eup %3340  ;;  %7524 = vst [vmem:[#allocation63_spill] sm:$0xff] %v4965_v57 }
 0x4df   :  { %v3343_v26 = vpop.eup %3342  ;;  %v1069_v29 = vmul.f32 %v3341_v23, %v1067_v14  ;;  %vm1074_vm0 = vweird.f32 %v3341_v23  ;;  %v7502_v14 = vld [vmem:[#allocation21_spill] sm:$0xff] }
 0x4e0   :  { %v1092_v32 = vmul.f32 %v3343_v26, %v1090_v20  ;;  %vm1075_vm2 = vmor %vm1073_vm1, %vm1074_vm0  ;;  %vm1097_vm4 = vweird.f32 %v3343_v26  ;;  %v4901_v20 = vld [vmem:[#allocation6 + $0xf8] sm:$0xff] }
 0x4e1   :  { %v1070_v34 = vsub.f32 1.0, %v1069_v29  ;;  %vm1098_vm6 = vmor %vm1096_vm5, %vm1097_vm4  ;;  %7503 = vst [vmem:[#allocation42_spill] sm:$0xff] %v4901_v20  ;;  %v4911_v29 = vld [vmem:[#allocation4 + $0xe8] sm:$0xff] }
 0x4e2   :  { %v1093_v40 = vsub.f32 1.0, %v1092_v32  ;;  %7506 = vst [vmem:[#allocation45_spill] sm:$0xff] %v4911_v29  ;;  %v4913_v32 = vld [vmem:[#allocation6 + $0xc8] sm:$0xff] }
 0x4e3   :  { %v1071_v43 = vmul.f32 %v3341_v23, %v1070_v34  ;;  %7507 = vst [vmem:[#allocation46_spill] sm:$0xff] %v4913_v32  ;;  %v4917_v34 = vld [vmem:[#allocation4 + $0xd0] sm:$0xff] }
 0x4e4   :  { %v1094_v46 = vmul.f32 %v3343_v26, %v1093_v40  ;;  %7508 = vst [vmem:[#allocation47_spill] sm:$0xff] %v4917_v34  ;;  %v4923_v40 = vld [vmem:[#allocation4 + $0xb8] sm:$0xff] }
 0x4e5   :  { %v1072_v35 = vadd.f32 %v3341_v23, %v1071_v43  ;;  %7510 = vst [vmem:[#allocation49_spill] sm:$0xff] %v4923_v40  ;;  %v4925_v43 = vld [vmem:[#allocation6 + $0x98] sm:$0xff] }
 0x4e6   :  { %v1095_v41 = vadd.f32 %v3343_v26, %v1094_v46  ;;  %7511 = vst [vmem:[#allocation50_spill] sm:$0xff] %v4925_v43  ;;  %v4935_v46 = vld [vmem:[#allocation4 + $0x88] sm:$0xff] }
 0x4e7   :  { %v1076_v50 = vsel %vm1075_vm2, %v3341_v23, %v1072_v35  ;;  %v4905_v23 = vld [vmem:[#allocation4 + $0x100] sm:$0xff]  ;;  %7514 = vst [vmem:[#allocation53_spill] sm:$0xff] %v4935_v46  ;;  %v4937_v35 = vld [vmem:[#allocation6 + $0x68] sm:$0xff] }
 0x4e8   :  { %v1081_v48 = vsel %vm1078_vm3, %v1080_v36, %v1076_v50  ;;  %v1099_v59 = vsel %vm1098_vm6, %v3343_v26, %v1095_v41  ;;  %7504 = vst [vmem:[#allocation43_spill] sm:$0xff] %v4905_v23  ;;  %v4907_v26 = vld [vmem:[#allocation6 + $0xe0] sm:$0xff]  ;;  %1276 = vmatpush.msra.mxu2 %v4905_v23  ;;  %v4941_v36 = vld [vmem:[#allocation4 + $0x70] sm:$0xff]  ;;  %v4947_v50 = vld [vmem:[#allocation4 + $0x58] sm:$0xff] }
 0x4e9   :  { %v1107_v47 = vmul.f32 %v1106_v55, %v1081_v48  ;;  %v1104_v51 = vsel %vm1101_vm7, %v1103_v62, %v1099_v59  ;;  %7505 = vst [vmem:[#allocation44_spill] sm:$0xff] %v4907_v26  ;;  %v4943_v55 = vld [vmem:[#allocation6 + $0x50] sm:$0xff]  ;;  %v4953_v48 = vld [vmem:[#allocation4 + $0x40] sm:$0xff] }
 0x4ea   :  { %v1112_v0 = vsub.f32 1.0, %v1104_v51  ;;  %v1114_v4 = vmul.f32 %v1104_v51, %v4804_v7  ;;  %1277 = vmatpush.msra.mxu2 %v4911_v29  ;;  %7515 = vst [vmem:[#allocation54_spill] sm:$0xff] %v4937_v35  ;;  %v4955_v41 = vld [vmem:[#allocation6 + $0x20] sm:$0xff]  ;;  %v4971_v59 = vld [vmem:[#allocation4 + $0x170] sm:$0xff]  ;;  %v4977_v51 = vld [vmem:[#allocation4 + $0x158] sm:$0xff] }
 0x4eb   :  { %v1110_v38 = vadd.f32 %v1108_v49, %v1107_v47  ;;  %7516 = vst [vmem:[#allocation55_spill] sm:$0xff] %v4941_v36  ;;  %v4949_v49 = vld [vmem:[#allocation6 + $0x38] sm:$0xff]  ;;  %v4959_v47 = vld [vmem:[#allocation4 + $0x28] sm:$0xff]  ;;  %v4973_v62 = vld [vmem:[#allocation4 + $0x150] sm:$0xff]  ;;  %1251 = vmatpush.msra.mxu1 %v4971_v59 }
 0x4ec   :  { %1278 = vmatpush.msra.mxu2 %v4917_v34  ;;  %7517 = vst [vmem:[#allocation56_spill] sm:$0xff] %v4943_v55  ;;  %v5016_v7 = vld [vmem:[#allocation4 + $0xc0] sm:$0xff] }
 0x4ed   :  { %3344 = vtanh.f32 %v1110_v38  ;;  %7518 = vst [vmem:[#allocation57_spill] sm:$0xff] %v4947_v50  ;;  %v4969_v38 = vld [vmem:[#allocation4 + $0x168] sm:$0xff]  ;;  %1252 = vmatpush.msra.mxu1 %v4977_v51 }
 0x4ee   :  { %1279 = vmatpush.msra.mxu2 %v4923_v40  ;;  %7519 = vst [vmem:[#allocation58_spill] sm:$0xff] %v4949_v49  ;;  %1231 = vmatpush.msra.mxu0 %v4969_v38 }
 0x4ef   :  { %7520 = vst [vmem:[#allocation59_spill] sm:$0xff] %v4953_v48 }
 0x4f0   :  { %1280 = vmatpush.msra.mxu2 %v4929_v45  ;;  %7521 = vst [vmem:[#allocation60_spill] sm:$0xff] %v4955_v41  ;;  %1232 = vmatpush.msra.mxu0 %v4973_v62 }
 0x4f1   :  { %7522 = vst [vmem:[#allocation61_spill] sm:$0xff] %v4959_v47 }
 0x4f2   :  { %1281 = vmatpush.msra.mxu2 %v4935_v46 }
 0x4f3   :  { %v3345_v1 = vpop.eup %3344 }
 0x4f4   :  { %v1113_v3 = vmul.f32 %v3345_v1, %v1112_v0  ;;  %1282 = vmatpush.msra.mxu2 %v4941_v36  ;;  %v7525_v0 = vmov 0.0   ;;  %v4981_v1 = vld [vmem:[#allocation4 + $0x138] sm:$0xff] }
 0x4f5   :  { %1233 = vmatpush.msra.mxu0 %v4981_v1 }
 0x4f6   :  { %v4867_v6 = vadd.f32 %v1114_v4, %v1113_v3  ;;  %1283 = vmatpush.msra.mxu2 %v4947_v50  ;;  %v4985_v3 = vld [vmem:[#allocation4 + $0x140] sm:$0xff] }
 0x4f7   :  { %v4988_v4 = vld [vmem:[#allocation4 + $0x120] sm:$0xff]  ;;  %1253 = vmatpush.msra.mxu1 %v4985_v3 }
 0x4f8   :  { %7491 = vst [vmem:[#allocation31_spill] sm:$0xff] %v4867_v6  ;;  %1134 = vmatmul.f32.vlgmr.msrb.gmra.mxu1 %v4867_v6  ;;  %1154 = vmatmul.f32.vlgmr.msrb.gmra.mxu2 %v4867_v6 }
 0x4f9   :  { %1174 = vmatmul.f32.vlgmr.msrb.gmra.mxu3 %v4867_v6  ;;  %1284 = vmatpush.msra.mxu2 %v4953_v48 }
 0x4fa   :  { %1374 = vmatpush.msrb.mxu3 %v4869_v18  ;;  %1234 = vmatpush.msra.mxu0 %v4988_v4  ;;  %v5116_v18 = vld [vmem:[#allocation6 + $0x120] sm:$0xff] }
 0x4fb   :  { %1285 = vmatpush.msra.mxu2 %v4959_v47  ;;  %1254 = vmatpush.msra.mxu1 %v4992_v54  ;;  %7532 = vst [vmem:[#allocation70_spill] sm:$0xff] %v5116_v18 }
 0x4fc   :  { %1375 = vmatpush.msrb.mxu3 %v4876_v25  ;;  %1235 = vmatpush.msra.mxu0 %v4995_v42  ;;  %v5114_v25 = vld [vmem:[#allocation2 + $0x130] sm:$0xff] }
 0x4fd   :  { %1286 = vmatpush.msra.mxu2 %v4965_v57  ;;  %1255 = vmatpush.msra.mxu1 %v4999_v44  ;;  %7531 = vst [vmem:[#allocation69_spill] sm:$0xff] %v5114_v25 }
 0x4fe   :  { %1376 = vmatpush.msrb.mxu3 %v4882_v28  ;;  %v5106_v28 = vld [vmem:[#allocation6 + $0x138] sm:$0xff] }
 0x4ff   :  { %7529 = vst [vmem:[#allocation67_spill] sm:$0xff] %v5106_v28 }
 0x500   :  { %1377 = vmatpush.msrb.mxu3 %v4888_v33  ;;  %v5104_v33 = vld [vmem:[#allocation2 + $0x148] sm:$0xff] }
 0x501   :  { %1307 = vmatmul.f32.vlgmr.msra.gmra.mxu3 %v7502_v14  ;;  %7528 = vst [vmem:[#allocation66_spill] sm:$0xff] %v5104_v33 }
 0x502   :  { %1378 = vmatpush.msrb.mxu3 %v4894_v5  ;;  %v5102_v5 = vld [vmem:[#allocation2 + $0x140] sm:$0xff] }
 0x504   :  { %1379 = vmatpush.msrb.mxu3 %v4901_v20  ;;  %v5096_v20 = vld [vmem:[#allocation6 + $0x150] sm:$0xff] }
 0x505   :  { %7527 = vst [vmem:[#allocation65_spill] sm:$0xff] %v5096_v20 }
 0x506   :  { %1380 = vmatpush.msrb.mxu3 %v4907_v26  ;;  %v5094_v26 = vld [vmem:[#allocation2 + $0x160] sm:$0xff] }
 0x508   :  { %1381 = vmatpush.msrb.mxu3 %v4913_v32  ;;  %v5092_v32 = vld [vmem:[#allocation2 + $0x158] sm:$0xff] }
 0x50a   :  { %1382 = vmatpush.msrb.mxu3 %v4919_v37  ;;  %v5087_v37 = vld [vmem:[#allocation6 + $0x168] sm:$0xff] }
 0x50b   :  { %7526 = vst [vmem:[#allocation64_spill] sm:$0xff] %v5087_v37  ;;  %1354 = vmatpush.msrb.mxu2 %v5087_v37 }
 0x50c   :  { %1383 = vmatpush.msrb.mxu3 %v4925_v43  ;;  %v5085_v43 = vld [vmem:[#allocation2 + $0x178] sm:$0xff] }
 0x50d   :  { %1355 = vmatpush.msrb.mxu2 %v5096_v20 }
 0x50e   :  { %1384 = vmatpush.msrb.mxu3 %v4931_v61  ;;  %v5083_v61 = vld [vmem:[#allocation2 + $0x170] sm:$0xff] }
 0x50f   :  { %1356 = vmatpush.msrb.mxu2 %v5106_v28 }
 0x510   :  { %1385 = vmatpush.msrb.mxu3 %v4937_v35  ;;  %v5079_v35 = vld [vmem:[#allocation4 + $0x8] sm:$0xff] }
 0x511   :  { %1357 = vmatpush.msrb.mxu2 %v5116_v18 }
 0x512   :  { %1386 = vmatpush.msrb.mxu3 %v4943_v55  ;;  %v5077_v55 = vld [vmem:[#allocation4] sm:$0xff] }
 0x513   :  { %1358 = vmatpush.msrb.mxu2 %v5126_v17 }
 0x514   :  { %1387 = vmatpush.msrb.mxu3 %v4949_v49  ;;  %v5073_v49 = vld [vmem:[#allocation4 + $0x20] sm:$0xff] }
 0x515   :  { %1359 = vmatpush.msrb.mxu2 %v5136_v2 }
 0x516   :  { %1388 = vmatpush.msrb.mxu3 %v4955_v41  ;;  %v5071_v41 = vld [vmem:[#allocation4 + $0x18] sm:$0xff] }
 0x517   :  { %1360 = vmatpush.msrb.mxu2 %v5146_v53 }
 0x518   :  { %1389 = vmatpush.msrb.mxu3 %v4961_v63  ;;  %v5067_v63 = vld [vmem:[#allocation4 + $0x38] sm:$0xff] }
 0x519   :  { %1390 = vmatmul.f32.vlgmr.msrb.gmra.mxu3 %v7525_v0  ;;  %1361 = vmatpush.msrb.mxu2 %v5161_v24 }
 0x51a   :  { %1502 = vmatpush.msra.mxu3 %v4873_v21  ;;  %v5009_v21 = vld [vmem:[#allocation4 + $0xd8] sm:$0xff] }
 0x51c   :  { %1503 = vmatpush.msra.mxu3 %v4880_v27  ;;  %v5002_v27 = vld [vmem:[#allocation4 + $0xf0] sm:$0xff] }
 0x51d   :  { %1236 = vmatpush.msra.mxu0 %v5002_v27 }
 0x51e   :  { %1504 = vmatpush.msra.mxu3 %v4886_v30  ;;  %v5006_v30 = vld [vmem:[#allocation4 + $0xf8] sm:$0xff] }
 0x51f   :  { %1256 = vmatpush.msra.mxu1 %v5006_v30  ;;  %1237 = vmatpush.msra.mxu0 %v5009_v21 }
 0x520   :  { %1505 = vmatpush.msra.mxu3 %v4892_v39  ;;  %v5013_v39 = vld [vmem:[#allocation4 + $0xe0] sm:$0xff] }
 0x521   :  { %1257 = vmatpush.msra.mxu1 %v5013_v39  ;;  %1238 = vmatpush.msra.mxu0 %v5016_v7 }
 0x522   :  { %1506 = vmatpush.msra.mxu3 %v4898_v11  ;;  %v5020_v11 = vld [vmem:[#allocation4 + $0xc8] sm:$0xff] }
 0x523   :  { %1258 = vmatpush.msra.mxu1 %v5020_v11 }
 0x524   :  { %1507 = vmatpush.msra.mxu3 %v4905_v23  ;;  %v5065_v23 = vld [vmem:[#allocation4 + $0x30] sm:$0xff] }
 0x526   :  { %1508 = vmatpush.msra.mxu3 %v4911_v29  ;;  %v5037_v29 = vld [vmem:[#allocation4 + $0xb0] sm:$0xff] }
 0x527   :  { %1259 = vmatpush.msra.mxu1 %v5037_v29 }
 0x528   :  { %1509 = vmatpush.msra.mxu3 %v4917_v34  ;;  %v5035_v34 = vld [vmem:[#allocation4 + $0xa8] sm:$0xff] }
 0x529   :  { %1239 = vmatpush.msra.mxu0 %v5035_v34 }
 0x52a   :  { %1510 = vmatpush.msra.mxu3 %v4923_v40  ;;  %v5061_v40 = vld [vmem:[#allocation4 + $0x50] sm:$0xff] }
 0x52c   :  { %1511 = vmatpush.msra.mxu3 %v4929_v45  ;;  %v5059_v45 = vld [vmem:[#allocation4 + $0x48] sm:$0xff] }
 0x52e   :  { %1512 = vmatpush.msra.mxu3 %v4935_v46  ;;  %v5041_v46 = vld [vmem:[#allocation4 + $0x90] sm:$0xff] }
 0x52f   :  { %1240 = vmatpush.msra.mxu0 %v5041_v46 }
 0x530   :  { %1513 = vmatpush.msra.mxu3 %v4941_v36  ;;  %v5043_v36 = vld [vmem:[#allocation4 + $0x98] sm:$0xff] }
 0x531   :  { %1260 = vmatpush.msra.mxu1 %v5043_v36 }
 0x532   :  { %1514 = vmatpush.msra.mxu3 %v4947_v50  ;;  %v5055_v50 = vld [vmem:[#allocation4 + $0x68] sm:$0xff] }
 0x534   :  { %1515 = vmatpush.msra.mxu3 %v4953_v48  ;;  %v5053_v48 = vld [vmem:[#allocation4 + $0x60] sm:$0xff] }
 0x536   :  { %1516 = vmatpush.msra.mxu3 %v4959_v47  ;;  %v5047_v47 = vld [vmem:[#allocation4 + $0x78] sm:$0xff] }
 0x537   :  { %1241 = vmatpush.msra.mxu0 %v5047_v47 }
 0x538   :  { %1517 = vmatpush.msra.mxu3 %v4965_v57  ;;  %v5049_v57 = vld [vmem:[#allocation4 + $0x80] sm:$0xff] }
 0x539   :  { %1518 = vmatmul.f32.vlgmr.msra.gmra.mxu3 %v4867_v6  ;;  %1261 = vmatpush.msra.mxu1 %v5049_v57 }
 0x53a   :  { %1242 = vmatpush.msra.mxu0 %v5053_v48  ;;  %1585 = vmatpush.msrb.mxu3 %v5087_v37  ;;  %v5112_v37 = vld [vmem:[#allocation2 + $0x128] sm:$0xff] }
 0x53b   :  { %1262 = vmatpush.msra.mxu1 %v5055_v50  ;;  %7530 = vst [vmem:[#allocation68_spill] sm:$0xff] %v5112_v37 }
 0x53c   :  { %1243 = vmatpush.msra.mxu0 %v5059_v45  ;;  %1586 = vmatpush.msrb.mxu3 %v5096_v20  ;;  %v5122_v20 = vld [vmem:[#allocation2 + $0x110] sm:$0xff] }
 0x53d   :  { %1263 = vmatpush.msra.mxu1 %v5061_v40  ;;  %7533 = vst [vmem:[#allocation71_spill] sm:$0xff] %v5122_v20 }
 0x53e   :  { %1244 = vmatpush.msra.mxu0 %v5065_v23  ;;  %1587 = vmatpush.msrb.mxu3 %v5106_v28  ;;  %v5132_v28 = vld [vmem:[#allocation2 + $0xf8] sm:$0xff] }
 0x53f   :  { %1264 = vmatpush.msra.mxu1 %v5067_v63  ;;  %7536 = vst [vmem:[#allocation74_spill] sm:$0xff] %v5132_v28 }
 0x540   :  { %1245 = vmatpush.msra.mxu0 %v5071_v41  ;;  %1588 = vmatpush.msrb.mxu3 %v5116_v18  ;;  %v5142_v18 = vld [vmem:[#allocation2 + $0xe0] sm:$0xff] }
 0x541   :  { %1265 = vmatpush.msra.mxu1 %v5073_v49  ;;  %7539 = vst [vmem:[#allocation77_spill] sm:$0xff] %v5142_v18 }
 0x542   :  { %1246 = vmatpush.msra.mxu0 %v5077_v55  ;;  %1589 = vmatpush.msrb.mxu3 %v5126_v17  ;;  %v5157_v17 = vld [vmem:[#allocation2 + $0xc8] sm:$0xff] }
 0x543   :  { %1266 = vmatpush.msra.mxu1 %v5079_v35  ;;  %7542 = vst [vmem:[#allocation80_spill] sm:$0xff] %v5157_v17 }
 0x544   :  { %1311 = vmatpush.msrb.mxu0 %v5083_v61  ;;  %1590 = vmatpush.msrb.mxu3 %v5136_v2 }
 0x545   :  { %1331 = vmatpush.msrb.mxu1 %v5085_v43 }
 0x546   :  { %1312 = vmatpush.msrb.mxu0 %v5092_v32  ;;  %1591 = vmatpush.msrb.mxu3 %v5146_v53  ;;  %v5178_v53 = vld [vmem:[#allocation2 + $0x98] sm:$0xff] }
 0x547   :  { %1332 = vmatpush.msrb.mxu1 %v5094_v26  ;;  %7548 = vst [vmem:[#allocation86_spill] sm:$0xff] %v5178_v53 }
 0x548   :  { %1313 = vmatpush.msrb.mxu0 %v5102_v5  ;;  %1592 = vmatpush.msrb.mxu3 %v5161_v24  ;;  %v5191_v24 = vld [vmem:[#allocation2 + $0x88] sm:$0xff] }
 0x549   :  { %1333 = vmatpush.msrb.mxu1 %v5104_v33  ;;  %7552 = vst [vmem:[#allocation90_spill] sm:$0xff] %v5191_v24 }
 0x54a   :  { %1314 = vmatpush.msrb.mxu0 %v5112_v37 }
 0x54b   :  { %1334 = vmatpush.msrb.mxu1 %v5114_v25 }
 0x54c   :  { %1315 = vmatpush.msrb.mxu0 %v5122_v20 }
 0x54d   :  { %1335 = vmatpush.msrb.mxu1 %v5124_v56  ;;  %v1223_v56 = vrot.slane %v5152_v58, 4 }
 0x54e   :  { %1316 = vmatpush.msrb.mxu0 %v5132_v28  ;;  %v1199_v28 = vrot.slane %v5152_v58, 2 }
 0x54f   :  { %1336 = vmatpush.msrb.mxu1 %v5134_v8 }
 0x550   :  { %1317 = vmatpush.msrb.mxu0 %v5142_v18  ;;  %v5171_v18 = vld [vmem:[#allocation6 + $0xa8] sm:$0xff] }
 0x551   :  { %1337 = vmatpush.msrb.mxu1 %v5144_v60  ;;  %v5169_v60 = vld [vmem:[#allocation2 + $0xb8] sm:$0xff]  ;;  %7547 = vst [vmem:[#allocation85_spill] sm:$0xff] %v5171_v18  ;;  %1362 = vmatpush.msrb.mxu2 %v5171_v18 }
 0x552   :  { %1318 = vmatpush.msrb.mxu0 %v5157_v17  ;;  %7546 = vst [vmem:[#allocation84_spill] sm:$0xff] %v5169_v60  ;;  %v5182_v17 = vld [vmem:[#allocation6 + $0x90] sm:$0xff]  ;;  %1593 = vmatpush.msrb.mxu3 %v5171_v18  ;;  %v5199_v18 = vld [vmem:[#allocation2 + $0x68] sm:$0xff] }
 0x553   :  { %1338 = vmatpush.msrb.mxu1 %v5159_v31  ;;  %v5180_v31 = vld [vmem:[#allocation2 + $0xa0] sm:$0xff]  ;;  %7550 = vst [vmem:[#allocation88_spill] sm:$0xff] %v5182_v17  ;;  %1363 = vmatpush.msrb.mxu2 %v5182_v17 }
 0x554   :  { %1319 = vmatpush.msrb.mxu0 %v5167_v22  ;;  %7549 = vst [vmem:[#allocation87_spill] sm:$0xff] %v5180_v31  ;;  %1594 = vmatpush.msrb.mxu3 %v5182_v17  ;;  %v5211_v17 = vld [vmem:[#allocation2 + $0x58] sm:$0xff] }
 0x555   :  { %1339 = vmatpush.msrb.mxu1 %v5169_v60  ;;  %v5193_v60 = vld [vmem:[#allocation6 + $0x78] sm:$0xff]  ;;  %7554 = vst [vmem:[#allocation92_spill] sm:$0xff] %v5199_v18 }
 0x556   :  { %1320 = vmatpush.msrb.mxu0 %v5178_v53  ;;  %7553 = vst [vmem:[#allocation91_spill] sm:$0xff] %v5193_v60  ;;  %1364 = vmatpush.msrb.mxu2 %v5193_v60  ;;  %v5203_v53 = vld [vmem:[#allocation6 + $0x60] sm:$0xff] }
 0x557   :  { %1340 = vmatpush.msrb.mxu1 %v5180_v31  ;;  %v5201_v31 = vld [vmem:[#allocation2 + $0x70] sm:$0xff]  ;;  %7556 = vst [vmem:[#allocation94_spill] sm:$0xff] %v5203_v53  ;;  %1595 = vmatpush.msrb.mxu3 %v5193_v60 }
 0x558   :  { %7555 = vst [vmem:[#allocation93_spill] sm:$0xff] %v5201_v31  ;;  %1365 = vmatpush.msrb.mxu2 %v5203_v53  ;;  %v5223_v60 = vld [vmem:[#allocation6 + $0x30] sm:$0xff] }
 0x559   :  { %1341 = vmatpush.msrb.mxu1 %v5191_v24  ;;  %7558 = vst [vmem:[#allocation96_spill] sm:$0xff] %v5211_v17  ;;  %v5213_v24 = vld [vmem:[#allocation6 + $0x48] sm:$0xff]  ;;  %1596 = vmatpush.msrb.mxu3 %v5203_v53  ;;  %v5229_v53 = vld [vmem:[#allocation2 + $0x20] sm:$0xff] }
 0x55a   :  { %7559 = vst [vmem:[#allocation97_spill] sm:$0xff] %v5213_v24  ;;  %1366 = vmatpush.msrb.mxu2 %v5213_v24 }
 0x55b   :  { %1342 = vmatpush.msrb.mxu1 %v5201_v31  ;;  %7562 = vst [vmem:[#allocation100_spill] sm:$0xff] %v5223_v60  ;;  %1597 = vmatpush.msrb.mxu3 %v5213_v24  ;;  %v5240_v24 = vld [vmem:[#allocation2 + $0x10] sm:$0xff] }
 0x55c   :  { %1367 = vmatpush.msrb.mxu2 %v5223_v60  ;;  %7563 = vst [vmem:[#allocation101_spill] sm:$0xff] %v5229_v53 }
 0x55d   :  { %1343 = vmatpush.msrb.mxu1 %v5211_v17  ;;  %v5231_v17 = vld [vmem:[#allocation2 + $0x28] sm:$0xff]  ;;  %1598 = vmatpush.msrb.mxu3 %v5223_v60  ;;  %7567 = vst [vmem:[#allocation105_spill] sm:$0xff] %v5240_v24 }
 0x55e   :  { %7564 = vst [vmem:[#allocation102_spill] sm:$0xff] %v5231_v17 }
 0x575   :  { %v1135_v2 = vpop.f32.mrf.mxu1 }
 0x576   :  { %v1178_v19 = vadd.f32 %v5152_v58, %v1135_v2  ;;  %v5189_v2 = vld [vmem:[#allocation2 + $0x80] sm:$0xff] }
 0x577   :  { %7551 = vst [vmem:[#allocation89_spill] sm:$0xff] %v5189_v2  ;;  %1321 = vmatpush.msrb.mxu0 %v5189_v2 }
 0x578   :  { %v3244_v8 = vmul.f32 -1.442695, %v1178_v19 }
 0x579   :  { %1322 = vmatpush.msrb.mxu0 %v5199_v18 }
 0x57a   :  { %3346 = vpow2.f32 %v3244_v8  ;;  %v5209_v8 = vld [vmem:[#allocation2 + $0x50] sm:$0xff] }
 0x57b   :  { %v1155_v19 = vpop.f32.mrf.mxu2  ;;  %7557 = vst [vmem:[#allocation95_spill] sm:$0xff] %v5209_v8  ;;  %1323 = vmatpush.msrb.mxu0 %v5209_v8  ;;  %v5233_v8 = vld [vmem:[#allocation6 + $0x18] sm:$0xff] }
 0x57c   :  { %v1201_v22 = vadd.f32 %v1199_v28, %v1155_v19  ;;  %v5219_v28 = vld [vmem:[#allocation2 + $0x38] sm:$0xff]  ;;  %v5221_v19 = vld [vmem:[#allocation2 + $0x40] sm:$0xff]  ;;  %7565 = vst [vmem:[#allocation103_spill] sm:$0xff] %v5233_v8  ;;  %1368 = vmatpush.msrb.mxu2 %v5233_v8  ;;  %1599 = vmatpush.msrb.mxu3 %v5233_v8  ;;  %v1175_v18 = vpop.f32.mrf.mxu3 }
 0x57d   :  { %7560 = vst [vmem:[#allocation98_spill] sm:$0xff] %v5219_v28  ;;  %1324 = vmatpush.msrb.mxu0 %v5219_v28  ;;  %1344 = vmatpush.msrb.mxu1 %v5221_v19 }
 0x57e   :  { %v3245_v2 = vmul.f32 -1.442695, %v1201_v22  ;;  %7561 = vst [vmem:[#allocation99_spill] sm:$0xff] %v5221_v19  ;;  %v5242_v19 = vld [vmem:[#allocation6] sm:$0xff] }
 0x57f   :  { %1325 = vmatpush.msrb.mxu0 %v5229_v53  ;;  %1345 = vmatpush.msrb.mxu1 %v5231_v17  ;;  %7568 = vst [vmem:[#allocation106_spill] sm:$0xff] %v5242_v19 }
 0x580   :  { %v3347_v31 = vpop.eup %3346  ;;  %3348 = vpow2.f32 %v3245_v2  ;;  %v5238_v2 = vld [vmem:[#allocation2 + $0x8] sm:$0xff]  ;;  %1369 = vmatpush.msrb.mxu2 %v5242_v19  ;;  %1600 = vmatpush.msrb.mxu3 %v5242_v19 }
 0x581   :  { %v1182_v22 = vadd.f32 1.0, %v3347_v31  ;;  %7566 = vst [vmem:[#allocation104_spill] sm:$0xff] %v5238_v2  ;;  %1326 = vmatpush.msrb.mxu0 %v5238_v2  ;;  %1346 = vmatpush.msrb.mxu1 %v5240_v24 }
 0x582   :  { %1713 = vmatpush.msra.mxu3 %v4971_v59 }
 0x583   :  { %3350 = vrcp.f32 %v1182_v22  ;;  %v1194_v2 = vand.u32 2147483648, %v1182_v22  ;;  %v1192_v28 = vand.u32 2147483647, %v1182_v22  ;;  %vm1188_vm9 = vweird.f32 %v1182_v22 }
 0x584   :  { %1714 = vmatpush.msra.mxu3 %v4977_v51 }
 0x585   :  { %v1195_v20 = vor.u32 1.1754944e-38, %v1194_v2  ;;  %vm1193_vm11 = vcmp.eq.f32.partialorder %v1192_v28, 8.507059e+37  ;;  %v5314_v28 = vld [vmem:[#allocation6 + $0xb8] sm:$0xff]  ;;  %v7583_v2 = vld [vmem:[#allocation20_spill] sm:$0xff] }
 0x586   :  { %v3349_v31 = vpop.eup %3348  ;;  %1715 = vmatpush.msra.mxu3 %v4985_v3 }
 0x587   :  { %v1205_v60 = vadd.f32 1.0, %v3349_v31 }
 0x588   :  { %1716 = vmatpush.msra.mxu3 %v4992_v54 }
 0x589   :  { %v3351_v17 = vpop.eup %3350  ;;  %3352 = vrcp.f32 %v1205_v60  ;;  %v1217_v13 = vand.u32 2147483648, %v1205_v60  ;;  %vm1211_vm13 = vweird.f32 %v1205_v60 }
 0x58a   :  { %v1184_v53 = vmul.f32 %v3351_v17, %v1182_v22  ;;  %vm1189_vm8 = vweird.f32 %v3351_v17  ;;  %1717 = vmatpush.msra.mxu3 %v4999_v44 }
 0x58b   :  { %vm1190_vm10 = vmor %vm1188_vm9, %vm1189_vm8 }
 0x58c   :  { %v1185_v8 = vsub.f32 1.0, %v1184_v53  ;;  %1718 = vmatpush.msra.mxu3 %v5006_v30 }
 0x58e   :  { %v1186_v24 = vmul.f32 %v3351_v17, %v1185_v8  ;;  %v1221_v8 = vadd.f32 %v4800_v52, %v1175_v18  ;;  %1719 = vmatpush.msra.mxu3 %v5013_v39 }
 0x58f   :  { %v3353_v19 = vpop.eup %3352 }
 0x590   :  { %v1207_v16 = vmul.f32 %v3353_v19, %v1205_v60  ;;  %v1187_v31 = vadd.f32 %v3351_v17, %v1186_v24  ;;  %vm1212_vm12 = vweird.f32 %v3353_v19  ;;  %1720 = vmatpush.msra.mxu3 %v5020_v11  ;;  %v1215_v24 = vand.u32 2147483647, %v1205_v60 }
 0x591   :  { %vm1213_vm14 = vmor %vm1211_vm13, %vm1212_vm12 }
 0x592   :  { %v1208_v53 = vsub.f32 1.0, %v1207_v16  ;;  %v1191_v15 = vsel %vm1190_vm10, %v3351_v17, %v1187_v31  ;;  %1721 = vmatpush.msra.mxu3 %v5037_v29  ;;  %v1218_v16 = vor.u32 1.1754944e-38, %v1217_v13  ;;  %vm1216_vm15 = vcmp.eq.f32.partialorder %v1215_v24, 8.507059e+37  ;;  %v7584_v31 = vld [vmem:[#allocation77_spill] sm:$0xff]  ;;  %v7587_v24 = vld [vmem:[#allocation80_spill] sm:$0xff] }
 0x593   :  { %v1196_v25 = vsel %vm1193_vm11, %v1195_v20, %v1191_v15  ;;  %v5280_v20 = vld [vmem:[#allocation6 + $0x148] sm:$0xff] }
 0x594   :  { %v1209_v37 = vmul.f32 %v3353_v19, %v1208_v53  ;;  %v1222_v33 = vmul.f32 %v1221_v8, %v1196_v25  ;;  %1722 = vmatpush.msra.mxu3 %v5043_v36  ;;  %v5269_v25 = vld [vmem:[#allocation6 + $0x178] sm:$0xff]  ;;  %v7585_v53 = vld [vmem:[#allocation78_spill] sm:$0xff]  ;;  %v7586_v8 = vld [vmem:[#allocation16_spill] sm:$0xff] }
 0x596   :  { %v1210_v22 = vadd.f32 %v3353_v19, %v1209_v37  ;;  %v1225_v58 = vadd.f32 %v1223_v56, %v1222_v33  ;;  %1723 = vmatpush.msra.mxu3 %v5049_v57  ;;  %v5274_v33 = vld [vmem:[#allocation6 + $0x160] sm:$0xff]  ;;  %v5286_v37 = vld [vmem:[#allocation6 + $0x130] sm:$0xff] }
 0x598   :  { %v1214_v17 = vsel %vm1213_vm14, %v3353_v19, %v1210_v22  ;;  %3354 = vtanh.f32 %v1225_v58  ;;  %1724 = vmatpush.msra.mxu3 %v5055_v50  ;;  %v7581_v19 = vld [vmem:[#allocation74_spill] sm:$0xff]  ;;  %v7588_v22 = vld [vmem:[#allocation81_spill] sm:$0xff] }
 0x599   :  { %v1219_v52 = vsel %vm1216_vm15, %v1218_v16, %v1214_v17  ;;  %v7589_v58 = vld [vmem:[#allocation17_spill] sm:$0xff]  ;;  %v7590_v16 = vld [vmem:[#allocation83_spill] sm:$0xff]  ;;  %v7591_v17 = vld [vmem:[#allocation84_spill] sm:$0xff] }
 0x59a   :  { %v1227_v15 = vsub.f32 1.0, %v1219_v52  ;;  %1725 = vmatpush.msra.mxu3 %v5061_v40  ;;  %v1229_v56 = vmul.f32 %v1219_v52, %v4867_v6  ;;  %v7592_v52 = vld [vmem:[#allocation24_spill] sm:$0xff] }
 0x59c   :  { %1726 = vmatpush.msra.mxu3 %v5067_v63 }
 0x59e   :  { %v3355_v18 = vpop.eup %3354  ;;  %1727 = vmatpush.msra.mxu3 %v5073_v49 }
 0x59f   :  { %v1228_v60 = vmul.f32 %v3355_v18, %v1227_v15  ;;  %v7593_v15 = vld [vmem:[#allocation86_spill] sm:$0xff]  ;;  %v7594_v18 = vld [vmem:[#allocation87_spill] sm:$0xff] }
 0x5a0   :  { %1728 = vmatpush.msra.mxu3 %v5079_v35 }
 0x5a1   :  { %v5267_v13 = vadd.f32 %v1229_v56, %v1228_v60  ;;  %v7595_v60 = vld [vmem:[#allocation25_spill] sm:$0xff] }
 0x5a2   :  { %v7596_v56 = vld [vmem:[#allocation89_spill] sm:$0xff] }
 0x5a3   :  { %7569 = vst [vmem:[#allocation107_spill] sm:$0xff] %v5267_v13  ;;  %1247 = vmatmul.f32.vlgmr.msra.gmra.mxu0 %v5267_v13  ;;  %1267 = vmatmul.f32.vlgmr.msra.gmra.mxu1 %v5267_v13 }
 0x5a4   :  { %1287 = vmatmul.f32.vlgmr.msra.gmra.mxu2 %v5267_v13  ;;  %1394 = vmatpush.msra.mxu0 %v5269_v25  ;;  %v7604_v13 = vld [vmem:[#allocation28_spill] sm:$0xff] }
 0x5a5   :  { %1462 = vmatpush.msra.mxu1 %v4969_v38  ;;  %1482 = vmatpush.msra.mxu2 %v4971_v59  ;;  %v5292_v59 = vld [vmem:[#allocation6 + $0x118] sm:$0xff] }
 0x5a6   :  { %1395 = vmatpush.msra.mxu0 %v5274_v33 }
 0x5a7   :  { %1463 = vmatpush.msra.mxu1 %v4973_v62  ;;  %1483 = vmatpush.msra.mxu2 %v4977_v51  ;;  %v5298_v51 = vld [vmem:[#allocation6 + $0x100] sm:$0xff] }
 0x5a8   :  { %1396 = vmatpush.msra.mxu0 %v5280_v20 }
 0x5a9   :  { %1464 = vmatpush.msra.mxu1 %v4981_v1  ;;  %1484 = vmatpush.msra.mxu2 %v4985_v3  ;;  %v5304_v3 = vld [vmem:[#allocation6 + $0xe8] sm:$0xff] }
 0x5aa   :  { %1397 = vmatpush.msra.mxu0 %v5286_v37 }
 0x5ab   :  { %1465 = vmatpush.msra.mxu1 %v4988_v4  ;;  %1485 = vmatpush.msra.mxu2 %v4992_v54  ;;  %v5309_v54 = vld [vmem:[#allocation6 + $0xd0] sm:$0xff] }
 0x5ac   :  { %1327 = vmatmul.f32.vlgmr.msrb.gmra.mxu0 %v7502_v14  ;;  %1347 = vmatmul.f32.vlgmr.msrb.gmra.mxu1 %v7502_v14  ;;  %v7605_v14 = vld [vmem:[#allocation98_spill] sm:$0xff] }
 0x5ad   :  { %1370 = vmatmul.f32.vlgmr.msrb.gmra.mxu2 %v7525_v0  ;;  %1398 = vmatpush.msra.mxu0 %v5292_v59 }
 0x5ae   :  { %1466 = vmatpush.msra.mxu1 %v4995_v42  ;;  %1486 = vmatpush.msra.mxu2 %v4999_v44  ;;  %v5319_v44 = vld [vmem:[#allocation6 + $0xa0] sm:$0xff] }
 0x5af   :  { %1399 = vmatpush.msra.mxu0 %v5298_v51 }
 0x5b0   :  { %1467 = vmatpush.msra.mxu1 %v5002_v27  ;;  %1487 = vmatpush.msra.mxu2 %v5006_v30  ;;  %v5324_v30 = vld [vmem:[#allocation6 + $0x88] sm:$0xff] }
 0x5b1   :  { %1400 = vmatpush.msra.mxu0 %v5304_v3 }
 0x5b2   :  { %1468 = vmatpush.msra.mxu1 %v5009_v21  ;;  %1488 = vmatpush.msra.mxu2 %v5013_v39  ;;  %v5329_v39 = vld [vmem:[#allocation6 + $0x70] sm:$0xff] }
 0x5b3   :  { %1401 = vmatpush.msra.mxu0 %v5309_v54 }
 0x5b4   :  { %1469 = vmatpush.msra.mxu1 %v5016_v7  ;;  %1489 = vmatpush.msra.mxu2 %v5020_v11  ;;  %v5334_v11 = vld [vmem:[#allocation6 + $0x58] sm:$0xff] }
 0x5b5   :  { %1402 = vmatpush.msra.mxu0 %v5314_v28 }
 0x5b6   :  { %1470 = vmatpush.msra.mxu1 %v5035_v34  ;;  %1490 = vmatpush.msra.mxu2 %v5037_v29  ;;  %v5339_v29 = vld [vmem:[#allocation6 + $0x40] sm:$0xff] }
 0x5b7   :  { %1403 = vmatpush.msra.mxu0 %v5319_v44  ;;  %7570 = vst [vmem:[#allocation108_spill] sm:$0xff] %v5339_v29 }
 0x5b8   :  { %1471 = vmatpush.msra.mxu1 %v5041_v46  ;;  %1491 = vmatpush.msra.mxu2 %v5043_v36  ;;  %v5344_v36 = vld [vmem:[#allocation6 + $0x28] sm:$0xff] }
 0x5b9   :  { %1404 = vmatpush.msra.mxu0 %v5324_v30  ;;  %7571 = vst [vmem:[#allocation109_spill] sm:$0xff] %v5344_v36 }
 0x5ba   :  { %1472 = vmatpush.msra.mxu1 %v5047_v47  ;;  %1492 = vmatpush.msra.mxu2 %v5049_v57  ;;  %v5349_v57 = vld [vmem:[#allocation6 + $0x10] sm:$0xff] }
 0x5bb   :  { %1405 = vmatpush.msra.mxu0 %v5329_v39  ;;  %7572 = vst [vmem:[#allocation110_spill] sm:$0xff] %v5349_v57 }
 0x5bc   :  { %1473 = vmatpush.msra.mxu1 %v5053_v48  ;;  %1493 = vmatpush.msra.mxu2 %v5055_v50  ;;  %v7576_v50 = vld [vmem:[#allocation69_spill] sm:$0xff] }
 0x5bd   :  { %1406 = vmatpush.msra.mxu0 %v5334_v11 }
 0x5be   :  { %1474 = vmatpush.msra.mxu1 %v5059_v45  ;;  %1494 = vmatpush.msra.mxu2 %v5061_v40  ;;  %v7573_v40 = vld [vmem:[#allocation66_spill] sm:$0xff] }
 0x5bf   :  { %1407 = vmatpush.msra.mxu0 %v5339_v29 }
 0x5c0   :  { %1475 = vmatpush.msra.mxu1 %v5065_v23  ;;  %1495 = vmatpush.msra.mxu2 %v5067_v63  ;;  %v7578_v63 = vld [vmem:[#allocation71_spill] sm:$0xff] }
 0x5c1   :  { %1408 = vmatpush.msra.mxu0 %v5344_v36 }
 0x5c2   :  { %1476 = vmatpush.msra.mxu1 %v5071_v41  ;;  %1496 = vmatpush.msra.mxu2 %v5073_v49  ;;  %v7577_v49 = vld [vmem:[#allocation14_spill] sm:$0xff] }
 0x5c3   :  { %1409 = vmatpush.msra.mxu0 %v5349_v57 }
 0x5c4   :  { %1477 = vmatpush.msra.mxu1 %v5077_v55  ;;  %1497 = vmatpush.msra.mxu2 %v5079_v35  ;;  %v7574_v35 = vld [vmem:[#allocation19_spill] sm:$0xff] }
 0x5c5   :  { %1478 = vmatmul.f32.vlgmr.msra.gmra.mxu1 %v4867_v6  ;;  %1498 = vmatmul.f32.vlgmr.msra.gmra.mxu2 %v4867_v6  ;;  %v7607_v6 = vld [vmem:[#allocation29_spill] sm:$0xff] }
 0x5c6   :  { %1522 = vmatpush.msrb.mxu0 %v4809_v9  ;;  %1542 = vmatpush.msrb.mxu1 %v5083_v61  ;;  %v7575_v9 = vld [vmem:[#allocation68_spill] sm:$0xff] }
 0x5c7   :  { %1562 = vmatpush.msrb.mxu2 %v5085_v43  ;;  %1410 = vmatmul.f32.vlgmr.msra.gmra.mxu0 %v7525_v0  ;;  %v7580_v0 = vld [vmem:[#allocation15_spill] sm:$0xff] }
 0x5c8   :  { %1523 = vmatpush.msrb.mxu0 %v4812_v10  ;;  %1543 = vmatpush.msrb.mxu1 %v5092_v32  ;;  %v7579_v10 = vld [vmem:[#allocation72_spill] sm:$0xff] }
 0x5c9   :  { %1563 = vmatpush.msrb.mxu2 %v5094_v26 }
 0x5ca   :  { %1524 = vmatpush.msrb.mxu0 %v4815_v12  ;;  %1544 = vmatpush.msrb.mxu1 %v5102_v5  ;;  %v7582_v12 = vld [vmem:[#allocation75_spill] sm:$0xff] }
 0x5cb   :  { %1564 = vmatpush.msrb.mxu2 %v7573_v40 }
 0x5cc   :  { %1525 = vmatpush.msrb.mxu0 %v7574_v35  ;;  %1545 = vmatpush.msrb.mxu1 %v7575_v9  ;;  %v7597_v35 = vld [vmem:[#allocation90_spill] sm:$0xff] }
 0x5cd   :  { %1565 = vmatpush.msrb.mxu2 %v7576_v50 }
 0x5ce   :  { %1526 = vmatpush.msrb.mxu0 %v7577_v49  ;;  %1546 = vmatpush.msrb.mxu1 %v7578_v63  ;;  %v7598_v49 = vld [vmem:[#allocation26_spill] sm:$0xff] }
 0x5cf   :  { %1566 = vmatpush.msrb.mxu2 %v7579_v10 }
 0x5d0   :  { %1527 = vmatpush.msrb.mxu0 %v7580_v0  ;;  %1547 = vmatpush.msrb.mxu1 %v7581_v19  ;;  %v7599_v0 = vld [vmem:[#allocation92_spill] sm:$0xff] }
 0x5d1   :  { %1567 = vmatpush.msrb.mxu2 %v7582_v12 }
 0x5d2   :  { %1528 = vmatpush.msrb.mxu0 %v7583_v2  ;;  %1548 = vmatpush.msrb.mxu1 %v7584_v31  ;;  %v7600_v2 = vld [vmem:[#allocation93_spill] sm:$0xff] }
 0x5d3   :  { %1568 = vmatpush.msrb.mxu2 %v7585_v53 }
 0x5d4   :  { %1529 = vmatpush.msrb.mxu0 %v7586_v8  ;;  %1549 = vmatpush.msrb.mxu1 %v7587_v24  ;;  %v7601_v8 = vld [vmem:[#allocation27_spill] sm:$0xff] }
 0x5d5   :  { %1569 = vmatpush.msrb.mxu2 %v7588_v22 }
 0x5d6   :  { %1530 = vmatpush.msrb.mxu0 %v7589_v58  ;;  %1550 = vmatpush.msrb.mxu1 %v7590_v16  ;;  %v7602_v58 = vld [vmem:[#allocation95_spill] sm:$0xff] }
 0x5d7   :  { %1570 = vmatpush.msrb.mxu2 %v7591_v17  ;;  %v7613_v17 = vld [vmem:[#allocation22_spill] sm:$0xff] }
 0x5d8   :  { %1531 = vmatpush.msrb.mxu0 %v7592_v52  ;;  %1551 = vmatpush.msrb.mxu1 %v7593_v15  ;;  %v7603_v52 = vld [vmem:[#allocation96_spill] sm:$0xff] }
 0x5d9   :  { %1571 = vmatpush.msrb.mxu2 %v7594_v18  ;;  %v7610_v18 = vld [vmem:[#allocation30_spill] sm:$0xff] }
 0x5da   :  { %1532 = vmatpush.msrb.mxu0 %v7595_v60  ;;  %1552 = vmatpush.msrb.mxu1 %v7596_v56  ;;  %v7606_v60 = vld [vmem:[#allocation99_spill] sm:$0xff] }
 0x5db   :  { %1572 = vmatpush.msrb.mxu2 %v7597_v35  ;;  %v7608_v35 = vld [vmem:[#allocation101_spill] sm:$0xff] }
 0x5dc   :  { %1533 = vmatpush.msrb.mxu0 %v7598_v49  ;;  %1553 = vmatpush.msrb.mxu1 %v7599_v0  ;;  %v7609_v49 = vld [vmem:[#allocation102_spill] sm:$0xff] }
 0x5dd   :  { %1573 = vmatpush.msrb.mxu2 %v7600_v2  ;;  %v7611_v2 = vld [vmem:[#allocation104_spill] sm:$0xff] }
 0x5de   :  { %1534 = vmatpush.msrb.mxu0 %v7601_v8  ;;  %1554 = vmatpush.msrb.mxu1 %v7602_v58  ;;  %v7612_v8 = vld [vmem:[#allocation105_spill] sm:$0xff] }
 0x5df   :  { %1574 = vmatpush.msrb.mxu2 %v7603_v52 }
 0x5e0   :  { %1535 = vmatpush.msrb.mxu0 %v7604_v13  ;;  %1555 = vmatpush.msrb.mxu1 %v7605_v14  ;;  %v7614_v13 = vld [vmem:[#allocation32_spill] sm:$0xff] }
 0x5e1   :  { %1575 = vmatpush.msrb.mxu2 %v7606_v60 }
 0x5e2   :  { %1536 = vmatpush.msrb.mxu0 %v7607_v6  ;;  %1556 = vmatpush.msrb.mxu1 %v7608_v35  ;;  %v7615_v6 = vld [vmem:[#allocation34_spill] sm:$0xff] }
 0x5e3   :  { %1576 = vmatpush.msrb.mxu2 %v7609_v49 }
 0x5e4   :  { %1537 = vmatpush.msrb.mxu0 %v7610_v18  ;;  %1557 = vmatpush.msrb.mxu1 %v7611_v2  ;;  %v7616_v18 = vld [vmem:[#allocation36_spill] sm:$0xff] }
 0x5e5   :  { %1577 = vmatpush.msrb.mxu2 %v7612_v8  ;;  %1538 = vmatmul.f32.vlgmr.msrb.gmra.mxu0 %v7613_v17 }
 0x5e6   :  { %1558 = vmatmul.f32.vlgmr.msrb.gmra.mxu1 %v7613_v17  ;;  %1578 = vmatmul.f32.vlgmr.msrb.gmra.mxu2 %v7613_v17  ;;  %v7617_v17 = vld [vmem:[#allocation38_spill] sm:$0xff] }
 0x5e7   :  { %1693 = vmatpush.msra.mxu2 %v4969_v38  ;;  %1605 = vmatpush.msra.mxu0 %v7614_v13  ;;  %v7618_v38 = vld [vmem:[#allocation40_spill] sm:$0xff]  ;;  %v5467_v13 = vld [vmem:[#allocation2 + $0x150] sm:$0xff] }
 0x5e8   :  { %1625 = vmatpush.msra.mxu1 %v5269_v25  ;;  %7634 = vst [vmem:[#allocation19_spill] sm:$0xff] %v5467_v13 }
 0x5e9   :  { %1694 = vmatpush.msra.mxu2 %v4973_v62  ;;  %1606 = vmatpush.msra.mxu0 %v7615_v6  ;;  %v7619_v62 = vld [vmem:[#allocation42_spill] sm:$0xff]  ;;  %v5472_v6 = vld [vmem:[#allocation2 + $0x138] sm:$0xff] }
 0x5ea   :  { %1626 = vmatpush.msra.mxu1 %v5274_v33  ;;  %7636 = vst [vmem:[#allocation68_spill] sm:$0xff] %v5472_v6 }
 0x5eb   :  { %1695 = vmatpush.msra.mxu2 %v4981_v1  ;;  %1607 = vmatpush.msra.mxu0 %v7616_v18  ;;  %v7620_v1 = vld [vmem:[#allocation44_spill] sm:$0xff] }
 0x5ec   :  { %1627 = vmatpush.msra.mxu1 %v5280_v20  ;;  %v5477_v18 = vld [vmem:[#allocation2 + $0x120] sm:$0xff] }
 0x5ed   :  { %1696 = vmatpush.msra.mxu2 %v4988_v4  ;;  %1608 = vmatpush.msra.mxu0 %v7617_v17  ;;  %v7621_v4 = vld [vmem:[#allocation46_spill] sm:$0xff]  ;;  %v5462_v17 = vld [vmem:[#allocation2 + $0x168] sm:$0xff] }
 0x5ee   :  { %1628 = vmatpush.msra.mxu1 %v5286_v37  ;;  %7632 = vst [vmem:[#allocation66_spill] sm:$0xff] %v5462_v17 }
 0x5ef   :  { %1697 = vmatpush.msra.mxu2 %v4995_v42  ;;  %1609 = vmatpush.msra.mxu0 %v7618_v38  ;;  %v7622_v42 = vld [vmem:[#allocation48_spill] sm:$0xff]  ;;  %v5482_v38 = vld [vmem:[#allocation2 + $0x108] sm:$0xff] }
 0x5f0   :  { %1629 = vmatpush.msra.mxu1 %v5292_v59 }
 0x5f1   :  { %1698 = vmatpush.msra.mxu2 %v5002_v27  ;;  %1610 = vmatpush.msra.mxu0 %v7619_v62  ;;  %v7623_v27 = vld [vmem:[#allocation50_spill] sm:$0xff] }
 0x5f2   :  { %1630 = vmatpush.msra.mxu1 %v5298_v51  ;;  %v5487_v62 = vld [vmem:[#allocation2 + $0xf0] sm:$0xff] }
 0x5f3   :  { %1699 = vmatpush.msra.mxu2 %v5009_v21  ;;  %1611 = vmatpush.msra.mxu0 %v7620_v1  ;;  %v7624_v21 = vld [vmem:[#allocation52_spill] sm:$0xff]  ;;  %v5492_v1 = vld [vmem:[#allocation2 + $0xd8] sm:$0xff] }
 0x5f4   :  { %1631 = vmatpush.msra.mxu1 %v5304_v3 }
 0x5f5   :  { %1700 = vmatpush.msra.mxu2 %v5016_v7  ;;  %1612 = vmatpush.msra.mxu0 %v7621_v4  ;;  %v7625_v7 = vld [vmem:[#allocation54_spill] sm:$0xff]  ;;  %v5497_v4 = vld [vmem:[#allocation2 + $0xc0] sm:$0xff] }
 0x5f6   :  { %1632 = vmatpush.msra.mxu1 %v5309_v54 }
 0x5f7   :  { %1701 = vmatpush.msra.mxu2 %v5035_v34  ;;  %1613 = vmatpush.msra.mxu0 %v7622_v42  ;;  %v7626_v34 = vld [vmem:[#allocation56_spill] sm:$0xff]  ;;  %v5502_v42 = vld [vmem:[#allocation2 + $0xa8] sm:$0xff] }
 0x5f8   :  { %1633 = vmatpush.msra.mxu1 %v5314_v28 }
 0x5f9   :  { %1702 = vmatpush.msra.mxu2 %v5041_v46  ;;  %1614 = vmatpush.msra.mxu0 %v7623_v27  ;;  %v7627_v46 = vld [vmem:[#allocation58_spill] sm:$0xff] }
 0x5fa   :  { %1634 = vmatpush.msra.mxu1 %v5319_v44  ;;  %v5507_v27 = vld [vmem:[#allocation2 + $0x90] sm:$0xff] }
 0x5fb   :  { %1703 = vmatpush.msra.mxu2 %v5047_v47  ;;  %1615 = vmatpush.msra.mxu0 %v7624_v21  ;;  %v7628_v47 = vld [vmem:[#allocation60_spill] sm:$0xff]  ;;  %v5512_v21 = vld [vmem:[#allocation2 + $0x78] sm:$0xff] }
 0x5fc   :  { %1635 = vmatpush.msra.mxu1 %v5324_v30 }
 0x5fd   :  { %1704 = vmatpush.msra.mxu2 %v5053_v48  ;;  %1616 = vmatpush.msra.mxu0 %v7625_v7  ;;  %v7629_v48 = vld [vmem:[#allocation62_spill] sm:$0xff]  ;;  %v5517_v7 = vld [vmem:[#allocation2 + $0x60] sm:$0xff] }
 0x5fe   :  { %1636 = vmatpush.msra.mxu1 %v5329_v39 }
 0x5ff   :  { %1705 = vmatpush.msra.mxu2 %v5059_v45  ;;  %1617 = vmatpush.msra.mxu0 %v7626_v34  ;;  %v7630_v45 = vld [vmem:[#allocation13_spill] sm:$0xff] }
 0x600   :  { %1637 = vmatpush.msra.mxu1 %v5334_v11 }
 0x601   :  { %1706 = vmatpush.msra.mxu2 %v5065_v23  ;;  %1618 = vmatpush.msra.mxu0 %v7627_v46  ;;  %v7631_v23 = vld [vmem:[#allocation33_spill] sm:$0xff]  ;;  %v7647_v46 = vld [vmem:[#allocation59_spill] sm:$0xff] }
 0x602   :  { %1638 = vmatpush.msra.mxu1 %v5339_v29 }
 0x603   :  { %1707 = vmatpush.msra.mxu2 %v5071_v41  ;;  %1619 = vmatpush.msra.mxu0 %v7628_v47  ;;  %v7633_v41 = vld [vmem:[#allocation35_spill] sm:$0xff]  ;;  %v7648_v47 = vld [vmem:[#allocation61_spill] sm:$0xff] }
 0x604   :  { %1639 = vmatpush.msra.mxu1 %v5344_v36 }
 0x605   :  { %1708 = vmatpush.msra.mxu2 %v5077_v55  ;;  %1620 = vmatpush.msra.mxu0 %v7629_v48  ;;  %v7635_v55 = vld [vmem:[#allocation37_spill] sm:$0xff]  ;;  %v1308_v48 = vpop.f32.mrf.mxu3 }
 0x606   :  { %1709 = vmatmul.f32.vlgmr.msra.gmra.mxu2 %v7630_v45  ;;  %1640 = vmatpush.msra.mxu1 %v5349_v57 }
 0x607   :  { %1773 = vmatpush.msrb.mxu2 %v5083_v61  ;;  %1733 = vmatpush.msrb.mxu0 %v7631_v23  ;;  %v7637_v61 = vld [vmem:[#allocation39_spill] sm:$0xff] }
 0x608   :  { %1753 = vmatpush.msrb.mxu1 %v5462_v17  ;;  %v7649_v23 = vld [vmem:[#allocation63_spill] sm:$0xff] }
 0x609   :  { %1774 = vmatpush.msrb.mxu2 %v5092_v32  ;;  %1734 = vmatpush.msrb.mxu0 %v7633_v41  ;;  %v7638_v32 = vld [vmem:[#allocation41_spill] sm:$0xff]  ;;  %v5538_v41 = vld [vmem:[#allocation2] sm:$0xff] }
 0x60a   :  { %1754 = vmatpush.msrb.mxu1 %v5467_v13 }
 0x60b   :  { %1775 = vmatpush.msrb.mxu2 %v5102_v5  ;;  %1735 = vmatpush.msrb.mxu0 %v7635_v55  ;;  %v7639_v5 = vld [vmem:[#allocation43_spill] sm:$0xff] }
 0x60c   :  { %1755 = vmatpush.msrb.mxu1 %v5472_v6 }
 0x60d   :  { %1776 = vmatpush.msrb.mxu2 %v7575_v9  ;;  %1736 = vmatpush.msrb.mxu0 %v7637_v61  ;;  %v7640_v9 = vld [vmem:[#allocation45_spill] sm:$0xff] }
 0x60e   :  { %1756 = vmatpush.msrb.mxu1 %v5477_v18 }
 0x60f   :  { %1777 = vmatpush.msrb.mxu2 %v7578_v63  ;;  %1737 = vmatpush.msrb.mxu0 %v7638_v32  ;;  %v7641_v63 = vld [vmem:[#allocation47_spill] sm:$0xff] }
 0x610   :  { %1757 = vmatpush.msrb.mxu1 %v5482_v38 }
 0x611   :  { %1778 = vmatpush.msrb.mxu2 %v7581_v19  ;;  %1738 = vmatpush.msrb.mxu0 %v7639_v5  ;;  %v7642_v19 = vld [vmem:[#allocation49_spill] sm:$0xff] }
 0x612   :  { %1758 = vmatpush.msrb.mxu1 %v5487_v62 }
 0x613   :  { %1779 = vmatpush.msrb.mxu2 %v7584_v31  ;;  %1739 = vmatpush.msrb.mxu0 %v7640_v9  ;;  %v7643_v31 = vld [vmem:[#allocation51_spill] sm:$0xff] }
 0x614   :  { %1759 = vmatpush.msrb.mxu1 %v5492_v1 }
 0x615   :  { %1780 = vmatpush.msrb.mxu2 %v7587_v24  ;;  %1740 = vmatpush.msrb.mxu0 %v7641_v63  ;;  %v7644_v24 = vld [vmem:[#allocation53_spill] sm:$0xff] }
 0x616   :  { %1760 = vmatpush.msrb.mxu1 %v5497_v4 }
 0x617   :  { %1781 = vmatpush.msrb.mxu2 %v7590_v16  ;;  %1741 = vmatpush.msrb.mxu0 %v7642_v19  ;;  %v7645_v16 = vld [vmem:[#allocation55_spill] sm:$0xff] }
 0x618   :  { %1761 = vmatpush.msrb.mxu1 %v5502_v42 }
 0x619   :  { %1782 = vmatpush.msrb.mxu2 %v7593_v15  ;;  %1742 = vmatpush.msrb.mxu0 %v7643_v31  ;;  %v7646_v15 = vld [vmem:[#allocation57_spill] sm:$0xff] }
 0x61a   :  { %1762 = vmatpush.msrb.mxu1 %v5507_v27 }
 0x61b   :  { %1783 = vmatpush.msrb.mxu2 %v7596_v56  ;;  %1743 = vmatpush.msrb.mxu0 %v7644_v24  ;;  %v5522_v56 = vld [vmem:[#allocation2 + $0x48] sm:$0xff]  ;;  %v1391_v24 = vpop.f32.mrf.mxu3 }
 0x61c   :  { %1763 = vmatpush.msrb.mxu1 %v5512_v21 }
 0x61d   :  { %1784 = vmatpush.msrb.mxu2 %v7599_v0  ;;  %1744 = vmatpush.msrb.mxu0 %v7645_v16  ;;  %v5527_v0 = vld [vmem:[#allocation2 + $0x30] sm:$0xff] }
 0x61e   :  { %1764 = vmatpush.msrb.mxu1 %v5517_v7 }
 0x61f   :  { %1785 = vmatpush.msrb.mxu2 %v7602_v58  ;;  %1745 = vmatpush.msrb.mxu0 %v7646_v15  ;;  %v5532_v58 = vld [vmem:[#allocation2 + $0x18] sm:$0xff] }
 0x620   :  { %v1248_v34 = vpop.f32.mrf.mxu0  ;;  %1765 = vmatpush.msrb.mxu1 %v5522_v56  ;;  %v1268_v32 = vpop.f32.mrf.mxu1 }
 0x621   :  { %1786 = vmatpush.msrb.mxu2 %v7605_v14  ;;  %1746 = vmatpush.msrb.mxu0 %v7647_v46  ;;  %v7650_v14 = vld [vmem:[#allocation23_spill] sm:$0xff]  ;;  %v1309_v63 = vadd.f32 %v1308_v48, %v1248_v34 }
 0x622   :  { %1766 = vmatpush.msrb.mxu1 %v5527_v0 }
 0x623   :  { %1787 = vmatpush.msrb.mxu2 %v7608_v35  ;;  %1747 = vmatpush.msrb.mxu0 %v7648_v47  ;;  %v304_v35 = vld [vmem:[%s7019_s5] sm:$0x7] }
 0x624   :  { %1767 = vmatpush.msrb.mxu1 %v5532_v58  ;;  %v5545_v61 = vperm.slane %v304_v35, 1  ;;  %v5548_v19 = vperm.slane %v304_v35, 0 }
 0x625   :  { %1788 = vmatpush.msrb.mxu2 %v7611_v2  ;;  %1748 = vmatpush.msrb.mxu0 %v7649_v23 }
 0x626   :  { %1789 = vmatmul.f32.vlgmr.msrb.gmra.mxu2 %v7650_v14  ;;  %1768 = vmatpush.msrb.mxu1 %v5538_v41  ;;  %7651 = vst [vmem:[#allocation69_spill] sm:$0xff] %v5545_v61  ;;  %v1351_v15 = vadd.f32 %v1309_v63, %v5548_v19 }
 0x627   :  { %v1288_v55 = vpop.f32.mrf.mxu2  ;;  %1856 = vmatpush.msra.mxu2 %v5269_v25  ;;  %7652 = vst [vmem:[#allocation14_spill] sm:$0xff] %v5548_v19 }
 0x629   :  { %v1328_v5 = vpop.f32.mrf.mxu0  ;;  %1857 = vmatpush.msra.mxu2 %v5274_v33 }
 0x62a   :  { %v1329_v9 = vadd.f32 %v1328_v5, %v1268_v32 }
 0x62b   :  { %1858 = vmatpush.msra.mxu2 %v5280_v20 }
 0x62c   :  { %v1352_v31 = vadd.f32 %v1329_v9, %v5545_v61 }
 0x62d   :  { %1859 = vmatpush.msra.mxu2 %v5286_v37 }
 0x62e   :  { %v1434_v16 = vadd.f32 %v1391_v24, %v1352_v31 }
 0x62f   :  { %1860 = vmatpush.msra.mxu2 %v5292_v59 }
 0x630   :  { %v3247_v46 = vmul.f32 -1.442695, %v1434_v16  ;;  %v1371_v47 = vpop.f32.mrf.mxu2 }
 0x631   :  { %v1414_v23 = vadd.f32 %v1371_v47, %v1351_v15  ;;  %1861 = vmatpush.msra.mxu2 %v5298_v51 }
 0x632   :  { %3356 = vpow2.f32 %v3247_v46  ;;  %v5570_v46 = vld [vmem:[%s7021_s7] ss:$0 sm:$0xff] }
 0x633   :  { %v3246_v34 = vmul.f32 -1.442695, %v1414_v23  ;;  %1862 = vmatpush.msra.mxu2 %v5304_v3  ;;  %v1348_v23 = vpop.f32.mrf.mxu1 }
 0x635   :  { %3358 = vpow2.f32 %v3246_v34  ;;  %1863 = vmatpush.msra.mxu2 %v5309_v54 }
 0x637   :  { %1864 = vmatpush.msra.mxu2 %v5314_v28 }
 0x638   :  { %v3357_v48 = vpop.eup %3356 }
 0x639   :  { %v1438_v32 = vadd.f32 1.0, %v3357_v48  ;;  %1865 = vmatpush.msra.mxu2 %v5319_v44 }
 0x63b   :  { %v3359_v5 = vpop.eup %3358  ;;  %3360 = vrcp.f32 %v1438_v32  ;;  %1866 = vmatpush.msra.mxu2 %v5324_v30  ;;  %vm1444_vm5 = vweird.f32 %v1438_v32 }
 0x63c   :  { %v1418_v9 = vadd.f32 1.0, %v3359_v5 }
 0x63d   :  { %1867 = vmatpush.msra.mxu2 %v5329_v39 }
 0x63e   :  { %3362 = vrcp.f32 %v1418_v9  ;;  %v1430_v48 = vand.u32 2147483648, %v1418_v9  ;;  %v1428_v19 = vand.u32 2147483647, %v1418_v9  ;;  %vm1424_vm1 = vweird.f32 %v1418_v9 }
 0x63f   :  { %1868 = vmatpush.msra.mxu2 %v5334_v11 }
 0x640   :  { %vm1429_vm3 = vcmp.eq.f32.partialorder %v1428_v19, 8.507059e+37 }
 0x641   :  { %v3361_v63 = vpop.eup %3360  ;;  %1869 = vmatpush.msra.mxu2 %v5339_v29 }
 0x642   :  { %v1440_v31 = vmul.f32 %v3361_v63, %v1438_v32  ;;  %vm1445_vm4 = vweird.f32 %v3361_v63 }
 0x643   :  { %1870 = vmatpush.msra.mxu2 %v5344_v36  ;;  %v5573_v36 = vperm.slane %v304_v35, 2  ;;  %vm1446_vm6 = vmor %vm1444_vm5, %vm1445_vm4 }
 0x644   :  { %v3363_v24 = vpop.eup %3362  ;;  %v1441_v15 = vsub.f32 1.0, %v1440_v31  ;;  %v1411_v34 = vpop.f32.mrf.mxu0  ;;  %v1349_v31 = vadd.f32 %v1348_v23, %v1288_v55  ;;  %v1448_v55 = vand.u32 2147483647, %v1438_v32 }
 0x645   :  { %v1420_v16 = vmul.f32 %v3363_v24, %v1418_v9  ;;  %1871 = vmatpush.msra.mxu2 %v5349_v57  ;;  %vm1425_vm0 = vweird.f32 %v3363_v24  ;;  %v1454_v61 = vadd.f32 %v5570_v46, %v1411_v34  ;;  %v5600_v34 = vld [vmem:[#allocation6 + $0x158] sm:$0xff] }
 0x646   :  { %v1442_v57 = vmul.f32 %v3361_v63, %v1441_v15  ;;  %vm1426_vm2 = vmor %vm1424_vm1, %vm1425_vm0  ;;  %v1353_v35 = vadd.f32 %v1349_v31, %v5573_v36  ;;  %vm1449_vm7 = vcmp.eq.f32.partialorder %v1448_v55, 8.507059e+37  ;;  %v7658_v31 = vld [vmem:[#allocation76_spill] sm:$0xff]  ;;  %v7663_v55 = vld [vmem:[#allocation85_spill] sm:$0xff] }
 0x647   :  { %1984 = vmatpush.msrb.mxu2 %v5462_v17  ;;  %v1421_v47 = vsub.f32 1.0, %v1420_v16  ;;  %v1431_v16 = vor.u32 1.1754944e-38, %v1430_v48  ;;  %v5606_v48 = vld [vmem:[#allocation6 + $0x140] sm:$0xff] }
 0x649   :  { %1985 = vmatpush.msrb.mxu2 %v5467_v13  ;;  %v1422_v5 = vmul.f32 %v3363_v24, %v1421_v47  ;;  %v1443_v47 = vadd.f32 %v3361_v63, %v1442_v57 }
 0x64b   :  { %1986 = vmatpush.msrb.mxu2 %v5472_v6  ;;  %v1423_v17 = vadd.f32 %v3363_v24, %v1422_v5  ;;  %v1450_v6 = vand.u32 2147483648, %v1438_v32  ;;  %v1447_v23 = vsel %vm1446_vm6, %v3361_v63, %v1443_v47  ;;  %v5594_v63 = vld [vmem:[#allocation6 + $0x170] sm:$0xff]  ;;  %v7660_v47 = vld [vmem:[#allocation84_spill] sm:$0xff] }
 0x64c   :  { %v5622_v5 = vld [vmem:[#allocation6 + $0x110] sm:$0xff] }
 0x64d   :  { %1987 = vmatpush.msrb.mxu2 %v5477_v18  ;;  %v1427_v29 = vsel %vm1426_vm2, %v3363_v24, %v1423_v17  ;;  %v1451_v17 = vor.u32 1.1754944e-38, %v1450_v6  ;;  %v7653_v6 = vld [vmem:[#allocation64_spill] sm:$0xff]  ;;  %v7654_v24 = vld [vmem:[#allocation65_spill] sm:$0xff] }
 0x64e   :  { %v1432_v13 = vsel %vm1429_vm3, %v1431_v16, %v1427_v29  ;;  %v7659_v16 = vld [vmem:[#allocation79_spill] sm:$0xff] }
 0x64f   :  { %1988 = vmatpush.msrb.mxu2 %v5482_v38  ;;  %v1455_v15 = vmul.f32 %v1454_v61, %v1432_v13  ;;  %v1452_v29 = vsel %vm1449_vm7, %v1451_v17, %v1447_v23  ;;  %v7665_v23 = vld [vmem:[#allocation88_spill] sm:$0xff]  ;;  %v5647_v17 = vld [vmem:[#allocation6 + $0x98] sm:$0xff] }
 0x650   :  { %v1458_v57 = vsub.f32 1.0, %v1452_v29  ;;  %v1460_v19 = vmul.f32 0.0, %v1452_v29  ;;  %v7666_v29 = vld [vmem:[#allocation93_spill] sm:$0xff] }
 0x651   :  { %1989 = vmatpush.msrb.mxu2 %v5487_v62  ;;  %v1456_v9 = vadd.f32 %v1455_v15, %v1353_v35  ;;  %v7661_v35 = vld [vmem:[#allocation82_spill] sm:$0xff]  ;;  %v5637_v15 = vld [vmem:[#allocation6 + $0xc8] sm:$0xff] }
 0x653   :  { %1990 = vmatpush.msrb.mxu2 %v5492_v1  ;;  %3364 = vtanh.f32 %v1456_v9  ;;  %v5642_v9 = vld [vmem:[#allocation6 + $0xb0] sm:$0xff] }
 0x655   :  { %1991 = vmatpush.msrb.mxu2 %v5497_v4 }
 0x657   :  { %1992 = vmatpush.msrb.mxu2 %v5502_v42 }
 0x659   :  { %1993 = vmatpush.msrb.mxu2 %v5507_v27  ;;  %v3365_v13 = vpop.eup %3364 }
 0x65a   :  { %v1459_v61 = vmul.f32 %v3365_v13, %v1458_v57  ;;  %v7667_v57 = vld [vmem:[#allocation91_spill] sm:$0xff]  ;;  %v5652_v13 = vld [vmem:[#allocation6 + $0x80] sm:$0xff] }
 0x65b   :  { %1994 = vmatpush.msrb.mxu2 %v5512_v21  ;;  %7668 = vst [vmem:[#allocation71_spill] sm:$0xff] %v5652_v13 }
 0x65c   :  { %v5586_v32 = vadd.f32 %v1460_v19, %v1459_v61  ;;  %v7669_v61 = vld [vmem:[#allocation94_spill] sm:$0xff]  ;;  %v5657_v19 = vld [vmem:[#allocation6 + $0x68] sm:$0xff] }
 0x65d   :  { %1995 = vmatpush.msrb.mxu2 %v5517_v7  ;;  %7670 = vst [vmem:[#allocation72_spill] sm:$0xff] %v5657_v19 }
 0x65e   :  { %1601 = vmatmul.f32.vlgmr.msrb.gmra.mxu3 %v5586_v32  ;;  %1621 = vmatmul.f32.vlgmr.msra.gmra.mxu0 %v5586_v32 }
 0x65f   :  { %1641 = vmatmul.f32.vlgmr.msra.gmra.mxu1 %v5586_v32  ;;  %1793 = vmatpush.msrb.mxu3 %v5085_v43  ;;  %v7655_v43 = vld [vmem:[#allocation67_spill] sm:$0xff] }
 0x660   :  { %1816 = vmatpush.msra.mxu0 %v7653_v6  ;;  %1836 = vmatpush.msra.mxu1 %v5594_v63  ;;  %v7671_v6 = vld [vmem:[#allocation97_spill] sm:$0xff] }
 0x661   :  { %1794 = vmatpush.msrb.mxu3 %v5094_v26  ;;  %1996 = vmatpush.msrb.mxu2 %v5522_v56  ;;  %v7656_v26 = vld [vmem:[#allocation70_spill] sm:$0xff] }
 0x662   :  { %1817 = vmatpush.msra.mxu0 %v7654_v24  ;;  %1837 = vmatpush.msra.mxu1 %v5600_v34  ;;  %v5662_v24 = vld [vmem:[#allocation6 + $0x50] sm:$0xff] }
 0x663   :  { %1795 = vmatpush.msrb.mxu3 %v7573_v40  ;;  %1997 = vmatpush.msrb.mxu2 %v5527_v0  ;;  %v5616_v40 = vld [vmem:[#allocation6 + $0x128] sm:$0xff] }
 0x664   :  { %1818 = vmatpush.msra.mxu0 %v7655_v43  ;;  %1838 = vmatpush.msra.mxu1 %v5606_v48  ;;  %v7672_v43 = vld [vmem:[#allocation100_spill] sm:$0xff] }
 0x665   :  { %1796 = vmatpush.msrb.mxu3 %v7576_v50  ;;  %1998 = vmatpush.msrb.mxu2 %v5532_v58  ;;  %v7657_v50 = vld [vmem:[#allocation73_spill] sm:$0xff] }
 0x666   :  { %1729 = vmatmul.f32.vlgmr.msra.gmra.mxu3 %v7630_v45  ;;  %1749 = vmatmul.f32.vlgmr.msrb.gmra.mxu0 %v7630_v45  ;;  %v5728_v45 = vld [vmem:[#allocation4 + $0xf8] sm:$0xff] }
 0x667   :  { %1769 = vmatmul.f32.vlgmr.msrb.gmra.mxu1 %v7650_v14  ;;  %1797 = vmatpush.msrb.mxu3 %v7579_v10  ;;  %v5627_v10 = vld [vmem:[#allocation6 + $0xf8] sm:$0xff]  ;;  %7693 = vst [vmem:[#allocation95_spill] sm:$0xff] %v5728_v45 }
 0x668   :  { %1819 = vmatpush.msra.mxu0 %v7656_v26  ;;  %1839 = vmatpush.msra.mxu1 %v5616_v40  ;;  %v5667_v26 = vld [vmem:[#allocation6 + $0x38] sm:$0xff] }
 0x669   :  { %1798 = vmatpush.msrb.mxu3 %v7582_v12  ;;  %1999 = vmatpush.msrb.mxu2 %v5538_v41  ;;  %v5632_v12 = vld [vmem:[#allocation6 + $0xe0] sm:$0xff] }
 0x66a   :  { %1820 = vmatpush.msra.mxu0 %v7657_v50  ;;  %1840 = vmatpush.msra.mxu1 %v5622_v5  ;;  %v5676_v50 = vld [vmem:[#allocation6 + $0x20] sm:$0xff] }
 0x66b   :  { %1799 = vmatpush.msrb.mxu3 %v7585_v53  ;;  %v7662_v53 = vld [vmem:[#allocation87_spill] sm:$0xff]  ;;  %7675 = vst [vmem:[#allocation74_spill] sm:$0xff] %v5676_v50 }
 0x66c   :  { %1821 = vmatpush.msra.mxu0 %v7658_v31  ;;  %1841 = vmatpush.msra.mxu1 %v5627_v10  ;;  %v5680_v31 = vld [vmem:[#allocation4 + $0x150] sm:$0xff] }
 0x66d   :  { %1800 = vmatpush.msrb.mxu3 %v7588_v22  ;;  %v7664_v22 = vld [vmem:[#allocation90_spill] sm:$0xff]  ;;  %7677 = vst [vmem:[#allocation75_spill] sm:$0xff] %v5680_v31 }
 0x66e   :  { %1822 = vmatpush.msra.mxu0 %v7659_v16  ;;  %1842 = vmatpush.msra.mxu1 %v5632_v12  ;;  %v5683_v16 = vld [vmem:[#allocation4 + $0x170] sm:$0xff] }
 0x66f   :  { %1801 = vmatpush.msrb.mxu3 %v7660_v47  ;;  %7678 = vst [vmem:[#allocation20_spill] sm:$0xff] %v5683_v16  ;;  %v5689_v47 = vld [vmem:[#allocation4 + $0x138] sm:$0xff] }
 0x670   :  { %1823 = vmatpush.msra.mxu0 %v7661_v35  ;;  %1843 = vmatpush.msra.mxu1 %v5637_v15  ;;  %7680 = vst [vmem:[#allocation78_spill] sm:$0xff] %v5689_v47  ;;  %v5692_v35 = vld [vmem:[#allocation4 + $0x158] sm:$0xff] }
 0x671   :  { %1802 = vmatpush.msrb.mxu3 %v7662_v53  ;;  %7681 = vst [vmem:[#allocation16_spill] sm:$0xff] %v5692_v35  ;;  %v5695_v53 = vld [vmem:[#allocation4 + $0x178] sm:$0xff] }
 0x672   :  { %1824 = vmatpush.msra.mxu0 %v7663_v55  ;;  %1844 = vmatpush.msra.mxu1 %v5642_v9  ;;  %7682 = vst [vmem:[#allocation80_spill] sm:$0xff] %v5695_v53  ;;  %v5698_v55 = vld [vmem:[#allocation4 + $0x120] sm:$0xff] }
 0x673   :  { %1803 = vmatpush.msrb.mxu3 %v7664_v22  ;;  %7683 = vst [vmem:[#allocation81_spill] sm:$0xff] %v5698_v55  ;;  %v5701_v22 = vld [vmem:[#allocation4 + $0x140] sm:$0xff] }
 0x674   :  { %1825 = vmatpush.msra.mxu0 %v7665_v23  ;;  %1845 = vmatpush.msra.mxu1 %v5647_v17  ;;  %7684 = vst [vmem:[#allocation17_spill] sm:$0xff] %v5701_v22  ;;  %v5704_v23 = vld [vmem:[#allocation4 + $0x160] sm:$0xff] }
 0x675   :  { %1804 = vmatpush.msrb.mxu3 %v7666_v29  ;;  %7685 = vst [vmem:[#allocation83_spill] sm:$0xff] %v5704_v23  ;;  %v5707_v29 = vld [vmem:[#allocation4 + $0x108] sm:$0xff] }
 0x676   :  { %1826 = vmatpush.msra.mxu0 %v7667_v57  ;;  %1846 = vmatpush.msra.mxu1 %v5652_v13  ;;  %7686 = vst [vmem:[#allocation24_spill] sm:$0xff] %v5707_v29  ;;  %v5710_v57 = vld [vmem:[#allocation4 + $0x128] sm:$0xff] }
 0x677   :  { %1805 = vmatpush.msrb.mxu3 %v7603_v52  ;;  %v7673_v52 = vld [vmem:[#allocation103_spill] sm:$0xff]  ;;  %7687 = vst [vmem:[#allocation86_spill] sm:$0xff] %v5710_v57 }
 0x678   :  { %1827 = vmatpush.msra.mxu0 %v7669_v61  ;;  %1847 = vmatpush.msra.mxu1 %v5657_v19  ;;  %v5713_v61 = vld [vmem:[#allocation4 + $0x148] sm:$0xff] }
 0x679   :  { %1806 = vmatpush.msrb.mxu3 %v7606_v60  ;;  %v5673_v60 = vld [vmem:[#allocation4 + $0x168] sm:$0xff]  ;;  %7688 = vst [vmem:[#allocation25_spill] sm:$0xff] %v5713_v61 }
 0x67a   :  { %1828 = vmatpush.msra.mxu0 %v7671_v6  ;;  %1848 = vmatpush.msra.mxu1 %v5662_v24  ;;  %7674 = vst [vmem:[#allocation15_spill] sm:$0xff] %v5673_v60  ;;  %v5716_v6 = vld [vmem:[#allocation4 + $0xf0] sm:$0xff] }
 0x67b   :  { %1807 = vmatpush.msrb.mxu3 %v7609_v49  ;;  %v7676_v49 = vld [vmem:[#allocation106_spill] sm:$0xff]  ;;  %7689 = vst [vmem:[#allocation89_spill] sm:$0xff] %v5716_v6 }
 0x67c   :  { %1829 = vmatpush.msra.mxu0 %v7672_v43  ;;  %1849 = vmatpush.msra.mxu1 %v5667_v26  ;;  %v5719_v43 = vld [vmem:[#allocation4 + $0x110] sm:$0xff] }
 0x67d   :  { %1808 = vmatpush.msrb.mxu3 %v7612_v8  ;;  %v5686_v8 = vld [vmem:[#allocation6 + $0x8] sm:$0xff]  ;;  %7690 = vst [vmem:[#allocation26_spill] sm:$0xff] %v5719_v43 }
 0x67e   :  { %1809 = vmatmul.f32.vlgmr.msrb.gmra.mxu3 %v7650_v14  ;;  %1830 = vmatpush.msra.mxu0 %v7673_v52  ;;  %7679 = vst [vmem:[#allocation77_spill] sm:$0xff] %v5686_v8  ;;  %v5722_v52 = vld [vmem:[#allocation4 + $0x130] sm:$0xff]  ;;  %v5731_v14 = vld [vmem:[#allocation4 + $0x118] sm:$0xff] }
 0x67f   :  { %1924 = vmatpush.msra.mxu3 %v5673_v60  ;;  %1850 = vmatpush.msra.mxu1 %v5676_v50  ;;  %7691 = vst [vmem:[#allocation92_spill] sm:$0xff] %v5722_v52 }
 0x680   :  { %1831 = vmatpush.msra.mxu0 %v7676_v49  ;;  %v5725_v49 = vld [vmem:[#allocation4 + $0xd8] sm:$0xff]  ;;  %7694 = vst [vmem:[#allocation96_spill] sm:$0xff] %v5731_v14 }
 0x681   :  { %1925 = vmatpush.msra.mxu3 %v5680_v31  ;;  %1851 = vmatpush.msra.mxu1 %v5686_v8  ;;  %7692 = vst [vmem:[#allocation27_spill] sm:$0xff] %v5725_v49 }
 0x682   :  { %1944 = vmatpush.msrb.mxu0 %v5683_v16 }
 0x683   :  { %1926 = vmatpush.msra.mxu3 %v5689_v47  ;;  %1964 = vmatpush.msrb.mxu1 %v5695_v53 }
 0x684   :  { %1945 = vmatpush.msrb.mxu0 %v5692_v35 }
 0x685   :  { %1927 = vmatpush.msra.mxu3 %v5698_v55  ;;  %1965 = vmatpush.msrb.mxu1 %v5704_v23 }
 0x686   :  { %1946 = vmatpush.msrb.mxu0 %v5701_v22 }
 0x687   :  { %1928 = vmatpush.msra.mxu3 %v5707_v29  ;;  %1966 = vmatpush.msrb.mxu1 %v5713_v61  ;;  %v5813_v61 = vld [vmem:[#allocation4 + $0x40] sm:$0xff] }
 0x688   :  { %1947 = vmatpush.msrb.mxu0 %v5710_v57  ;;  %7722 = vst [vmem:[#allocation35_spill] sm:$0xff] %v5813_v61 }
 0x689   :  { %1929 = vmatpush.msra.mxu3 %v5716_v6  ;;  %1967 = vmatpush.msrb.mxu1 %v5722_v52  ;;  %v5734_v6 = vld [vmem:[#allocation4 + $0xc0] sm:$0xff] }
 0x68a   :  { %1948 = vmatpush.msrb.mxu0 %v5719_v43  ;;  %7695 = vst [vmem:[#allocation28_spill] sm:$0xff] %v5734_v6  ;;  %v5737_v43 = vld [vmem:[#allocation4 + $0xe0] sm:$0xff] }
 0x68b   :  { %1930 = vmatpush.msra.mxu3 %v5725_v49  ;;  %1968 = vmatpush.msrb.mxu1 %v5731_v14  ;;  %7696 = vst [vmem:[#allocation98_spill] sm:$0xff] %v5737_v43  ;;  %v5740_v52 = vld [vmem:[#allocation4 + $0x100] sm:$0xff]  ;;  %v5743_v49 = vld [vmem:[#allocation4 + $0xa8] sm:$0xff] }
 0x68c   :  { %1949 = vmatpush.msrb.mxu0 %v5728_v45  ;;  %7697 = vst [vmem:[#allocation99_spill] sm:$0xff] %v5740_v52  ;;  %v5746_v45 = vld [vmem:[#allocation4 + $0xc8] sm:$0xff] }
 0x68d   :  { %1931 = vmatpush.msra.mxu3 %v5734_v6  ;;  %1969 = vmatpush.msrb.mxu1 %v5740_v52  ;;  %7698 = vst [vmem:[#allocation29_spill] sm:$0xff] %v5743_v49  ;;  %v5749_v14 = vld [vmem:[#allocation4 + $0xe8] sm:$0xff]  ;;  %v5752_v6 = vld [vmem:[#allocation4 + $0x90] sm:$0xff] }
 0x68e   :  { %1950 = vmatpush.msrb.mxu0 %v5737_v43  ;;  %7699 = vst [vmem:[#allocation101_spill] sm:$0xff] %v5746_v45  ;;  %v5755_v43 = vld [vmem:[#allocation4 + $0xb0] sm:$0xff] }
 0x68f   :  { %1932 = vmatpush.msra.mxu3 %v5743_v49  ;;  %7700 = vst [vmem:[#allocation102_spill] sm:$0xff] %v5749_v14  ;;  %1970 = vmatpush.msrb.mxu1 %v5749_v14  ;;  %v5758_v52 = vld [vmem:[#allocation4 + $0xd0] sm:$0xff]  ;;  %v5761_v49 = vld [vmem:[#allocation4 + $0x78] sm:$0xff] }
 0x690   :  { %1951 = vmatpush.msrb.mxu0 %v5746_v45  ;;  %7701 = vst [vmem:[#allocation30_spill] sm:$0xff] %v5752_v6  ;;  %v5764_v45 = vld [vmem:[#allocation4 + $0x98] sm:$0xff] }
 0x691   :  { %1933 = vmatpush.msra.mxu3 %v5752_v6  ;;  %7702 = vst [vmem:[#allocation104_spill] sm:$0xff] %v5755_v43  ;;  %1971 = vmatpush.msrb.mxu1 %v5758_v52  ;;  %v5767_v14 = vld [vmem:[#allocation4 + $0xb8] sm:$0xff]  ;;  %v5770_v6 = vld [vmem:[#allocation4 + $0x60] sm:$0xff] }
 0x692   :  { %1952 = vmatpush.msrb.mxu0 %v5755_v43  ;;  %7703 = vst [vmem:[#allocation105_spill] sm:$0xff] %v5758_v52  ;;  %v5773_v43 = vld [vmem:[#allocation4 + $0x80] sm:$0xff] }
 0x693   :  { %7704 = vst [vmem:[#allocation32_spill] sm:$0xff] %v5761_v49  ;;  %1934 = vmatpush.msra.mxu3 %v5761_v49  ;;  %1972 = vmatpush.msrb.mxu1 %v5767_v14  ;;  %v5776_v52 = vld [vmem:[#allocation4 + $0xa0] sm:$0xff]  ;;  %v5779_v49 = vld [vmem:[#allocation4 + $0x48] sm:$0xff] }
 0x694   :  { %7705 = vst [vmem:[#allocation34_spill] sm:$0xff] %v5764_v45  ;;  %1953 = vmatpush.msrb.mxu0 %v5764_v45  ;;  %v5782_v45 = vld [vmem:[#allocation4 + $0x68] sm:$0xff] }
 0x695   :  { %7706 = vst [vmem:[#allocation36_spill] sm:$0xff] %v5767_v14  ;;  %1935 = vmatpush.msra.mxu3 %v5770_v6  ;;  %1973 = vmatpush.msrb.mxu1 %v5776_v52  ;;  %v5785_v14 = vld [vmem:[#allocation4 + $0x88] sm:$0xff] }
 0x696   :  { %7707 = vst [vmem:[#allocation38_spill] sm:$0xff] %v5770_v6  ;;  %1954 = vmatpush.msrb.mxu0 %v5773_v43  ;;  %v5788_v6 = vld [vmem:[#allocation4 + $0x30] sm:$0xff] }
 0x697   :  { %7708 = vst [vmem:[#allocation40_spill] sm:$0xff] %v5773_v43  ;;  %1936 = vmatpush.msra.mxu3 %v5779_v49  ;;  %1974 = vmatpush.msrb.mxu1 %v5785_v14  ;;  %v5791_v43 = vld [vmem:[#allocation4 + $0x50] sm:$0xff] }
 0x698   :  { %7709 = vst [vmem:[#allocation42_spill] sm:$0xff] %v5776_v52  ;;  %1955 = vmatpush.msrb.mxu0 %v5782_v45  ;;  %v5794_v52 = vld [vmem:[#allocation4 + $0x70] sm:$0xff] }
 0x699   :  { %7710 = vst [vmem:[#allocation44_spill] sm:$0xff] %v5779_v49  ;;  %1937 = vmatpush.msra.mxu3 %v5788_v6  ;;  %1975 = vmatpush.msrb.mxu1 %v5794_v52  ;;  %v5797_v49 = vld [vmem:[#allocation4 + $0x18] sm:$0xff] }
 0x69a   :  { %7711 = vst [vmem:[#allocation46_spill] sm:$0xff] %v5782_v45  ;;  %1956 = vmatpush.msrb.mxu0 %v5791_v43  ;;  %v5800_v45 = vld [vmem:[#allocation4 + $0x38] sm:$0xff] }
 0x69b   :  { %7712 = vst [vmem:[#allocation48_spill] sm:$0xff] %v5785_v14  ;;  %1938 = vmatpush.msra.mxu3 %v5797_v49  ;;  %v5803_v14 = vld [vmem:[#allocation4 + $0x58] sm:$0xff] }
 0x69c   :  { %7713 = vst [vmem:[#allocation50_spill] sm:$0xff] %v5788_v6  ;;  %1957 = vmatpush.msrb.mxu0 %v5800_v45  ;;  %1976 = vmatpush.msrb.mxu1 %v5803_v14  ;;  %v5806_v6 = vld [vmem:[#allocation4] sm:$0xff] }
 0x69d   :  { %7714 = vst [vmem:[#allocation52_spill] sm:$0xff] %v5791_v43  ;;  %1939 = vmatpush.msra.mxu3 %v5806_v6  ;;  %v5809_v43 = vld [vmem:[#allocation4 + $0x20] sm:$0xff] }
 0x69e   :  { %7715 = vst [vmem:[#allocation54_spill] sm:$0xff] %v5794_v52  ;;  %1958 = vmatpush.msrb.mxu0 %v5809_v43  ;;  %v7721_v52 = vld [vmem:[#allocation12_spill] sm:$0xff]  ;;  %1977 = vmatpush.msrb.mxu1 %v5813_v61 }
 0x69f   :  { %7716 = vst [vmem:[#allocation56_spill] sm:$0xff] %v5797_v49  ;;  %1940 = vmatmul.f32.vlgmr.msra.gmra.mxu3 %v7721_v52  ;;  %v5816_v49 = vld [vmem:[#allocation2 + $0x170] sm:$0xff]  ;;  %v5831_v61 = vld [vmem:[#allocation2 + $0x140] sm:$0xff] }
 0x6a0   :  { %7717 = vst [vmem:[#allocation58_spill] sm:$0xff] %v5800_v45  ;;  %2004 = vmatpush.msrb.mxu3 %v5816_v49  ;;  %v5819_v45 = vld [vmem:[#allocation4 + $0x8] sm:$0xff] }
 0x6a1   :  { %7718 = vst [vmem:[#allocation60_spill] sm:$0xff] %v5803_v14  ;;  %1959 = vmatpush.msrb.mxu0 %v5819_v45  ;;  %v5822_v14 = vld [vmem:[#allocation4 + $0x28] sm:$0xff] }
 0x6a2   :  { %7719 = vst [vmem:[#allocation62_spill] sm:$0xff] %v5806_v6  ;;  %1978 = vmatpush.msrb.mxu1 %v5822_v14  ;;  %v5825_v6 = vld [vmem:[#allocation2 + $0x158] sm:$0xff] }
 0x6a3   :  { %7720 = vst [vmem:[#allocation33_spill] sm:$0xff] %v5809_v43  ;;  %2005 = vmatpush.msrb.mxu3 %v5825_v6  ;;  %v5828_v43 = vld [vmem:[#allocation4 + $0x10] sm:$0xff] }
 0x6a4   :  { %7723 = vst [vmem:[#allocation37_spill] sm:$0xff] %v5816_v49  ;;  %1979 = vmatpush.msrb.mxu1 %v5828_v43  ;;  %v5834_v49 = vld [vmem:[#allocation2 + $0x128] sm:$0xff] }
 0x6a5   :  { %7724 = vst [vmem:[#allocation39_spill] sm:$0xff] %v5819_v45  ;;  %2006 = vmatpush.msrb.mxu3 %v5831_v61  ;;  %v5837_v45 = vld [vmem:[#allocation2 + $0x110] sm:$0xff] }
 0x6a6   :  { %7725 = vst [vmem:[#allocation41_spill] sm:$0xff] %v5822_v14  ;;  %v5840_v14 = vld [vmem:[#allocation2 + $0xf8] sm:$0xff] }
 0x6a7   :  { %7726 = vst [vmem:[#allocation43_spill] sm:$0xff] %v5825_v6  ;;  %2007 = vmatpush.msrb.mxu3 %v5834_v49  ;;  %v5843_v6 = vld [vmem:[#allocation2 + $0xe0] sm:$0xff] }
 0x6a8   :  { %7727 = vst [vmem:[#allocation45_spill] sm:$0xff] %v5828_v43  ;;  %v5846_v43 = vld [vmem:[#allocation2 + $0xc8] sm:$0xff] }
 0x6a9   :  { %7728 = vst [vmem:[#allocation47_spill] sm:$0xff] %v5831_v61  ;;  %2008 = vmatpush.msrb.mxu3 %v5837_v45  ;;  %v5849_v61 = vld [vmem:[#allocation2 + $0xb0] sm:$0xff] }
 0x6aa   :  { %7729 = vst [vmem:[#allocation49_spill] sm:$0xff] %v5834_v49  ;;  %v5852_v49 = vld [vmem:[#allocation2 + $0x98] sm:$0xff] }
 0x6ab   :  { %7730 = vst [vmem:[#allocation51_spill] sm:$0xff] %v5837_v45  ;;  %2009 = vmatpush.msrb.mxu3 %v5840_v14  ;;  %v5855_v45 = vld [vmem:[#allocation2 + $0x80] sm:$0xff] }
 0x6ac   :  { %7731 = vst [vmem:[#allocation53_spill] sm:$0xff] %v5840_v14  ;;  %v5858_v14 = vld [vmem:[#allocation2 + $0x68] sm:$0xff] }
 0x6ad   :  { %7732 = vst [vmem:[#allocation55_spill] sm:$0xff] %v5843_v6  ;;  %2010 = vmatpush.msrb.mxu3 %v5843_v6  ;;  %v5861_v6 = vld [vmem:[#allocation2 + $0x50] sm:$0xff] }
 0x6ae   :  { %7733 = vst [vmem:[#allocation57_spill] sm:$0xff] %v5846_v43 }
 0x6af   :  { %2011 = vmatpush.msrb.mxu3 %v5846_v43  ;;  %7734 = vst [vmem:[#allocation59_spill] sm:$0xff] %v5849_v61  ;;  %v5864_v43 = vld [vmem:[#allocation2 + $0x38] sm:$0xff] }
 0x6b0   :  { %7735 = vst [vmem:[#allocation61_spill] sm:$0xff] %v5852_v49 }
 0x6b1   :  { %2012 = vmatpush.msrb.mxu3 %v5849_v61  ;;  %7736 = vst [vmem:[#allocation63_spill] sm:$0xff] %v5855_v45  ;;  %v5867_v61 = vld [vmem:[#allocation2 + $0x20] sm:$0xff] }
 0x6b2   :  { %7737 = vst [vmem:[#allocation64_spill] sm:$0xff] %v5858_v14 }
 0x6b3   :  { %2013 = vmatpush.msrb.mxu3 %v5852_v49  ;;  %7738 = vst [vmem:[#allocation65_spill] sm:$0xff] %v5861_v6  ;;  %v7741_v49 = vld [vmem:[#allocation18_spill] sm:$0xff] }
 0x6b4   :  { %7739 = vst [vmem:[#allocation67_spill] sm:$0xff] %v5864_v43 }
 0x6b5   :  { %2014 = vmatpush.msrb.mxu3 %v5855_v45  ;;  %7740 = vst [vmem:[#allocation70_spill] sm:$0xff] %v5867_v61 }
 0x6b7   :  { %2015 = vmatpush.msrb.mxu3 %v5858_v14 }
 0x6b9   :  { %2016 = vmatpush.msrb.mxu3 %v5861_v6  ;;  %v7745_v6 = vld [vmem:[#allocation110_spill] sm:$0xff] }
 0x6bb   :  { %2017 = vmatpush.msrb.mxu3 %v5864_v43  ;;  %v1479_v43 = vpop.f32.mrf.mxu1 }
 0x6bd   :  { %2018 = vmatpush.msrb.mxu3 %v5867_v61  ;;  %v7744_v61 = vld [vmem:[#allocation109_spill] sm:$0xff] }
 0x6bf   :  { %2019 = vmatpush.msrb.mxu3 %v7611_v2 }
 0x6c0   :  { %2020 = vmatmul.f32.vlgmr.msrb.gmra.mxu3 %v7741_v49 }
 0x6c1   :  { %2087 = vmatpush.msra.mxu3 %v5269_v25  ;;  %v1539_v25 = vpop.f32.mrf.mxu0 }
 0x6c3   :  { %2088 = vmatpush.msra.mxu3 %v5274_v33  ;;  %v1559_v2 = vpop.f32.mrf.mxu1  ;;  %v1499_v33 = vpop.f32.mrf.mxu2 }
 0x6c5   :  { %2089 = vmatpush.msra.mxu3 %v5280_v20  ;;  %v1560_v20 = vadd.f32 %v1559_v2, %v1499_v33  ;;  %v7748_v33 = vld [vmem:[#allocation19_spill] sm:$0xff] }
 0x6c7   :  { %2090 = vmatpush.msra.mxu3 %v5286_v37  ;;  %v1519_v37 = vpop.f32.mrf.mxu3 }
 0x6c9   :  { %2091 = vmatpush.msra.mxu3 %v5292_v59  ;;  %v7742_v59 = vld [vmem:[#allocation108_spill] sm:$0xff] }
 0x6cb   :  { %2092 = vmatpush.msra.mxu3 %v5298_v51  ;;  %v7743_v51 = vld [vmem:[#allocation69_spill] sm:$0xff] }
 0x6cd   :  { %2093 = vmatpush.msra.mxu3 %v5304_v3  ;;  %v1583_v3 = vadd.f32 %v1560_v20, %v7743_v51 }
 0x6cf   :  { %2094 = vmatpush.msra.mxu3 %v5309_v54 }
 0x6d1   :  { %2095 = vmatpush.msra.mxu3 %v5314_v28  ;;  %v1540_v28 = vadd.f32 %v1539_v25, %v1479_v43 }
 0x6d3   :  { %2096 = vmatpush.msra.mxu3 %v5319_v44 }
 0x6d5   :  { %2097 = vmatpush.msra.mxu3 %v5324_v30  ;;  %v7746_v30 = vld [vmem:[#allocation66_spill] sm:$0xff] }
 0x6d7   :  { %2098 = vmatpush.msra.mxu3 %v5329_v39  ;;  %v7747_v39 = vld [vmem:[#allocation14_spill] sm:$0xff] }
 0x6d8   :  { %v1582_v2 = vadd.f32 %v1540_v28, %v7747_v39 }
 0x6d9   :  { %2099 = vmatpush.msra.mxu3 %v5334_v11 }
 0x6db   :  { %2100 = vmatpush.msra.mxu3 %v7742_v59  ;;  %v1622_v54 = vpop.f32.mrf.mxu0  ;;  %v7749_v59 = vld [vmem:[#allocation68_spill] sm:$0xff] }
 0x6dc   :  { %v1665_v44 = vadd.f32 %v1622_v54, %v1583_v3  ;;  %v1579_v3 = vpop.f32.mrf.mxu2 }
 0x6dd   :  { %2101 = vmatpush.msra.mxu3 %v7744_v61 }
 0x6de   :  { %v3249_v14 = vmul.f32 -1.442695, %v1665_v44 }
 0x6df   :  { %2102 = vmatpush.msra.mxu3 %v7745_v6 }
 0x6e0   :  { %3366 = vpow2.f32 %v3249_v14 }
 0x6e1   :  { %2215 = vmatpush.msrb.mxu3 %v7746_v30  ;;  %v1602_v11 = vpop.f32.mrf.mxu3 }
 0x6e2   :  { %v1645_v45 = vadd.f32 %v1602_v11, %v1582_v2  ;;  %v1642_v2 = vpop.f32.mrf.mxu1 }
 0x6e3   :  { %2216 = vmatpush.msrb.mxu3 %v7748_v33  ;;  %v1580_v33 = vadd.f32 %v1579_v3, %v1519_v37 }
 0x6e4   :  { %v3248_v20 = vmul.f32 -1.442695, %v1645_v45 }
 0x6e5   :  { %2217 = vmatpush.msrb.mxu3 %v7749_v59 }
 0x6e6   :  { %v3367_v61 = vpop.eup %3366  ;;  %3368 = vpow2.f32 %v3248_v20 }
 0x6e7   :  { %2218 = vmatpush.msrb.mxu3 %v5477_v18  ;;  %v1669_v6 = vadd.f32 1.0, %v3367_v61  ;;  %v1584_v61 = vadd.f32 %v1580_v33, %v5573_v36  ;;  %v5941_v33 = vld [vmem:[#allocation2 + $0x118] sm:$0xff] }
 0x6e9   :  { %2219 = vmatpush.msrb.mxu3 %v5482_v38  ;;  %3370 = vrcp.f32 %v1669_v6  ;;  %vm1675_vm13 = vweird.f32 %v1669_v6 }
 0x6eb   :  { %2220 = vmatpush.msrb.mxu3 %v5487_v62 }
 0x6ec   :  { %v3369_v14 = vpop.eup %3368 }
 0x6ed   :  { %2221 = vmatpush.msrb.mxu3 %v5492_v1  ;;  %v1649_v43 = vadd.f32 1.0, %v3369_v14  ;;  %v1681_v14 = vand.u32 2147483648, %v1669_v6 }
 0x6ef   :  { %2222 = vmatpush.msrb.mxu3 %v5497_v4  ;;  %3372 = vrcp.f32 %v1649_v43  ;;  %v3371_v45 = vpop.eup %3370  ;;  %v1661_v54 = vand.u32 2147483648, %v1649_v43  ;;  %v1659_v44 = vand.u32 2147483647, %v1649_v43  ;;  %vm1655_vm9 = vweird.f32 %v1649_v43 }
 0x6f0   :  { %v1671_v18 = vmul.f32 %v3371_v45, %v1669_v6  ;;  %vm1676_vm12 = vweird.f32 %v3371_v45 }
 0x6f1   :  { %2223 = vmatpush.msrb.mxu3 %v5502_v42  ;;  %vm1660_vm11 = vcmp.eq.f32.partialorder %v1659_v44, 8.507059e+37  ;;  %vm1677_vm14 = vmor %vm1675_vm13, %vm1676_vm12  ;;  %v5928_v44 = vld [vmem:[#allocation2 + $0x148] sm:$0xff] }
 0x6f2   :  { %v1672_v1 = vsub.f32 1.0, %v1671_v18  ;;  %v1679_v18 = vand.u32 2147483647, %v1669_v6  ;;  %v5914_v6 = vld [vmem:[#allocation2 + $0x178] sm:$0xff] }
 0x6f3   :  { %2224 = vmatpush.msrb.mxu3 %v5507_v27 }
 0x6f4   :  { %v1673_v30 = vmul.f32 %v3371_v45, %v1672_v1  ;;  %vm1680_vm15 = vcmp.eq.f32.partialorder %v1679_v18, 8.507059e+37  ;;  %v5976_v18 = vld [vmem:[#allocation2 + $0xa0] sm:$0xff] }
 0x6f5   :  { %2225 = vmatpush.msrb.mxu3 %v5512_v21  ;;  %v3373_v38 = vpop.eup %3372 }
 0x6f6   :  { %v1651_v62 = vmul.f32 %v3373_v38, %v1649_v43  ;;  %vm1656_vm8 = vweird.f32 %v3373_v38  ;;  %v1674_v20 = vadd.f32 %v3371_v45, %v1673_v30  ;;  %v5931_v30 = vld [vmem:[#allocation6 + $0x138] sm:$0xff] }
 0x6f7   :  { %2226 = vmatpush.msrb.mxu3 %v5517_v7  ;;  %vm1657_vm10 = vmor %vm1655_vm9, %vm1656_vm8  ;;  %v1662_v7 = vor.u32 1.1754944e-38, %v1661_v54 }
 0x6f8   :  { %v1652_v25 = vsub.f32 1.0, %v1651_v62  ;;  %v1678_v43 = vsel %vm1677_vm14, %v3371_v45, %v1674_v20  ;;  %v1682_v62 = vor.u32 1.1754944e-38, %v1681_v14  ;;  %v5917_v45 = vld [vmem:[#allocation6 + $0x168] sm:$0xff]  ;;  %v5962_v20 = vld [vmem:[#allocation2 + $0xd0] sm:$0xff]  ;;  %v5969_v14 = vld [vmem:[#allocation2 + $0xb8] sm:$0xff] }
 0x6f9   :  { %2227 = vmatpush.msrb.mxu3 %v5522_v56  ;;  %v1685_v56 = vadd.f32 %v5570_v46, %v1642_v2  ;;  %v5935_v2 = vld [vmem:[#allocation2 + $0x130] sm:$0xff] }
 0x6fa   :  { %v1653_v28 = vmul.f32 %v3373_v38, %v1652_v25 }
 0x6fb   :  { %2228 = vmatpush.msrb.mxu3 %v5527_v0 }
 0x6fc   :  { %v1654_v11 = vadd.f32 %v3373_v38, %v1653_v28  ;;  %v5921_v28 = vld [vmem:[#allocation2 + $0x160] sm:$0xff] }
 0x6fd   :  { %2229 = vmatpush.msrb.mxu3 %v5532_v58 }
 0x6fe   :  { %v1658_v59 = vsel %vm1657_vm10, %v3373_v38, %v1654_v11  ;;  %v5944_v11 = vld [vmem:[#allocation6 + $0x120] sm:$0xff] }
 0x6ff   :  { %2230 = vmatpush.msrb.mxu3 %v5538_v41  ;;  %v1663_v0 = vsel %vm1660_vm11, %v1662_v7, %v1658_v59  ;;  %v1683_v41 = vsel %vm1680_vm15, %v1682_v62, %v1678_v43  ;;  %v5948_v7 = vld [vmem:[#allocation2 + $0x100] sm:$0xff]  ;;  %v5955_v59 = vld [vmem:[#allocation2 + $0xe8] sm:$0xff]  ;;  %v5986_v62 = vld [vmem:[#allocation6 + $0x90] sm:$0xff] }
 0x700   :  { %v1686_v58 = vmul.f32 %v1685_v56, %v1663_v0  ;;  %v1689_v1 = vsub.f32 1.0, %v1683_v41  ;;  %v1691_v3 = vmul.f32 %v1683_v41, %v5586_v32  ;;  %v5924_v32 = vld [vmem:[#allocation6 + $0x150] sm:$0xff]  ;;  %v5951_v56 = vld [vmem:[#allocation6 + $0x108] sm:$0xff] }
 0x701   :  { %v5958_v0 = vld [vmem:[#allocation6 + $0xf0] sm:$0xff]  ;;  %v5983_v43 = vld [vmem:[#allocation2 + $0x88] sm:$0xff] }
 0x702   :  { %v1687_v37 = vadd.f32 %v1686_v58, %v1584_v61  ;;  %v5965_v61 = vld [vmem:[#allocation6 + $0xd8] sm:$0xff]  ;;  %v5972_v58 = vld [vmem:[#allocation6 + $0xc0] sm:$0xff]  ;;  %v5990_v41 = vld [vmem:[#allocation2 + $0x70] sm:$0xff] }
 0x703   :  { %7750 = vst [vmem:[#allocation73_spill] sm:$0xff] %v5990_v41 }
 0x704   :  { %3374 = vtanh.f32 %v1687_v37  ;;  %v5979_v37 = vld [vmem:[#allocation6 + $0xa8] sm:$0xff] }
 0x70a   :  { %v3375_v25 = vpop.eup %3374 }
 0x70b   :  { %v1690_v38 = vmul.f32 %v3375_v25, %v1689_v1  ;;  %v5993_v1 = vld [vmem:[#allocation6 + $0x78] sm:$0xff] }
 0x70c   :  { %v5997_v25 = vld [vmem:[#allocation2 + $0x58] sm:$0xff] }
 0x70d   :  { %v5909_v54 = vadd.f32 %v1691_v3, %v1690_v38  ;;  %7751 = vst [vmem:[#allocation76_spill] sm:$0xff] %v5997_v25  ;;  %v6000_v38 = vld [vmem:[#allocation6 + $0x60] sm:$0xff] }
 0x70e   :  { %v6004_v3 = vld [vmem:[#allocation2 + $0x40] sm:$0xff] }
 0x70f   :  { %1832 = vmatmul.f32.vlgmr.msra.gmra.mxu0 %v5909_v54  ;;  %1852 = vmatmul.f32.vlgmr.msra.gmra.mxu1 %v5909_v54  ;;  %7752 = vst [vmem:[#allocation79_spill] sm:$0xff] %v6004_v3 }
 0x710   :  { %1872 = vmatmul.f32.vlgmr.msra.gmra.mxu2 %v5909_v54  ;;  %2024 = vmatpush.msra.mxu0 %v5914_v6 }
 0x711   :  { %2047 = vmatpush.msra.mxu1 %v5917_v45  ;;  %2067 = vmatpush.msra.mxu2 %v5594_v63 }
 0x712   :  { %2025 = vmatpush.msra.mxu0 %v5921_v28 }
 0x713   :  { %2048 = vmatpush.msra.mxu1 %v5924_v32  ;;  %2068 = vmatpush.msra.mxu2 %v5600_v34 }
 0x714   :  { %2026 = vmatpush.msra.mxu0 %v5928_v44 }
 0x715   :  { %2049 = vmatpush.msra.mxu1 %v5931_v30  ;;  %2069 = vmatpush.msra.mxu2 %v5606_v48 }
 0x716   :  { %2027 = vmatpush.msra.mxu0 %v5935_v2 }
 0x717   :  { %1960 = vmatmul.f32.vlgmr.msrb.gmra.mxu0 %v7721_v52  ;;  %1980 = vmatmul.f32.vlgmr.msrb.gmra.mxu1 %v7721_v52 }
 0x718   :  { %2000 = vmatmul.f32.vlgmr.msrb.gmra.mxu2 %v7741_v49  ;;  %2028 = vmatpush.msra.mxu0 %v5941_v33 }
 0x719   :  { %2050 = vmatpush.msra.mxu1 %v5944_v11  ;;  %2070 = vmatpush.msra.mxu2 %v5616_v40 }
 0x71a   :  { %2029 = vmatpush.msra.mxu0 %v5948_v7 }
 0x71b   :  { %2051 = vmatpush.msra.mxu1 %v5951_v56  ;;  %2071 = vmatpush.msra.mxu2 %v5622_v5 }
 0x71c   :  { %2030 = vmatpush.msra.mxu0 %v5955_v59 }
 0x71d   :  { %2052 = vmatpush.msra.mxu1 %v5958_v0  ;;  %2072 = vmatpush.msra.mxu2 %v5627_v10 }
 0x71e   :  { %2031 = vmatpush.msra.mxu0 %v5962_v20 }
 0x71f   :  { %2053 = vmatpush.msra.mxu1 %v5965_v61  ;;  %2073 = vmatpush.msra.mxu2 %v5632_v12 }
 0x720   :  { %2032 = vmatpush.msra.mxu0 %v5969_v14 }
 0x721   :  { %2054 = vmatpush.msra.mxu1 %v5972_v58  ;;  %2074 = vmatpush.msra.mxu2 %v5637_v15 }
 0x722   :  { %2033 = vmatpush.msra.mxu0 %v5976_v18 }
 0x723   :  { %2055 = vmatpush.msra.mxu1 %v5979_v37  ;;  %2075 = vmatpush.msra.mxu2 %v5642_v9 }
 0x724   :  { %2034 = vmatpush.msra.mxu0 %v5983_v43 }
 0x725   :  { %2056 = vmatpush.msra.mxu1 %v5986_v62  ;;  %2076 = vmatpush.msra.mxu2 %v5647_v17 }
 0x726   :  { %2035 = vmatpush.msra.mxu0 %v5990_v41  ;;  %v6007_v41 = vld [vmem:[#allocation6 + $0x48] sm:$0xff] }
 0x727   :  { %2057 = vmatpush.msra.mxu1 %v5993_v1  ;;  %2077 = vmatpush.msra.mxu2 %v5652_v13  ;;  %v6011_v13 = vld [vmem:[#allocation2 + $0x28] sm:$0xff] }
 0x728   :  { %2036 = vmatpush.msra.mxu0 %v5997_v25  ;;  %7753 = vst [vmem:[#allocation84_spill] sm:$0xff] %v6011_v13  ;;  %v6014_v25 = vld [vmem:[#allocation6 + $0x30] sm:$0xff] }
 0x729   :  { %2058 = vmatpush.msra.mxu1 %v6000_v38  ;;  %2078 = vmatpush.msra.mxu2 %v5657_v19  ;;  %v6018_v19 = vld [vmem:[#allocation2 + $0x10] sm:$0xff] }
 0x72a   :  { %2037 = vmatpush.msra.mxu0 %v6004_v3  ;;  %v6022_v3 = vld [vmem:[#allocation6 + $0x18] sm:$0xff] }
 0x72b   :  { %2059 = vmatpush.msra.mxu1 %v6007_v41  ;;  %2079 = vmatpush.msra.mxu2 %v5662_v24  ;;  %7754 = vst [vmem:[#allocation82_spill] sm:$0xff] %v6022_v3 }
 0x72c   :  { %2038 = vmatpush.msra.mxu0 %v6011_v13  ;;  %v6027_v13 = vld [vmem:[#allocation6] sm:$0xff] }
 0x72d   :  { %2060 = vmatpush.msra.mxu1 %v6014_v25  ;;  %2080 = vmatpush.msra.mxu2 %v5667_v26  ;;  %7755 = vst [vmem:[#allocation87_spill] sm:$0xff] %v6027_v13 }
 0x72e   :  { %2039 = vmatpush.msra.mxu0 %v6018_v19 }
 0x72f   :  { %2040 = vmatmul.f32.vlgmr.msra.gmra.mxu0 %v7741_v49  ;;  %2061 = vmatpush.msra.mxu1 %v6022_v3  ;;  %v6144_v3 = vld [vmem:[#allocation6 + $0x28] sm:$0xff] }
 0x730   :  { %2155 = vmatpush.msrb.mxu0 %v5673_v60  ;;  %2081 = vmatpush.msra.mxu2 %v5676_v50  ;;  %7823 = vst [vmem:[#allocation66_spill] sm:$0xff] %v6144_v3 }
 0x731   :  { %2062 = vmatpush.msra.mxu1 %v6027_v13 }
 0x732   :  { %2156 = vmatpush.msrb.mxu0 %v5680_v31  ;;  %2082 = vmatpush.msra.mxu2 %v5686_v8  ;;  %v7756_v31 = vld [vmem:[#allocation25_spill] sm:$0xff]  ;;  %v7758_v8 = vld [vmem:[#allocation26_spill] sm:$0xff] }
 0x733   :  { %2175 = vmatpush.msrb.mxu1 %v5683_v16  ;;  %v7757_v16 = vld [vmem:[#allocation89_spill] sm:$0xff] }
 0x734   :  { %2157 = vmatpush.msrb.mxu0 %v5689_v47  ;;  %2195 = vmatpush.msrb.mxu2 %v5695_v53  ;;  %v7759_v47 = vld [vmem:[#allocation92_spill] sm:$0xff]  ;;  %v7761_v53 = vld [vmem:[#allocation95_spill] sm:$0xff] }
 0x735   :  { %2176 = vmatpush.msrb.mxu1 %v5692_v35  ;;  %v7760_v35 = vld [vmem:[#allocation27_spill] sm:$0xff] }
 0x736   :  { %2158 = vmatpush.msrb.mxu0 %v5698_v55  ;;  %2196 = vmatpush.msrb.mxu2 %v5704_v23  ;;  %v7762_v55 = vld [vmem:[#allocation96_spill] sm:$0xff]  ;;  %v7764_v23 = vld [vmem:[#allocation98_spill] sm:$0xff] }
 0x737   :  { %2177 = vmatpush.msrb.mxu1 %v5701_v22  ;;  %v7763_v22 = vld [vmem:[#allocation28_spill] sm:$0xff] }
 0x738   :  { %2159 = vmatpush.msrb.mxu0 %v5707_v29  ;;  %2197 = vmatpush.msrb.mxu2 %v7756_v31  ;;  %v7765_v29 = vld [vmem:[#allocation99_spill] sm:$0xff]  ;;  %v7767_v31 = vld [vmem:[#allocation101_spill] sm:$0xff] }
 0x739   :  { %2178 = vmatpush.msrb.mxu1 %v5710_v57  ;;  %v7766_v57 = vld [vmem:[#allocation29_spill] sm:$0xff] }
 0x73a   :  { %2160 = vmatpush.msrb.mxu0 %v7757_v16  ;;  %2198 = vmatpush.msrb.mxu2 %v7759_v47  ;;  %v7768_v16 = vld [vmem:[#allocation102_spill] sm:$0xff]  ;;  %v7770_v47 = vld [vmem:[#allocation104_spill] sm:$0xff] }
 0x73b   :  { %2179 = vmatpush.msrb.mxu1 %v7758_v8  ;;  %v7769_v8 = vld [vmem:[#allocation30_spill] sm:$0xff] }
 0x73c   :  { %2161 = vmatpush.msrb.mxu0 %v7760_v35  ;;  %2199 = vmatpush.msrb.mxu2 %v7762_v55  ;;  %v7771_v35 = vld [vmem:[#allocation105_spill] sm:$0xff]  ;;  %v7773_v55 = vld [vmem:[#allocation34_spill] sm:$0xff] }
 0x73d   :  { %2180 = vmatpush.msrb.mxu1 %v7761_v53  ;;  %v7772_v53 = vld [vmem:[#allocation32_spill] sm:$0xff] }
 0x73e   :  { %2162 = vmatpush.msrb.mxu0 %v7763_v22  ;;  %2200 = vmatpush.msrb.mxu2 %v7765_v29  ;;  %v7774_v22 = vld [vmem:[#allocation36_spill] sm:$0xff] }
 0x73f   :  { %2181 = vmatpush.msrb.mxu1 %v7764_v23  ;;  %v7775_v23 = vld [vmem:[#allocation38_spill] sm:$0xff]  ;;  %v7776_v29 = vld [vmem:[#allocation40_spill] sm:$0xff] }
 0x740   :  { %2163 = vmatpush.msrb.mxu0 %v7766_v57  ;;  %2201 = vmatpush.msrb.mxu2 %v7768_v16  ;;  %v7777_v57 = vld [vmem:[#allocation42_spill] sm:$0xff] }
 0x741   :  { %2182 = vmatpush.msrb.mxu1 %v7767_v31  ;;  %v7778_v31 = vld [vmem:[#allocation44_spill] sm:$0xff]  ;;  %v7779_v16 = vld [vmem:[#allocation46_spill] sm:$0xff] }
 0x742   :  { %2164 = vmatpush.msrb.mxu0 %v7769_v8  ;;  %2202 = vmatpush.msrb.mxu2 %v7771_v35  ;;  %v7780_v8 = vld [vmem:[#allocation48_spill] sm:$0xff] }
 0x743   :  { %2183 = vmatpush.msrb.mxu1 %v7770_v47  ;;  %v7781_v47 = vld [vmem:[#allocation50_spill] sm:$0xff]  ;;  %v7782_v35 = vld [vmem:[#allocation52_spill] sm:$0xff] }
 0x744   :  { %2165 = vmatpush.msrb.mxu0 %v7772_v53  ;;  %2203 = vmatpush.msrb.mxu2 %v7774_v22  ;;  %v7783_v53 = vld [vmem:[#allocation54_spill] sm:$0xff] }
 0x745   :  { %2184 = vmatpush.msrb.mxu1 %v7773_v55  ;;  %v7784_v55 = vld [vmem:[#allocation56_spill] sm:$0xff]  ;;  %v7785_v22 = vld [vmem:[#allocation58_spill] sm:$0xff] }
 0x746   :  { %2166 = vmatpush.msrb.mxu0 %v7775_v23  ;;  %2204 = vmatpush.msrb.mxu2 %v7777_v57  ;;  %v7786_v23 = vld [vmem:[#allocation60_spill] sm:$0xff]  ;;  %v7788_v57 = vld [vmem:[#allocation33_spill] sm:$0xff] }
 0x747   :  { %2185 = vmatpush.msrb.mxu1 %v7776_v29  ;;  %v7787_v29 = vld [vmem:[#allocation62_spill] sm:$0xff] }
 0x748   :  { %2167 = vmatpush.msrb.mxu0 %v7778_v31  ;;  %2205 = vmatpush.msrb.mxu2 %v7780_v8  ;;  %v7790_v8 = vld [vmem:[#allocation37_spill] sm:$0xff]  ;;  %v7799_v31 = vld [vmem:[#allocation55_spill] sm:$0xff] }
 0x749   :  { %2186 = vmatpush.msrb.mxu1 %v7779_v16  ;;  %v7789_v16 = vld [vmem:[#allocation35_spill] sm:$0xff] }
 0x74a   :  { %2168 = vmatpush.msrb.mxu0 %v7781_v47  ;;  %2206 = vmatpush.msrb.mxu2 %v7783_v53  ;;  %v7791_v47 = vld [vmem:[#allocation39_spill] sm:$0xff] }
 0x74b   :  { %2187 = vmatpush.msrb.mxu1 %v7782_v35  ;;  %v7792_v35 = vld [vmem:[#allocation41_spill] sm:$0xff]  ;;  %v7793_v53 = vld [vmem:[#allocation43_spill] sm:$0xff] }
 0x74c   :  { %2169 = vmatpush.msrb.mxu0 %v7784_v55  ;;  %2207 = vmatpush.msrb.mxu2 %v7786_v23  ;;  %v7794_v55 = vld [vmem:[#allocation45_spill] sm:$0xff] }
 0x74d   :  { %2188 = vmatpush.msrb.mxu1 %v7785_v22  ;;  %v7795_v22 = vld [vmem:[#allocation47_spill] sm:$0xff]  ;;  %v7796_v23 = vld [vmem:[#allocation49_spill] sm:$0xff] }
 0x74e   :  { %2170 = vmatpush.msrb.mxu0 %v7787_v29  ;;  %2208 = vmatpush.msrb.mxu2 %v7789_v16  ;;  %v7797_v29 = vld [vmem:[#allocation51_spill] sm:$0xff]  ;;  %v7800_v16 = vld [vmem:[#allocation57_spill] sm:$0xff] }
 0x74f   :  { %2189 = vmatpush.msrb.mxu1 %v7788_v57  ;;  %2171 = vmatmul.f32.vlgmr.msrb.gmra.mxu0 %v7741_v49  ;;  %v7798_v57 = vld [vmem:[#allocation53_spill] sm:$0xff] }
 0x750   :  { %2235 = vmatpush.msra.mxu0 %v7790_v8  ;;  %2209 = vmatpush.msrb.mxu2 %v7792_v35  ;;  %v7801_v8 = vld [vmem:[#allocation59_spill] sm:$0xff] }
 0x751   :  { %2190 = vmatpush.msrb.mxu1 %v7791_v47  ;;  %v7802_v47 = vld [vmem:[#allocation61_spill] sm:$0xff]  ;;  %v7803_v35 = vld [vmem:[#allocation63_spill] sm:$0xff] }
 0x752   :  { %2236 = vmatpush.msra.mxu0 %v7793_v53  ;;  %2210 = vmatpush.msrb.mxu2 %v7794_v55  ;;  %v7804_v53 = vld [vmem:[#allocation64_spill] sm:$0xff]  ;;  %v7805_v55 = vld [vmem:[#allocation65_spill] sm:$0xff] }
 0x754   :  { %2237 = vmatpush.msra.mxu0 %v7795_v22  ;;  %v7806_v22 = vld [vmem:[#allocation67_spill] sm:$0xff] }
 0x756   :  { %2238 = vmatpush.msra.mxu0 %v7796_v23  ;;  %v7807_v23 = vld [vmem:[#allocation70_spill] sm:$0xff] }
 0x758   :  { %2239 = vmatpush.msra.mxu0 %v7797_v29  ;;  %v6094_v29 = vld [vmem:[#allocation2 + $0x8] sm:$0xff] }
 0x759   :  { %7808 = vst [vmem:[#allocation85_spill] sm:$0xff] %v6094_v29 }
 0x75a   :  { %2240 = vmatpush.msra.mxu0 %v7798_v57 }
 0x75c   :  { %2241 = vmatpush.msra.mxu0 %v7799_v31  ;;  %v6133_v31 = vld [vmem:[#allocation6 + $0x70] sm:$0xff] }
 0x75d   :  { %7820 = vst [vmem:[#allocation108_spill] sm:$0xff] %v6133_v31 }
 0x75e   :  { %2242 = vmatpush.msra.mxu0 %v7800_v16  ;;  %v6098_v16 = vld [vmem:[#allocation6 + $0x178] sm:$0xff] }
 0x75f   :  { %7809 = vst [vmem:[#allocation90_spill] sm:$0xff] %v6098_v16 }
 0x760   :  { %2243 = vmatpush.msra.mxu0 %v7801_v8  ;;  %v6130_v8 = vld [vmem:[#allocation6 + $0x88] sm:$0xff] }
 0x761   :  { %7819 = vst [vmem:[#allocation18_spill] sm:$0xff] %v6130_v8 }
 0x762   :  { %2244 = vmatpush.msra.mxu0 %v7802_v47  ;;  %v6101_v47 = vld [vmem:[#allocation6 + $0x160] sm:$0xff] }
 0x763   :  { %7810 = vst [vmem:[#allocation88_spill] sm:$0xff] %v6101_v47 }
 0x764   :  { %2245 = vmatpush.msra.mxu0 %v7803_v35  ;;  %v1730_v35 = vpop.f32.mrf.mxu3 }
 0x766   :  { %2246 = vmatpush.msra.mxu0 %v7804_v53  ;;  %v6104_v53 = vld [vmem:[#allocation6 + $0x148] sm:$0xff] }
 0x767   :  { %7811 = vst [vmem:[#allocation93_spill] sm:$0xff] %v6104_v53 }
 0x768   :  { %2247 = vmatpush.msra.mxu0 %v7805_v55  ;;  %v6119_v55 = vld [vmem:[#allocation6 + $0xd0] sm:$0xff] }
 0x769   :  { %7816 = vst [vmem:[#allocation103_spill] sm:$0xff] %v6119_v55 }
 0x76a   :  { %2248 = vmatpush.msra.mxu0 %v7806_v22  ;;  %v6107_v22 = vld [vmem:[#allocation6 + $0x130] sm:$0xff] }
 0x76b   :  { %7812 = vst [vmem:[#allocation91_spill] sm:$0xff] %v6107_v22 }
 0x76c   :  { %2249 = vmatpush.msra.mxu0 %v7807_v23  ;;  %v6110_v23 = vld [vmem:[#allocation6 + $0x118] sm:$0xff] }
 0x76d   :  { %7813 = vst [vmem:[#allocation94_spill] sm:$0xff] %v6110_v23 }
 0x76e   :  { %2250 = vmatpush.msra.mxu0 %v6094_v29  ;;  %v6113_v29 = vld [vmem:[#allocation6 + $0x100] sm:$0xff] }
 0x76f   :  { %2251 = vmatmul.f32.vlgmr.msra.gmra.mxu0 %v7721_v52  ;;  %7814 = vst [vmem:[#allocation97_spill] sm:$0xff] %v6113_v29 }
 0x770   :  { %2318 = vmatpush.msrb.mxu0 %v6098_v16  ;;  %v6116_v16 = vld [vmem:[#allocation6 + $0xe8] sm:$0xff] }
 0x771   :  { %7815 = vst [vmem:[#allocation100_spill] sm:$0xff] %v6116_v16 }
 0x772   :  { %2319 = vmatpush.msrb.mxu0 %v6101_v47  ;;  %v1710_v47 = vpop.f32.mrf.mxu2 }
 0x774   :  { %2320 = vmatpush.msrb.mxu0 %v6104_v53  ;;  %v6122_v53 = vld [vmem:[#allocation6 + $0xb8] sm:$0xff] }
 0x775   :  { %7817 = vst [vmem:[#allocation106_spill] sm:$0xff] %v6122_v53 }
 0x776   :  { %2321 = vmatpush.msrb.mxu0 %v6107_v22  ;;  %v6125_v22 = vld [vmem:[#allocation6 + $0xa0] sm:$0xff] }
 0x777   :  { %7818 = vst [vmem:[#allocation12_spill] sm:$0xff] %v6125_v22 }
 0x778   :  { %2322 = vmatpush.msrb.mxu0 %v6110_v23  ;;  %v6128_v23 = vpop.f32.mrf.mxu0 }
 0x77a   :  { %2323 = vmatpush.msrb.mxu0 %v6113_v29  ;;  %v1770_v29 = vpop.f32.mrf.mxu1 }
 0x77c   :  { %2324 = vmatpush.msrb.mxu0 %v6116_v16  ;;  %v1790_v16 = vpop.f32.mrf.mxu2 }
 0x77d   :  { %v1791_v57 = vadd.f32 %v1790_v16, %v1730_v35  ;;  %v6147_v35 = vld [vmem:[#allocation6 + $0x10] sm:$0xff] }
 0x77e   :  { %2325 = vmatpush.msrb.mxu0 %v6119_v55  ;;  %v1771_v55 = vadd.f32 %v1770_v29, %v1710_v47  ;;  %7824 = vst [vmem:[#allocation19_spill] sm:$0xff] %v6147_v35 }
 0x77f   :  { %v1814_v50 = vadd.f32 %v1791_v57, %v7743_v51  ;;  %v6156_v57 = vld [vmem:[#allocation2 + $0x138] sm:$0xff] }
 0x780   :  { %2326 = vmatpush.msrb.mxu0 %v6122_v53  ;;  %v6136_v53 = vld [vmem:[#allocation6 + $0x58] sm:$0xff]  ;;  %v1813_v13 = vadd.f32 %v1771_v55, %v7747_v39  ;;  %v6153_v55 = vld [vmem:[#allocation2 + $0x150] sm:$0xff]  ;;  %7827 = vst [vmem:[#allocation112_spill] sm:$0xff] %v6156_v57 }
 0x781   :  { %7821 = vst [vmem:[#allocation109_spill] sm:$0xff] %v6136_v53 }
 0x782   :  { %2327 = vmatpush.msrb.mxu0 %v6125_v22  ;;  %v6139_v22 = vld [vmem:[#allocation6 + $0x40] sm:$0xff]  ;;  %7826 = vst [vmem:[#allocation111_spill] sm:$0xff] %v6153_v55 }
 0x783   :  { %7822 = vst [vmem:[#allocation110_spill] sm:$0xff] %v6139_v22 }
 0x784   :  { %2328 = vmatpush.msrb.mxu0 %v6130_v8 }
 0x786   :  { %2329 = vmatpush.msrb.mxu0 %v6133_v31  ;;  %v6150_v31 = vld [vmem:[#allocation2 + $0x168] sm:$0xff] }
 0x787   :  { %7825 = vst [vmem:[#allocation68_spill] sm:$0xff] %v6150_v31 }
 0x788   :  { %2330 = vmatpush.msrb.mxu0 %v6136_v53 }
 0x78a   :  { %2331 = vmatpush.msrb.mxu0 %v6139_v22 }
 0x78c   :  { %v1833_v8 = vpop.f32.mrf.mxu0  ;;  %v1853_v60 = vpop.f32.mrf.mxu1  ;;  %2332 = vmatpush.msrb.mxu0 %v6144_v3 }
 0x78d   :  { %v1876_v47 = vadd.f32 %v1833_v8, %v1813_v13  ;;  %v1896_v16 = vadd.f32 %v1853_v60, %v1814_v50  ;;  %v6159_v13 = vld [vmem:[#allocation2 + $0x120] sm:$0xff]  ;;  %v6162_v50 = vld [vmem:[#allocation2 + $0x108] sm:$0xff] }
 0x78e   :  { %2333 = vmatpush.msrb.mxu0 %v6147_v35  ;;  %7828 = vst [vmem:[#allocation113_spill] sm:$0xff] %v6159_v13 }
 0x78f   :  { %v3250_v29 = vmul.f32 -1.442695, %v1876_v47  ;;  %v3251_v53 = vmul.f32 -1.442695, %v1896_v16  ;;  %7829 = vst [vmem:[#allocation114_spill] sm:$0xff] %v6162_v50 }
 0x790   :  { %2446 = vmatpush.msra.mxu0 %v6150_v31 }
 0x791   :  { %3376 = vpow2.f32 %v3250_v29  ;;  %v6165_v29 = vld [vmem:[#allocation2 + $0xf0] sm:$0xff] }
 0x792   :  { %2447 = vmatpush.msra.mxu0 %v6153_v55  ;;  %3378 = vpow2.f32 %v3251_v53  ;;  %7830 = vst [vmem:[#allocation115_spill] sm:$0xff] %v6165_v29  ;;  %v6168_v53 = vld [vmem:[#allocation2 + $0xd8] sm:$0xff] }
 0x793   :  { %7831 = vst [vmem:[#allocation116_spill] sm:$0xff] %v6168_v53 }
 0x794   :  { %2448 = vmatpush.msra.mxu0 %v6156_v57 }
 0x796   :  { %2449 = vmatpush.msra.mxu0 %v6159_v13 }
 0x797   :  { %v3377_v60 = vpop.eup %3376 }
 0x798   :  { %2450 = vmatpush.msra.mxu0 %v6162_v50  ;;  %v3379_v8 = vpop.eup %3378  ;;  %v1880_v47 = vadd.f32 1.0, %v3377_v60 }
 0x799   :  { %v1900_v16 = vadd.f32 1.0, %v3379_v8 }
 0x79a   :  { %2451 = vmatpush.msra.mxu0 %v6165_v29  ;;  %3380 = vrcp.f32 %v1880_v47  ;;  %v1810_v29 = vpop.f32.mrf.mxu3  ;;  %v1892_v51 = vand.u32 2147483648, %v1880_v47  ;;  %v1890_v35 = vand.u32 2147483647, %v1880_v47  ;;  %vm1886_vm1 = vweird.f32 %v1880_v47 }
 0x79b   :  { %3382 = vrcp.f32 %v1900_v16  ;;  %v1811_v3 = vadd.f32 %v1810_v29, %v6128_v23  ;;  %v6187_v29 = vld [vmem:[#allocation2 + $0x18] sm:$0xff]  ;;  %vm1906_vm5 = vweird.f32 %v1900_v16 }
 0x79c   :  { %2452 = vmatpush.msra.mxu0 %v6168_v53  ;;  %v6175_v53 = vld [vmem:[#allocation2 + $0x60] sm:$0xff]  ;;  %vm1891_vm3 = vcmp.eq.f32.partialorder %v1890_v35, 8.507059e+37 }
 0x79d   :  { %7832 = vst [vmem:[#allocation117_spill] sm:$0xff] %v6175_v53 }
 0x79e   :  { %2453 = vmatpush.msra.mxu0 %v5497_v4 }
 0x7a0   :  { %2454 = vmatpush.msra.mxu0 %v5502_v42  ;;  %v3381_v13 = vpop.eup %3380  ;;  %v1873_v42 = vpop.f32.mrf.mxu2 }
 0x7a1   :  { %v3383_v57 = vpop.eup %3382  ;;  %v1882_v50 = vmul.f32 %v3381_v13, %v1880_v47  ;;  %vm1887_vm0 = vweird.f32 %v3381_v13  ;;  %v1912_v47 = vand.u32 2147483648, %v1900_v16 }
 0x7a2   :  { %2455 = vmatpush.msra.mxu0 %v5507_v27  ;;  %v1902_v60 = vmul.f32 %v3383_v57, %v1900_v16  ;;  %v6179_v27 = vld [vmem:[#allocation2 + $0x48] sm:$0xff]  ;;  %vm1888_vm2 = vmor %vm1886_vm1, %vm1887_vm0  ;;  %vm1907_vm4 = vweird.f32 %v3383_v57 }
 0x7a3   :  { %v1883_v8 = vsub.f32 1.0, %v1882_v50  ;;  %7833 = vst [vmem:[#allocation118_spill] sm:$0xff] %v6179_v27  ;;  %vm1908_vm6 = vmor %vm1906_vm5, %vm1907_vm4 }
 0x7a4   :  { %2456 = vmatpush.msra.mxu0 %v5512_v21  ;;  %v1903_v55 = vsub.f32 1.0, %v1902_v60  ;;  %v1893_v21 = vor.u32 1.1754944e-38, %v1892_v51  ;;  %v1916_v60 = vadd.f32 %v5570_v46, %v1873_v42  ;;  %v1910_v51 = vand.u32 2147483647, %v1900_v16  ;;  %v6190_v46 = vld [vmem:[#allocation2] sm:$0xff] }
 0x7a5   :  { %v1884_v31 = vmul.f32 %v3381_v13, %v1883_v8  ;;  %v6183_v8 = vld [vmem:[#allocation2 + $0x30] sm:$0xff]  ;;  %v7849_v16 = vld [vmem:[#allocation80_spill] sm:$0xff] }
 0x7a6   :  { %2457 = vmatpush.msra.mxu0 %v6175_v53  ;;  %v1904_v4 = vmul.f32 %v3383_v57, %v1903_v55  ;;  %vm1911_vm7 = vcmp.eq.f32.partialorder %v1910_v51, 8.507059e+37  ;;  %v7856_v51 = vld [vmem:[#allocation89_spill] sm:$0xff] }
 0x7a7   :  { %v1885_v39 = vadd.f32 %v3381_v13, %v1884_v31  ;;  %v1815_v31 = vadd.f32 %v1811_v3, %v5573_v36 }
 0x7a8   :  { %2458 = vmatpush.msra.mxu0 %v6179_v27  ;;  %v1905_v53 = vadd.f32 %v3383_v57, %v1904_v4 }
 0x7a9   :  { %v1889_v50 = vsel %vm1888_vm2, %v3381_v13, %v1885_v39  ;;  %v1913_v13 = vor.u32 1.1754944e-38, %v1912_v47  ;;  %v7855_v47 = vld [vmem:[#allocation25_spill] sm:$0xff] }
 0x7aa   :  { %2459 = vmatpush.msra.mxu0 %v6183_v8  ;;  %v1894_v55 = vsel %vm1891_vm3, %v1893_v21, %v1889_v50  ;;  %v1909_v35 = vsel %vm1908_vm6, %v3383_v57, %v1905_v53  ;;  %v7847_v57 = vld [vmem:[#allocation78_spill] sm:$0xff]  ;;  %v7851_v53 = vld [vmem:[#allocation17_spill] sm:$0xff] }
 0x7ab   :  { %v1917_v23 = vmul.f32 %v1916_v60, %v1894_v55  ;;  %v1914_v4 = vsel %vm1911_vm7, %v1913_v13, %v1909_v35  ;;  %v7852_v55 = vld [vmem:[#allocation83_spill] sm:$0xff]  ;;  %v7858_v35 = vld [vmem:[#allocation92_spill] sm:$0xff] }
 0x7ac   :  { %2460 = vmatpush.msra.mxu0 %v6187_v29  ;;  %v1920_v3 = vsub.f32 1.0, %v1914_v4  ;;  %v1922_v50 = vmul.f32 %v1914_v4, %v5909_v54  ;;  %v7846_v54 = vld [vmem:[#allocation77_spill] sm:$0xff]  ;;  %v7859_v13 = vld [vmem:[#allocation27_spill] sm:$0xff] }
 0x7ad   :  { %v1918_v39 = vadd.f32 %v1917_v23, %v1815_v31  ;;  %v7853_v31 = vld [vmem:[#allocation24_spill] sm:$0xff]  ;;  %v7854_v23 = vld [vmem:[#allocation86_spill] sm:$0xff]  ;;  %v7860_v4 = vld [vmem:[#allocation95_spill] sm:$0xff] }
 0x7ae   :  { %2461 = vmatpush.msra.mxu0 %v6190_v46 }
 0x7af   :  { %3384 = vtanh.f32 %v1918_v39  ;;  %v7857_v39 = vld [vmem:[#allocation26_spill] sm:$0xff] }
 0x7b5   :  { %v3385_v42 = vpop.eup %3384 }
 0x7b6   :  { %v1921_v21 = vmul.f32 %v3385_v42, %v1920_v3  ;;  %v7861_v3 = vld [vmem:[#allocation96_spill] sm:$0xff] }
 0x7b7   :  { %v7862_v42 = vld [vmem:[#allocation28_spill] sm:$0xff] }
 0x7b8   :  { %v6194_v60 = vadd.f32 %v1922_v50, %v1921_v21  ;;  %v7863_v21 = vld [vmem:[#allocation98_spill] sm:$0xff]  ;;  %v7864_v50 = vld [vmem:[#allocation99_spill] sm:$0xff] }
 0x7ba   :  { %2063 = vmatmul.f32.vlgmr.msra.gmra.mxu1 %v6194_v60  ;;  %2083 = vmatmul.f32.vlgmr.msra.gmra.mxu2 %v6194_v60 }
 0x7bb   :  { %2103 = vmatmul.f32.vlgmr.msra.gmra.mxu3 %v6194_v60  ;;  %2255 = vmatpush.msra.mxu1 %v5914_v6 }
 0x7bc   :  { %2278 = vmatpush.msra.mxu2 %v5917_v45  ;;  %2298 = vmatpush.msra.mxu3 %v5594_v63  ;;  %v7834_v63 = vld [vmem:[#allocation73_spill] sm:$0xff] }
 0x7bd   :  { %2256 = vmatpush.msra.mxu1 %v5921_v28 }
 0x7be   :  { %2279 = vmatpush.msra.mxu2 %v5924_v32  ;;  %2299 = vmatpush.msra.mxu3 %v5600_v34  ;;  %v7835_v34 = vld [vmem:[#allocation71_spill] sm:$0xff] }
 0x7bf   :  { %2257 = vmatpush.msra.mxu1 %v5928_v44 }
 0x7c0   :  { %2280 = vmatpush.msra.mxu2 %v5931_v30  ;;  %2300 = vmatpush.msra.mxu3 %v5606_v48  ;;  %v7836_v48 = vld [vmem:[#allocation76_spill] sm:$0xff] }
 0x7c1   :  { %2258 = vmatpush.msra.mxu1 %v5935_v2 }
 0x7c2   :  { %2191 = vmatmul.f32.vlgmr.msrb.gmra.mxu1 %v7741_v49  ;;  %2211 = vmatmul.f32.vlgmr.msrb.gmra.mxu2 %v7741_v49  ;;  %v7844_v49 = vld [vmem:[#allocation75_spill] sm:$0xff] }
 0x7c3   :  { %2231 = vmatmul.f32.vlgmr.msrb.gmra.mxu3 %v7721_v52  ;;  %2259 = vmatpush.msra.mxu1 %v5941_v33 }
 0x7c4   :  { %2281 = vmatpush.msra.mxu2 %v5944_v11  ;;  %2301 = vmatpush.msra.mxu3 %v5616_v40  ;;  %v7837_v40 = vld [vmem:[#allocation72_spill] sm:$0xff] }
 0x7c5   :  { %2260 = vmatpush.msra.mxu1 %v5948_v7 }
 0x7c6   :  { %2282 = vmatpush.msra.mxu2 %v5951_v56  ;;  %2302 = vmatpush.msra.mxu3 %v5622_v5  ;;  %v7838_v5 = vld [vmem:[#allocation79_spill] sm:$0xff] }
 0x7c7   :  { %2261 = vmatpush.msra.mxu1 %v5955_v59 }
 0x7c8   :  { %2283 = vmatpush.msra.mxu2 %v5958_v0  ;;  %2303 = vmatpush.msra.mxu3 %v5627_v10  ;;  %v7839_v10 = vld [vmem:[#allocation84_spill] sm:$0xff] }
 0x7c9   :  { %2262 = vmatpush.msra.mxu1 %v5962_v20 }
 0x7ca   :  { %2284 = vmatpush.msra.mxu2 %v5965_v61  ;;  %2304 = vmatpush.msra.mxu3 %v5632_v12  ;;  %v7840_v12 = vld [vmem:[#allocation82_spill] sm:$0xff] }
 0x7cb   :  { %2263 = vmatpush.msra.mxu1 %v5969_v14 }
 0x7cc   :  { %2285 = vmatpush.msra.mxu2 %v5972_v58  ;;  %2305 = vmatpush.msra.mxu3 %v5637_v15  ;;  %v7841_v15 = vld [vmem:[#allocation15_spill] sm:$0xff] }
 0x7cd   :  { %2264 = vmatpush.msra.mxu1 %v5976_v18 }
 0x7ce   :  { %2286 = vmatpush.msra.mxu2 %v5979_v37  ;;  %2306 = vmatpush.msra.mxu3 %v5642_v9  ;;  %v7842_v9 = vld [vmem:[#allocation74_spill] sm:$0xff] }
 0x7cf   :  { %2265 = vmatpush.msra.mxu1 %v5983_v43 }
 0x7d0   :  { %2287 = vmatpush.msra.mxu2 %v5986_v62  ;;  %2307 = vmatpush.msra.mxu3 %v5647_v17  ;;  %v7843_v17 = vld [vmem:[#allocation87_spill] sm:$0xff] }
 0x7d1   :  { %2266 = vmatpush.msra.mxu1 %v7834_v63 }
 0x7d2   :  { %2288 = vmatpush.msra.mxu2 %v5993_v1  ;;  %2308 = vmatpush.msra.mxu3 %v7835_v34  ;;  %v7865_v34 = vld [vmem:[#allocation29_spill] sm:$0xff] }
 0x7d3   :  { %2267 = vmatpush.msra.mxu1 %v7836_v48 }
 0x7d4   :  { %2289 = vmatpush.msra.mxu2 %v6000_v38  ;;  %2309 = vmatpush.msra.mxu3 %v7837_v40  ;;  %v7866_v40 = vld [vmem:[#allocation101_spill] sm:$0xff] }
 0x7d5   :  { %2268 = vmatpush.msra.mxu1 %v7838_v5 }
 0x7d6   :  { %2290 = vmatpush.msra.mxu2 %v6007_v41  ;;  %2310 = vmatpush.msra.mxu3 %v5662_v24  ;;  %v7845_v24 = vld [vmem:[#allocation20_spill] sm:$0xff] }
 0x7d7   :  { %2269 = vmatpush.msra.mxu1 %v7839_v10 }
 0x7d8   :  { %2291 = vmatpush.msra.mxu2 %v6014_v25  ;;  %2311 = vmatpush.msra.mxu3 %v5667_v26  ;;  %v7848_v26 = vld [vmem:[#allocation16_spill] sm:$0xff] }
 0x7d9   :  { %2270 = vmatpush.msra.mxu1 %v6018_v19 }
 0x7da   :  { %2271 = vmatmul.f32.vlgmr.msra.gmra.mxu1 %v7721_v52  ;;  %2292 = vmatpush.msra.mxu2 %v7840_v12  ;;  %v7850_v52 = vld [vmem:[#allocation81_spill] sm:$0xff] }
 0x7db   :  { %2386 = vmatpush.msrb.mxu1 %v7841_v15  ;;  %2312 = vmatpush.msra.mxu3 %v7842_v9  ;;  %v7867_v15 = vld [vmem:[#allocation102_spill] sm:$0xff] }
 0x7dc   :  { %2293 = vmatpush.msra.mxu2 %v7843_v17  ;;  %v7868_v9 = vld [vmem:[#allocation30_spill] sm:$0xff] }
 0x7dd   :  { %2387 = vmatpush.msrb.mxu1 %v7844_v49  ;;  %2313 = vmatpush.msra.mxu3 %v7846_v54  ;;  %v7869_v49 = vld [vmem:[#allocation104_spill] sm:$0xff] }
 0x7de   :  { %2406 = vmatpush.msrb.mxu2 %v7845_v24  ;;  %v7870_v24 = vld [vmem:[#allocation105_spill] sm:$0xff]  ;;  %v7871_v54 = vld [vmem:[#allocation32_spill] sm:$0xff] }
 0x7df   :  { %2388 = vmatpush.msrb.mxu1 %v7847_v57  ;;  %2426 = vmatpush.msrb.mxu3 %v7849_v16  ;;  %v7872_v57 = vld [vmem:[#allocation34_spill] sm:$0xff] }
 0x7e0   :  { %2407 = vmatpush.msrb.mxu2 %v7848_v26  ;;  %v7873_v26 = vld [vmem:[#allocation36_spill] sm:$0xff]  ;;  %v7874_v16 = vld [vmem:[#allocation38_spill] sm:$0xff] }
 0x7e1   :  { %2389 = vmatpush.msrb.mxu1 %v7850_v52  ;;  %2427 = vmatpush.msrb.mxu3 %v7852_v55  ;;  %v7875_v52 = vld [vmem:[#allocation40_spill] sm:$0xff] }
 0x7e2   :  { %2408 = vmatpush.msrb.mxu2 %v7851_v53  ;;  %v7876_v53 = vld [vmem:[#allocation42_spill] sm:$0xff]  ;;  %v7877_v55 = vld [vmem:[#allocation44_spill] sm:$0xff] }
 0x7e3   :  { %2390 = vmatpush.msrb.mxu1 %v7853_v31  ;;  %2428 = vmatpush.msrb.mxu3 %v7855_v47  ;;  %v7878_v31 = vld [vmem:[#allocation46_spill] sm:$0xff] }
 0x7e4   :  { %2409 = vmatpush.msrb.mxu2 %v7854_v23  ;;  %v7879_v23 = vld [vmem:[#allocation48_spill] sm:$0xff]  ;;  %v7880_v47 = vld [vmem:[#allocation50_spill] sm:$0xff] }
 0x7e5   :  { %2391 = vmatpush.msrb.mxu1 %v7856_v51  ;;  %2429 = vmatpush.msrb.mxu3 %v7858_v35  ;;  %v7881_v51 = vld [vmem:[#allocation52_spill] sm:$0xff] }
 0x7e6   :  { %2410 = vmatpush.msrb.mxu2 %v7857_v39  ;;  %v7882_v39 = vld [vmem:[#allocation54_spill] sm:$0xff]  ;;  %v7883_v35 = vld [vmem:[#allocation56_spill] sm:$0xff] }
 0x7e7   :  { %2392 = vmatpush.msrb.mxu1 %v7859_v13  ;;  %2430 = vmatpush.msrb.mxu3 %v7861_v3  ;;  %v7884_v13 = vld [vmem:[#allocation58_spill] sm:$0xff] }
 0x7e8   :  { %2411 = vmatpush.msrb.mxu2 %v7860_v4  ;;  %v7885_v4 = vld [vmem:[#allocation60_spill] sm:$0xff]  ;;  %v7886_v3 = vld [vmem:[#allocation62_spill] sm:$0xff] }
 0x7e9   :  { %2393 = vmatpush.msrb.mxu1 %v7862_v42  ;;  %2431 = vmatpush.msrb.mxu3 %v7864_v50  ;;  %v7887_v42 = vld [vmem:[#allocation33_spill] sm:$0xff]  ;;  %v7889_v50 = vld [vmem:[#allocation35_spill] sm:$0xff] }
 0x7ea   :  { %2412 = vmatpush.msrb.mxu2 %v7863_v21  ;;  %v7888_v21 = vld [vmem:[#allocation23_spill] sm:$0xff] }
 0x7eb   :  { %2394 = vmatpush.msrb.mxu1 %v7865_v34  ;;  %2432 = vmatpush.msrb.mxu3 %v7867_v15  ;;  %v7890_v34 = vld [vmem:[#allocation37_spill] sm:$0xff] }
 0x7ec   :  { %2413 = vmatpush.msrb.mxu2 %v7866_v40  ;;  %v7891_v40 = vld [vmem:[#allocation39_spill] sm:$0xff]  ;;  %v7892_v15 = vld [vmem:[#allocation41_spill] sm:$0xff] }
 0x7ed   :  { %2395 = vmatpush.msrb.mxu1 %v7868_v9  ;;  %2433 = vmatpush.msrb.mxu3 %v7870_v24  ;;  %v7893_v9 = vld [vmem:[#allocation43_spill] sm:$0xff] }
 0x7ee   :  { %2414 = vmatpush.msrb.mxu2 %v7869_v49  ;;  %v7894_v49 = vld [vmem:[#allocation45_spill] sm:$0xff]  ;;  %v7895_v24 = vld [vmem:[#allocation47_spill] sm:$0xff] }
 0x7ef   :  { %2396 = vmatpush.msrb.mxu1 %v7871_v54  ;;  %2434 = vmatpush.msrb.mxu3 %v7873_v26  ;;  %v7896_v54 = vld [vmem:[#allocation49_spill] sm:$0xff] }
 0x7f0   :  { %2415 = vmatpush.msrb.mxu2 %v7872_v57  ;;  %v7897_v57 = vld [vmem:[#allocation51_spill] sm:$0xff]  ;;  %v7898_v26 = vld [vmem:[#allocation53_spill] sm:$0xff] }
 0x7f1   :  { %2397 = vmatpush.msrb.mxu1 %v7874_v16  ;;  %2435 = vmatpush.msrb.mxu3 %v7876_v53  ;;  %v7899_v16 = vld [vmem:[#allocation55_spill] sm:$0xff] }
 0x7f2   :  { %2416 = vmatpush.msrb.mxu2 %v7875_v52  ;;  %v7900_v52 = vld [vmem:[#allocation57_spill] sm:$0xff]  ;;  %v7901_v53 = vld [vmem:[#allocation59_spill] sm:$0xff] }
 0x7f3   :  { %2398 = vmatpush.msrb.mxu1 %v7877_v55  ;;  %2436 = vmatpush.msrb.mxu3 %v7879_v23  ;;  %v7902_v55 = vld [vmem:[#allocation61_spill] sm:$0xff]  ;;  %v7904_v23 = vld [vmem:[#allocation64_spill] sm:$0xff] }
 0x7f4   :  { %2417 = vmatpush.msrb.mxu2 %v7878_v31  ;;  %v7903_v31 = vld [vmem:[#allocation63_spill] sm:$0xff] }
 0x7f5   :  { %2399 = vmatpush.msrb.mxu1 %v7880_v47  ;;  %2437 = vmatpush.msrb.mxu3 %v7882_v39  ;;  %v7905_v47 = vld [vmem:[#allocation65_spill] sm:$0xff]  ;;  %v7907_v39 = vld [vmem:[#allocation70_spill] sm:$0xff] }
 0x7f6   :  { %2418 = vmatpush.msrb.mxu2 %v7881_v51  ;;  %v7906_v51 = vld [vmem:[#allocation67_spill] sm:$0xff] }
 0x7f7   :  { %2400 = vmatpush.msrb.mxu1 %v7883_v35  ;;  %2438 = vmatpush.msrb.mxu3 %v7885_v4  ;;  %v7908_v35 = vld [vmem:[#allocation85_spill] sm:$0xff]  ;;  %v7910_v4 = vld [vmem:[#allocation90_spill] sm:$0xff] }
 0x7f8   :  { %2419 = vmatpush.msrb.mxu2 %v7884_v13  ;;  %v7909_v13 = vld [vmem:[#allocation13_spill] sm:$0xff] }
 0x7f9   :  { %2401 = vmatpush.msrb.mxu1 %v7886_v3  ;;  %2439 = vmatpush.msrb.mxu3 %v7889_v50  ;;  %v7911_v3 = vld [vmem:[#allocation88_spill] sm:$0xff]  ;;  %v7913_v50 = vld [vmem:[#allocation91_spill] sm:$0xff] }
 0x7fa   :  { %2420 = vmatpush.msrb.mxu2 %v7887_v42  ;;  %2402 = vmatmul.f32.vlgmr.msrb.gmra.mxu1 %v7888_v21  ;;  %v7912_v42 = vld [vmem:[#allocation93_spill] sm:$0xff] }
 0x7fb   :  { %2466 = vmatpush.msra.mxu1 %v7890_v34  ;;  %2440 = vmatpush.msrb.mxu3 %v7892_v15  ;;  %v7914_v34 = vld [vmem:[#allocation94_spill] sm:$0xff]  ;;  %v7916_v15 = vld [vmem:[#allocation100_spill] sm:$0xff] }
 0x7fc   :  { %2421 = vmatpush.msrb.mxu2 %v7891_v40  ;;  %v7915_v40 = vld [vmem:[#allocation97_spill] sm:$0xff] }
 0x7fd   :  { %2467 = vmatpush.msra.mxu1 %v7893_v9  ;;  %2441 = vmatpush.msrb.mxu3 %v7894_v49  ;;  %v7917_v9 = vld [vmem:[#allocation103_spill] sm:$0xff]  ;;  %v7918_v49 = vld [vmem:[#allocation106_spill] sm:$0xff] }
 0x7ff   :  { %2468 = vmatpush.msra.mxu1 %v7895_v24  ;;  %v7919_v24 = vld [vmem:[#allocation12_spill] sm:$0xff] }
 0x801   :  { %2469 = vmatpush.msra.mxu1 %v7896_v54  ;;  %v1941_v54 = vpop.f32.mrf.mxu3 }
 0x803   :  { %2470 = vmatpush.msra.mxu1 %v7897_v57  ;;  %v1981_v57 = vpop.f32.mrf.mxu1 }
 0x805   :  { %2471 = vmatpush.msra.mxu1 %v7898_v26  ;;  %v2001_v26 = vpop.f32.mrf.mxu2 }
 0x807   :  { %2472 = vmatpush.msra.mxu1 %v7899_v16  ;;  %v7920_v16 = vld [vmem:[#allocation18_spill] sm:$0xff] }
 0x809   :  { %2473 = vmatpush.msra.mxu1 %v7900_v52  ;;  %v7921_v52 = vld [vmem:[#allocation108_spill] sm:$0xff] }
 0x80b   :  { %2474 = vmatpush.msra.mxu1 %v7901_v53  ;;  %v2002_v53 = vadd.f32 %v2001_v26, %v1941_v54  ;;  %v7927_v54 = vld [vmem:[#allocation69_spill] sm:$0xff] }
 0x80d   :  { %2475 = vmatpush.msra.mxu1 %v7902_v55  ;;  %v7922_v55 = vld [vmem:[#allocation109_spill] sm:$0xff] }
 0x80f   :  { %2476 = vmatpush.msra.mxu1 %v7903_v31  ;;  %v1961_v31 = vpop.f32.mrf.mxu0 }
 0x811   :  { %2477 = vmatpush.msra.mxu1 %v7904_v23  ;;  %v7923_v23 = vld [vmem:[#allocation14_spill] sm:$0xff] }
 0x813   :  { %2478 = vmatpush.msra.mxu1 %v7905_v47  ;;  %v2044_v47 = vadd.f32 %v2002_v53, %v7923_v23  ;;  %v7930_v23 = vld [vmem:[#allocation113_spill] sm:$0xff] }
 0x815   :  { %2479 = vmatpush.msra.mxu1 %v7906_v51  ;;  %v2021_v51 = vpop.f32.mrf.mxu3 }
 0x817   :  { %2480 = vmatpush.msra.mxu1 %v7907_v39 }
 0x819   :  { %2481 = vmatpush.msra.mxu1 %v7908_v35 }
 0x81a   :  { %2482 = vmatmul.f32.vlgmr.msra.gmra.mxu1 %v7909_v13 }
 0x81b   :  { %2549 = vmatpush.msrb.mxu1 %v7910_v4 }
 0x81d   :  { %2550 = vmatpush.msrb.mxu1 %v7911_v3 }
 0x81f   :  { %2551 = vmatpush.msrb.mxu1 %v7912_v42 }
 0x821   :  { %2552 = vmatpush.msrb.mxu1 %v7913_v50 }
 0x823   :  { %2553 = vmatpush.msrb.mxu1 %v7914_v34  ;;  %v7929_v34 = vld [vmem:[#allocation112_spill] sm:$0xff] }
 0x825   :  { %2554 = vmatpush.msrb.mxu1 %v7915_v40 }
 0x827   :  { %2555 = vmatpush.msrb.mxu1 %v7916_v15  ;;  %v7925_v15 = vld [vmem:[#allocation19_spill] sm:$0xff] }
 0x829   :  { %2556 = vmatpush.msrb.mxu1 %v7917_v9 }
 0x82b   :  { %2557 = vmatpush.msrb.mxu1 %v7918_v49  ;;  %v7924_v49 = vld [vmem:[#allocation66_spill] sm:$0xff] }
 0x82d   :  { %2558 = vmatpush.msrb.mxu1 %v7919_v24  ;;  %v2022_v24 = vadd.f32 %v2021_v51, %v1961_v31  ;;  %v7931_v31 = vld [vmem:[#allocation114_spill] sm:$0xff]  ;;  %v6342_v51 = vld [vmem:[#allocation2 + $0xc0] sm:$0xff] }
 0x82e   :  { %7934 = vst [vmem:[#allocation73_spill] sm:$0xff] %v6342_v51 }
 0x82f   :  { %2559 = vmatpush.msrb.mxu1 %v7920_v16  ;;  %v7926_v16 = vld [vmem:[#allocation68_spill] sm:$0xff]  ;;  %v2045_v26 = vadd.f32 %v2022_v24, %v7927_v54 }
 0x831   :  { %2560 = vmatpush.msrb.mxu1 %v7921_v52 }
 0x833   :  { %2561 = vmatpush.msrb.mxu1 %v7922_v55  ;;  %v7928_v55 = vld [vmem:[#allocation111_spill] sm:$0xff] }
 0x835   :  { %2562 = vmatpush.msrb.mxu1 %v6139_v22 }
 0x837   :  { %v2064_v39 = vpop.f32.mrf.mxu1  ;;  %2563 = vmatpush.msrb.mxu1 %v7924_v49 }
 0x838   :  { %v2107_v9 = vadd.f32 %v2064_v39, %v2044_v47  ;;  %v6345_v39 = vld [vmem:[#allocation2 + $0xa8] sm:$0xff] }
 0x839   :  { %2564 = vmatpush.msrb.mxu1 %v7925_v15  ;;  %7935 = vst [vmem:[#allocation71_spill] sm:$0xff] %v6345_v39 }
 0x83a   :  { %v3252_v40 = vmul.f32 -1.442695, %v2107_v9  ;;  %v7932_v9 = vld [vmem:[#allocation115_spill] sm:$0xff] }
 0x83b   :  { %2677 = vmatpush.msra.mxu1 %v7926_v16 }
 0x83c   :  { %3386 = vpow2.f32 %v3252_v40  ;;  %v7933_v40 = vld [vmem:[#allocation116_spill] sm:$0xff] }
 0x83d   :  { %2678 = vmatpush.msra.mxu1 %v7928_v55  ;;  %v2084_v52 = vpop.f32.mrf.mxu2 }
 0x83e   :  { %v2127_v22 = vadd.f32 %v2084_v52, %v2045_v26  ;;  %v2104_v55 = vpop.f32.mrf.mxu3 }
 0x83f   :  { %2679 = vmatpush.msra.mxu1 %v7929_v34 }
 0x840   :  { %v3253_v53 = vmul.f32 -1.442695, %v2127_v22 }
 0x841   :  { %2680 = vmatpush.msra.mxu1 %v7930_v23  ;;  %v7937_v23 = vld [vmem:[#allocation117_spill] sm:$0xff] }
 0x842   :  { %v3387_v49 = vpop.eup %3386  ;;  %3388 = vpow2.f32 %v3253_v53  ;;  %v6348_v53 = vld [vmem:[#allocation2 + $0x90] sm:$0xff] }
 0x843   :  { %2681 = vmatpush.msra.mxu1 %v7931_v31  ;;  %v2111_v47 = vadd.f32 1.0, %v3387_v49  ;;  %7936 = vst [vmem:[#allocation76_spill] sm:$0xff] %v6348_v53  ;;  %v2041_v49 = vpop.f32.mrf.mxu0 }
 0x844   :  { %v2042_v34 = vadd.f32 %v2041_v49, %v1981_v57 }
 0x845   :  { %2682 = vmatpush.msra.mxu1 %v7932_v9  ;;  %3390 = vrcp.f32 %v2111_v47  ;;  %v2123_v31 = vand.u32 2147483648, %v2111_v47  ;;  %vm2117_vm9 = vweird.f32 %v2111_v47 }
 0x846   :  { %v2046_v57 = vadd.f32 %v2042_v34, %v5573_v36 }
 0x847   :  { %2683 = vmatpush.msra.mxu1 %v7933_v40  ;;  %v6351_v40 = vld [vmem:[#allocation2 + $0x78] sm:$0xff] }
 0x848   :  { %v3389_v24 = vpop.eup %3388 }
 0x849   :  { %2684 = vmatpush.msra.mxu1 %v6342_v51  ;;  %v2131_v52 = vadd.f32 1.0, %v3389_v24  ;;  %v2121_v24 = vand.u32 2147483647, %v2111_v47 }
 0x84b   :  { %2685 = vmatpush.msra.mxu1 %v6345_v39  ;;  %v3391_v22 = vpop.eup %3390  ;;  %3392 = vrcp.f32 %v2131_v52  ;;  %vm2122_vm11 = vcmp.eq.f32.partialorder %v2121_v24, 8.507059e+37  ;;  %vm2137_vm13 = vweird.f32 %v2131_v52 }
 0x84c   :  { %v2113_v26 = vmul.f32 %v3391_v22, %v2111_v47  ;;  %vm2118_vm8 = vweird.f32 %v3391_v22 }
 0x84d   :  { %2686 = vmatpush.msra.mxu1 %v6348_v53  ;;  %vm2119_vm10 = vmor %vm2117_vm9, %vm2118_vm8 }
 0x84e   :  { %v2114_v9 = vsub.f32 1.0, %v2113_v26  ;;  %v2124_v26 = vor.u32 1.1754944e-38, %v2123_v31 }
 0x84f   :  { %2687 = vmatpush.msra.mxu1 %v6351_v40 }
 0x850   :  { %v2115_v51 = vmul.f32 %v3391_v22, %v2114_v9  ;;  %v6359_v9 = vld [vmem:[%s7021_s7] ss:$0 sm:$0xff] }
 0x851   :  { %2688 = vmatpush.msra.mxu1 %v7937_v23  ;;  %v3393_v39 = vpop.eup %3392  ;;  %v2147_v23 = vadd.f32 %v6359_v9, %v2104_v55 }
 0x852   :  { %v2133_v54 = vmul.f32 %v3393_v39, %v2131_v52  ;;  %v2116_v16 = vadd.f32 %v3391_v22, %v2115_v51  ;;  %vm2138_vm12 = vweird.f32 %v3393_v39 }
 0x853   :  { %2689 = vmatpush.msra.mxu1 %v6179_v27  ;;  %v2143_v27 = vand.u32 2147483648, %v2131_v52  ;;  %vm2139_vm14 = vmor %vm2137_vm13, %vm2138_vm12 }
 0x854   :  { %v2134_v53 = vsub.f32 1.0, %v2133_v54  ;;  %v2120_v15 = vsel %vm2119_vm10, %v3391_v22, %v2116_v16  ;;  %v2141_v16 = vand.u32 2147483647, %v2131_v52  ;;  %v6384_v52 = vld [vmem:[#allocation6 + $0x140] sm:$0xff] }
 0x855   :  { %2690 = vmatpush.msra.mxu1 %v6183_v8  ;;  %v2125_v51 = vsel %vm2122_vm11, %v2124_v26, %v2120_v15  ;;  %v2144_v22 = vor.u32 1.1754944e-38, %v2143_v27  ;;  %v6374_v27 = vld [vmem:[#allocation6 + $0x170] sm:$0xff] }
 0x856   :  { %v2135_v47 = vmul.f32 %v3393_v39, %v2134_v53  ;;  %v2148_v49 = vmul.f32 %v2147_v23, %v2125_v51  ;;  %vm2142_vm15 = vcmp.eq.f32.partialorder %v2141_v16, 8.507059e+37  ;;  %v6525_v51 = vld [vmem:[#allocation4 + $0xe8] sm:$0xff]  ;;  %v6534_v16 = vld [vmem:[#allocation4 + $0xd0] sm:$0xff] }
 0x857   :  { %2691 = vmatpush.msra.mxu1 %v6187_v29  ;;  %7948 = vst [vmem:[#allocation78_spill] sm:$0xff] %v6525_v51 }
 0x858   :  { %v2149_v54 = vadd.f32 %v2148_v49, %v2046_v57  ;;  %v2136_v31 = vadd.f32 %v3393_v39, %v2135_v47  ;;  %v6522_v57 = vld [vmem:[#allocation4 + $0xc8] sm:$0xff]  ;;  %v6528_v47 = vld [vmem:[#allocation4 + $0x90] sm:$0xff]  ;;  %7951 = vst [vmem:[#allocation81_spill] sm:$0xff] %v6534_v16 }
 0x859   :  { %2692 = vmatpush.msra.mxu1 %v6190_v46  ;;  %7947 = vst [vmem:[#allocation77_spill] sm:$0xff] %v6522_v57  ;;  %v6531_v49 = vld [vmem:[#allocation4 + $0xb0] sm:$0xff] }
 0x85a   :  { %3394 = vtanh.f32 %v2149_v54  ;;  %v2140_v55 = vsel %vm2139_vm14, %v3393_v39, %v2136_v31  ;;  %v6519_v39 = vld [vmem:[#allocation4 + $0xa8] sm:$0xff]  ;;  %7949 = vst [vmem:[#allocation16_spill] sm:$0xff] %v6528_v47  ;;  %v6537_v54 = vld [vmem:[#allocation4 + $0x78] sm:$0xff] }
 0x85b   :  { %v2145_v24 = vsel %vm2142_vm15, %v2144_v22, %v2140_v55  ;;  %7946 = vst [vmem:[#allocation20_spill] sm:$0xff] %v6519_v39  ;;  %v6540_v31 = vld [vmem:[#allocation4 + $0x98] sm:$0xff]  ;;  %v6546_v22 = vld [vmem:[#allocation4 + $0x60] sm:$0xff] }
 0x85c   :  { %v2151_v34 = vsub.f32 1.0, %v2145_v24  ;;  %v2153_v23 = vmul.f32 %v2145_v24, %v6194_v60  ;;  %v6379_v60 = vld [vmem:[#allocation6 + $0x158] sm:$0xff]  ;;  %7950 = vst [vmem:[#allocation80_spill] sm:$0xff] %v6531_v49  ;;  %v6549_v24 = vld [vmem:[#allocation4 + $0x80] sm:$0xff] }
 0x85d   :  { %7952 = vst [vmem:[#allocation17_spill] sm:$0xff] %v6537_v54  ;;  %v6543_v55 = vld [vmem:[#allocation4 + $0xb8] sm:$0xff] }
 0x85e   :  { %7953 = vst [vmem:[#allocation83_spill] sm:$0xff] %v6540_v31 }
 0x85f   :  { %7954 = vst [vmem:[#allocation24_spill] sm:$0xff] %v6543_v55 }
 0x860   :  { %v3395_v15 = vpop.eup %3394  ;;  %7955 = vst [vmem:[#allocation86_spill] sm:$0xff] %v6546_v22 }
 0x861   :  { %v2152_v53 = vmul.f32 %v3395_v15, %v2151_v34  ;;  %7956 = vst [vmem:[#allocation25_spill] sm:$0xff] %v6549_v24  ;;  %v6552_v34 = vld [vmem:[#allocation4 + $0xa0] sm:$0xff]  ;;  %v6555_v15 = vld [vmem:[#allocation4 + $0x48] sm:$0xff] }
 0x862   :  { %7957 = vst [vmem:[#allocation89_spill] sm:$0xff] %v6552_v34 }
 0x863   :  { %v6367_v26 = vadd.f32 %v2153_v23, %v2152_v53  ;;  %7958 = vst [vmem:[#allocation26_spill] sm:$0xff] %v6555_v15  ;;  %v6558_v53 = vld [vmem:[#allocation4 + $0x68] sm:$0xff] }
 0x864   :  { %7959 = vst [vmem:[#allocation92_spill] sm:$0xff] %v6558_v53  ;;  %v6561_v23 = vld [vmem:[#allocation4 + $0x88] sm:$0xff] }
 0x865   :  { %2294 = vmatmul.f32.vlgmr.msra.gmra.mxu2 %v6367_v26  ;;  %2314 = vmatmul.f32.vlgmr.msra.gmra.mxu3 %v6367_v26  ;;  %7960 = vst [vmem:[#allocation27_spill] sm:$0xff] %v6561_v23 }
 0x866   :  { %2334 = vmatmul.f32.vlgmr.msrb.gmra.mxu0 %v6367_v26  ;;  %2486 = vmatpush.msra.mxu2 %v5914_v6  ;;  %v6393_v6 = vld [vmem:[#allocation6 + $0x128] sm:$0xff] }
 0x867   :  { %2509 = vmatpush.msra.mxu3 %v5917_v45  ;;  %2529 = vmatpush.msrb.mxu0 %v6374_v27  ;;  %v6398_v45 = vld [vmem:[#allocation6 + $0x110] sm:$0xff] }
 0x868   :  { %2487 = vmatpush.msra.mxu2 %v5921_v28  ;;  %v6403_v28 = vld [vmem:[#allocation6 + $0xf8] sm:$0xff] }
 0x869   :  { %2510 = vmatpush.msra.mxu3 %v5924_v32  ;;  %2530 = vmatpush.msrb.mxu0 %v6379_v60  ;;  %v6408_v32 = vld [vmem:[#allocation6 + $0xe0] sm:$0xff] }
 0x86a   :  { %2488 = vmatpush.msra.mxu2 %v5928_v44  ;;  %v6413_v44 = vld [vmem:[#allocation6 + $0xc8] sm:$0xff] }
 0x86b   :  { %2511 = vmatpush.msra.mxu3 %v5931_v30  ;;  %2531 = vmatpush.msrb.mxu0 %v6384_v52  ;;  %v6418_v30 = vld [vmem:[#allocation6 + $0xb0] sm:$0xff] }
 0x86c   :  { %2489 = vmatpush.msra.mxu2 %v5935_v2  ;;  %v6423_v2 = vld [vmem:[#allocation6 + $0x98] sm:$0xff] }
 0x86d   :  { %2422 = vmatmul.f32.vlgmr.msrb.gmra.mxu2 %v7888_v21  ;;  %2442 = vmatmul.f32.vlgmr.msrb.gmra.mxu3 %v7888_v21  ;;  %7938 = vst [vmem:[#allocation72_spill] sm:$0xff] %v6423_v2  ;;  %v6513_v21 = vld [vmem:[#allocation4 + $0xe0] sm:$0xff] }
 0x86e   :  { %2462 = vmatmul.f32.vlgmr.msra.gmra.mxu0 %v7909_v13  ;;  %2490 = vmatpush.msra.mxu2 %v5941_v33  ;;  %v6428_v33 = vld [vmem:[#allocation6 + $0x80] sm:$0xff]  ;;  %7944 = vst [vmem:[#allocation87_spill] sm:$0xff] %v6513_v21 }
 0x86f   :  { %2512 = vmatpush.msra.mxu3 %v5944_v11  ;;  %2532 = vmatpush.msrb.mxu0 %v6393_v6  ;;  %7939 = vst [vmem:[#allocation79_spill] sm:$0xff] %v6428_v33  ;;  %v6433_v11 = vld [vmem:[#allocation6 + $0x68] sm:$0xff] }
 0x870   :  { %2491 = vmatpush.msra.mxu2 %v5948_v7  ;;  %7940 = vst [vmem:[#allocation84_spill] sm:$0xff] %v6433_v11  ;;  %v6438_v7 = vld [vmem:[#allocation6 + $0x50] sm:$0xff] }
 0x871   :  { %2513 = vmatpush.msra.mxu3 %v5951_v56  ;;  %2533 = vmatpush.msrb.mxu0 %v6398_v45  ;;  %v6443_v56 = vld [vmem:[#allocation6 + $0x38] sm:$0xff] }
 0x872   :  { %2492 = vmatpush.msra.mxu2 %v5955_v59  ;;  %v6449_v59 = vld [vmem:[#allocation4 + $0x168] sm:$0xff] }
 0x873   :  { %2514 = vmatpush.msra.mxu3 %v5958_v0  ;;  %2534 = vmatpush.msrb.mxu0 %v6403_v28  ;;  %v6452_v0 = vld [vmem:[#allocation6 + $0x20] sm:$0xff] }
 0x874   :  { %2493 = vmatpush.msra.mxu2 %v5962_v20  ;;  %7941 = vst [vmem:[#allocation82_spill] sm:$0xff] %v6452_v0  ;;  %v6456_v20 = vld [vmem:[#allocation4 + $0x150] sm:$0xff] }
 0x875   :  { %2515 = vmatpush.msra.mxu3 %v5965_v61  ;;  %2535 = vmatpush.msrb.mxu0 %v6408_v32  ;;  %v6459_v61 = vld [vmem:[#allocation4 + $0x170] sm:$0xff] }
 0x876   :  { %2494 = vmatpush.msra.mxu2 %v5969_v14  ;;  %v6465_v14 = vld [vmem:[#allocation4 + $0x138] sm:$0xff] }
 0x877   :  { %2516 = vmatpush.msra.mxu3 %v5972_v58  ;;  %2536 = vmatpush.msrb.mxu0 %v6413_v44  ;;  %v6468_v58 = vld [vmem:[#allocation4 + $0x158] sm:$0xff] }
 0x878   :  { %2495 = vmatpush.msra.mxu2 %v5976_v18  ;;  %v6471_v18 = vld [vmem:[#allocation4 + $0x178] sm:$0xff] }
 0x879   :  { %2517 = vmatpush.msra.mxu3 %v5979_v37  ;;  %2537 = vmatpush.msrb.mxu0 %v6418_v30  ;;  %v6474_v37 = vld [vmem:[#allocation4 + $0x120] sm:$0xff] }
 0x87a   :  { %2496 = vmatpush.msra.mxu2 %v5983_v43  ;;  %v6477_v43 = vld [vmem:[#allocation4 + $0x140] sm:$0xff] }
 0x87b   :  { %2518 = vmatpush.msra.mxu3 %v5986_v62  ;;  %2538 = vmatpush.msrb.mxu0 %v6423_v2  ;;  %v6480_v62 = vld [vmem:[#allocation4 + $0x160] sm:$0xff] }
 0x87c   :  { %2497 = vmatpush.msra.mxu2 %v7834_v63  ;;  %v6495_v63 = vld [vmem:[#allocation4 + $0x110] sm:$0xff] }
 0x87d   :  { %2519 = vmatpush.msra.mxu3 %v5993_v1  ;;  %2539 = vmatpush.msrb.mxu0 %v6428_v33  ;;  %v6486_v1 = vld [vmem:[#allocation4 + $0x128] sm:$0xff] }
 0x87e   :  { %2498 = vmatpush.msra.mxu2 %v7836_v48  ;;  %v6498_v48 = vld [vmem:[#allocation4 + $0x130] sm:$0xff] }
 0x87f   :  { %2520 = vmatpush.msra.mxu3 %v6000_v38  ;;  %2540 = vmatpush.msrb.mxu0 %v6433_v11  ;;  %v6492_v38 = vld [vmem:[#allocation4 + $0xf0] sm:$0xff] }
 0x880   :  { %2499 = vmatpush.msra.mxu2 %v7838_v5  ;;  %v6501_v5 = vld [vmem:[#allocation4 + $0xd8] sm:$0xff] }
 0x881   :  { %2521 = vmatpush.msra.mxu3 %v6007_v41  ;;  %2541 = vmatpush.msrb.mxu0 %v6438_v7  ;;  %v6483_v41 = vld [vmem:[#allocation4 + $0x108] sm:$0xff] }
 0x882   :  { %2500 = vmatpush.msra.mxu2 %v7839_v10  ;;  %v6504_v10 = vld [vmem:[#allocation4 + $0xf8] sm:$0xff] }
 0x883   :  { %2522 = vmatpush.msra.mxu3 %v6014_v25  ;;  %2542 = vmatpush.msrb.mxu0 %v6443_v56  ;;  %v6489_v25 = vld [vmem:[#allocation4 + $0x148] sm:$0xff] }
 0x884   :  { %2501 = vmatpush.msra.mxu2 %v6018_v19  ;;  %v6462_v19 = vld [vmem:[#allocation6 + $0x8] sm:$0xff] }
 0x885   :  { %2502 = vmatmul.f32.vlgmr.msra.gmra.mxu2 %v7909_v13  ;;  %2523 = vmatpush.msra.mxu3 %v7840_v12  ;;  %7942 = vst [vmem:[#allocation15_spill] sm:$0xff] %v6462_v19  ;;  %v6507_v12 = vld [vmem:[#allocation4 + $0x118] sm:$0xff]  ;;  %v6516_v13 = vld [vmem:[#allocation4 + $0x100] sm:$0xff] }
 0x886   :  { %2617 = vmatpush.msrb.mxu2 %v6449_v59  ;;  %2543 = vmatpush.msrb.mxu0 %v6452_v0  ;;  %7945 = vst [vmem:[#allocation75_spill] sm:$0xff] %v6516_v13 }
 0x887   :  { %2524 = vmatpush.msra.mxu3 %v7843_v17  ;;  %v6510_v17 = vld [vmem:[#allocation4 + $0xc0] sm:$0xff] }
 0x888   :  { %2618 = vmatpush.msrb.mxu2 %v6456_v20  ;;  %2544 = vmatpush.msrb.mxu0 %v6462_v19  ;;  %7943 = vst [vmem:[#allocation74_spill] sm:$0xff] %v6510_v17 }
 0x889   :  { %2637 = vmatpush.msrb.mxu3 %v6459_v61 }
 0x88a   :  { %2619 = vmatpush.msrb.mxu2 %v6465_v14  ;;  %2657 = vmatpush.msra.mxu0 %v6471_v18 }
 0x88b   :  { %2638 = vmatpush.msrb.mxu3 %v6468_v58 }
 0x88c   :  { %2620 = vmatpush.msrb.mxu2 %v6474_v37  ;;  %2658 = vmatpush.msra.mxu0 %v6480_v62 }
 0x88d   :  { %2639 = vmatpush.msrb.mxu3 %v6477_v43 }
 0x88e   :  { %2621 = vmatpush.msrb.mxu2 %v6483_v41  ;;  %2659 = vmatpush.msra.mxu0 %v6489_v25 }
 0x88f   :  { %2640 = vmatpush.msrb.mxu3 %v6486_v1 }
 0x890   :  { %2622 = vmatpush.msrb.mxu2 %v6492_v38  ;;  %2660 = vmatpush.msra.mxu0 %v6498_v48 }
 0x891   :  { %2641 = vmatpush.msrb.mxu3 %v6495_v63 }
 0x892   :  { %2623 = vmatpush.msrb.mxu2 %v6501_v5  ;;  %2661 = vmatpush.msra.mxu0 %v6507_v12 }
 0x893   :  { %2642 = vmatpush.msrb.mxu3 %v6504_v10 }
 0x894   :  { %2624 = vmatpush.msrb.mxu2 %v6510_v17  ;;  %2662 = vmatpush.msra.mxu0 %v6516_v13 }
 0x895   :  { %2643 = vmatpush.msrb.mxu3 %v6513_v21 }
 0x896   :  { %2625 = vmatpush.msrb.mxu2 %v6519_v39  ;;  %2663 = vmatpush.msra.mxu0 %v6525_v51  ;;  %v8004_v51 = vld [vmem:[#allocation69_spill] sm:$0xff] }
 0x897   :  { %2644 = vmatpush.msrb.mxu3 %v6522_v57  ;;  %v8005_v57 = vld [vmem:[#allocation111_spill] sm:$0xff] }
 0x898   :  { %2626 = vmatpush.msrb.mxu2 %v6528_v47  ;;  %2664 = vmatpush.msra.mxu0 %v6534_v16  ;;  %v7999_v16 = vld [vmem:[#allocation110_spill] sm:$0xff] }
 0x899   :  { %2645 = vmatpush.msrb.mxu3 %v6531_v49  ;;  %v8003_v47 = vld [vmem:[#allocation14_spill] sm:$0xff] }
 0x89a   :  { %2627 = vmatpush.msrb.mxu2 %v6537_v54  ;;  %2665 = vmatpush.msra.mxu0 %v6543_v55  ;;  %v6589_v55 = vld [vmem:[#allocation4 + $0x40] sm:$0xff]  ;;  %v2212_v54 = vpop.f32.mrf.mxu2 }
 0x89b   :  { %2646 = vmatpush.msrb.mxu3 %v6540_v31  ;;  %7970 = vst [vmem:[#allocation30_spill] sm:$0xff] %v6589_v55  ;;  %v2172_v31 = vpop.f32.mrf.mxu0 }
 0x89c   :  { %2628 = vmatpush.msrb.mxu2 %v6546_v22  ;;  %2666 = vmatpush.msra.mxu0 %v6552_v34  ;;  %v6564_v22 = vld [vmem:[#allocation4 + $0x30] sm:$0xff] }
 0x89d   :  { %2647 = vmatpush.msrb.mxu3 %v6549_v24  ;;  %7961 = vst [vmem:[#allocation95_spill] sm:$0xff] %v6564_v22  ;;  %v6567_v24 = vld [vmem:[#allocation4 + $0x50] sm:$0xff] }
 0x89e   :  { %2629 = vmatpush.msrb.mxu2 %v6555_v15  ;;  %2667 = vmatpush.msra.mxu0 %v6561_v23  ;;  %7962 = vst [vmem:[#allocation96_spill] sm:$0xff] %v6567_v24  ;;  %v6570_v34 = vld [vmem:[#allocation4 + $0x70] sm:$0xff]  ;;  %v6573_v15 = vld [vmem:[#allocation4 + $0x18] sm:$0xff] }
 0x89f   :  { %2648 = vmatpush.msrb.mxu3 %v6558_v53  ;;  %7963 = vst [vmem:[#allocation28_spill] sm:$0xff] %v6570_v34  ;;  %v6576_v53 = vld [vmem:[#allocation4 + $0x38] sm:$0xff] }
 0x8a0   :  { %2630 = vmatpush.msrb.mxu2 %v6564_v22  ;;  %2668 = vmatpush.msra.mxu0 %v6570_v34  ;;  %7964 = vst [vmem:[#allocation98_spill] sm:$0xff] %v6573_v15  ;;  %v6579_v23 = vld [vmem:[#allocation4 + $0x58] sm:$0xff]  ;;  %v6582_v22 = vld [vmem:[#allocation4] sm:$0xff]  ;;  %v7969_v34 = vld [vmem:[#allocation22_spill] sm:$0xff] }
 0x8a1   :  { %2649 = vmatpush.msrb.mxu3 %v6567_v24  ;;  %7965 = vst [vmem:[#allocation99_spill] sm:$0xff] %v6576_v53  ;;  %v6585_v24 = vld [vmem:[#allocation4 + $0x20] sm:$0xff] }
 0x8a2   :  { %2631 = vmatpush.msrb.mxu2 %v6573_v15  ;;  %7966 = vst [vmem:[#allocation29_spill] sm:$0xff] %v6579_v23  ;;  %2669 = vmatpush.msra.mxu0 %v6579_v23  ;;  %v6592_v15 = vld [vmem:[#allocation2 + $0x170] sm:$0xff]  ;;  %v6598_v23 = vld [vmem:[#allocation4 + $0x28] sm:$0xff] }
 0x8a3   :  { %2650 = vmatpush.msrb.mxu3 %v6576_v53  ;;  %7967 = vst [vmem:[#allocation101_spill] sm:$0xff] %v6582_v22  ;;  %v6595_v53 = vld [vmem:[#allocation4 + $0x8] sm:$0xff] }
 0x8a4   :  { %2632 = vmatpush.msrb.mxu2 %v6582_v22  ;;  %7968 = vst [vmem:[#allocation102_spill] sm:$0xff] %v6585_v24  ;;  %2670 = vmatpush.msra.mxu0 %v6589_v55  ;;  %v6601_v22 = vld [vmem:[#allocation2 + $0x158] sm:$0xff]  ;;  %v6607_v55 = vld [vmem:[#allocation2 + $0x140] sm:$0xff] }
 0x8a5   :  { %2651 = vmatpush.msrb.mxu3 %v6585_v24  ;;  %2633 = vmatmul.f32.vlgmr.msrb.gmra.mxu2 %v7969_v34  ;;  %7971 = vst [vmem:[#allocation104_spill] sm:$0xff] %v6592_v15  ;;  %v6604_v24 = vld [vmem:[#allocation4 + $0x10] sm:$0xff] }
 0x8a6   :  { %2697 = vmatpush.msra.mxu2 %v6592_v15  ;;  %7972 = vst [vmem:[#allocation105_spill] sm:$0xff] %v6595_v53  ;;  %2671 = vmatpush.msra.mxu0 %v6598_v23  ;;  %v6610_v15 = vld [vmem:[#allocation2 + $0x128] sm:$0xff] }
 0x8a7   :  { %2652 = vmatpush.msrb.mxu3 %v6595_v53  ;;  %7973 = vst [vmem:[#allocation32_spill] sm:$0xff] %v6598_v23  ;;  %v6613_v53 = vld [vmem:[#allocation2 + $0x110] sm:$0xff]  ;;  %v6616_v23 = vld [vmem:[#allocation2 + $0xf8] sm:$0xff] }
 0x8a8   :  { %7974 = vst [vmem:[#allocation34_spill] sm:$0xff] %v6601_v22  ;;  %2698 = vmatpush.msra.mxu2 %v6601_v22  ;;  %2672 = vmatpush.msra.mxu0 %v6604_v24  ;;  %v6619_v22 = vld [vmem:[#allocation2 + $0xe0] sm:$0xff] }
 0x8a9   :  { %7975 = vst [vmem:[#allocation36_spill] sm:$0xff] %v6604_v24  ;;  %v6622_v24 = vld [vmem:[#allocation2 + $0xc8] sm:$0xff] }
 0x8aa   :  { %7976 = vst [vmem:[#allocation38_spill] sm:$0xff] %v6607_v55  ;;  %2699 = vmatpush.msra.mxu2 %v6607_v55  ;;  %v6625_v55 = vld [vmem:[#allocation2 + $0xb0] sm:$0xff] }
 0x8ab   :  { %7977 = vst [vmem:[#allocation40_spill] sm:$0xff] %v6610_v15 }
 0x8ac   :  { %2700 = vmatpush.msra.mxu2 %v6610_v15  ;;  %7978 = vst [vmem:[#allocation42_spill] sm:$0xff] %v6613_v53  ;;  %v6628_v15 = vld [vmem:[#allocation2 + $0x98] sm:$0xff] }
 0x8ad   :  { %7979 = vst [vmem:[#allocation44_spill] sm:$0xff] %v6616_v23 }
 0x8ae   :  { %2701 = vmatpush.msra.mxu2 %v6613_v53  ;;  %7980 = vst [vmem:[#allocation46_spill] sm:$0xff] %v6619_v22  ;;  %v6631_v53 = vld [vmem:[#allocation2 + $0x80] sm:$0xff] }
 0x8af   :  { %7981 = vst [vmem:[#allocation48_spill] sm:$0xff] %v6622_v24 }
 0x8b0   :  { %2702 = vmatpush.msra.mxu2 %v6616_v23  ;;  %7982 = vst [vmem:[#allocation50_spill] sm:$0xff] %v6625_v55  ;;  %v6634_v23 = vld [vmem:[#allocation2 + $0x68] sm:$0xff] }
 0x8b1   :  { %7983 = vst [vmem:[#allocation52_spill] sm:$0xff] %v6628_v15 }
 0x8b2   :  { %2703 = vmatpush.msra.mxu2 %v6619_v22  ;;  %7984 = vst [vmem:[#allocation54_spill] sm:$0xff] %v6631_v53  ;;  %v6637_v22 = vld [vmem:[#allocation2 + $0x50] sm:$0xff] }
 0x8b3   :  { %7985 = vst [vmem:[#allocation56_spill] sm:$0xff] %v6634_v23 }
 0x8b4   :  { %2704 = vmatpush.msra.mxu2 %v6622_v24  ;;  %7986 = vst [vmem:[#allocation58_spill] sm:$0xff] %v6637_v22  ;;  %v6640_v24 = vld [vmem:[#allocation2 + $0x38] sm:$0xff] }
 0x8b5   :  { %7987 = vst [vmem:[#allocation60_spill] sm:$0xff] %v6640_v24 }
 0x8b6   :  { %2705 = vmatpush.msra.mxu2 %v6625_v55  ;;  %v6643_v55 = vld [vmem:[#allocation2 + $0x20] sm:$0xff] }
 0x8b7   :  { %7988 = vst [vmem:[#allocation62_spill] sm:$0xff] %v6643_v55 }
 0x8b8   :  { %2706 = vmatpush.msra.mxu2 %v6628_v15  ;;  %v7989_v15 = vld [vmem:[#allocation31_spill] sm:$0xff] }
 0x8ba   :  { %2707 = vmatpush.msra.mxu2 %v6631_v53  ;;  %v7993_v53 = vld [vmem:[#allocation103_spill] sm:$0xff] }
 0x8bc   :  { %2708 = vmatpush.msra.mxu2 %v6634_v23  ;;  %v7991_v23 = vld [vmem:[#allocation97_spill] sm:$0xff] }
 0x8be   :  { %2709 = vmatpush.msra.mxu2 %v6637_v22  ;;  %v7990_v22 = vld [vmem:[#allocation94_spill] sm:$0xff] }
 0x8c0   :  { %2710 = vmatpush.msra.mxu2 %v6640_v24  ;;  %v7992_v24 = vld [vmem:[#allocation100_spill] sm:$0xff] }
 0x8c2   :  { %2711 = vmatpush.msra.mxu2 %v6643_v55  ;;  %v7994_v55 = vld [vmem:[#allocation106_spill] sm:$0xff] }
 0x8c4   :  { %2712 = vmatpush.msra.mxu2 %v7908_v35  ;;  %v7995_v35 = vld [vmem:[#allocation12_spill] sm:$0xff] }
 0x8c5   :  { %2713 = vmatmul.f32.vlgmr.msra.gmra.mxu2 %v7989_v15 }
 0x8c6   :  { %2780 = vmatpush.msrb.mxu2 %v7910_v4  ;;  %v7996_v4 = vld [vmem:[#allocation18_spill] sm:$0xff] }
 0x8c8   :  { %2781 = vmatpush.msrb.mxu2 %v7911_v3  ;;  %v7997_v3 = vld [vmem:[#allocation108_spill] sm:$0xff] }
 0x8ca   :  { %2782 = vmatpush.msrb.mxu2 %v7912_v42  ;;  %v7998_v42 = vld [vmem:[#allocation109_spill] sm:$0xff] }
 0x8cc   :  { %2783 = vmatpush.msrb.mxu2 %v7913_v50  ;;  %v2192_v50 = vpop.f32.mrf.mxu1 }
 0x8ce   :  { %2784 = vmatpush.msrb.mxu2 %v7990_v22  ;;  %v2232_v22 = vpop.f32.mrf.mxu3 }
 0x8cf   :  { %v2233_v49 = vadd.f32 %v2232_v22, %v2172_v31  ;;  %v8008_v31 = vld [vmem:[#allocation114_spill] sm:$0xff]  ;;  %v8009_v22 = vld [vmem:[#allocation115_spill] sm:$0xff] }
 0x8d0   :  { %2785 = vmatpush.msrb.mxu2 %v7991_v23  ;;  %v2252_v23 = vpop.f32.mrf.mxu0 }
 0x8d2   :  { %2786 = vmatpush.msrb.mxu2 %v7992_v24  ;;  %v8000_v24 = vld [vmem:[#allocation66_spill] sm:$0xff] }
 0x8d4   :  { %2787 = vmatpush.msrb.mxu2 %v7993_v53  ;;  %v2253_v53 = vadd.f32 %v2252_v23, %v2192_v50  ;;  %v8007_v50 = vld [vmem:[#allocation113_spill] sm:$0xff] }
 0x8d6   :  { %2788 = vmatpush.msrb.mxu2 %v7994_v55  ;;  %v8001_v55 = vld [vmem:[#allocation19_spill] sm:$0xff] }
 0x8d8   :  { %2789 = vmatpush.msrb.mxu2 %v7995_v35  ;;  %v8002_v35 = vld [vmem:[#allocation68_spill] sm:$0xff] }
 0x8da   :  { %2790 = vmatpush.msrb.mxu2 %v7996_v4  ;;  %v2275_v4 = vadd.f32 %v2233_v49, %v8003_v47  ;;  %v8010_v49 = vld [vmem:[#allocation116_spill] sm:$0xff] }
 0x8dc   :  { %2791 = vmatpush.msrb.mxu2 %v7997_v3  ;;  %v2276_v3 = vadd.f32 %v2253_v53, %v8004_v51 }
 0x8de   :  { %2792 = vmatpush.msrb.mxu2 %v7998_v42 }
 0x8e0   :  { %2793 = vmatpush.msrb.mxu2 %v7999_v16  ;;  %v8006_v16 = vld [vmem:[#allocation112_spill] sm:$0xff] }
 0x8e2   :  { %2794 = vmatpush.msrb.mxu2 %v8000_v24 }
 0x8e4   :  { %2795 = vmatpush.msrb.mxu2 %v8001_v55 }
 0x8e6   :  { %2908 = vmatpush.msra.mxu2 %v8002_v35  ;;  %v8012_v35 = vld [vmem:[#allocation71_spill] sm:$0xff] }
 0x8e8   :  { %2909 = vmatpush.msra.mxu2 %v8005_v57  ;;  %v2295_v42 = vpop.f32.mrf.mxu2  ;;  %v2315_v39 = vpop.f32.mrf.mxu3  ;;  %v8011_v57 = vld [vmem:[#allocation73_spill] sm:$0xff] }
 0x8e9   :  { %v2338_v13 = vadd.f32 %v2295_v42, %v2275_v4  ;;  %v2358_v21 = vadd.f32 %v2315_v39, %v2276_v3  ;;  %v8015_v42 = vld [vmem:[#allocation118_spill] sm:$0xff] }
 0x8ea   :  { %2910 = vmatpush.msra.mxu2 %v8006_v16 }
 0x8eb   :  { %v3254_v17 = vmul.f32 -1.442695, %v2338_v13  ;;  %v3255_v24 = vmul.f32 -1.442695, %v2358_v21  ;;  %v8013_v21 = vld [vmem:[#allocation76_spill] sm:$0xff] }
 0x8ec   :  { %2911 = vmatpush.msra.mxu2 %v8007_v50  ;;  %v2272_v50 = vpop.f32.mrf.mxu1 }
 0x8ed   :  { %3396 = vpow2.f32 %v3254_v17  ;;  %v8014_v17 = vld [vmem:[#allocation117_spill] sm:$0xff] }
 0x8ee   :  { %2912 = vmatpush.msra.mxu2 %v8008_v31  ;;  %3398 = vpow2.f32 %v3255_v24 }
 0x8f0   :  { %2913 = vmatpush.msra.mxu2 %v8009_v22 }
 0x8f2   :  { %2914 = vmatpush.msra.mxu2 %v8010_v49 }
 0x8f3   :  { %v3397_v23 = vpop.eup %3396 }
 0x8f4   :  { %2915 = vmatpush.msra.mxu2 %v8011_v57  ;;  %v3399_v53 = vpop.eup %3398  ;;  %v2342_v55 = vadd.f32 1.0, %v3397_v23 }
 0x8f5   :  { %v2362_v39 = vadd.f32 1.0, %v3399_v53  ;;  %v2273_v53 = vadd.f32 %v2272_v50, %v2212_v54 }
 0x8f6   :  { %2916 = vmatpush.msra.mxu2 %v8012_v35  ;;  %3400 = vrcp.f32 %v2342_v55  ;;  %v2354_v31 = vand.u32 2147483648, %v2342_v55  ;;  %v2352_v23 = vand.u32 2147483647, %v2342_v55  ;;  %vm2348_vm1 = vweird.f32 %v2342_v55 }
 0x8f7   :  { %3402 = vrcp.f32 %v2362_v39  ;;  %vm2368_vm5 = vweird.f32 %v2362_v39 }
 0x8f8   :  { %2917 = vmatpush.msra.mxu2 %v8013_v21  ;;  %v2355_v21 = vor.u32 1.1754944e-38, %v2354_v31  ;;  %vm2353_vm3 = vcmp.eq.f32.partialorder %v2352_v23, 8.507059e+37 }
 0x8fa   :  { %2918 = vmatpush.msra.mxu2 %v6351_v40  ;;  %v2335_v40 = vpop.f32.mrf.mxu0 }
 0x8fc   :  { %2919 = vmatpush.msra.mxu2 %v8014_v17  ;;  %v3401_v13 = vpop.eup %3400  ;;  %v2378_v17 = vadd.f32 %v6359_v9, %v2335_v40 }
 0x8fd   :  { %v3403_v4 = vpop.eup %3402  ;;  %v2344_v3 = vmul.f32 %v3401_v13, %v2342_v55  ;;  %vm2349_vm0 = vweird.f32 %v3401_v13 }
 0x8fe   :  { %2920 = vmatpush.msra.mxu2 %v8015_v42  ;;  %v2364_v16 = vmul.f32 %v3403_v4, %v2362_v39  ;;  %vm2350_vm2 = vmor %vm2348_vm1, %vm2349_vm0  ;;  %vm2369_vm4 = vweird.f32 %v3403_v4 }
 0x8ff   :  { %v2345_v24 = vsub.f32 1.0, %v2344_v3  ;;  %vm2370_vm6 = vmor %vm2368_vm5, %vm2369_vm4 }
 0x900   :  { %2921 = vmatpush.msra.mxu2 %v6183_v8  ;;  %v2365_v22 = vsub.f32 1.0, %v2364_v16  ;;  %v2277_v16 = vadd.f32 %v2273_v53, %v5573_v36  ;;  %v6704_v53 = vld [vmem:[#allocation2 + $0x148] sm:$0xff] }
 0x901   :  { %v2346_v49 = vmul.f32 %v3401_v13, %v2345_v24  ;;  %v2374_v24 = vand.u32 2147483648, %v2362_v39 }
 0x902   :  { %2922 = vmatpush.msra.mxu2 %v6187_v29  ;;  %v2366_v57 = vmul.f32 %v3403_v4, %v2365_v22  ;;  %v2372_v22 = vand.u32 2147483647, %v2362_v39  ;;  %v6690_v39 = vld [vmem:[#allocation2 + $0x178] sm:$0xff] }
 0x903   :  { %v2347_v35 = vadd.f32 %v3401_v13, %v2346_v49  ;;  %v2375_v50 = vor.u32 1.1754944e-38, %v2374_v24  ;;  %v6738_v24 = vld [vmem:[#allocation2 + $0xd0] sm:$0xff] }
 0x904   :  { %2923 = vmatpush.msra.mxu2 %v6190_v46  ;;  %v2367_v42 = vadd.f32 %v3403_v4, %v2366_v57  ;;  %vm2373_vm7 = vcmp.eq.f32.partialorder %v2372_v22, 8.507059e+37  ;;  %v6697_v57 = vld [vmem:[#allocation2 + $0x160] sm:$0xff]  ;;  %v6745_v22 = vld [vmem:[#allocation2 + $0xb8] sm:$0xff] }
 0x905   :  { %v2351_v8 = vsel %vm2350_vm2, %v3401_v13, %v2347_v35  ;;  %v6707_v35 = vld [vmem:[#allocation6 + $0x138] sm:$0xff] }
 0x906   :  { %v2356_v3 = vsel %vm2353_vm3, %v2355_v21, %v2351_v8  ;;  %v2371_v55 = vsel %vm2370_vm6, %v3403_v4, %v2367_v42  ;;  %v6693_v4 = vld [vmem:[#allocation6 + $0x168] sm:$0xff]  ;;  %v6711_v21 = vld [vmem:[#allocation2 + $0x130] sm:$0xff]  ;;  %v6720_v8 = vld [vmem:[#allocation6 + $0x120] sm:$0xff] }
 0x907   :  { %v2379_v29 = vmul.f32 %v2378_v17, %v2356_v3  ;;  %v2376_v46 = vsel %vm2373_vm7, %v2375_v50, %v2371_v55  ;;  %v6717_v17 = vld [vmem:[#allocation2 + $0x118] sm:$0xff]  ;;  %v6724_v3 = vld [vmem:[#allocation2 + $0x100] sm:$0xff]  ;;  %v6727_v42 = vld [vmem:[#allocation6 + $0x108] sm:$0xff] }
 0x908   :  { %v2382_v31 = vsub.f32 1.0, %v2376_v46  ;;  %v2384_v23 = vmul.f32 %v2376_v46, %v6367_v26  ;;  %v6700_v26 = vld [vmem:[#allocation6 + $0x150] sm:$0xff]  ;;  %v6752_v55 = vld [vmem:[#allocation2 + $0xa0] sm:$0xff]  ;;  %v6755_v50 = vld [vmem:[#allocation6 + $0xa8] sm:$0xff] }
 0x909   :  { %v2380_v54 = vadd.f32 %v2379_v29, %v2277_v16  ;;  %v6734_v16 = vld [vmem:[#allocation6 + $0xf0] sm:$0xff]  ;;  %v6741_v29 = vld [vmem:[#allocation6 + $0xd8] sm:$0xff]  ;;  %v6759_v46 = vld [vmem:[#allocation2 + $0x88] sm:$0xff] }
 0x90a   :  { %8016 = vst [vmem:[#allocation33_spill] sm:$0xff] %v6759_v46 }
 0x90b   :  { %3404 = vtanh.f32 %v2380_v54  ;;  %v6748_v54 = vld [vmem:[#allocation6 + $0xc0] sm:$0xff] }
 0x911   :  { %v3405_v49 = vpop.eup %3404 }
 0x912   :  { %v2383_v13 = vmul.f32 %v3405_v49, %v2382_v31  ;;  %v6762_v31 = vld [vmem:[#allocation6 + $0x90] sm:$0xff] }
 0x913   :  { %v6766_v49 = vld [vmem:[#allocation2 + $0x70] sm:$0xff] }
 0x914   :  { %v6685_v40 = vadd.f32 %v2384_v23, %v2383_v13  ;;  %8017 = vst [vmem:[#allocation23_spill] sm:$0xff] %v6766_v49  ;;  %v6769_v13 = vld [vmem:[#allocation6 + $0x78] sm:$0xff] }
 0x915   :  { %v6773_v23 = vld [vmem:[#allocation2 + $0x58] sm:$0xff] }
 0x916   :  { %2525 = vmatmul.f32.vlgmr.msra.gmra.mxu3 %v6685_v40  ;;  %2545 = vmatmul.f32.vlgmr.msrb.gmra.mxu0 %v6685_v40  ;;  %8018 = vst [vmem:[#allocation35_spill] sm:$0xff] %v6773_v23 }
 0x917   :  { %2565 = vmatmul.f32.vlgmr.msrb.gmra.mxu1 %v6685_v40  ;;  %2717 = vmatpush.msra.mxu3 %v6690_v39 }
 0x918   :  { %2740 = vmatpush.msrb.mxu0 %v6693_v4  ;;  %2760 = vmatpush.msrb.mxu1 %v6374_v27 }
 0x919   :  { %2718 = vmatpush.msra.mxu3 %v6697_v57 }
 0x91a   :  { %2741 = vmatpush.msrb.mxu0 %v6700_v26  ;;  %2761 = vmatpush.msrb.mxu1 %v6379_v60 }
 0x91b   :  { %2719 = vmatpush.msra.mxu3 %v6704_v53 }
 0x91c   :  { %2742 = vmatpush.msrb.mxu0 %v6707_v35  ;;  %2762 = vmatpush.msrb.mxu1 %v6384_v52 }
 0x91d   :  { %2720 = vmatpush.msra.mxu3 %v6711_v21 }
 0x91e   :  { %2653 = vmatmul.f32.vlgmr.msrb.gmra.mxu3 %v7969_v34  ;;  %2673 = vmatmul.f32.vlgmr.msra.gmra.mxu0 %v7969_v34  ;;  %v6731_v34 = vld [vmem:[#allocation2 + $0xe8] sm:$0xff] }
 0x91f   :  { %2693 = vmatmul.f32.vlgmr.msra.gmra.mxu1 %v7989_v15  ;;  %2721 = vmatpush.msra.mxu3 %v6717_v17 }
 0x920   :  { %2743 = vmatpush.msrb.mxu0 %v6720_v8  ;;  %2763 = vmatpush.msrb.mxu1 %v6393_v6 }
 0x921   :  { %2722 = vmatpush.msra.mxu3 %v6724_v3 }
 0x922   :  { %2744 = vmatpush.msrb.mxu0 %v6727_v42  ;;  %2764 = vmatpush.msrb.mxu1 %v6398_v45 }
 0x923   :  { %2723 = vmatpush.msra.mxu3 %v6731_v34 }
 0x924   :  { %2745 = vmatpush.msrb.mxu0 %v6734_v16  ;;  %2765 = vmatpush.msrb.mxu1 %v6403_v28 }
 0x925   :  { %2724 = vmatpush.msra.mxu3 %v6738_v24 }
 0x926   :  { %2746 = vmatpush.msrb.mxu0 %v6741_v29  ;;  %2766 = vmatpush.msrb.mxu1 %v6408_v32 }
 0x927   :  { %2725 = vmatpush.msra.mxu3 %v6745_v22 }
 0x928   :  { %2747 = vmatpush.msrb.mxu0 %v6748_v54  ;;  %2767 = vmatpush.msrb.mxu1 %v6413_v44 }
 0x929   :  { %2726 = vmatpush.msra.mxu3 %v6752_v55 }
 0x92a   :  { %2748 = vmatpush.msrb.mxu0 %v6755_v50  ;;  %2768 = vmatpush.msrb.mxu1 %v6418_v30 }
 0x92b   :  { %2727 = vmatpush.msra.mxu3 %v6759_v46  ;;  %v6776_v46 = vld [vmem:[#allocation6 + $0x60] sm:$0xff] }
 0x92c   :  { %2749 = vmatpush.msrb.mxu0 %v6762_v31  ;;  %2769 = vmatpush.msrb.mxu1 %v6423_v2  ;;  %v6780_v2 = vld [vmem:[#allocation2 + $0x40] sm:$0xff] }
 0x92d   :  { %2728 = vmatpush.msra.mxu3 %v6766_v49  ;;  %8019 = vst [vmem:[#allocation37_spill] sm:$0xff] %v6780_v2  ;;  %v6783_v49 = vld [vmem:[#allocation6 + $0x48] sm:$0xff] }
 0x92e   :  { %2750 = vmatpush.msrb.mxu0 %v6769_v13  ;;  %2770 = vmatpush.msrb.mxu1 %v6428_v33  ;;  %v6787_v33 = vld [vmem:[#allocation2 + $0x28] sm:$0xff] }
 0x92f   :  { %2729 = vmatpush.msra.mxu3 %v6773_v23  ;;  %8020 = vst [vmem:[#allocation39_spill] sm:$0xff] %v6787_v33  ;;  %v6790_v23 = vld [vmem:[#allocation6 + $0x30] sm:$0xff] }
 0x930   :  { %2751 = vmatpush.msrb.mxu0 %v6776_v46  ;;  %2771 = vmatpush.msrb.mxu1 %v6433_v11  ;;  %v6794_v11 = vld [vmem:[#allocation2 + $0x10] sm:$0xff] }
 0x931   :  { %2730 = vmatpush.msra.mxu3 %v6780_v2  ;;  %v6798_v2 = vld [vmem:[#allocation6 + $0x18] sm:$0xff] }
 0x932   :  { %2752 = vmatpush.msrb.mxu0 %v6783_v49  ;;  %2772 = vmatpush.msrb.mxu1 %v6438_v7  ;;  %8021 = vst [vmem:[#allocation41_spill] sm:$0xff] %v6798_v2 }
 0x933   :  { %2731 = vmatpush.msra.mxu3 %v6787_v33  ;;  %v6803_v33 = vld [vmem:[#allocation6] sm:$0xff] }
 0x934   :  { %2753 = vmatpush.msrb.mxu0 %v6790_v23  ;;  %2773 = vmatpush.msrb.mxu1 %v6443_v56  ;;  %8022 = vst [vmem:[#allocation43_spill] sm:$0xff] %v6803_v33 }
 0x935   :  { %2732 = vmatpush.msra.mxu3 %v6794_v11 }
 0x936   :  { %2733 = vmatmul.f32.vlgmr.msra.gmra.mxu3 %v7989_v15  ;;  %2754 = vmatpush.msrb.mxu0 %v6798_v2  ;;  %v8041_v15 = vld [vmem:[#allocation95_spill] sm:$0xff] }
 0x937   :  { %2848 = vmatpush.msrb.mxu3 %v6449_v59  ;;  %2774 = vmatpush.msrb.mxu1 %v6452_v0  ;;  %v8023_v59 = vld [vmem:[#allocation74_spill] sm:$0xff] }
 0x938   :  { %2755 = vmatpush.msrb.mxu0 %v6803_v33 }
 0x939   :  { %2849 = vmatpush.msrb.mxu3 %v6456_v20  ;;  %2775 = vmatpush.msrb.mxu1 %v6462_v19  ;;  %v8024_v20 = vld [vmem:[#allocation87_spill] sm:$0xff] }
 0x93a   :  { %2868 = vmatpush.msra.mxu0 %v6459_v61  ;;  %v8025_v61 = vld [vmem:[#allocation75_spill] sm:$0xff] }
 0x93b   :  { %2850 = vmatpush.msrb.mxu3 %v6465_v14  ;;  %2888 = vmatpush.msra.mxu1 %v6471_v18  ;;  %v8026_v14 = vld [vmem:[#allocation20_spill] sm:$0xff]  ;;  %v8028_v18 = vld [vmem:[#allocation78_spill] sm:$0xff] }
 0x93c   :  { %2869 = vmatpush.msra.mxu0 %v6468_v58  ;;  %v8027_v58 = vld [vmem:[#allocation77_spill] sm:$0xff] }
 0x93d   :  { %2851 = vmatpush.msrb.mxu3 %v6474_v37  ;;  %2889 = vmatpush.msra.mxu1 %v6480_v62  ;;  %v8029_v37 = vld [vmem:[#allocation16_spill] sm:$0xff]  ;;  %v8031_v62 = vld [vmem:[#allocation81_spill] sm:$0xff] }
 0x93e   :  { %2870 = vmatpush.msra.mxu0 %v6477_v43  ;;  %v8030_v43 = vld [vmem:[#allocation80_spill] sm:$0xff] }
 0x93f   :  { %2852 = vmatpush.msrb.mxu3 %v6483_v41  ;;  %2890 = vmatpush.msra.mxu1 %v6489_v25  ;;  %v8032_v41 = vld [vmem:[#allocation17_spill] sm:$0xff]  ;;  %v8034_v25 = vld [vmem:[#allocation24_spill] sm:$0xff] }
 0x940   :  { %2871 = vmatpush.msra.mxu0 %v6486_v1  ;;  %v8033_v1 = vld [vmem:[#allocation83_spill] sm:$0xff] }
 0x941   :  { %2853 = vmatpush.msrb.mxu3 %v6492_v38  ;;  %2891 = vmatpush.msra.mxu1 %v6498_v48  ;;  %v8035_v38 = vld [vmem:[#allocation86_spill] sm:$0xff]  ;;  %v8037_v48 = vld [vmem:[#allocation89_spill] sm:$0xff] }
 0x942   :  { %2872 = vmatpush.msra.mxu0 %v6495_v63  ;;  %v8036_v63 = vld [vmem:[#allocation25_spill] sm:$0xff] }
 0x943   :  { %2854 = vmatpush.msrb.mxu3 %v6501_v5  ;;  %2892 = vmatpush.msra.mxu1 %v6507_v12  ;;  %v8038_v5 = vld [vmem:[#allocation26_spill] sm:$0xff]  ;;  %v8040_v12 = vld [vmem:[#allocation27_spill] sm:$0xff] }
 0x944   :  { %2873 = vmatpush.msra.mxu0 %v6504_v10  ;;  %v8039_v10 = vld [vmem:[#allocation92_spill] sm:$0xff] }
 0x945   :  { %2855 = vmatpush.msrb.mxu3 %v8023_v59  ;;  %2893 = vmatpush.msra.mxu1 %v8025_v61  ;;  %v8042_v59 = vld [vmem:[#allocation96_spill] sm:$0xff]  ;;  %v8044_v61 = vld [vmem:[#allocation98_spill] sm:$0xff] }
 0x946   :  { %2874 = vmatpush.msra.mxu0 %v8024_v20  ;;  %v8043_v20 = vld [vmem:[#allocation28_spill] sm:$0xff] }
 0x947   :  { %2856 = vmatpush.msrb.mxu3 %v8026_v14  ;;  %2894 = vmatpush.msra.mxu1 %v8028_v18  ;;  %v8045_v14 = vld [vmem:[#allocation99_spill] sm:$0xff]  ;;  %v8047_v18 = vld [vmem:[#allocation101_spill] sm:$0xff] }
 0x948   :  { %2875 = vmatpush.msra.mxu0 %v8027_v58  ;;  %v8046_v58 = vld [vmem:[#allocation29_spill] sm:$0xff] }
 0x949   :  { %2857 = vmatpush.msrb.mxu3 %v8029_v37  ;;  %2895 = vmatpush.msra.mxu1 %v8031_v62  ;;  %v8048_v37 = vld [vmem:[#allocation102_spill] sm:$0xff] }
 0x94a   :  { %2876 = vmatpush.msra.mxu0 %v8030_v43  ;;  %v8049_v43 = vld [vmem:[#allocation21_spill] sm:$0xff]  ;;  %v8050_v62 = vld [vmem:[#allocation30_spill] sm:$0xff] }
 0x94b   :  { %2858 = vmatpush.msrb.mxu3 %v8032_v41  ;;  %2896 = vmatpush.msra.mxu1 %v8034_v25  ;;  %v8051_v41 = vld [vmem:[#allocation104_spill] sm:$0xff] }
 0x94c   :  { %2877 = vmatpush.msra.mxu0 %v8033_v1  ;;  %v8052_v1 = vld [vmem:[#allocation105_spill] sm:$0xff]  ;;  %v8053_v25 = vld [vmem:[#allocation32_spill] sm:$0xff] }
 0x94d   :  { %2859 = vmatpush.msrb.mxu3 %v8035_v38  ;;  %2897 = vmatpush.msra.mxu1 %v8037_v48  ;;  %v8054_v38 = vld [vmem:[#allocation34_spill] sm:$0xff] }
 0x94e   :  { %2878 = vmatpush.msra.mxu0 %v8036_v63  ;;  %v8055_v63 = vld [vmem:[#allocation36_spill] sm:$0xff]  ;;  %v8056_v48 = vld [vmem:[#allocation38_spill] sm:$0xff] }
 0x94f   :  { %2860 = vmatpush.msrb.mxu3 %v8038_v5  ;;  %2898 = vmatpush.msra.mxu1 %v8040_v12  ;;  %v8057_v5 = vld [vmem:[#allocation40_spill] sm:$0xff] }
 0x950   :  { %2879 = vmatpush.msra.mxu0 %v8039_v10  ;;  %v8058_v10 = vld [vmem:[#allocation42_spill] sm:$0xff]  ;;  %v8059_v12 = vld [vmem:[#allocation44_spill] sm:$0xff] }
 0x951   :  { %2861 = vmatpush.msrb.mxu3 %v8041_v15  ;;  %2899 = vmatpush.msra.mxu1 %v8043_v20  ;;  %v8060_v15 = vld [vmem:[#allocation46_spill] sm:$0xff] }
 0x952   :  { %2880 = vmatpush.msra.mxu0 %v8042_v59  ;;  %v8061_v59 = vld [vmem:[#allocation48_spill] sm:$0xff]  ;;  %v8062_v20 = vld [vmem:[#allocation50_spill] sm:$0xff] }
 0x953   :  { %2862 = vmatpush.msrb.mxu3 %v8044_v61  ;;  %2900 = vmatpush.msra.mxu1 %v8046_v58  ;;  %v8063_v61 = vld [vmem:[#allocation52_spill] sm:$0xff] }
 0x954   :  { %2881 = vmatpush.msra.mxu0 %v8045_v14  ;;  %v8064_v14 = vld [vmem:[#allocation54_spill] sm:$0xff]  ;;  %v8065_v58 = vld [vmem:[#allocation56_spill] sm:$0xff] }
 0x955   :  { %2863 = vmatpush.msrb.mxu3 %v8047_v18  ;;  %2901 = vmatpush.msra.mxu1 %v8050_v62  ;;  %v8066_v18 = vld [vmem:[#allocation58_spill] sm:$0xff] }
 0x956   :  { %2882 = vmatpush.msra.mxu0 %v8048_v37  ;;  %2864 = vmatmul.f32.vlgmr.msrb.gmra.mxu3 %v8049_v43  ;;  %v8067_v37 = vld [vmem:[#allocation60_spill] sm:$0xff]  ;;  %v8068_v62 = vld [vmem:[#allocation62_spill] sm:$0xff] }
 0x957   :  { %2928 = vmatpush.msra.mxu3 %v8051_v41  ;;  %2902 = vmatpush.msra.mxu1 %v8053_v25  ;;  %v3763_v41 = vld [vmem:[#allocation2 + $0x8] sm:$0xff]  ;;  %v3764_v25 = vld [vmem:[#allocation6 + $0x178] sm:$0xff] }
 0x958   :  { %2883 = vmatpush.msra.mxu0 %v8052_v1  ;;  %v8069_v1 = vld [vmem:[#allocation107_spill] sm:$0xff] }
 0x959   :  { %2929 = vmatpush.msra.mxu3 %v8054_v38  ;;  %2903 = vmatpush.msra.mxu1 %v8055_v63  ;;  %v3765_v38 = vld [vmem:[#allocation6 + $0x160] sm:$0xff]  ;;  %v3766_v63 = vld [vmem:[#allocation6 + $0x148] sm:$0xff] }
 0x95b   :  { %2930 = vmatpush.msra.mxu3 %v8056_v48  ;;  %v3767_v48 = vld [vmem:[#allocation6 + $0x130] sm:$0xff] }
 0x95d   :  { %2931 = vmatpush.msra.mxu3 %v8057_v5  ;;  %v3768_v5 = vld [vmem:[#allocation6 + $0x118] sm:$0xff] }
 0x95f   :  { %2932 = vmatpush.msra.mxu3 %v8058_v10  ;;  %v3769_v10 = vld [vmem:[#allocation6 + $0x100] sm:$0xff] }
 0x961   :  { %2933 = vmatpush.msra.mxu3 %v8059_v12  ;;  %v3770_v12 = vld [vmem:[#allocation6 + $0xe8] sm:$0xff] }
 0x963   :  { %2934 = vmatpush.msra.mxu3 %v8060_v15  ;;  %v2403_v15 = vpop.f32.mrf.mxu1 }
 0x965   :  { %2935 = vmatpush.msra.mxu3 %v8061_v59  ;;  %v3771_v59 = vld [vmem:[#allocation6 + $0xd0] sm:$0xff] }
 0x967   :  { %2936 = vmatpush.msra.mxu3 %v8062_v20  ;;  %v3772_v20 = vld [vmem:[#allocation6 + $0xb8] sm:$0xff] }
 0x969   :  { %2937 = vmatpush.msra.mxu3 %v8063_v61  ;;  %v3773_v61 = vld [vmem:[#allocation6 + $0xa0] sm:$0xff] }
 0x96b   :  { %2938 = vmatpush.msra.mxu3 %v8064_v14  ;;  %v2463_v14 = vpop.f32.mrf.mxu0 }
 0x96d   :  { %2939 = vmatpush.msra.mxu3 %v8065_v58  ;;  %v2423_v58 = vpop.f32.mrf.mxu2 }
 0x96f   :  { %2940 = vmatpush.msra.mxu3 %v8066_v18  ;;  %v3774_v18 = vld [vmem:[#allocation6 + $0x88] sm:$0xff] }
 0x971   :  { %2941 = vmatpush.msra.mxu3 %v8067_v37  ;;  %v2483_v37 = vpop.f32.mrf.mxu1 }
 0x973   :  { %2942 = vmatpush.msra.mxu3 %v8068_v62  ;;  %v3775_v62 = vld [vmem:[#allocation6 + $0x70] sm:$0xff] }
 0x975   :  { %2943 = vmatpush.msra.mxu3 %v3763_v41  ;;  %v2484_v41 = vadd.f32 %v2483_v37, %v2423_v58 }
 0x976   :  { %2944 = vmatmul.f32.vlgmr.msra.gmra.mxu3 %v8069_v1 }
 0x977   :  { %3011 = vmatpush.msrb.mxu3 %v3764_v25  ;;  %v3776_v25 = vld [vmem:[#allocation6 + $0x58] sm:$0xff] }
 0x979   :  { %3012 = vmatpush.msrb.mxu3 %v3765_v38  ;;  %v2443_v38 = vpop.f32.mrf.mxu3 }
 0x97b   :  { %3013 = vmatpush.msrb.mxu3 %v3766_v63  ;;  %v3777_v63 = vld [vmem:[#allocation6 + $0x40] sm:$0xff] }
 0x97d   :  { %3014 = vmatpush.msrb.mxu3 %v3767_v48  ;;  %v2507_v48 = vadd.f32 %v2484_v41, %v8004_v51 }
 0x97f   :  { %3015 = vmatpush.msrb.mxu3 %v3768_v5 }
 0x981   :  { %3016 = vmatpush.msrb.mxu3 %v3769_v10  ;;  %v3778_v10 = vld [vmem:[#allocation6 + $0x28] sm:$0xff] }
 0x983   :  { %3017 = vmatpush.msrb.mxu3 %v3770_v12  ;;  %v2464_v12 = vadd.f32 %v2463_v14, %v2403_v15 }
 0x985   :  { %3018 = vmatpush.msrb.mxu3 %v3771_v59 }
 0x987   :  { %3019 = vmatpush.msrb.mxu3 %v3772_v20  ;;  %v3779_v20 = vld [vmem:[#allocation6 + $0x10] sm:$0xff] }
 0x989   :  { %3020 = vmatpush.msrb.mxu3 %v3773_v61 }
 0x98b   :  { %3021 = vmatpush.msrb.mxu3 %v3774_v18  ;;  %v2506_v18 = vadd.f32 %v2464_v12, %v8003_v47 }
 0x98d   :  { %3022 = vmatpush.msrb.mxu3 %v3775_v62 }
 0x98f   :  { %3023 = vmatpush.msrb.mxu3 %v3776_v25 }
 0x991   :  { %3024 = vmatpush.msrb.mxu3 %v3777_v63 }
 0x993   :  { %v2546_v5 = vpop.f32.mrf.mxu0  ;;  %3025 = vmatpush.msrb.mxu3 %v3778_v10 }
 0x994   :  { %v2589_v59 = vadd.f32 %v2546_v5, %v2507_v48 }
 0x995   :  { %3026 = vmatpush.msrb.mxu3 %v3779_v20 }
 0x996   :  { %v3257_v61 = vmul.f32 -1.442695, %v2589_v59  ;;  %v2503_v59 = vpop.f32.mrf.mxu2 }
 0x998   :  { %3406 = vpow2.f32 %v3257_v61 }
 0x999   :  { %v2526_v62 = vpop.f32.mrf.mxu3 }
 0x99a   :  { %v2569_v58 = vadd.f32 %v2526_v62, %v2506_v18  ;;  %v2566_v62 = vpop.f32.mrf.mxu1 }
 0x99c   :  { %v3256_v37 = vmul.f32 -1.442695, %v2569_v58  ;;  %v2504_v58 = vadd.f32 %v2503_v59, %v2443_v38 }
 0x99e   :  { %v3407_v25 = vpop.eup %3406  ;;  %3408 = vpow2.f32 %v3256_v37 }
 0x99f   :  { %v2593_v19 = vadd.f32 1.0, %v3407_v25 }
 0x9a1   :  { %3410 = vrcp.f32 %v2593_v19  ;;  %vm2599_vm13 = vweird.f32 %v2593_v19  ;;  %v2603_v2 = vand.u32 2147483647, %v2593_v19 }
 0x9a3   :  { %vm2604_vm15 = vcmp.eq.f32.partialorder %v2603_v2, 8.507059e+37  ;;  %v3093_v2 = vld [vmem:[#allocation7 + $0x70] sm:$0xff] }
 0x9a4   :  { %v3409_v63 = vpop.eup %3408 }
 0x9a5   :  { %v2573_v41 = vadd.f32 1.0, %v3409_v63  ;;  %v2609_v63 = vadd.f32 %v6359_v9, %v2566_v62 }
 0x9a7   :  { %3412 = vrcp.f32 %v2573_v41  ;;  %v3411_v51 = vpop.eup %3410  ;;  %v2585_v20 = vand.u32 2147483648, %v2573_v41  ;;  %v2583_v12 = vand.u32 2147483647, %v2573_v41  ;;  %vm2579_vm9 = vweird.f32 %v2573_v41 }
 0x9a8   :  { %v2595_v10 = vmul.f32 %v3411_v51, %v2593_v19  ;;  %vm2600_vm12 = vweird.f32 %v3411_v51 }
 0x9a9   :  { %v2586_v25 = vor.u32 1.1754944e-38, %v2585_v20  ;;  %vm2584_vm11 = vcmp.eq.f32.partialorder %v2583_v12, 8.507059e+37  ;;  %vm2601_vm14 = vmor %vm2599_vm13, %vm2600_vm12 }
 0x9aa   :  { %v2596_v48 = vsub.f32 1.0, %v2595_v10  ;;  %v2508_v10 = vadd.f32 %v2504_v58, %v5573_v36 }
 0x9ac   :  { %v2597_v18 = vmul.f32 %v3411_v51, %v2596_v48 }
 0x9ad   :  { %v3413_v15 = vpop.eup %3412 }
 0x9ae   :  { %v2575_v14 = vmul.f32 %v3413_v15, %v2573_v41  ;;  %vm2580_vm8 = vweird.f32 %v3413_v15  ;;  %v2598_v0 = vadd.f32 %v3411_v51, %v2597_v18 }
 0x9af   :  { %vm2581_vm10 = vmor %vm2579_vm9, %vm2580_vm8 }
 0x9b0   :  { %v2576_v5 = vsub.f32 1.0, %v2575_v14  ;;  %v2605_v14 = vand.u32 2147483648, %v2593_v19  ;;  %v2602_v38 = vsel %vm2601_vm14, %v3411_v51, %v2598_v0  ;;  %v8079_v0 = vld [vmem:[#allocation82_spill] sm:$0xff]  ;;  %v3092_v19 = vld [vmem:[#allocation7 + $0x68] sm:$0xff]  ;;  %v8080_v51 = vld [vmem:[#allocation43_spill] sm:$0xff] }
 0x9b2   :  { %v2577_v61 = vmul.f32 %v3413_v15, %v2576_v5  ;;  %v2606_v59 = vor.u32 1.1754944e-38, %v2605_v14 }
 0x9b4   :  { %v2578_v37 = vadd.f32 %v3413_v15, %v2577_v61  ;;  %v2607_v41 = vsel %vm2604_vm15, %v2606_v59, %v2602_v38 }
 0x9b5   :  { %v2613_v20 = vsub.f32 1.0, %v2607_v41 }
 0x9b6   :  { %v2582_v47 = vsel %vm2581_vm10, %v3413_v15, %v2578_v37 }
 0x9b7   :  { %v2587_v33 = vsel %vm2584_vm11, %v2586_v25, %v2582_v47  ;;  %v2615_v47 = vmul.f32 %v2607_v41, %v6685_v40  ;;  %v3091_v40 = vld [vmem:[#allocation7 + $0x60] sm:$0xff] }
 0x9b8   :  { %v2610_v5 = vmul.f32 %v2609_v63, %v2587_v33  ;;  %v8078_v33 = vld [vmem:[#allocation41_spill] sm:$0xff] }
 0x9ba   :  { %v2611_v48 = vadd.f32 %v2610_v5, %v2508_v10 }
 0x9bc   :  { %3414 = vtanh.f32 %v2611_v48 }
 0x9c2   :  { %v3415_v9 = vpop.eup %3414 }
 0x9c3   :  { %v2614_v15 = vmul.f32 %v3415_v9, %v2613_v20 }
 0x9c5   :  { %v6876_v61 = vadd.f32 %v2615_v47, %v2614_v15 }
 0x9c7   :  { %2756 = vmatmul.f32.vlgmr.msrb.gmra.mxu0 %v6876_v61  ;;  %2776 = vmatmul.f32.vlgmr.msrb.gmra.mxu1 %v6876_v61 }
 0x9c8   :  { %2796 = vmatmul.f32.vlgmr.msrb.gmra.mxu2 %v6876_v61  ;;  %2948 = vmatpush.msrb.mxu0 %v6690_v39  ;;  %v3090_v39 = vld [vmem:[#allocation7 + $0x58] sm:$0xff] }
 0x9c9   :  { %2971 = vmatpush.msrb.mxu1 %v6693_v4  ;;  %2991 = vmatpush.msrb.mxu2 %v6374_v27  ;;  %v8070_v27 = vld [vmem:[#allocation33_spill] sm:$0xff]  ;;  %v3087_v4 = vld [vmem:[#allocation7 + $0x40] sm:$0xff] }
 0x9ca   :  { %2949 = vmatpush.msrb.mxu0 %v6697_v57  ;;  %v3086_v57 = vld [vmem:[#allocation7 + $0x38] sm:$0xff] }
 0x9cb   :  { %2972 = vmatpush.msrb.mxu1 %v6700_v26  ;;  %2992 = vmatpush.msrb.mxu2 %v6379_v60  ;;  %v8071_v60 = vld [vmem:[#allocation72_spill] sm:$0xff]  ;;  %v3085_v26 = vld [vmem:[#allocation7 + $0x30] sm:$0xff] }
 0x9cc   :  { %2950 = vmatpush.msrb.mxu0 %v6704_v53  ;;  %v3084_v53 = vld [vmem:[#allocation7 + $0x28] sm:$0xff] }
 0x9cd   :  { %2973 = vmatpush.msrb.mxu1 %v6707_v35  ;;  %2993 = vmatpush.msrb.mxu2 %v6384_v52  ;;  %v8072_v52 = vld [vmem:[#allocation23_spill] sm:$0xff]  ;;  %v3083_v35 = vld [vmem:[#allocation7 + $0x20] sm:$0xff] }
 0x9ce   :  { %2951 = vmatpush.msrb.mxu0 %v6711_v21  ;;  %v3082_v21 = vld [vmem:[#allocation7 + $0x18] sm:$0xff] }
 0x9cf   :  { %2884 = vmatmul.f32.vlgmr.msra.gmra.mxu0 %v8049_v43  ;;  %2904 = vmatmul.f32.vlgmr.msra.gmra.mxu1 %v8049_v43 }
 0x9d0   :  { %2924 = vmatmul.f32.vlgmr.msra.gmra.mxu2 %v8069_v1  ;;  %2952 = vmatpush.msrb.mxu0 %v6717_v17  ;;  %v3081_v17 = vld [vmem:[#allocation7 + $0x10] sm:$0xff] }
 0x9d1   :  { %2974 = vmatpush.msrb.mxu1 %v6720_v8  ;;  %2994 = vmatpush.msrb.mxu2 %v6393_v6  ;;  %v8073_v6 = vld [vmem:[#allocation79_spill] sm:$0xff]  ;;  %v3080_v8 = vld [vmem:[#allocation7 + $0x8] sm:$0xff] }
 0x9d2   :  { %2953 = vmatpush.msrb.mxu0 %v6724_v3  ;;  %v3079_v3 = vld [vmem:[#allocation7] sm:$0xff] }
 0x9d3   :  { %2975 = vmatpush.msrb.mxu1 %v6727_v42  ;;  %2995 = vmatpush.msrb.mxu2 %v6398_v45  ;;  %v8074_v45 = vld [vmem:[#allocation35_spill] sm:$0xff]  ;;  %v2634_v42 = vpop.f32.mrf.mxu2 }
 0x9d4   :  { %2954 = vmatpush.msrb.mxu0 %v6731_v34  ;;  %v2674_v34 = vpop.f32.mrf.mxu0 }
 0x9d5   :  { %2976 = vmatpush.msrb.mxu1 %v6734_v16  ;;  %2996 = vmatpush.msrb.mxu2 %v6403_v28  ;;  %v8075_v28 = vld [vmem:[#allocation84_spill] sm:$0xff]  ;;  %v2694_v16 = vpop.f32.mrf.mxu1 }
 0x9d6   :  { %2955 = vmatpush.msrb.mxu0 %v6738_v24  ;;  %v2654_v24 = vpop.f32.mrf.mxu3 }
 0x9d7   :  { %2977 = vmatpush.msrb.mxu1 %v6741_v29  ;;  %2997 = vmatpush.msrb.mxu2 %v6408_v32  ;;  %v8076_v32 = vld [vmem:[#allocation37_spill] sm:$0xff] }
 0x9d8   :  { %2956 = vmatpush.msrb.mxu0 %v6745_v22  ;;  %v2695_v22 = vadd.f32 %v2694_v16, %v2634_v42  ;;  %v3105_v42 = vld [vmem:[#allocation7 + $0xd0] sm:$0xff] }
 0x9d9   :  { %2978 = vmatpush.msrb.mxu1 %v6748_v54  ;;  %2998 = vmatpush.msrb.mxu2 %v6413_v44  ;;  %v8077_v44 = vld [vmem:[#allocation39_spill] sm:$0xff] }
 0x9da   :  { %2957 = vmatpush.msrb.mxu0 %v6752_v55  ;;  %v8082_v55 = vld [vmem:[#allocation14_spill] sm:$0xff] }
 0x9db   :  { %2979 = vmatpush.msrb.mxu1 %v6755_v50  ;;  %2999 = vmatpush.msrb.mxu2 %v6418_v30  ;;  %v3094_v30 = vld [vmem:[#allocation7 + $0x78] sm:$0xff]  ;;  %v2714_v29 = vpop.f32.mrf.mxu2  ;;  %v2737_v50 = vadd.f32 %v2695_v22, %v8082_v55 }
 0x9dc   :  { %2958 = vmatpush.msrb.mxu0 %v8070_v27  ;;  %v2715_v54 = vadd.f32 %v2714_v29, %v2654_v24  ;;  %v3104_v24 = vld [vmem:[#allocation7 + $0xc8] sm:$0xff] }
 0x9dd   :  { %2980 = vmatpush.msrb.mxu1 %v6762_v31  ;;  %3000 = vmatpush.msrb.mxu2 %v8071_v60 }
 0x9de   :  { %2959 = vmatpush.msrb.mxu0 %v8072_v52  ;;  %v2734_v48 = vpop.f32.mrf.mxu3 }
 0x9df   :  { %2981 = vmatpush.msrb.mxu1 %v6769_v13  ;;  %3001 = vmatpush.msrb.mxu2 %v8073_v6  ;;  %v2735_v47 = vadd.f32 %v2734_v48, %v2674_v34  ;;  %v6939_v6 = vld [vmem:[%s7021_s7] ss:$0 sm:$0xff]  ;;  %v3169_v48 = vld [vmem:[%s7024_s10 + $0x68] sm:$0xff] }
 0x9e0   :  { %2960 = vmatpush.msrb.mxu0 %v8074_v45 }
 0x9e1   :  { %2982 = vmatpush.msrb.mxu1 %v6776_v46  ;;  %3002 = vmatpush.msrb.mxu2 %v8075_v28  ;;  %v8083_v46 = vld [vmem:[#allocation69_spill] sm:$0xff] }
 0x9e2   :  { %2961 = vmatpush.msrb.mxu0 %v8076_v32  ;;  %v2738_v31 = vadd.f32 %v2715_v54, %v8083_v46 }
 0x9e3   :  { %2983 = vmatpush.msrb.mxu1 %v6783_v49  ;;  %3003 = vmatpush.msrb.mxu2 %v6438_v7  ;;  %v8081_v7 = vld [vmem:[#allocation15_spill] sm:$0xff] }
 0x9e4   :  { %2962 = vmatpush.msrb.mxu0 %v8077_v44  ;;  %v2739_v44 = vadd.f32 %v2735_v47, %v5573_v36  ;;  %v3166_v47 = vld [vmem:[%s7024_s10 + $0x50] sm:$0xff] }
 0x9e5   :  { %2984 = vmatpush.msrb.mxu1 %v6790_v23  ;;  %3004 = vmatpush.msrb.mxu2 %v6443_v56  ;;  %v3089_v56 = vld [vmem:[#allocation7 + $0x50] sm:$0xff] }
 0x9e6   :  { %2963 = vmatpush.msrb.mxu0 %v6794_v11  ;;  %v3088_v11 = vld [vmem:[#allocation7 + $0x48] sm:$0xff] }
 0x9e7   :  { %2964 = vmatmul.f32.vlgmr.msrb.gmra.mxu0 %v8069_v1  ;;  %2985 = vmatpush.msrb.mxu1 %v8078_v33 }
 0x9e8   :  { %3115 = vmatpush.msra.mxu0 %v3094_v30  ;;  %3005 = vmatpush.msrb.mxu2 %v8079_v0 }
 0x9e9   :  { %2986 = vmatpush.msrb.mxu1 %v8080_v51 }
 0x9ea   :  { %3116 = vmatpush.msra.mxu0 %v3093_v2  ;;  %3006 = vmatpush.msrb.mxu2 %v8081_v7 }
 0x9ec   :  { %3117 = vmatpush.msra.mxu0 %v3092_v19 }
 0x9ee   :  { %3118 = vmatpush.msra.mxu0 %v3091_v40 }
 0x9f0   :  { %3119 = vmatpush.msra.mxu0 %v3090_v39 }
 0x9f2   :  { %3120 = vmatpush.msra.mxu0 %v3089_v56 }
 0x9f4   :  { %3121 = vmatpush.msra.mxu0 %v3088_v11 }
 0x9f6   :  { %3122 = vmatpush.msra.mxu0 %v3087_v4 }
 0x9f8   :  { %3123 = vmatpush.msra.mxu0 %v3086_v57  ;;  %v3110_v57 = vld [vmem:[#allocation7 + $0xf8] sm:$0xff] }
 0x9f9   :  { %3135 = vmatpush.msra.mxu1 %v3110_v57 }
 0x9fa   :  { %3124 = vmatpush.msra.mxu0 %v3085_v26  ;;  %v3109_v26 = vld [vmem:[#allocation7 + $0xf0] sm:$0xff] }
 0x9fb   :  { %3136 = vmatpush.msra.mxu1 %v3109_v26  ;;  %v3162_v26 = vld [vmem:[%s7024_s10 + $0x30] sm:$0xff] }
 0x9fc   :  { %3125 = vmatpush.msra.mxu0 %v3084_v53  ;;  %v2865_v53 = vpop.f32.mrf.mxu3 }
 0x9fe   :  { %3126 = vmatpush.msra.mxu0 %v3083_v35  ;;  %v3108_v35 = vld [vmem:[#allocation7 + $0xe8] sm:$0xff] }
 0x9ff   :  { %3137 = vmatpush.msra.mxu1 %v3108_v35 }
 0xa00   :  { %3127 = vmatpush.msra.mxu0 %v3082_v21 }
 0xa02   :  { %3128 = vmatpush.msra.mxu0 %v3081_v17 }
 0xa04   :  { %3129 = vmatpush.msra.mxu0 %v3080_v8  ;;  %v3107_v8 = vld [vmem:[#allocation7 + $0xe0] sm:$0xff]  ;;  %v2945_v29 = vpop.f32.mrf.mxu3 }
 0xa05   :  { %3138 = vmatpush.msra.mxu1 %v3107_v8  ;;  %v3161_v8 = vld [vmem:[%s7024_s10 + $0x28] sm:$0xff] }
 0xa06   :  { %3130 = vmatpush.msra.mxu0 %v3079_v3  ;;  %v3106_v3 = vld [vmem:[#allocation7 + $0xd8] sm:$0xff] }
 0xa07   :  { %3131 = vmatmul.f32.vlgmr.msra.gmra.mxu0 %v8069_v1  ;;  %3139 = vmatpush.msra.mxu1 %v3106_v3 }
 0xa09   :  { %3140 = vmatpush.msra.mxu1 %v3105_v42 }
 0xa0b   :  { %3141 = vmatpush.msra.mxu1 %v3104_v24 }
 0xa44   :  { %v2757_v49 = vpop.f32.mrf.mxu0  ;;  %v2777_v13 = vpop.f32.mrf.mxu1 }
 0xa45   :  { %v2800_v23 = vadd.f32 %v2757_v49, %v2737_v50  ;;  %v2820_v43 = vadd.f32 %v2777_v13, %v2738_v31  ;;  %v3103_v31 = vld [vmem:[#allocation7 + $0xc0] sm:$0xff]  ;;  %v3102_v13 = vld [vmem:[#allocation7 + $0xb8] sm:$0xff] }
 0xa46   :  { %3142 = vmatpush.msra.mxu1 %v3103_v31  ;;  %v3158_v31 = vld [vmem:[%s7024_s10 + $0x10] sm:$0xff] }
 0xa47   :  { %v3258_v12 = vmul.f32 -1.442695, %v2800_v23  ;;  %v3259_v18 = vmul.f32 -1.442695, %v2820_v43  ;;  %v3101_v43 = vld [vmem:[#allocation7 + $0xb0] sm:$0xff] }
 0xa48   :  { %3143 = vmatpush.msra.mxu1 %v3102_v13  ;;  %v3274_v13 = vld [vmem:[%s7023_s9] ss:$0 sm:$0xff] }
 0xa49   :  { %3416 = vpow2.f32 %v3258_v12 }
 0xa4a   :  { %3418 = vpow2.f32 %v3259_v18  ;;  %3144 = vmatpush.msra.mxu1 %v3101_v43 }
 0xa4b   :  { %v2797_v15 = vpop.f32.mrf.mxu2 }
 0xa4c   :  { %v2840_v45 = vadd.f32 %v6939_v6, %v2797_v15  ;;  %v6949_v21 = vpop.f32.mrf.mxu1  ;;  %v2885_v34 = vpop.f32.mrf.mxu0 }
 0xa4d   :  { %v2946_v54 = vadd.f32 %v2945_v29, %v2885_v34 }
 0xa4f   :  { %v3417_v1 = vpop.eup %3416  ;;  %v2969_v23 = vadd.f32 %v2946_v54, %v8083_v46  ;;  %v3171_v46 = vld [vmem:[%s7024_s10 + $0x78] sm:$0xff]  ;;  %v3160_v54 = vld [vmem:[%s7024_s10 + $0x20] sm:$0xff] }
 0xa50   :  { %v3419_v62 = vpop.eup %3418  ;;  %v2804_v58 = vadd.f32 1.0, %v3417_v1  ;;  %v3100_v1 = vld [vmem:[#allocation7 + $0xa8] sm:$0xff]  ;;  %3176 = vmatpush.msra.mxu2 %v3171_v46 }
 0xa51   :  { %v2824_v37 = vadd.f32 1.0, %v3419_v62  ;;  %3145 = vmatpush.msra.mxu1 %v3100_v1  ;;  %v3099_v62 = vld [vmem:[#allocation7 + $0xa0] sm:$0xff] }
 0xa52   :  { %3420 = vrcp.f32 %v2804_v58  ;;  %v2816_v59 = vand.u32 2147483648, %v2804_v58  ;;  %v2814_v20 = vand.u32 2147483647, %v2804_v58  ;;  %vm2810_vm1 = vweird.f32 %v2804_v58 }
 0xa53   :  { %3422 = vrcp.f32 %v2824_v37  ;;  %v2836_v2 = vand.u32 2147483648, %v2824_v37  ;;  %vm2830_vm5 = vweird.f32 %v2824_v37  ;;  %v2834_v33 = vand.u32 2147483647, %v2824_v37  ;;  %v2925_v17 = vpop.f32.mrf.mxu2  ;;  %3146 = vmatpush.msra.mxu1 %v3099_v62 }
 0xa54   :  { %v2817_v60 = vor.u32 1.1754944e-38, %v2816_v59  ;;  %vm2815_vm3 = vcmp.eq.f32.partialorder %v2814_v20, 8.507059e+37 }
 0xa55   :  { %v2837_v51 = vor.u32 1.1754944e-38, %v2836_v2  ;;  %vm2835_vm7 = vcmp.eq.f32.partialorder %v2834_v33, 8.507059e+37  ;;  %v3164_v33 = vld [vmem:[%s7024_s10 + $0x40] sm:$0xff] }
 0xa58   :  { %v3421_v25 = vpop.eup %3420 }
 0xa59   :  { %v3423_v63 = vpop.eup %3422  ;;  %v2806_v10 = vmul.f32 %v3421_v25, %v2804_v58  ;;  %vm2811_vm0 = vweird.f32 %v3421_v25  ;;  %v3098_v58 = vld [vmem:[#allocation7 + $0x98] sm:$0xff] }
 0xa5a   :  { %v2826_v14 = vmul.f32 %v3423_v63, %v2824_v37  ;;  %vm2812_vm2 = vmor %vm2810_vm1, %vm2811_vm0  ;;  %vm2831_vm4 = vweird.f32 %v3423_v63  ;;  %3147 = vmatpush.msra.mxu1 %v3098_v58 }
 0xa5b   :  { %v2807_v5 = vsub.f32 1.0, %v2806_v10  ;;  %vm2832_vm6 = vmor %vm2830_vm5, %vm2831_vm4  ;;  %v3096_v10 = vld [vmem:[#allocation7 + $0x88] sm:$0xff] }
 0xa5c   :  { %v2827_v38 = vsub.f32 1.0, %v2826_v14  ;;  %v3170_v14 = vld [vmem:[%s7024_s10 + $0x70] sm:$0xff] }
 0xa5d   :  { %v2808_v41 = vmul.f32 %v3421_v25, %v2807_v5  ;;  %v3095_v5 = vld [vmem:[#allocation7 + $0x80] sm:$0xff]  ;;  %3177 = vmatpush.msra.mxu2 %v3170_v14 }
 0xa5e   :  { %v2828_v9 = vmul.f32 %v3423_v63, %v2827_v38 }
 0xa5f   :  { %v2809_v27 = vadd.f32 %v3421_v25, %v2808_v41  ;;  %v3168_v41 = vld [vmem:[%s7024_s10 + $0x60] sm:$0xff]  ;;  %3178 = vmatpush.msra.mxu2 %v3169_v48 }
 0xa60   :  { %v2829_v32 = vadd.f32 %v3423_v63, %v2828_v9  ;;  %v3167_v9 = vld [vmem:[%s7024_s10 + $0x58] sm:$0xff] }
 0xa61   :  { %v2813_v52 = vsel %vm2812_vm2, %v3421_v25, %v2809_v27  ;;  %v3097_v25 = vld [vmem:[#allocation7 + $0x90] sm:$0xff]  ;;  %3179 = vmatpush.msra.mxu2 %v3168_v41 }
 0xa62   :  { %v2818_v28 = vsel %vm2815_vm3, %v2817_v60, %v2813_v52  ;;  %v2833_v19 = vsel %vm2832_vm6, %v3423_v63, %v2829_v32  ;;  %3148 = vmatpush.msra.mxu1 %v3097_v25 }
 0xa63   :  { %v2841_v30 = vmul.f32 %v2840_v45, %v2818_v28  ;;  %v2838_v7 = vsel %vm2835_vm7, %v2837_v51, %v2833_v19  ;;  %3180 = vmatpush.msra.mxu2 %v3167_v9  ;;  %v3165_v45 = vld [vmem:[%s7024_s10 + $0x48] sm:$0xff] }
 0xa64   :  { %v2844_v40 = vsub.f32 1.0, %v2838_v7  ;;  %v2846_v11 = vmul.f32 %v2838_v7, %v6876_v61  ;;  %v2926_v61 = vadd.f32 %v2925_v17, %v2865_v53  ;;  %3149 = vmatpush.msra.mxu1 %v3096_v10  ;;  %v2965_v27 = vpop.f32.mrf.mxu0  ;;  %v3163_v7 = vld [vmem:[%s7024_s10 + $0x38] sm:$0xff] }
 0xa65   :  { %v2842_v0 = vadd.f32 %v2841_v30, %v2739_v44  ;;  %3181 = vmatpush.msra.mxu2 %v3166_v47  ;;  %v2966_v30 = vadd.f32 %v2965_v27, %v6949_v21 }
 0xa66   :  { %v2968_v16 = vadd.f32 %v2926_v61, %v8082_v55  ;;  %3150 = vmatpush.msra.mxu1 %v3095_v5 }
 0xa67   :  { %3424 = vtanh.f32 %v2842_v0  ;;  %3182 = vmatpush.msra.mxu2 %v3165_v45 }
 0xa69   :  { %3183 = vmatpush.msra.mxu2 %v3164_v33 }
 0xa6b   :  { %3184 = vmatpush.msra.mxu2 %v3163_v7 }
 0xa6d   :  { %v3425_v39 = vpop.eup %3424  ;;  %3185 = vmatpush.msra.mxu2 %v3162_v26 }
 0xa6e   :  { %v2845_v56 = vmul.f32 %v3425_v39, %v2844_v40 }
 0xa6f   :  { %3186 = vmatpush.msra.mxu2 %v3161_v8 }
 0xa70   :  { %v6944_v4 = vadd.f32 %v2846_v11, %v2845_v56  ;;  %v2970_v11 = vadd.f32 %v2966_v30, %v5573_v36 }
 0xa71   :  { %3187 = vmatpush.msra.mxu2 %v3160_v54 }
 0xa72   :  { %2987 = vmatmul.f32.vlgmr.msrb.gmra.mxu1 %v6944_v4  ;;  %3007 = vmatmul.f32.vlgmr.msrb.gmra.mxu2 %v6944_v4 }
 0xa73   :  { %3027 = vmatmul.f32.vlgmr.msrb.gmra.mxu3 %v6944_v4 }
 0xaef   :  { %v2988_v22 = vpop.f32.mrf.mxu1 }
 0xaf0   :  { %v3031_v50 = vadd.f32 %v2988_v22, %v2968_v16 }
 0xaf2   :  { %v3260_v49 = vmul.f32 -1.442695, %v3031_v50  ;;  %v3159_v50 = vld [vmem:[%s7024_s10 + $0x18] sm:$0xff] }
 0xaf3   :  { %3188 = vmatpush.msra.mxu2 %v3159_v50 }
 0xaf4   :  { %3426 = vpow2.f32 %v3260_v49  ;;  %v3156_v49 = vld [vmem:[%s7024_s10] sm:$0xff] }
 0xaf5   :  { %v3008_v12 = vpop.f32.mrf.mxu2  ;;  %3189 = vmatpush.msra.mxu2 %v3158_v31 }
 0xaf6   :  { %v3051_v18 = vadd.f32 %v3008_v12, %v2969_v23  ;;  %v3028_v2 = vpop.f32.mrf.mxu3  ;;  %v3132_v23 = vpop.f32.mrf.mxu0 }
 0xaf7   :  { %v3071_v56 = vadd.f32 %v6939_v6, %v3028_v2  ;;  %v3133_v43 = vadd.f32 %v3274_v13, %v3132_v23 }
 0xaf8   :  { %v3261_v55 = vmul.f32 -1.442695, %v3051_v18 }
 0xafa   :  { %v3427_v37 = vpop.eup %3426  ;;  %3428 = vpow2.f32 %v3261_v55  ;;  %v3275_v55 = vld [vmem:[%s7025_s11] ss:$0 sm:$0xff] }
 0xafb   :  { %v3035_v63 = vadd.f32 1.0, %v3427_v37 }
 0xafd   :  { %3430 = vrcp.f32 %v3035_v63  ;;  %v3047_v52 = vand.u32 2147483648, %v3035_v63  ;;  %v3045_v32 = vand.u32 2147483647, %v3035_v63  ;;  %vm3041_vm9 = vweird.f32 %v3035_v63 }
 0xaff   :  { %v3048_v51 = vor.u32 1.1754944e-38, %v3047_v52  ;;  %vm3046_vm11 = vcmp.eq.f32.partialorder %v3045_v32, 8.507059e+37 }
 0xb00   :  { %v3429_v38 = vpop.eup %3428 }
 0xb01   :  { %v3055_v59 = vadd.f32 1.0, %v3429_v38 }
 0xb03   :  { %v3431_v20 = vpop.eup %3430  ;;  %3432 = vrcp.f32 %v3055_v59  ;;  %v3067_v35 = vand.u32 2147483648, %v3055_v59  ;;  %v3065_v17 = vand.u32 2147483647, %v3055_v59  ;;  %vm3061_vm13 = vweird.f32 %v3055_v59 }
 0xb04   :  { %v3037_v15 = vmul.f32 %v3431_v20, %v3035_v63  ;;  %vm3042_vm8 = vweird.f32 %v3431_v20 }
 0xb05   :  { %vm3043_vm10 = vmor %vm3041_vm9, %vm3042_vm8  ;;  %v3068_v36 = vor.u32 1.1754944e-38, %v3067_v35  ;;  %vm3066_vm15 = vcmp.eq.f32.partialorder %v3065_v17, 8.507059e+37 }
 0xb06   :  { %v3038_v60 = vsub.f32 1.0, %v3037_v15 }
 0xb08   :  { %v3039_v28 = vmul.f32 %v3431_v20, %v3038_v60 }
 0xb09   :  { %v3433_v44 = vpop.eup %3432 }
 0xb0a   :  { %v3057_v0 = vmul.f32 %v3433_v44, %v3055_v59  ;;  %v3040_v19 = vadd.f32 %v3431_v20, %v3039_v28  ;;  %vm3062_vm12 = vweird.f32 %v3433_v44 }
 0xb0b   :  { %vm3063_vm14 = vmor %vm3061_vm13, %vm3062_vm12 }
 0xb0c   :  { %v3058_v40 = vsub.f32 1.0, %v3057_v0  ;;  %v3044_v39 = vsel %vm3043_vm10, %v3431_v20, %v3040_v19 }
 0xb0d   :  { %v3049_v57 = vsel %vm3046_vm11, %v3048_v51, %v3044_v39 }
 0xb0e   :  { %v3059_v53 = vmul.f32 %v3433_v44, %v3058_v40  ;;  %v3072_v21 = vmul.f32 %v3071_v56, %v3049_v57 }
 0xb10   :  { %v3060_v61 = vadd.f32 %v3433_v44, %v3059_v53  ;;  %v3073_v6 = vadd.f32 %v3072_v21, %v2970_v11 }
 0xb12   :  { %v3064_v3 = vsel %vm3063_vm14, %v3433_v44, %v3060_v61  ;;  %3434 = vtanh.f32 %v3073_v6 }
 0xb13   :  { %v3069_v42 = vsel %vm3066_vm15, %v3068_v36, %v3064_v3 }
 0xb14   :  { %v3075_v34 = vsub.f32 1.0, %v3069_v42  ;;  %v3077_v29 = vmul.f32 %v3069_v42, %v6944_v4  ;;  %v3157_v4 = vld [vmem:[%s7024_s10 + $0x8] sm:$0xff] }
 0xb15   :  { %3190 = vmatpush.msra.mxu2 %v3157_v4 }
 0xb17   :  { %3191 = vmatpush.msra.mxu2 %v3156_v49 }
 0xb18   :  { %v3435_v16 = vpop.eup %3434 }
 0xb19   :  { %v3076_v24 = vmul.f32 %v3435_v16, %v3075_v34 }
 0xb1b   :  { %v3078_v22 = vadd.f32 %v3077_v29, %v3076_v24 }
 0xb1d   :  { %3151 = vmatmul.f32.vlgmr.msra.gmra.mxu1 %v3078_v22 }
 0xb9a   :  { %v3152_v12 = vpop.f32.mrf.mxu1 }
 0xb9b   :  { %v3153_v18 = vadd.f32 %v3152_v12, %v3133_v43 }
 0xb9d   :  { %3436 = vtanh.f32 %v3153_v18 }
 0xba3   :  { %v3437_v1 = vpop.eup %3436 }
 0xba4   :  { %3192 = vmatmul.f32.vlgmr.msra.gmra.mxu2 %v3437_v1 }
 0xc27   :  { %v3193_v62 = vpop.f32.mrf.mxu2 }
 0xc28   :  { %v3194_v58 = vadd.f32 %v3275_v55, %v3193_v62 }
 0xc2a   :  { %v3262_v37 = vmul.f32 -1.442695, %v3194_v58 }
 0xc2c   :  { %3438 = vpow2.f32 %v3262_v37 }
 0xc32   :  { %v3439_v25 = vpop.eup %3438 }
 0xc33   :  { %v3199_v63 = vadd.f32 1.0, %v3439_v25 }
 0xc35   :  { %3440 = vrcp.f32 %v3199_v63  ;;  %v3211_v5 = vand.u32 2147483648, %v3199_v63  ;;  %v3209_v38 = vand.u32 2147483647, %v3199_v63  ;;  %vm3205_vm1 = vweird.f32 %v3199_v63 }
 0xc37   :  { %v3212_v41 = vor.u32 1.1754944e-38, %v3211_v5  ;;  %vm3210_vm3 = vcmp.eq.f32.partialorder %v3209_v38, 8.507059e+37 }
 0xc3b   :  { %v3441_v10 = vpop.eup %3440 }
 0xc3c   :  { %v3201_v46 = vmul.f32 %v3441_v10, %v3199_v63  ;;  %vm3206_vm0 = vweird.f32 %v3441_v10 }
 0xc3d   :  { %vm3207_vm2 = vmor %vm3205_vm1, %vm3206_vm0 }
 0xc3e   :  { %v3202_v14 = vsub.f32 1.0, %v3201_v46 }
 0xc40   :  { %v3203_v48 = vmul.f32 %v3441_v10, %v3202_v14 }
 0xc42   :  { %v3204_v59 = vadd.f32 %v3441_v10, %v3203_v48 }
 0xc44   :  { %v3208_v20 = vsel %vm3207_vm2, %v3441_v10, %v3204_v59 }
 0xc45   :  { %v3213_v9 = vsel %vm3210_vm3, %v3212_v41, %v3208_v20 }
 0xc46   :  { %3215 = vst [vmem:[%s7026_s12] sm:$0x3] %v3213_v9 }
 0xc47   :  { %3220 = vsyncpa [#allocation3], 1 }
 0xc48   :  { %3221 = vsyncpa [#allocation5], 1 }
 0xc49   :  { %3222 = vsyncpa [#allocation8], 1 }

</bundles_post_ra>
